<compile_context>
chip_gen: v6e
topology: v6e:2x2x1
jax: 0.10.0
libtpu: 0.0.40
codegen_flags: <defaults>
</compile_context>

<pallas_src>
import functools

import jax
import jax.numpy as jnp
from jax import lax
from jax.experimental import pallas as pl
from jax.experimental.pallas import tpu as pltpu

EPS = 1e-5  # PyTorch InstanceNorm3d default eps


def _round_up(x, m):
    return (x + m - 1) // m * m


def _vmem_bytes(shape, dtype):
    """Rough VMEM footprint of one buffer: minor two dims padded to (8, 128)."""
    itemsize = jnp.dtype(dtype).itemsize
    if len(shape) == 0:
        return itemsize
    if len(shape) == 1:
        return _round_up(shape[0], 128) * 8 * itemsize
    major = 1
    for s in shape[:-2]:
        major *= s
    return major * _round_up(shape[-2], 8) * _round_up(shape[-1], 128) * itemsize


def _vmem_capacity_bytes():
    try:
        return int(pltpu.get_tpu_info().vmem_capacity_bytes)
    except Exception:
        return 64 * 1024 * 1024  # v7x-safe fallback


def _pick_d_tile(D, H, W, Cin, Cout, Cout_pad, K_pad, mm_dtype, store_dtype,
                 in_dtype, budget_bytes):
    """Largest divisor of D whose per-grid-step VMEM footprint fits the budget."""
    # TODO(synk): support a remainder D tile (ceil-div grid + masked stats) for awkward D.
    best = 1
    for td in range(1, D + 1):
        if D % td:
            continue
        rows = td * H * W
        est = (
            2 * _vmem_bytes((td, H, W * Cin), in_dtype)               # center tile (dbl-buf)
            + 4 * _vmem_bytes((1, H, W * Cin), in_dtype)              # two D-halo rows
            + 2 * _vmem_bytes((K_pad, Cout_pad), mm_dtype)            # weights
            + 2 * _vmem_bytes((W * td, H, Cout), store_dtype)         # conv-out block (dbl-buf)
            + _vmem_bytes((td + 2, H + 2, (W + 2) * Cin), mm_dtype)   # padded-tile scratch
            + _vmem_bytes((rows, K_pad), mm_dtype)                    # im2col patch scratch
            + _vmem_bytes((rows, Cout_pad), jnp.float32)              # f32 matmul result temp
        )
        est = int(est * 1.2) + (1 << 20)
        if est <= budget_bytes:
            best = td
    return best


def _pick_row_tile(r_total, target_rows=4096):
    """Largest divisor of r_total that is a multiple of 8 and <= target_rows (pass-2 tiling)."""
    if r_total <= target_rows:
        return r_total
    best = 0
    for r in range(8, target_rows + 1, 8):
        if r_total % r == 0:
            best = r
    return best if best else r_total


@functools.partial(jax.jit,
                   static_argnames=("d_tile", "matmul_dtype", "store_dtype"))
def short_conv(x_ncdhw, weight_oidhw, gamma, beta, *, d_tile=None,
               matmul_dtype=jnp.bfloat16, store_dtype=jnp.bfloat16):
    """ShortConv forward. x: (N, Cin, D, H, W), weight: (Cout, Cin, 3, 3, 3)."""
    N, Cin, D, H, W = x_ncdhw.shape
    Cout = weight_oidhw.shape[0]
    in_dtype = x_ncdhw.dtype

    K = 27 * Cin
    K_pad = _round_up(K, 128)
    Cout_pad = _round_up(Cout, 128)

    # generation-aware VMEM budgeting (v7x: 64 MiB/TC, v5e/v6e: 128 MiB)
    vmem_cap = _vmem_capacity_bytes()
    vmem_limit = min(int(vmem_cap * 0.85), vmem_cap - (8 << 20))
    tile_budget = int(vmem_cap * 0.40)

    if d_tile is None:
        TD = _pick_d_tile(D, H, W, Cin, Cout, Cout_pad, K_pad, matmul_dtype,
                          store_dtype, in_dtype, tile_budget)
    else:
        if D % d_tile:
            raise ValueError(f"d_tile={d_tile} must divide D={D}")
        TD = d_tile
    nD = D // TD
    TDH = TD * H
    rows = TD * H * W
    LCin = W * Cin

    # ---- wrapper glue (layout only) ---------------------------------------------------------
    # TODO(synk): accept channels-last (NDHWC) input end-to-end to remove this one transpose
    # over the (small, Cin-sized) input tensor.
    x = jnp.transpose(x_ncdhw, (0, 2, 3, 4, 1)).reshape(N, D, H, W * Cin)
    # weight K ordering (kd, kh, kw, ci) matches the in-kernel patch build.
    w = jnp.transpose(weight_oidhw, (2, 3, 4, 1, 0)).reshape(K, Cout)
    w = jnp.pad(w, ((0, K_pad - K), (0, Cout_pad - Cout))).astype(matmul_dtype)
    gamma_p = jnp.pad(gamma.astype(jnp.float32), (0, Cout_pad - Cout)).reshape(1, Cout_pad)
    beta_p = jnp.pad(beta.astype(jnp.float32), (0, Cout_pad - Cout)).reshape(1, Cout_pad)

    # ---------------- pass 1: conv (single im2col matmul) + per-channel stats ----------------
    def conv_stats_kernel(xc_ref, xu_ref, xd_ref, w_ref, g_ref, b_ref,
                          conv_ref, stats_ref,
                          xpad_scr, patch_scr, mean_scr, m2_scr):
        t = pl.program_id(1)

        @pl.when(t == 0)
        def _init():
            # Zero once per instance: establishes the D/H/W zero-padding border of the scratch
            # and resets the running InstanceNorm statistics.
            xpad_scr[...] = jnp.zeros_like(xpad_scr)
            mean_scr[...] = jnp.zeros_like(mean_scr)
            m2_scr[...] = jnp.zeros_like(m2_scr)
            if K_pad > K:  # dead im2col columns meet zero weight rows; keep them NaN-free
                patch_scr[:, K:] = jnp.zeros((rows, K_pad - K), patch_scr.dtype)

        # Interior of the zero-padded tile.  The merged (W+2)*Cin lane axis keeps the scratch
        # lane-dense; the +1 sublane / +Cin lane offsets only cost rotates on the small
        # Cin-sized input, which is negligible.
        xpad_scr[1:TD + 1, 1:H + 1, Cin:Cin + LCin] = xc_ref[0].astype(xpad_scr.dtype)

        # D halo rows; rows beyond the volume stay / are reset to zero.
        @pl.when(t > 0)
        def _():
            xpad_scr[0:1, 1:H + 1, Cin:Cin + LCin] = xu_ref[0].astype(xpad_scr.dtype)

        @pl.when(t < nD - 1)
        def _():
            xpad_scr[TD + 1:TD + 2, 1:H + 1, Cin:Cin + LCin] = xd_ref[0].astype(xpad_scr.dtype)

        if nD > 1:
            @pl.when(t == nD - 1)
            def _():
                xpad_scr[TD + 1:TD + 2, 1:H + 1, Cin:Cin + LCin] = jnp.zeros(
                    (1, H, LCin), xpad_scr.dtype)

        # im2col with rows ordered (w, d, h): per (w, kd, kh) one wide (TD*H, 3*Cin) copy from
        # a contiguous lane window -> 9 wide copies per w instead of 27 narrow column writes.
        for w_ in range(W):
            r0 = w_ * TDH
            lane0 = w_ * Cin
            for kd in range(3):
                for kh in range(3):
                    c0 = (kd * 3 + kh) * 3 * Cin
                    blk = xpad_scr[kd:kd + TD, kh:kh + H, lane0:lane0 + 3 * Cin]
                    patch_scr[r0:r0 + TDH, c0:c0 + 3 * Cin] = blk.reshape(TDH, 3 * Cin)

        # One lane-dense MXU matmul, f32 accumulation.
        acc = jnp.dot(patch_scr[...], w_ref[...], preferred_element_type=jnp.float32)

        # Conv intermediate: real Cout only, store_dtype (bf16 by default) -> HBM traffic is
        # the true tensor size, not the 128-padded one.
        conv_ref[...] = acc.reshape(1, W, TD, H, Cout_pad)[..., :Cout].astype(conv_ref.dtype)

        # InstanceNorm statistics: per-tile mean/M2 + Chan combine across D tiles.
        tile_cnt = float(rows)
        tile_mean = jnp.sum(acc, axis=0, keepdims=True) * (1.0 / tile_cnt)
        dcen = acc - tile_mean
        tile_m2 = jnp.sum(dcen * dcen, axis=0, keepdims=True)

        t_f = t.astype(jnp.float32)
        n_a = t_f * tile_cnt
        n_ab = n_a + tile_cnt
        delta = tile_mean - mean_scr[...]
        mean_scr[...] = mean_scr[...] + delta * (tile_cnt / n_ab)
        m2_scr[...] = m2_scr[...] + tile_m2 + (delta * delta) * (n_a * tile_cnt / n_ab)

        # NOTE: the stats output block index is constant over the t axis ("arbitrary"); the
        # block stays resident in VMEM and is only written back after the last tile writes it.
        # Do not mark t parallel or change this out_spec without revisiting this.
        @pl.when(t == nD - 1)
        def _finalize():
            var = m2_scr[...] * (1.0 / float(D * H * W))
            inv = lax.rsqrt(var + EPS)              # EUP slot, effectively free
            scale = inv * g_ref[...]
            shift = b_ref[...] - mean_scr[...] * scale
            stats_ref[0:1, 0:1, :] = scale[:, :Cout][None]
            stats_ref[0:1, 1:2, :] = shift[:, :Cout][None]

    conv_out, stats = pl.pallas_call(
        conv_stats_kernel,
        out_shape=(
            jax.ShapeDtypeStruct((N, W, D, H, Cout), store_dtype),
            jax.ShapeDtypeStruct((N, 2, Cout), jnp.float32),
        ),
        grid_spec=pltpu.PrefetchScalarGridSpec(
            num_scalar_prefetch=0,
            grid=(N, nD),
            in_specs=[
                # center D-tile, channels merged into lanes
                pl.BlockSpec((1, TD, H, W * Cin), lambda n, t: (n, t, 0, 0)),
                # one-row halo above (clamped; stays zero at t == 0 via the scratch init)
                pl.BlockSpec((1, 1, H, W * Cin),
                             lambda n, t: (n, jnp.maximum(t * TD - 1, 0), 0, 0)),
                # one-row halo below (clamped; zeroed in-kernel at t == nD-1)
                pl.BlockSpec((1, 1, H, W * Cin),
                             lambda n, t: (n, jnp.minimum(t * TD + TD, D - 1), 0, 0)),
                pl.BlockSpec((K_pad, Cout_pad), lambda n, t: (0, 0)),
                pl.BlockSpec((1, Cout_pad), lambda n, t: (0, 0)),
                pl.BlockSpec((1, Cout_pad), lambda n, t: (0, 0)),
            ],
            out_specs=[
                pl.BlockSpec((1, W, TD, H, Cout), lambda n, t: (n, 0, t, 0, 0)),
                pl.BlockSpec((1, 2, Cout), lambda n, t: (n, 0, 0)),
            ],
            scratch_shapes=[
                pltpu.VMEM((TD + 2, H + 2, (W + 2) * Cin), matmul_dtype),  # padded tile
                pltpu.VMEM((rows, K_pad), matmul_dtype),                   # im2col patch
                pltpu.VMEM((1, Cout_pad), jnp.float32),                    # running mean
                pltpu.VMEM((1, Cout_pad), jnp.float32),                    # running M2
            ],
        ),
        compiler_params=pltpu.CompilerParams(
            dimension_semantics=("parallel", "arbitrary"),
            vmem_limit_bytes=vmem_limit,
        ),
        # TODO(synk): on v7x with N == 1, split D across the two TensorCores with per-core
        # partial (mean, M2) and a tiny combine step.
    )(x, x, x, w, gamma_p, beta_p)

    # ---------------- pass 2: streaming normalize + affine + ReLU ----------------------------
    r_total = W * D * H
    r_tile = _pick_row_tile(r_total)
    conv_flat = conv_out.reshape(N, r_total, Cout)   # free (contiguous) reshape

    def norm_relu_kernel(conv_ref, stats_ref, o_ref):
        st = stats_ref[...]                   # (1, 2, Cout) f32
        scale = st[0, 0:1, :]                 # (1, Cout)
        shift = st[0, 1:2, :]
        y = conv_ref[0].astype(jnp.float32) * scale + shift
        o_ref[...] = jnp.maximum(y, 0.0).astype(o_ref.dtype)[None]

    out_flat = pl.pallas_call(
        norm_relu_kernel,
        out_shape=jax.ShapeDtypeStruct((N, r_total, Cout), in_dtype),
        grid_spec=pltpu.PrefetchScalarGridSpec(
            num_scalar_prefetch=0,
            grid=(N, r_total // r_tile),
            in_specs=[
                pl.BlockSpec((1, r_tile, Cout), lambda n, r: (n, r, 0)),
                pl.BlockSpec((1, 2, Cout), lambda n, r: (n, 0, 0)),
            ],
            out_specs=pl.BlockSpec((1, r_tile, Cout), lambda n, r: (n, r, 0)),
        ),
        compiler_params=pltpu.CompilerParams(
            dimension_semantics=("parallel", "parallel"),
            vmem_limit_bytes=vmem_limit,
        ),
    )(conv_flat, stats)

    # Back to PyTorch NCDHW: the reshape is free, the transpose is one HBM pass over the
    # real-Cout output (not a 128-padded one).
    # TODO(synk): emit (N, Cout, D, H, W) directly from pass 2 via an in-kernel channel
    # transpose to remove this last wrapper transpose.
    out = out_flat.reshape(N, W, D, H, Cout)
    return jnp.transpose(out, (0, 4, 2, 3, 1))


def short_conv_reference(x_ncdhw, weight_oidhw, gamma, beta):
    """Pure-JAX reference matching PyTorch semantics (validation only)."""
    conv = lax.conv_general_dilated(
        x_ncdhw, weight_oidhw,
        window_strides=(1, 1, 1),
        padding=((1, 1), (1, 1), (1, 1)),
        dimension_numbers=("NCDHW", "OIDHW", "NCDHW"),
    )
    mean = jnp.mean(conv, axis=(2, 3, 4), keepdims=True)
    var = jnp.mean((conv - mean) ** 2, axis=(2, 3, 4), keepdims=True)
    y = (conv - mean) / jnp.sqrt(var + EPS)
    y = y * gamma[None, :, None, None, None] + beta[None, :, None, None, None]
    return jnp.maximum(y, 0.0)


if __name__ == "__main__":
    key = jax.random.PRNGKey(0)
    k_x, k_w, k_g, k_b = jax.random.split(key, 4)

    N, C_IN, C_OUT = 2, 4, 8
    D = H = W = 8

    x = jax.random.normal(k_x, (N, C_IN, D, H, W), dtype=jnp.float32)
    weight = 0.1 * jax.random.normal(k_w, (C_OUT, C_IN, 3, 3, 3), dtype=jnp.float32)
    gamma = 1.0 + 0.1 * jax.random.normal(k_g, (C_OUT,), dtype=jnp.float32)
    beta = 0.1 * jax.random.normal(k_b, (C_OUT,), dtype=jnp.float32)

    ref = jax.block_until_ready(short_conv_reference(x, weight, gamma, beta))

    # default: bf16 MXU operands + bf16 conv intermediate, auto D tile
    out = jax.block_until_ready(short_conv(x, weight, gamma, beta))
    assert out.shape == (N, C_OUT, D, H, W)
    assert jnp.allclose(out, ref, rtol=5e-2, atol=5e-2), "bf16 default mismatch"

    # f32 everywhere, D tiled into 4 tiles: exercises halo exchange + Chan-combined stats
    out32 = jax.block_until_ready(
        short_conv(x, weight, gamma, beta, d_tile=2,
                   matmul_dtype=jnp.float32, store_dtype=jnp.float32))
    assert jnp.allclose(out32, ref, rtol=1e-3, atol=1e-3), "f32 (d_tile=2) mismatch"

    # bf16 with a different explicit D tiling
    out_bf = jax.block_until_ready(short_conv(x, weight, gamma, beta, d_tile=4))
    assert jnp.allclose(out_bf, ref, rtol=5e-2, atol=5e-2), "bf16 (d_tile=4) mismatch"

    print("KERNEL_OK")
</pallas_src>

<mosaic_0001>
module attributes {stable_mosaic.version = 11 : i64} {
  func.func @norm_relu_kernel(%arg0: i32, %arg1: i32, %arg2: memref<1x512x8xbf16, #tpu.memory_space<vmem>>, %arg3: memref<1x2x8xf32, #tpu.memory_space<vmem>>, %arg4: memref<1x512x8xf32, #tpu.memory_space<vmem>>) attributes {dimension_semantics = [#tpu.dimension_semantics<parallel>, #tpu.dimension_semantics<parallel>], iteration_bounds = array<i64: 2, 1>, scalar_prefetch = 0 : i64, scratch_operands = 0 : i64, tpu.core_type = #tpu.core_type<tc>, window_params = [{transform_indices = @transform_0, window_bounds = array<i64: 1, 512, 8>}, {transform_indices = @transform_1, window_bounds = array<i64: 1, 2, 8>}, {transform_indices = @transform_2, window_bounds = array<i64: 1, 512, 8>}]} {
    %c0 = arith.constant 0 : index
    %c0_0 = arith.constant 0 : index
    %c0_1 = arith.constant 0 : index
    %0 = vector.load %arg3[%c0, %c0_0, %c0_1] : memref<1x2x8xf32, #tpu.memory_space<vmem>>, vector<1x2x8xf32>
    %1 = vector.extract_strided_slice %0 {offsets = [0, 0, 0], sizes = [1, 1, 8], strides = [1, 1, 1]} : vector<1x2x8xf32> to vector<1x1x8xf32>
    %2 = vector.shape_cast %1 : vector<1x1x8xf32> to vector<1x8xf32>
    %3 = vector.extract_strided_slice %0 {offsets = [0, 1, 0], sizes = [1, 1, 8], strides = [1, 1, 1]} : vector<1x2x8xf32> to vector<1x1x8xf32>
    %4 = vector.shape_cast %3 : vector<1x1x8xf32> to vector<1x8xf32>
    %c0_2 = arith.constant 0 : index
    %c0_3 = arith.constant 0 : index
    %c0_4 = arith.constant 0 : index
    %5 = vector.load %arg2[%c0_2, %c0_3, %c0_4] : memref<1x512x8xbf16, #tpu.memory_space<vmem>>, vector<1x512x8xbf16>
    %6 = vector.shape_cast %5 : vector<1x512x8xbf16> to vector<512x8xbf16>
    %7 = arith.extf %6 : vector<512x8xbf16> to vector<512x8xf32>
    %8 = vector.broadcast %2 : vector<1x8xf32> to vector<512x8xf32>
    %9 = arith.mulf %7, %8 : vector<512x8xf32>
    %10 = vector.broadcast %4 : vector<1x8xf32> to vector<512x8xf32>
    %11 = arith.addf %9, %10 : vector<512x8xf32>
    %cst = arith.constant 0.000000e+00 : f32
    %12 = vector.broadcast %cst : f32 to vector<512x8xf32>
    %13 = arith.maximumf %11, %12 : vector<512x8xf32>
    %14 = vector.shape_cast %13 : vector<512x8xf32> to vector<1x512x8xf32>
    %c0_5 = arith.constant 0 : index
    %c0_6 = arith.constant 0 : index
    %c0_7 = arith.constant 0 : index
    %15 = vector.load %arg4[%c0_5, %c0_6, %c0_7] : memref<1x512x8xf32, #tpu.memory_space<vmem>>, vector<1x512x8xf32>
    tpu.vector_store %arg4[%c0_5, %c0_6, %c0_7], %14 {strides = array<i32>} : memref<1x512x8xf32, #tpu.memory_space<vmem>>, vector<1x512x8xf32>,
    return
  }
  func.func @transform_0(%arg0: i32, %arg1: i32) -> (i32, i32, i32) {
    %c0_i32 = arith.constant 0 : i32
    %c0_i32_0 = arith.constant 0 : i32
    return %arg0, %arg1, %c0_i32 : i32, i32, i32
  }
  func.func @transform_1(%arg0: i32, %arg1: i32) -> (i32, i32, i32) {
    %c0_i32 = arith.constant 0 : i32
    %c0_i32_0 = arith.constant 0 : i32
    %c0_i32_1 = arith.constant 0 : i32
    return %arg0, %c0_i32, %c0_i32_0 : i32, i32, i32
  }
  func.func @transform_2(%arg0: i32, %arg1: i32) -> (i32, i32, i32) {
    %c0_i32 = arith.constant 0 : i32
    %c0_i32_0 = arith.constant 0 : i32
    return %arg0, %arg1, %c0_i32 : i32, i32, i32
  }
}

module attributes {stable_mosaic.version = 11 : i64} {
  func.func @conv_stats_kernel(%arg0: i32, %arg1: i32, %arg2: memref<1x8x8x32xf32, #tpu.memory_space<vmem>>, %arg3: memref<1x1x8x32xf32, #tpu.memory_space<vmem>>, %arg4: memref<1x1x8x32xf32, #tpu.memory_space<vmem>>, %arg5: memref<128x128xbf16, #tpu.memory_space<vmem>>, %arg6: memref<1x128xf32, #tpu.memory_space<vmem>>, %arg7: memref<1x128xf32, #tpu.memory_space<vmem>>, %arg8: memref<1x8x8x8x8xbf16, #tpu.memory_space<vmem>>, %arg9: memref<1x2x8xf32, #tpu.memory_space<vmem>>, %arg10: memref<10x10x40xbf16, #tpu.memory_space<vmem>>, %arg11: memref<512x128xbf16, #tpu.memory_space<vmem>>, %arg12: memref<1x128xf32, #tpu.memory_space<vmem>>, %arg13: memref<1x128xf32, #tpu.memory_space<vmem>>) attributes {dimension_semantics = [#tpu.dimension_semantics<parallel>, #tpu.dimension_semantics<arbitrary>], iteration_bounds = array<i64: 2, 1>, scalar_prefetch = 0 : i64, scratch_operands = 4 : i64, tpu.core_type = #tpu.core_type<tc>, window_params = [{transform_indices = @transform_0, window_bounds = array<i64: 1, 8, 8, 32>}, {transform_indices = @transform_1, window_bounds = array<i64: 1, 1, 8, 32>}, {transform_indices = @transform_2, window_bounds = array<i64: 1, 1, 8, 32>}, {pipeline_mode = #tpu.pipeline_mode<synchronous>, transform_indices = @transform_3, window_bounds = array<i64: 128, 128>}, {pipeline_mode = #tpu.pipeline_mode<synchronous>, transform_indices = @transform_4, window_bounds = array<i64: 1, 128>}, {pipeline_mode = #tpu.pipeline_mode<synchronous>, transform_indices = @transform_5, window_bounds = array<i64: 1, 128>}, {transform_indices = @transform_6, window_bounds = array<i64: 1, 8, 8, 8, 8>}, {transform_indices = @transform_7, window_bounds = array<i64: 1, 2, 8>}]} {
    %c0_i32 = arith.constant 0 : i32
    %0 = arith.cmpi eq, %arg1, %c0_i32 : i32
    %1 = arith.extui %0 : i1 to i32
    %c0_i32_0 = arith.constant 0 : i32
    %2 = arith.cmpi ne, %1, %c0_i32_0 : i32
    scf.if %2 {
      %cst_377 = arith.constant 0.000000e+00 : bf16
      %268 = vector.broadcast %cst_377 : bf16 to vector<10x10x40xbf16>
      %c0_378 = arith.constant 0 : index
      %c0_379 = arith.constant 0 : index
      %c0_380 = arith.constant 0 : index
      %269 = vector.load %arg10[%c0_378, %c0_379, %c0_380] : memref<10x10x40xbf16, #tpu.memory_space<vmem>>, vector<10x10x40xbf16>
      tpu.vector_store %arg10[%c0_378, %c0_379, %c0_380], %268 {strides = array<i32>} : memref<10x10x40xbf16, #tpu.memory_space<vmem>>, vector<10x10x40xbf16>,
      %cst_381 = arith.constant 0.000000e+00 : f32
      %270 = vector.broadcast %cst_381 : f32 to vector<1x128xf32>
      %c0_382 = arith.constant 0 : index
      %c0_383 = arith.constant 0 : index
      %271 = vector.load %arg12[%c0_382, %c0_383] : memref<1x128xf32, #tpu.memory_space<vmem>>, vector<1x128xf32>
      tpu.vector_store %arg12[%c0_382, %c0_383], %270 {strides = array<i32>} : memref<1x128xf32, #tpu.memory_space<vmem>>, vector<1x128xf32>,
      %cst_384 = arith.constant 0.000000e+00 : f32
      %272 = vector.broadcast %cst_384 : f32 to vector<1x128xf32>
      %c0_385 = arith.constant 0 : index
      %c0_386 = arith.constant 0 : index
      %273 = vector.load %arg13[%c0_385, %c0_386] : memref<1x128xf32, #tpu.memory_space<vmem>>, vector<1x128xf32>
      tpu.vector_store %arg13[%c0_385, %c0_386], %272 {strides = array<i32>} : memref<1x128xf32, #tpu.memory_space<vmem>>, vector<1x128xf32>,
      %cst_387 = arith.constant 0.000000e+00 : bf16
      %274 = vector.broadcast %cst_387 : bf16 to vector<512x20xbf16>
      %c0_388 = arith.constant 0 : index
      %c108 = arith.constant 108 : index
      %275 = vector.load %arg11[%c0_388, %c108] : memref<512x128xbf16, #tpu.memory_space<vmem>>, vector<512x20xbf16>
      tpu.vector_store %arg11[%c0_388, %c108], %274 {strides = array<i32>} : memref<512x128xbf16, #tpu.memory_space<vmem>>, vector<512x20xbf16>,
    } else {
    }
    %c0 = arith.constant 0 : index
    %c0_1 = arith.constant 0 : index
    %c0_2 = arith.constant 0 : index
    %c0_3 = arith.constant 0 : index
    %3 = vector.load %arg2[%c0, %c0_1, %c0_2, %c0_3] : memref<1x8x8x32xf32, #tpu.memory_space<vmem>>, vector<1x8x8x32xf32>
    %4 = vector.shape_cast %3 : vector<1x8x8x32xf32> to vector<8x8x32xf32>
    %5 = arith.truncf %4 : vector<8x8x32xf32> to vector<8x8x32xbf16>
    %c1 = arith.constant 1 : index
    %c1_4 = arith.constant 1 : index
    %c4 = arith.constant 4 : index
    %6 = vector.load %arg10[%c1, %c1_4, %c4] : memref<10x10x40xbf16, #tpu.memory_space<vmem>>, vector<8x8x32xbf16>
    tpu.vector_store %arg10[%c1, %c1_4, %c4], %5 {strides = array<i32>} : memref<10x10x40xbf16, #tpu.memory_space<vmem>>, vector<8x8x32xbf16>,
    %c0_i32_5 = arith.constant 0 : i32
    %7 = arith.cmpi sgt, %arg1, %c0_i32_5 : i32
    %8 = arith.extui %7 : i1 to i32
    %c0_i32_6 = arith.constant 0 : i32
    %9 = arith.cmpi ne, %8, %c0_i32_6 : i32
    scf.if %9 {
      %c0_377 = arith.constant 0 : index
      %c0_378 = arith.constant 0 : index
      %c0_379 = arith.constant 0 : index
      %c0_380 = arith.constant 0 : index
      %268 = vector.load %arg3[%c0_377, %c0_378, %c0_379, %c0_380] : memref<1x1x8x32xf32, #tpu.memory_space<vmem>>, vector<1x1x8x32xf32>
      %269 = vector.shape_cast %268 : vector<1x1x8x32xf32> to vector<1x8x32xf32>
      %270 = arith.truncf %269 : vector<1x8x32xf32> to vector<1x8x32xbf16>
      %c0_381 = arith.constant 0 : index
      %c1_382 = arith.constant 1 : index
      %c4_383 = arith.constant 4 : index
      %271 = vector.load %arg10[%c0_381, %c1_382, %c4_383] : memref<10x10x40xbf16, #tpu.memory_space<vmem>>, vector<1x8x32xbf16>
      tpu.vector_store %arg10[%c0_381, %c1_382, %c4_383], %270 {strides = array<i32>} : memref<10x10x40xbf16, #tpu.memory_space<vmem>>, vector<1x8x32xbf16>,
    } else {
    }
    %c0_i32_7 = arith.constant 0 : i32
    %10 = arith.cmpi slt, %arg1, %c0_i32_7 : i32
    %11 = arith.extui %10 : i1 to i32
    %c0_i32_8 = arith.constant 0 : i32
    %12 = arith.cmpi ne, %11, %c0_i32_8 : i32
    scf.if %12 {
      %c0_377 = arith.constant 0 : index
      %c0_378 = arith.constant 0 : index
      %c0_379 = arith.constant 0 : index
      %c0_380 = arith.constant 0 : index
      %268 = vector.load %arg4[%c0_377, %c0_378, %c0_379, %c0_380] : memref<1x1x8x32xf32, #tpu.memory_space<vmem>>, vector<1x1x8x32xf32>
      %269 = vector.shape_cast %268 : vector<1x1x8x32xf32> to vector<1x8x32xf32>
      %270 = arith.truncf %269 : vector<1x8x32xf32> to vector<1x8x32xbf16>
      %c9 = arith.constant 9 : index
      %c1_381 = arith.constant 1 : index
      %c4_382 = arith.constant 4 : index
      %271 = vector.load %arg10[%c9, %c1_381, %c4_382] : memref<10x10x40xbf16, #tpu.memory_space<vmem>>, vector<1x8x32xbf16>
      tpu.vector_store %arg10[%c9, %c1_381, %c4_382], %270 {strides = array<i32>} : memref<10x10x40xbf16, #tpu.memory_space<vmem>>, vector<1x8x32xbf16>,
    } else {
    }
    %c0_9 = arith.constant 0 : index
    %c0_10 = arith.constant 0 : index
    %c0_11 = arith.constant 0 : index
    %13 = vector.load %arg10[%c0_9, %c0_10, %c0_11] : memref<10x10x40xbf16, #tpu.memory_space<vmem>>, vector<8x8x12xbf16>
    %14 = vector.shape_cast %13 : vector<8x8x12xbf16> to vector<64x12xbf16>
    %c0_12 = arith.constant 0 : index
    %c0_13 = arith.constant 0 : index
    %15 = vector.load %arg11[%c0_12, %c0_13] : memref<512x128xbf16, #tpu.memory_space<vmem>>, vector<64x12xbf16>
    tpu.vector_store %arg11[%c0_12, %c0_13], %14 {strides = array<i32>} : memref<512x128xbf16, #tpu.memory_space<vmem>>, vector<64x12xbf16>,
    %c0_14 = arith.constant 0 : index
    %c1_15 = arith.constant 1 : index
    %c0_16 = arith.constant 0 : index
    %16 = vector.load %arg10[%c0_14, %c1_15, %c0_16] : memref<10x10x40xbf16, #tpu.memory_space<vmem>>, vector<8x8x12xbf16>
    %17 = vector.shape_cast %16 : vector<8x8x12xbf16> to vector<64x12xbf16>
    %c0_17 = arith.constant 0 : index
    %c12 = arith.constant 12 : index
    %18 = vector.load %arg11[%c0_17, %c12] : memref<512x128xbf16, #tpu.memory_space<vmem>>, vector<64x12xbf16>
    tpu.vector_store %arg11[%c0_17, %c12], %17 {strides = array<i32>} : memref<512x128xbf16, #tpu.memory_space<vmem>>, vector<64x12xbf16>,
    %c0_18 = arith.constant 0 : index
    %c2 = arith.constant 2 : index
    %c0_19 = arith.constant 0 : index
    %19 = vector.load %arg10[%c0_18, %c2, %c0_19] : memref<10x10x40xbf16, #tpu.memory_space<vmem>>, vector<8x8x12xbf16>
    %20 = vector.shape_cast %19 : vector<8x8x12xbf16> to vector<64x12xbf16>
    %c0_20 = arith.constant 0 : index
    %c24 = arith.constant 24 : index
    %21 = vector.load %arg11[%c0_20, %c24] : memref<512x128xbf16, #tpu.memory_space<vmem>>, vector<64x12xbf16>
    tpu.vector_store %arg11[%c0_20, %c24], %20 {strides = array<i32>} : memref<512x128xbf16, #tpu.memory_space<vmem>>, vector<64x12xbf16>,
    %c1_21 = arith.constant 1 : index
    %c0_22 = arith.constant 0 : index
    %c0_23 = arith.constant 0 : index
    %22 = vector.load %arg10[%c1_21, %c0_22, %c0_23] : memref<10x10x40xbf16, #tpu.memory_space<vmem>>, vector<8x8x12xbf16>
    %23 = vector.shape_cast %22 : vector<8x8x12xbf16> to vector<64x12xbf16>
    %c0_24 = arith.constant 0 : index
    %c36 = arith.constant 36 : index
    %24 = vector.load %arg11[%c0_24, %c36] : memref<512x128xbf16, #tpu.memory_space<vmem>>, vector<64x12xbf16>
    tpu.vector_store %arg11[%c0_24, %c36], %23 {strides = array<i32>} : memref<512x128xbf16, #tpu.memory_space<vmem>>, vector<64x12xbf16>,
    %c1_25 = arith.constant 1 : index
    %c1_26 = arith.constant 1 : index
    %c0_27 = arith.constant 0 : index
    %25 = vector.load %arg10[%c1_25, %c1_26, %c0_27] : memref<10x10x40xbf16, #tpu.memory_space<vmem>>, vector<8x8x12xbf16>
    %26 = vector.shape_cast %25 : vector<8x8x12xbf16> to vector<64x12xbf16>
    %c0_28 = arith.constant 0 : index
    %c48 = arith.constant 48 : index
    %27 = vector.load %arg11[%c0_28, %c48] : memref<512x128xbf16, #tpu.memory_space<vmem>>, vector<64x12xbf16>
    tpu.vector_store %arg11[%c0_28, %c48], %26 {strides = array<i32>} : memref<512x128xbf16, #tpu.memory_space<vmem>>, vector<64x12xbf16>,
    %c1_29 = arith.constant 1 : index
    %c2_30 = arith.constant 2 : index
    %c0_31 = arith.constant 0 : index
    %28 = vector.load %arg10[%c1_29, %c2_30, %c0_31] : memref<10x10x40xbf16, #tpu.memory_space<vmem>>, vector<8x8x12xbf16>
    %29 = vector.shape_cast %28 : vector<8x8x12xbf16> to vector<64x12xbf16>
    %c0_32 = arith.constant 0 : index
    %c60 = arith.constant 60 : index
    %30 = vector.load %arg11[%c0_32, %c60] : memref<512x128xbf16, #tpu.memory_space<vmem>>, vector<64x12xbf16>
    tpu.vector_store %arg11[%c0_32, %c60], %29 {strides = array<i32>} : memref<512x128xbf16, #tpu.memory_space<vmem>>, vector<64x12xbf16>,
    %c2_33 = arith.constant 2 : index
    %c0_34 = arith.constant 0 : index
    %c0_35 = arith.constant 0 : index
    %31 = vector.load %arg10[%c2_33, %c0_34, %c0_35] : memref<10x10x40xbf16, #tpu.memory_space<vmem>>, vector<8x8x12xbf16>
    %32 = vector.shape_cast %31 : vector<8x8x12xbf16> to vector<64x12xbf16>
    %c0_36 = arith.constant 0 : index
    %c72 = arith.constant 72 : index
    %33 = vector.load %arg11[%c0_36, %c72] : memref<512x128xbf16, #tpu.memory_space<vmem>>, vector<64x12xbf16>
    tpu.vector_store %arg11[%c0_36, %c72], %32 {strides = array<i32>} : memref<512x128xbf16, #tpu.memory_space<vmem>>, vector<64x12xbf16>,
    %c2_37 = arith.constant 2 : index
    %c1_38 = arith.constant 1 : index
    %c0_39 = arith.constant 0 : index
    %34 = vector.load %arg10[%c2_37, %c1_38, %c0_39] : memref<10x10x40xbf16, #tpu.memory_space<vmem>>, vector<8x8x12xbf16>
    %35 = vector.shape_cast %34 : vector<8x8x12xbf16> to vector<64x12xbf16>
    %c0_40 = arith.constant 0 : index
    %c84 = arith.constant 84 : index
    %36 = vector.load %arg11[%c0_40, %c84] : memref<512x128xbf16, #tpu.memory_space<vmem>>, vector<64x12xbf16>
    tpu.vector_store %arg11[%c0_40, %c84], %35 {strides = array<i32>} : memref<512x128xbf16, #tpu.memory_space<vmem>>, vector<64x12xbf16>,
    %c2_41 = arith.constant 2 : index
    %c2_42 = arith.constant 2 : index
    %c0_43 = arith.constant 0 : index
    %37 = vector.load %arg10[%c2_41, %c2_42, %c0_43] : memref<10x10x40xbf16, #tpu.memory_space<vmem>>, vector<8x8x12xbf16>
    %38 = vector.shape_cast %37 : vector<8x8x12xbf16> to vector<64x12xbf16>
    %c0_44 = arith.constant 0 : index
    %c96 = arith.constant 96 : index
    %39 = vector.load %arg11[%c0_44, %c96] : memref<512x128xbf16, #tpu.memory_space<vmem>>, vector<64x12xbf16>
    tpu.vector_store %arg11[%c0_44, %c96], %38 {strides = array<i32>} : memref<512x128xbf16, #tpu.memory_space<vmem>>, vector<64x12xbf16>,
    %c0_45 = arith.constant 0 : index
    %c0_46 = arith.constant 0 : index
    %c4_47 = arith.constant 4 : index
    %40 = vector.load %arg10[%c0_45, %c0_46, %c4_47] : memref<10x10x40xbf16, #tpu.memory_space<vmem>>, vector<8x8x12xbf16>
    %41 = vector.shape_cast %40 : vector<8x8x12xbf16> to vector<64x12xbf16>
    %c64 = arith.constant 64 : index
    %c0_48 = arith.constant 0 : index
    %42 = vector.load %arg11[%c64, %c0_48] : memref<512x128xbf16, #tpu.memory_space<vmem>>, vector<64x12xbf16>
    tpu.vector_store %arg11[%c64, %c0_48], %41 {strides = array<i32>} : memref<512x128xbf16, #tpu.memory_space<vmem>>, vector<64x12xbf16>,
    %c0_49 = arith.constant 0 : index
    %c1_50 = arith.constant 1 : index
    %c4_51 = arith.constant 4 : index
    %43 = vector.load %arg10[%c0_49, %c1_50, %c4_51] : memref<10x10x40xbf16, #tpu.memory_space<vmem>>, vector<8x8x12xbf16>
    %44 = vector.shape_cast %43 : vector<8x8x12xbf16> to vector<64x12xbf16>
    %c64_52 = arith.constant 64 : index
    %c12_53 = arith.constant 12 : index
    %45 = vector.load %arg11[%c64_52, %c12_53] : memref<512x128xbf16, #tpu.memory_space<vmem>>, vector<64x12xbf16>
    tpu.vector_store %arg11[%c64_52, %c12_53], %44 {strides = array<i32>} : memref<512x128xbf16, #tpu.memory_space<vmem>>, vector<64x12xbf16>,
    %c0_54 = arith.constant 0 : index
    %c2_55 = arith.constant 2 : index
    %c4_56 = arith.constant 4 : index
    %46 = vector.load %arg10[%c0_54, %c2_55, %c4_56] : memref<10x10x40xbf16, #tpu.memory_space<vmem>>, vector<8x8x12xbf16>
    %47 = vector.shape_cast %46 : vector<8x8x12xbf16> to vector<64x12xbf16>
    %c64_57 = arith.constant 64 : index
    %c24_58 = arith.constant 24 : index
    %48 = vector.load %arg11[%c64_57, %c24_58] : memref<512x128xbf16, #tpu.memory_space<vmem>>, vector<64x12xbf16>
    tpu.vector_store %arg11[%c64_57, %c24_58], %47 {strides = array<i32>} : memref<512x128xbf16, #tpu.memory_space<vmem>>, vector<64x12xbf16>,
    %c1_59 = arith.constant 1 : index
    %c0_60 = arith.constant 0 : index
    %c4_61 = arith.constant 4 : index
    %49 = vector.load %arg10[%c1_59, %c0_60, %c4_61] : memref<10x10x40xbf16, #tpu.memory_space<vmem>>, vector<8x8x12xbf16>
    %50 = vector.shape_cast %49 : vector<8x8x12xbf16> to vector<64x12xbf16>
    %c64_62 = arith.constant 64 : index
    %c36_63 = arith.constant 36 : index
    %51 = vector.load %arg11[%c64_62, %c36_63] : memref<512x128xbf16, #tpu.memory_space<vmem>>, vector<64x12xbf16>
    tpu.vector_store %arg11[%c64_62, %c36_63], %50 {strides = array<i32>} : memref<512x128xbf16, #tpu.memory_space<vmem>>, vector<64x12xbf16>,
    %c1_64 = arith.constant 1 : index
    %c1_65 = arith.constant 1 : index
    %c4_66 = arith.constant 4 : index
    %52 = vector.load %arg10[%c1_64, %c1_65, %c4_66] : memref<10x10x40xbf16, #tpu.memory_space<vmem>>, vector<8x8x12xbf16>
    %53 = vector.shape_cast %52 : vector<8x8x12xbf16> to vector<64x12xbf16>
    %c64_67 = arith.constant 64 : index
    %c48_68 = arith.constant 48 : index
    %54 = vector.load %arg11[%c64_67, %c48_68] : memref<512x128xbf16, #tpu.memory_space<vmem>>, vector<64x12xbf16>
    tpu.vector_store %arg11[%c64_67, %c48_68], %53 {strides = array<i32>} : memref<512x128xbf16, #tpu.memory_space<vmem>>, vector<64x12xbf16>,
    %c1_69 = arith.constant 1 : index
    %c2_70 = arith.constant 2 : index
    %c4_71 = arith.constant 4 : index
    %55 = vector.load %arg10[%c1_69, %c2_70, %c4_71] : memref<10x10x40xbf16, #tpu.memory_space<vmem>>, vector<8x8x12xbf16>
    %56 = vector.shape_cast %55 : vector<8x8x12xbf16> to vector<64x12xbf16>
    %c64_72 = arith.constant 64 : index
    %c60_73 = arith.constant 60 : index
    %57 = vector.load %arg11[%c64_72, %c60_73] : memref<512x128xbf16, #tpu.memory_space<vmem>>, vector<64x12xbf16>
    tpu.vector_store %arg11[%c64_72, %c60_73], %56 {strides = array<i32>} : memref<512x128xbf16, #tpu.memory_space<vmem>>, vector<64x12xbf16>,
    %c2_74 = arith.constant 2 : index
    %c0_75 = arith.constant 0 : index
    %c4_76 = arith.constant 4 : index
    %58 = vector.load %arg10[%c2_74, %c0_75, %c4_76] : memref<10x10x40xbf16, #tpu.memory_space<vmem>>, vector<8x8x12xbf16>
    %59 = vector.shape_cast %58 : vector<8x8x12xbf16> to vector<64x12xbf16>
    %c64_77 = arith.constant 64 : index
    %c72_78 = arith.constant 72 : index
    %60 = vector.load %arg11[%c64_77, %c72_78] : memref<512x128xbf16, #tpu.memory_space<vmem>>, vector<64x12xbf16>
    tpu.vector_store %arg11[%c64_77, %c72_78], %59 {strides = array<i32>} : memref<512x128xbf16, #tpu.memory_space<vmem>>, vector<64x12xbf16>,
    %c2_79 = arith.constant 2 : index
    %c1_80 = arith.constant 1 : index
    %c4_81 = arith.constant 4 : index
    %61 = vector.load %arg10[%c2_79, %c1_80, %c4_81] : memref<10x10x40xbf16, #tpu.memory_space<vmem>>, vector<8x8x12xbf16>
    %62 = vector.shape_cast %61 : vector<8x8x12xbf16> to vector<64x12xbf16>
    %c64_82 = arith.constant 64 : index
    %c84_83 = arith.constant 84 : index
    %63 = vector.load %arg11[%c64_82, %c84_83] : memref<512x128xbf16, #tpu.memory_space<vmem>>, vector<64x12xbf16>
    tpu.vector_store %arg11[%c64_82, %c84_83], %62 {strides = array<i32>} : memref<512x128xbf16, #tpu.memory_space<vmem>>, vector<64x12xbf16>,
    %c2_84 = arith.constant 2 : index
    %c2_85 = arith.constant 2 : index
    %c4_86 = arith.constant 4 : index
    %64 = vector.load %arg10[%c2_84, %c2_85, %c4_86] : memref<10x10x40xbf16, #tpu.memory_space<vmem>>, vector<8x8x12xbf16>
    %65 = vector.shape_cast %64 : vector<8x8x12xbf16> to vector<64x12xbf16>
    %c64_87 = arith.constant 64 : index
    %c96_88 = arith.constant 96 : index
    %66 = vector.load %arg11[%c64_87, %c96_88] : memref<512x128xbf16, #tpu.memory_space<vmem>>, vector<64x12xbf16>
    tpu.vector_store %arg11[%c64_87, %c96_88], %65 {strides = array<i32>} : memref<512x128xbf16, #tpu.memory_space<vmem>>, vector<64x12xbf16>,
    %c0_89 = arith.constant 0 : index
    %c0_90 = arith.constant 0 : index
    %c8 = arith.constant 8 : index
    %67 = vector.load %arg10[%c0_89, %c0_90, %c8] : memref<10x10x40xbf16, #tpu.memory_space<vmem>>, vector<8x8x12xbf16>
    %68 = vector.shape_cast %67 : vector<8x8x12xbf16> to vector<64x12xbf16>
    %c128 = arith.constant 128 : index
    %c0_91 = arith.constant 0 : index
    %69 = vector.load %arg11[%c128, %c0_91] : memref<512x128xbf16, #tpu.memory_space<vmem>>, vector<64x12xbf16>
    tpu.vector_store %arg11[%c128, %c0_91], %68 {strides = array<i32>} : memref<512x128xbf16, #tpu.memory_space<vmem>>, vector<64x12xbf16>,
    %c0_92 = arith.constant 0 : index
    %c1_93 = arith.constant 1 : index
    %c8_94 = arith.constant 8 : index
    %70 = vector.load %arg10[%c0_92, %c1_93, %c8_94] : memref<10x10x40xbf16, #tpu.memory_space<vmem>>, vector<8x8x12xbf16>
    %71 = vector.shape_cast %70 : vector<8x8x12xbf16> to vector<64x12xbf16>
    %c128_95 = arith.constant 128 : index
    %c12_96 = arith.constant 12 : index
    %72 = vector.load %arg11[%c128_95, %c12_96] : memref<512x128xbf16, #tpu.memory_space<vmem>>, vector<64x12xbf16>
    tpu.vector_store %arg11[%c128_95, %c12_96], %71 {strides = array<i32>} : memref<512x128xbf16, #tpu.memory_space<vmem>>, vector<64x12xbf16>,
    %c0_97 = arith.constant 0 : index
    %c2_98 = arith.constant 2 : index
    %c8_99 = arith.constant 8 : index
    %73 = vector.load %arg10[%c0_97, %c2_98, %c8_99] : memref<10x10x40xbf16, #tpu.memory_space<vmem>>, vector<8x8x12xbf16>
    %74 = vector.shape_cast %73 : vector<8x8x12xbf16> to vector<64x12xbf16>
    %c128_100 = arith.constant 128 : index
    %c24_101 = arith.constant 24 : index
    %75 = vector.load %arg11[%c128_100, %c24_101] : memref<512x128xbf16, #tpu.memory_space<vmem>>, vector<64x12xbf16>
    tpu.vector_store %arg11[%c128_100, %c24_101], %74 {strides = array<i32>} : memref<512x128xbf16, #tpu.memory_space<vmem>>, vector<64x12xbf16>,
    %c1_102 = arith.constant 1 : index
    %c0_103 = arith.constant 0 : index
    %c8_104 = arith.constant 8 : index
    %76 = vector.load %arg10[%c1_102, %c0_103, %c8_104] : memref<10x10x40xbf16, #tpu.memory_space<vmem>>, vector<8x8x12xbf16>
    %77 = vector.shape_cast %76 : vector<8x8x12xbf16> to vector<64x12xbf16>
    %c128_105 = arith.constant 128 : index
    %c36_106 = arith.constant 36 : index
    %78 = vector.load %arg11[%c128_105, %c36_106] : memref<512x128xbf16, #tpu.memory_space<vmem>>, vector<64x12xbf16>
    tpu.vector_store %arg11[%c128_105, %c36_106], %77 {strides = array<i32>} : memref<512x128xbf16, #tpu.memory_space<vmem>>, vector<64x12xbf16>,
    %c1_107 = arith.constant 1 : index
    %c1_108 = arith.constant 1 : index
    %c8_109 = arith.constant 8 : index
    %79 = vector.load %arg10[%c1_107, %c1_108, %c8_109] : memref<10x10x40xbf16, #tpu.memory_space<vmem>>, vector<8x8x12xbf16>
    %80 = vector.shape_cast %79 : vector<8x8x12xbf16> to vector<64x12xbf16>
    %c128_110 = arith.constant 128 : index
    %c48_111 = arith.constant 48 : index
    %81 = vector.load %arg11[%c128_110, %c48_111] : memref<512x128xbf16, #tpu.memory_space<vmem>>, vector<64x12xbf16>
    tpu.vector_store %arg11[%c128_110, %c48_111], %80 {strides = array<i32>} : memref<512x128xbf16, #tpu.memory_space<vmem>>, vector<64x12xbf16>,
    %c1_112 = arith.constant 1 : index
    %c2_113 = arith.constant 2 : index
    %c8_114 = arith.constant 8 : index
    %82 = vector.load %arg10[%c1_112, %c2_113, %c8_114] : memref<10x10x40xbf16, #tpu.memory_space<vmem>>, vector<8x8x12xbf16>
    %83 = vector.shape_cast %82 : vector<8x8x12xbf16> to vector<64x12xbf16>
    %c128_115 = arith.constant 128 : index
    %c60_116 = arith.constant 60 : index
    %84 = vector.load %arg11[%c128_115, %c60_116] : memref<512x128xbf16, #tpu.memory_space<vmem>>, vector<64x12xbf16>
    tpu.vector_store %arg11[%c128_115, %c60_116], %83 {strides = array<i32>} : memref<512x128xbf16, #tpu.memory_space<vmem>>, vector<64x12xbf16>,
    %c2_117 = arith.constant 2 : index
    %c0_118 = arith.constant 0 : index
    %c8_119 = arith.constant 8 : index
    %85 = vector.load %arg10[%c2_117, %c0_118, %c8_119] : memref<10x10x40xbf16, #tpu.memory_space<vmem>>, vector<8x8x12xbf16>
    %86 = vector.shape_cast %85 : vector<8x8x12xbf16> to vector<64x12xbf16>
    %c128_120 = arith.constant 128 : index
    %c72_121 = arith.constant 72 : index
    %87 = vector.load %arg11[%c128_120, %c72_121] : memref<512x128xbf16, #tpu.memory_space<vmem>>, vector<64x12xbf16>
    tpu.vector_store %arg11[%c128_120, %c72_121], %86 {strides = array<i32>} : memref<512x128xbf16, #tpu.memory_space<vmem>>, vector<64x12xbf16>,
    %c2_122 = arith.constant 2 : index
    %c1_123 = arith.constant 1 : index
    %c8_124 = arith.constant 8 : index
    %88 = vector.load %arg10[%c2_122, %c1_123, %c8_124] : memref<10x10x40xbf16, #tpu.memory_space<vmem>>, vector<8x8x12xbf16>
    %89 = vector.shape_cast %88 : vector<8x8x12xbf16> to vector<64x12xbf16>
    %c128_125 = arith.constant 128 : index
    %c84_126 = arith.constant 84 : index
    %90 = vector.load %arg11[%c128_125, %c84_126] : memref<512x128xbf16, #tpu.memory_space<vmem>>, vector<64x12xbf16>
    tpu.vector_store %arg11[%c128_125, %c84_126], %89 {strides = array<i32>} : memref<512x128xbf16, #tpu.memory_space<vmem>>, vector<64x12xbf16>,
    %c2_127 = arith.constant 2 : index
    %c2_128 = arith.constant 2 : index
    %c8_129 = arith.constant 8 : index
    %91 = vector.load %arg10[%c2_127, %c2_128, %c8_129] : memref<10x10x40xbf16, #tpu.memory_space<vmem>>, vector<8x8x12xbf16>
    %92 = vector.shape_cast %91 : vector<8x8x12xbf16> to vector<64x12xbf16>
    %c128_130 = arith.constant 128 : index
    %c96_131 = arith.constant 96 : index
    %93 = vector.load %arg11[%c128_130, %c96_131] : memref<512x128xbf16, #tpu.memory_space<vmem>>, vector<64x12xbf16>
    tpu.vector_store %arg11[%c128_130, %c96_131], %92 {strides = array<i32>} : memref<512x128xbf16, #tpu.memory_space<vmem>>, vector<64x12xbf16>,
    %c0_132 = arith.constant 0 : index
    %c0_133 = arith.constant 0 : index
    %c12_134 = arith.constant 12 : index
    %94 = vector.load %arg10[%c0_132, %c0_133, %c12_134] : memref<10x10x40xbf16, #tpu.memory_space<vmem>>, vector<8x8x12xbf16>
    %95 = vector.shape_cast %94 : vector<8x8x12xbf16> to vector<64x12xbf16>
    %c192 = arith.constant 192 : index
    %c0_135 = arith.constant 0 : index
    %96 = vector.load %arg11[%c192, %c0_135] : memref<512x128xbf16, #tpu.memory_space<vmem>>, vector<64x12xbf16>
    tpu.vector_store %arg11[%c192, %c0_135], %95 {strides = array<i32>} : memref<512x128xbf16, #tpu.memory_space<vmem>>, vector<64x12xbf16>,
    %c0_136 = arith.constant 0 : index
    %c1_137 = arith.constant 1 : index
    %c12_138 = arith.constant 12 : index
    %97 = vector.load %arg10[%c0_136, %c1_137, %c12_138] : memref<10x10x40xbf16, #tpu.memory_space<vmem>>, vector<8x8x12xbf16>
    %98 = vector.shape_cast %97 : vector<8x8x12xbf16> to vector<64x12xbf16>
    %c192_139 = arith.constant 192 : index
    %c12_140 = arith.constant 12 : index
    %99 = vector.load %arg11[%c192_139, %c12_140] : memref<512x128xbf16, #tpu.memory_space<vmem>>, vector<64x12xbf16>
    tpu.vector_store %arg11[%c192_139, %c12_140], %98 {strides = array<i32>} : memref<512x128xbf16, #tpu.memory_space<vmem>>, vector<64x12xbf16>,
    %c0_141 = arith.constant 0 : index
    %c2_142 = arith.constant 2 : index
    %c12_143 = arith.constant 12 : index
    %100 = vector.load %arg10[%c0_141, %c2_142, %c12_143] : memref<10x10x40xbf16, #tpu.memory_space<vmem>>, vector<8x8x12xbf16>
    %101 = vector.shape_cast %100 : vector<8x8x12xbf16> to vector<64x12xbf16>
    %c192_144 = arith.constant 192 : index
    %c24_145 = arith.constant 24 : index
    %102 = vector.load %arg11[%c192_144, %c24_145] : memref<512x128xbf16, #tpu.memory_space<vmem>>, vector<64x12xbf16>
    tpu.vector_store %arg11[%c192_144, %c24_145], %101 {strides = array<i32>} : memref<512x128xbf16, #tpu.memory_space<vmem>>, vector<64x12xbf16>,
    %c1_146 = arith.constant 1 : index
    %c0_147 = arith.constant 0 : index
    %c12_148 = arith.constant 12 : index
    %103 = vector.load %arg10[%c1_146, %c0_147, %c12_148] : memref<10x10x40xbf16, #tpu.memory_space<vmem>>, vector<8x8x12xbf16>
    %104 = vector.shape_cast %103 : vector<8x8x12xbf16> to vector<64x12xbf16>
    %c192_149 = arith.constant 192 : index
    %c36_150 = arith.constant 36 : index
    %105 = vector.load %arg11[%c192_149, %c36_150] : memref<512x128xbf16, #tpu.memory_space<vmem>>, vector<64x12xbf16>
    tpu.vector_store %arg11[%c192_149, %c36_150], %104 {strides = array<i32>} : memref<512x128xbf16, #tpu.memory_space<vmem>>, vector<64x12xbf16>,
    %c1_151 = arith.constant 1 : index
    %c1_152 = arith.constant 1 : index
    %c12_153 = arith.constant 12 : index
    %106 = vector.load %arg10[%c1_151, %c1_152, %c12_153] : memref<10x10x40xbf16, #tpu.memory_space<vmem>>, vector<8x8x12xbf16>
    %107 = vector.shape_cast %106 : vector<8x8x12xbf16> to vector<64x12xbf16>
    %c192_154 = arith.constant 192 : index
    %c48_155 = arith.constant 48 : index
    %108 = vector.load %arg11[%c192_154, %c48_155] : memref<512x128xbf16, #tpu.memory_space<vmem>>, vector<64x12xbf16>
    tpu.vector_store %arg11[%c192_154, %c48_155], %107 {strides = array<i32>} : memref<512x128xbf16, #tpu.memory_space<vmem>>, vector<64x12xbf16>,
    %c1_156 = arith.constant 1 : index
    %c2_157 = arith.constant 2 : index
    %c12_158 = arith.constant 12 : index
    %109 = vector.load %arg10[%c1_156, %c2_157, %c12_158] : memref<10x10x40xbf16, #tpu.memory_space<vmem>>, vector<8x8x12xbf16>
    %110 = vector.shape_cast %109 : vector<8x8x12xbf16> to vector<64x12xbf16>
    %c192_159 = arith.constant 192 : index
    %c60_160 = arith.constant 60 : index
    %111 = vector.load %arg11[%c192_159, %c60_160] : memref<512x128xbf16, #tpu.memory_space<vmem>>, vector<64x12xbf16>
    tpu.vector_store %arg11[%c192_159, %c60_160], %110 {strides = array<i32>} : memref<512x128xbf16, #tpu.memory_space<vmem>>, vector<64x12xbf16>,
    %c2_161 = arith.constant 2 : index
    %c0_162 = arith.constant 0 : index
    %c12_163 = arith.constant 12 : index
    %112 = vector.load %arg10[%c2_161, %c0_162, %c12_163] : memref<10x10x40xbf16, #tpu.memory_space<vmem>>, vector<8x8x12xbf16>
    %113 = vector.shape_cast %112 : vector<8x8x12xbf16> to vector<64x12xbf16>
    %c192_164 = arith.constant 192 : index
    %c72_165 = arith.constant 72 : index
    %114 = vector.load %arg11[%c192_164, %c72_165] : memref<512x128xbf16, #tpu.memory_space<vmem>>, vector<64x12xbf16>
    tpu.vector_store %arg11[%c192_164, %c72_165], %113 {strides = array<i32>} : memref<512x128xbf16, #tpu.memory_space<vmem>>, vector<64x12xbf16>,
    %c2_166 = arith.constant 2 : index
    %c1_167 = arith.constant 1 : index
    %c12_168 = arith.constant 12 : index
    %115 = vector.load %arg10[%c2_166, %c1_167, %c12_168] : memref<10x10x40xbf16, #tpu.memory_space<vmem>>, vector<8x8x12xbf16>
    %116 = vector.shape_cast %115 : vector<8x8x12xbf16> to vector<64x12xbf16>
    %c192_169 = arith.constant 192 : index
    %c84_170 = arith.constant 84 : index
    %117 = vector.load %arg11[%c192_169, %c84_170] : memref<512x128xbf16, #tpu.memory_space<vmem>>, vector<64x12xbf16>
    tpu.vector_store %arg11[%c192_169, %c84_170], %116 {strides = array<i32>} : memref<512x128xbf16, #tpu.memory_space<vmem>>, vector<64x12xbf16>,
    %c2_171 = arith.constant 2 : index
    %c2_172 = arith.constant 2 : index
    %c12_173 = arith.constant 12 : index
    %118 = vector.load %arg10[%c2_171, %c2_172, %c12_173] : memref<10x10x40xbf16, #tpu.memory_space<vmem>>, vector<8x8x12xbf16>
    %119 = vector.shape_cast %118 : vector<8x8x12xbf16> to vector<64x12xbf16>
    %c192_174 = arith.constant 192 : index
    %c96_175 = arith.constant 96 : index
    %120 = vector.load %arg11[%c192_174, %c96_175] : memref<512x128xbf16, #tpu.memory_space<vmem>>, vector<64x12xbf16>
    tpu.vector_store %arg11[%c192_174, %c96_175], %119 {strides = array<i32>} : memref<512x128xbf16, #tpu.memory_space<vmem>>, vector<64x12xbf16>,
    %c0_176 = arith.constant 0 : index
    %c0_177 = arith.constant 0 : index
    %c16 = arith.constant 16 : index
    %121 = vector.load %arg10[%c0_176, %c0_177, %c16] : memref<10x10x40xbf16, #tpu.memory_space<vmem>>, vector<8x8x12xbf16>
    %122 = vector.shape_cast %121 : vector<8x8x12xbf16> to vector<64x12xbf16>
    %c256 = arith.constant 256 : index
    %c0_178 = arith.constant 0 : index
    %123 = vector.load %arg11[%c256, %c0_178] : memref<512x128xbf16, #tpu.memory_space<vmem>>, vector<64x12xbf16>
    tpu.vector_store %arg11[%c256, %c0_178], %122 {strides = array<i32>} : memref<512x128xbf16, #tpu.memory_space<vmem>>, vector<64x12xbf16>,
    %c0_179 = arith.constant 0 : index
    %c1_180 = arith.constant 1 : index
    %c16_181 = arith.constant 16 : index
    %124 = vector.load %arg10[%c0_179, %c1_180, %c16_181] : memref<10x10x40xbf16, #tpu.memory_space<vmem>>, vector<8x8x12xbf16>
    %125 = vector.shape_cast %124 : vector<8x8x12xbf16> to vector<64x12xbf16>
    %c256_182 = arith.constant 256 : index
    %c12_183 = arith.constant 12 : index
    %126 = vector.load %arg11[%c256_182, %c12_183] : memref<512x128xbf16, #tpu.memory_space<vmem>>, vector<64x12xbf16>
    tpu.vector_store %arg11[%c256_182, %c12_183], %125 {strides = array<i32>} : memref<512x128xbf16, #tpu.memory_space<vmem>>, vector<64x12xbf16>,
    %c0_184 = arith.constant 0 : index
    %c2_185 = arith.constant 2 : index
    %c16_186 = arith.constant 16 : index
    %127 = vector.load %arg10[%c0_184, %c2_185, %c16_186] : memref<10x10x40xbf16, #tpu.memory_space<vmem>>, vector<8x8x12xbf16>
    %128 = vector.shape_cast %127 : vector<8x8x12xbf16> to vector<64x12xbf16>
    %c256_187 = arith.constant 256 : index
    %c24_188 = arith.constant 24 : index
    %129 = vector.load %arg11[%c256_187, %c24_188] : memref<512x128xbf16, #tpu.memory_space<vmem>>, vector<64x12xbf16>
    tpu.vector_store %arg11[%c256_187, %c24_188], %128 {strides = array<i32>} : memref<512x128xbf16, #tpu.memory_space<vmem>>, vector<64x12xbf16>,
    %c1_189 = arith.constant 1 : index
    %c0_190 = arith.constant 0 : index
    %c16_191 = arith.constant 16 : index
    %130 = vector.load %arg10[%c1_189, %c0_190, %c16_191] : memref<10x10x40xbf16, #tpu.memory_space<vmem>>, vector<8x8x12xbf16>
    %131 = vector.shape_cast %130 : vector<8x8x12xbf16> to vector<64x12xbf16>
    %c256_192 = arith.constant 256 : index
    %c36_193 = arith.constant 36 : index
    %132 = vector.load %arg11[%c256_192, %c36_193] : memref<512x128xbf16, #tpu.memory_space<vmem>>, vector<64x12xbf16>
    tpu.vector_store %arg11[%c256_192, %c36_193], %131 {strides = array<i32>} : memref<512x128xbf16, #tpu.memory_space<vmem>>, vector<64x12xbf16>,
    %c1_194 = arith.constant 1 : index
    %c1_195 = arith.constant 1 : index
    %c16_196 = arith.constant 16 : index
    %133 = vector.load %arg10[%c1_194, %c1_195, %c16_196] : memref<10x10x40xbf16, #tpu.memory_space<vmem>>, vector<8x8x12xbf16>
    %134 = vector.shape_cast %133 : vector<8x8x12xbf16> to vector<64x12xbf16>
    %c256_197 = arith.constant 256 : index
    %c48_198 = arith.constant 48 : index
    %135 = vector.load %arg11[%c256_197, %c48_198] : memref<512x128xbf16, #tpu.memory_space<vmem>>, vector<64x12xbf16>
    tpu.vector_store %arg11[%c256_197, %c48_198], %134 {strides = array<i32>} : memref<512x128xbf16, #tpu.memory_space<vmem>>, vector<64x12xbf16>,
    %c1_199 = arith.constant 1 : index
    %c2_200 = arith.constant 2 : index
    %c16_201 = arith.constant 16 : index
    %136 = vector.load %arg10[%c1_199, %c2_200, %c16_201] : memref<10x10x40xbf16, #tpu.memory_space<vmem>>, vector<8x8x12xbf16>
    %137 = vector.shape_cast %136 : vector<8x8x12xbf16> to vector<64x12xbf16>
    %c256_202 = arith.constant 256 : index
    %c60_203 = arith.constant 60 : index
    %138 = vector.load %arg11[%c256_202, %c60_203] : memref<512x128xbf16, #tpu.memory_space<vmem>>, vector<64x12xbf16>
    tpu.vector_store %arg11[%c256_202, %c60_203], %137 {strides = array<i32>} : memref<512x128xbf16, #tpu.memory_space<vmem>>, vector<64x12xbf16>,
    %c2_204 = arith.constant 2 : index
    %c0_205 = arith.constant 0 : index
    %c16_206 = arith.constant 16 : index
    %139 = vector.load %arg10[%c2_204, %c0_205, %c16_206] : memref<10x10x40xbf16, #tpu.memory_space<vmem>>, vector<8x8x12xbf16>
    %140 = vector.shape_cast %139 : vector<8x8x12xbf16> to vector<64x12xbf16>
    %c256_207 = arith.constant 256 : index
    %c72_208 = arith.constant 72 : index
    %141 = vector.load %arg11[%c256_207, %c72_208] : memref<512x128xbf16, #tpu.memory_space<vmem>>, vector<64x12xbf16>
    tpu.vector_store %arg11[%c256_207, %c72_208], %140 {strides = array<i32>} : memref<512x128xbf16, #tpu.memory_space<vmem>>, vector<64x12xbf16>,
    %c2_209 = arith.constant 2 : index
    %c1_210 = arith.constant 1 : index
    %c16_211 = arith.constant 16 : index
    %142 = vector.load %arg10[%c2_209, %c1_210, %c16_211] : memref<10x10x40xbf16, #tpu.memory_space<vmem>>, vector<8x8x12xbf16>
    %143 = vector.shape_cast %142 : vector<8x8x12xbf16> to vector<64x12xbf16>
    %c256_212 = arith.constant 256 : index
    %c84_213 = arith.constant 84 : index
    %144 = vector.load %arg11[%c256_212, %c84_213] : memref<512x128xbf16, #tpu.memory_space<vmem>>, vector<64x12xbf16>
    tpu.vector_store %arg11[%c256_212, %c84_213], %143 {strides = array<i32>} : memref<512x128xbf16, #tpu.memory_space<vmem>>, vector<64x12xbf16>,
    %c2_214 = arith.constant 2 : index
    %c2_215 = arith.constant 2 : index
    %c16_216 = arith.constant 16 : index
    %145 = vector.load %arg10[%c2_214, %c2_215, %c16_216] : memref<10x10x40xbf16, #tpu.memory_space<vmem>>, vector<8x8x12xbf16>
    %146 = vector.shape_cast %145 : vector<8x8x12xbf16> to vector<64x12xbf16>
    %c256_217 = arith.constant 256 : index
    %c96_218 = arith.constant 96 : index
    %147 = vector.load %arg11[%c256_217, %c96_218] : memref<512x128xbf16, #tpu.memory_space<vmem>>, vector<64x12xbf16>
    tpu.vector_store %arg11[%c256_217, %c96_218], %146 {strides = array<i32>} : memref<512x128xbf16, #tpu.memory_space<vmem>>, vector<64x12xbf16>,
    %c0_219 = arith.constant 0 : index
    %c0_220 = arith.constant 0 : index
    %c20 = arith.constant 20 : index
    %148 = vector.load %arg10[%c0_219, %c0_220, %c20] : memref<10x10x40xbf16, #tpu.memory_space<vmem>>, vector<8x8x12xbf16>
    %149 = vector.shape_cast %148 : vector<8x8x12xbf16> to vector<64x12xbf16>
    %c320 = arith.constant 320 : index
    %c0_221 = arith.constant 0 : index
    %150 = vector.load %arg11[%c320, %c0_221] : memref<512x128xbf16, #tpu.memory_space<vmem>>, vector<64x12xbf16>
    tpu.vector_store %arg11[%c320, %c0_221], %149 {strides = array<i32>} : memref<512x128xbf16, #tpu.memory_space<vmem>>, vector<64x12xbf16>,
    %c0_222 = arith.constant 0 : index
    %c1_223 = arith.constant 1 : index
    %c20_224 = arith.constant 20 : index
    %151 = vector.load %arg10[%c0_222, %c1_223, %c20_224] : memref<10x10x40xbf16, #tpu.memory_space<vmem>>, vector<8x8x12xbf16>
    %152 = vector.shape_cast %151 : vector<8x8x12xbf16> to vector<64x12xbf16>
    %c320_225 = arith.constant 320 : index
    %c12_226 = arith.constant 12 : index
    %153 = vector.load %arg11[%c320_225, %c12_226] : memref<512x128xbf16, #tpu.memory_space<vmem>>, vector<64x12xbf16>
    tpu.vector_store %arg11[%c320_225, %c12_226], %152 {strides = array<i32>} : memref<512x128xbf16, #tpu.memory_space<vmem>>, vector<64x12xbf16>,
    %c0_227 = arith.constant 0 : index
    %c2_228 = arith.constant 2 : index
    %c20_229 = arith.constant 20 : index
    %154 = vector.load %arg10[%c0_227, %c2_228, %c20_229] : memref<10x10x40xbf16, #tpu.memory_space<vmem>>, vector<8x8x12xbf16>
    %155 = vector.shape_cast %154 : vector<8x8x12xbf16> to vector<64x12xbf16>
    %c320_230 = arith.constant 320 : index
    %c24_231 = arith.constant 24 : index
    %156 = vector.load %arg11[%c320_230, %c24_231] : memref<512x128xbf16, #tpu.memory_space<vmem>>, vector<64x12xbf16>
    tpu.vector_store %arg11[%c320_230, %c24_231], %155 {strides = array<i32>} : memref<512x128xbf16, #tpu.memory_space<vmem>>, vector<64x12xbf16>,
    %c1_232 = arith.constant 1 : index
    %c0_233 = arith.constant 0 : index
    %c20_234 = arith.constant 20 : index
    %157 = vector.load %arg10[%c1_232, %c0_233, %c20_234] : memref<10x10x40xbf16, #tpu.memory_space<vmem>>, vector<8x8x12xbf16>
    %158 = vector.shape_cast %157 : vector<8x8x12xbf16> to vector<64x12xbf16>
    %c320_235 = arith.constant 320 : index
    %c36_236 = arith.constant 36 : index
    %159 = vector.load %arg11[%c320_235, %c36_236] : memref<512x128xbf16, #tpu.memory_space<vmem>>, vector<64x12xbf16>
    tpu.vector_store %arg11[%c320_235, %c36_236], %158 {strides = array<i32>} : memref<512x128xbf16, #tpu.memory_space<vmem>>, vector<64x12xbf16>,
    %c1_237 = arith.constant 1 : index
    %c1_238 = arith.constant 1 : index
    %c20_239 = arith.constant 20 : index
    %160 = vector.load %arg10[%c1_237, %c1_238, %c20_239] : memref<10x10x40xbf16, #tpu.memory_space<vmem>>, vector<8x8x12xbf16>
    %161 = vector.shape_cast %160 : vector<8x8x12xbf16> to vector<64x12xbf16>
    %c320_240 = arith.constant 320 : index
    %c48_241 = arith.constant 48 : index
    %162 = vector.load %arg11[%c320_240, %c48_241] : memref<512x128xbf16, #tpu.memory_space<vmem>>, vector<64x12xbf16>
    tpu.vector_store %arg11[%c320_240, %c48_241], %161 {strides = array<i32>} : memref<512x128xbf16, #tpu.memory_space<vmem>>, vector<64x12xbf16>,
    %c1_242 = arith.constant 1 : index
    %c2_243 = arith.constant 2 : index
    %c20_244 = arith.constant 20 : index
    %163 = vector.load %arg10[%c1_242, %c2_243, %c20_244] : memref<10x10x40xbf16, #tpu.memory_space<vmem>>, vector<8x8x12xbf16>
    %164 = vector.shape_cast %163 : vector<8x8x12xbf16> to vector<64x12xbf16>
    %c320_245 = arith.constant 320 : index
    %c60_246 = arith.constant 60 : index
    %165 = vector.load %arg11[%c320_245, %c60_246] : memref<512x128xbf16, #tpu.memory_space<vmem>>, vector<64x12xbf16>
    tpu.vector_store %arg11[%c320_245, %c60_246], %164 {strides = array<i32>} : memref<512x128xbf16, #tpu.memory_space<vmem>>, vector<64x12xbf16>,
    %c2_247 = arith.constant 2 : index
    %c0_248 = arith.constant 0 : index
    %c20_249 = arith.constant 20 : index
    %166 = vector.load %arg10[%c2_247, %c0_248, %c20_249] : memref<10x10x40xbf16, #tpu.memory_space<vmem>>, vector<8x8x12xbf16>
    %167 = vector.shape_cast %166 : vector<8x8x12xbf16> to vector<64x12xbf16>
    %c320_250 = arith.constant 320 : index
    %c72_251 = arith.constant 72 : index
    %168 = vector.load %arg11[%c320_250, %c72_251] : memref<512x128xbf16, #tpu.memory_space<vmem>>, vector<64x12xbf16>
    tpu.vector_store %arg11[%c320_250, %c72_251], %167 {strides = array<i32>} : memref<512x128xbf16, #tpu.memory_space<vmem>>, vector<64x12xbf16>,
    %c2_252 = arith.constant 2 : index
    %c1_253 = arith.constant 1 : index
    %c20_254 = arith.constant 20 : index
    %169 = vector.load %arg10[%c2_252, %c1_253, %c20_254] : memref<10x10x40xbf16, #tpu.memory_space<vmem>>, vector<8x8x12xbf16>
    %170 = vector.shape_cast %169 : vector<8x8x12xbf16> to vector<64x12xbf16>
    %c320_255 = arith.constant 320 : index
    %c84_256 = arith.constant 84 : index
    %171 = vector.load %arg11[%c320_255, %c84_256] : memref<512x128xbf16, #tpu.memory_space<vmem>>, vector<64x12xbf16>
    tpu.vector_store %arg11[%c320_255, %c84_256], %170 {strides = array<i32>} : memref<512x128xbf16, #tpu.memory_space<vmem>>, vector<64x12xbf16>,
    %c2_257 = arith.constant 2 : index
    %c2_258 = arith.constant 2 : index
    %c20_259 = arith.constant 20 : index
    %172 = vector.load %arg10[%c2_257, %c2_258, %c20_259] : memref<10x10x40xbf16, #tpu.memory_space<vmem>>, vector<8x8x12xbf16>
    %173 = vector.shape_cast %172 : vector<8x8x12xbf16> to vector<64x12xbf16>
    %c320_260 = arith.constant 320 : index
    %c96_261 = arith.constant 96 : index
    %174 = vector.load %arg11[%c320_260, %c96_261] : memref<512x128xbf16, #tpu.memory_space<vmem>>, vector<64x12xbf16>
    tpu.vector_store %arg11[%c320_260, %c96_261], %173 {strides = array<i32>} : memref<512x128xbf16, #tpu.memory_space<vmem>>, vector<64x12xbf16>,
    %c0_262 = arith.constant 0 : index
    %c0_263 = arith.constant 0 : index
    %c24_264 = arith.constant 24 : index
    %175 = vector.load %arg10[%c0_262, %c0_263, %c24_264] : memref<10x10x40xbf16, #tpu.memory_space<vmem>>, vector<8x8x12xbf16>
    %176 = vector.shape_cast %175 : vector<8x8x12xbf16> to vector<64x12xbf16>
    %c384 = arith.constant 384 : index
    %c0_265 = arith.constant 0 : index
    %177 = vector.load %arg11[%c384, %c0_265] : memref<512x128xbf16, #tpu.memory_space<vmem>>, vector<64x12xbf16>
    tpu.vector_store %arg11[%c384, %c0_265], %176 {strides = array<i32>} : memref<512x128xbf16, #tpu.memory_space<vmem>>, vector<64x12xbf16>,
    %c0_266 = arith.constant 0 : index
    %c1_267 = arith.constant 1 : index
    %c24_268 = arith.constant 24 : index
    %178 = vector.load %arg10[%c0_266, %c1_267, %c24_268] : memref<10x10x40xbf16, #tpu.memory_space<vmem>>, vector<8x8x12xbf16>
    %179 = vector.shape_cast %178 : vector<8x8x12xbf16> to vector<64x12xbf16>
    %c384_269 = arith.constant 384 : index
    %c12_270 = arith.constant 12 : index
    %180 = vector.load %arg11[%c384_269, %c12_270] : memref<512x128xbf16, #tpu.memory_space<vmem>>, vector<64x12xbf16>
    tpu.vector_store %arg11[%c384_269, %c12_270], %179 {strides = array<i32>} : memref<512x128xbf16, #tpu.memory_space<vmem>>, vector<64x12xbf16>,
    %c0_271 = arith.constant 0 : index
    %c2_272 = arith.constant 2 : index
    %c24_273 = arith.constant 24 : index
    %181 = vector.load %arg10[%c0_271, %c2_272, %c24_273] : memref<10x10x40xbf16, #tpu.memory_space<vmem>>, vector<8x8x12xbf16>
    %182 = vector.shape_cast %181 : vector<8x8x12xbf16> to vector<64x12xbf16>
    %c384_274 = arith.constant 384 : index
    %c24_275 = arith.constant 24 : index
    %183 = vector.load %arg11[%c384_274, %c24_275] : memref<512x128xbf16, #tpu.memory_space<vmem>>, vector<64x12xbf16>
    tpu.vector_store %arg11[%c384_274, %c24_275], %182 {strides = array<i32>} : memref<512x128xbf16, #tpu.memory_space<vmem>>, vector<64x12xbf16>,
    %c1_276 = arith.constant 1 : index
    %c0_277 = arith.constant 0 : index
    %c24_278 = arith.constant 24 : index
    %184 = vector.load %arg10[%c1_276, %c0_277, %c24_278] : memref<10x10x40xbf16, #tpu.memory_space<vmem>>, vector<8x8x12xbf16>
    %185 = vector.shape_cast %184 : vector<8x8x12xbf16> to vector<64x12xbf16>
    %c384_279 = arith.constant 384 : index
    %c36_280 = arith.constant 36 : index
    %186 = vector.load %arg11[%c384_279, %c36_280] : memref<512x128xbf16, #tpu.memory_space<vmem>>, vector<64x12xbf16>
    tpu.vector_store %arg11[%c384_279, %c36_280], %185 {strides = array<i32>} : memref<512x128xbf16, #tpu.memory_space<vmem>>, vector<64x12xbf16>,
    %c1_281 = arith.constant 1 : index
    %c1_282 = arith.constant 1 : index
    %c24_283 = arith.constant 24 : index
    %187 = vector.load %arg10[%c1_281, %c1_282, %c24_283] : memref<10x10x40xbf16, #tpu.memory_space<vmem>>, vector<8x8x12xbf16>
    %188 = vector.shape_cast %187 : vector<8x8x12xbf16> to vector<64x12xbf16>
    %c384_284 = arith.constant 384 : index
    %c48_285 = arith.constant 48 : index
    %189 = vector.load %arg11[%c384_284, %c48_285] : memref<512x128xbf16, #tpu.memory_space<vmem>>, vector<64x12xbf16>
    tpu.vector_store %arg11[%c384_284, %c48_285], %188 {strides = array<i32>} : memref<512x128xbf16, #tpu.memory_space<vmem>>, vector<64x12xbf16>,
    %c1_286 = arith.constant 1 : index
    %c2_287 = arith.constant 2 : index
    %c24_288 = arith.constant 24 : index
    %190 = vector.load %arg10[%c1_286, %c2_287, %c24_288] : memref<10x10x40xbf16, #tpu.memory_space<vmem>>, vector<8x8x12xbf16>
    %191 = vector.shape_cast %190 : vector<8x8x12xbf16> to vector<64x12xbf16>
    %c384_289 = arith.constant 384 : index
    %c60_290 = arith.constant 60 : index
    %192 = vector.load %arg11[%c384_289, %c60_290] : memref<512x128xbf16, #tpu.memory_space<vmem>>, vector<64x12xbf16>
    tpu.vector_store %arg11[%c384_289, %c60_290], %191 {strides = array<i32>} : memref<512x128xbf16, #tpu.memory_space<vmem>>, vector<64x12xbf16>,
    %c2_291 = arith.constant 2 : index
    %c0_292 = arith.constant 0 : index
    %c24_293 = arith.constant 24 : index
    %193 = vector.load %arg10[%c2_291, %c0_292, %c24_293] : memref<10x10x40xbf16, #tpu.memory_space<vmem>>, vector<8x8x12xbf16>
    %194 = vector.shape_cast %193 : vector<8x8x12xbf16> to vector<64x12xbf16>
    %c384_294 = arith.constant 384 : index
    %c72_295 = arith.constant 72 : index
    %195 = vector.load %arg11[%c384_294, %c72_295] : memref<512x128xbf16, #tpu.memory_space<vmem>>, vector<64x12xbf16>
    tpu.vector_store %arg11[%c384_294, %c72_295], %194 {strides = array<i32>} : memref<512x128xbf16, #tpu.memory_space<vmem>>, vector<64x12xbf16>,
    %c2_296 = arith.constant 2 : index
    %c1_297 = arith.constant 1 : index
    %c24_298 = arith.constant 24 : index
    %196 = vector.load %arg10[%c2_296, %c1_297, %c24_298] : memref<10x10x40xbf16, #tpu.memory_space<vmem>>, vector<8x8x12xbf16>
    %197 = vector.shape_cast %196 : vector<8x8x12xbf16> to vector<64x12xbf16>
    %c384_299 = arith.constant 384 : index
    %c84_300 = arith.constant 84 : index
    %198 = vector.load %arg11[%c384_299, %c84_300] : memref<512x128xbf16, #tpu.memory_space<vmem>>, vector<64x12xbf16>
    tpu.vector_store %arg11[%c384_299, %c84_300], %197 {strides = array<i32>} : memref<512x128xbf16, #tpu.memory_space<vmem>>, vector<64x12xbf16>,
    %c2_301 = arith.constant 2 : index
    %c2_302 = arith.constant 2 : index
    %c24_303 = arith.constant 24 : index
    %199 = vector.load %arg10[%c2_301, %c2_302, %c24_303] : memref<10x10x40xbf16, #tpu.memory_space<vmem>>, vector<8x8x12xbf16>
    %200 = vector.shape_cast %199 : vector<8x8x12xbf16> to vector<64x12xbf16>
    %c384_304 = arith.constant 384 : index
    %c96_305 = arith.constant 96 : index
    %201 = vector.load %arg11[%c384_304, %c96_305] : memref<512x128xbf16, #tpu.memory_space<vmem>>, vector<64x12xbf16>
    tpu.vector_store %arg11[%c384_304, %c96_305], %200 {strides = array<i32>} : memref<512x128xbf16, #tpu.memory_space<vmem>>, vector<64x12xbf16>,
    %c0_306 = arith.constant 0 : index
    %c0_307 = arith.constant 0 : index
    %c28 = arith.constant 28 : index
    %202 = vector.load %arg10[%c0_306, %c0_307, %c28] : memref<10x10x40xbf16, #tpu.memory_space<vmem>>, vector<8x8x12xbf16>
    %203 = vector.shape_cast %202 : vector<8x8x12xbf16> to vector<64x12xbf16>
    %c448 = arith.constant 448 : index
    %c0_308 = arith.constant 0 : index
    %204 = vector.load %arg11[%c448, %c0_308] : memref<512x128xbf16, #tpu.memory_space<vmem>>, vector<64x12xbf16>
    tpu.vector_store %arg11[%c448, %c0_308], %203 {strides = array<i32>} : memref<512x128xbf16, #tpu.memory_space<vmem>>, vector<64x12xbf16>,
    %c0_309 = arith.constant 0 : index
    %c1_310 = arith.constant 1 : index
    %c28_311 = arith.constant 28 : index
    %205 = vector.load %arg10[%c0_309, %c1_310, %c28_311] : memref<10x10x40xbf16, #tpu.memory_space<vmem>>, vector<8x8x12xbf16>
    %206 = vector.shape_cast %205 : vector<8x8x12xbf16> to vector<64x12xbf16>
    %c448_312 = arith.constant 448 : index
    %c12_313 = arith.constant 12 : index
    %207 = vector.load %arg11[%c448_312, %c12_313] : memref<512x128xbf16, #tpu.memory_space<vmem>>, vector<64x12xbf16>
    tpu.vector_store %arg11[%c448_312, %c12_313], %206 {strides = array<i32>} : memref<512x128xbf16, #tpu.memory_space<vmem>>, vector<64x12xbf16>,
    %c0_314 = arith.constant 0 : index
    %c2_315 = arith.constant 2 : index
    %c28_316 = arith.constant 28 : index
    %208 = vector.load %arg10[%c0_314, %c2_315, %c28_316] : memref<10x10x40xbf16, #tpu.memory_space<vmem>>, vector<8x8x12xbf16>
    %209 = vector.shape_cast %208 : vector<8x8x12xbf16> to vector<64x12xbf16>
    %c448_317 = arith.constant 448 : index
    %c24_318 = arith.constant 24 : index
    %210 = vector.load %arg11[%c448_317, %c24_318] : memref<512x128xbf16, #tpu.memory_space<vmem>>, vector<64x12xbf16>
    tpu.vector_store %arg11[%c448_317, %c24_318], %209 {strides = array<i32>} : memref<512x128xbf16, #tpu.memory_space<vmem>>, vector<64x12xbf16>,
    %c1_319 = arith.constant 1 : index
    %c0_320 = arith.constant 0 : index
    %c28_321 = arith.constant 28 : index
    %211 = vector.load %arg10[%c1_319, %c0_320, %c28_321] : memref<10x10x40xbf16, #tpu.memory_space<vmem>>, vector<8x8x12xbf16>
    %212 = vector.shape_cast %211 : vector<8x8x12xbf16> to vector<64x12xbf16>
    %c448_322 = arith.constant 448 : index
    %c36_323 = arith.constant 36 : index
    %213 = vector.load %arg11[%c448_322, %c36_323] : memref<512x128xbf16, #tpu.memory_space<vmem>>, vector<64x12xbf16>
    tpu.vector_store %arg11[%c448_322, %c36_323], %212 {strides = array<i32>} : memref<512x128xbf16, #tpu.memory_space<vmem>>, vector<64x12xbf16>,
    %c1_324 = arith.constant 1 : index
    %c1_325 = arith.constant 1 : index
    %c28_326 = arith.constant 28 : index
    %214 = vector.load %arg10[%c1_324, %c1_325, %c28_326] : memref<10x10x40xbf16, #tpu.memory_space<vmem>>, vector<8x8x12xbf16>
    %215 = vector.shape_cast %214 : vector<8x8x12xbf16> to vector<64x12xbf16>
    %c448_327 = arith.constant 448 : index
    %c48_328 = arith.constant 48 : index
    %216 = vector.load %arg11[%c448_327, %c48_328] : memref<512x128xbf16, #tpu.memory_space<vmem>>, vector<64x12xbf16>
    tpu.vector_store %arg11[%c448_327, %c48_328], %215 {strides = array<i32>} : memref<512x128xbf16, #tpu.memory_space<vmem>>, vector<64x12xbf16>,
    %c1_329 = arith.constant 1 : index
    %c2_330 = arith.constant 2 : index
    %c28_331 = arith.constant 28 : index
    %217 = vector.load %arg10[%c1_329, %c2_330, %c28_331] : memref<10x10x40xbf16, #tpu.memory_space<vmem>>, vector<8x8x12xbf16>
    %218 = vector.shape_cast %217 : vector<8x8x12xbf16> to vector<64x12xbf16>
    %c448_332 = arith.constant 448 : index
    %c60_333 = arith.constant 60 : index
    %219 = vector.load %arg11[%c448_332, %c60_333] : memref<512x128xbf16, #tpu.memory_space<vmem>>, vector<64x12xbf16>
    tpu.vector_store %arg11[%c448_332, %c60_333], %218 {strides = array<i32>} : memref<512x128xbf16, #tpu.memory_space<vmem>>, vector<64x12xbf16>,
    %c2_334 = arith.constant 2 : index
    %c0_335 = arith.constant 0 : index
    %c28_336 = arith.constant 28 : index
    %220 = vector.load %arg10[%c2_334, %c0_335, %c28_336] : memref<10x10x40xbf16, #tpu.memory_space<vmem>>, vector<8x8x12xbf16>
    %221 = vector.shape_cast %220 : vector<8x8x12xbf16> to vector<64x12xbf16>
    %c448_337 = arith.constant 448 : index
    %c72_338 = arith.constant 72 : index
    %222 = vector.load %arg11[%c448_337, %c72_338] : memref<512x128xbf16, #tpu.memory_space<vmem>>, vector<64x12xbf16>
    tpu.vector_store %arg11[%c448_337, %c72_338], %221 {strides = array<i32>} : memref<512x128xbf16, #tpu.memory_space<vmem>>, vector<64x12xbf16>,
    %c2_339 = arith.constant 2 : index
    %c1_340 = arith.constant 1 : index
    %c28_341 = arith.constant 28 : index
    %223 = vector.load %arg10[%c2_339, %c1_340, %c28_341] : memref<10x10x40xbf16, #tpu.memory_space<vmem>>, vector<8x8x12xbf16>
    %224 = vector.shape_cast %223 : vector<8x8x12xbf16> to vector<64x12xbf16>
    %c448_342 = arith.constant 448 : index
    %c84_343 = arith.constant 84 : index
    %225 = vector.load %arg11[%c448_342, %c84_343] : memref<512x128xbf16, #tpu.memory_space<vmem>>, vector<64x12xbf16>
    tpu.vector_store %arg11[%c448_342, %c84_343], %224 {strides = array<i32>} : memref<512x128xbf16, #tpu.memory_space<vmem>>, vector<64x12xbf16>,
    %c2_344 = arith.constant 2 : index
    %c2_345 = arith.constant 2 : index
    %c28_346 = arith.constant 28 : index
    %226 = vector.load %arg10[%c2_344, %c2_345, %c28_346] : memref<10x10x40xbf16, #tpu.memory_space<vmem>>, vector<8x8x12xbf16>
    %227 = vector.shape_cast %226 : vector<8x8x12xbf16> to vector<64x12xbf16>
    %c448_347 = arith.constant 448 : index
    %c96_348 = arith.constant 96 : index
    %228 = vector.load %arg11[%c448_347, %c96_348] : memref<512x128xbf16, #tpu.memory_space<vmem>>, vector<64x12xbf16>
    tpu.vector_store %arg11[%c448_347, %c96_348], %227 {strides = array<i32>} : memref<512x128xbf16, #tpu.memory_space<vmem>>, vector<64x12xbf16>,
    %c0_349 = arith.constant 0 : index
    %c0_350 = arith.constant 0 : index
    %229 = vector.load %arg11[%c0_349, %c0_350] : memref<512x128xbf16, #tpu.memory_space<vmem>>, vector<512x128xbf16>
    %c0_351 = arith.constant 0 : index
    %c0_352 = arith.constant 0 : index
    %230 = vector.load %arg5[%c0_351, %c0_352] : memref<128x128xbf16, #tpu.memory_space<vmem>>, vector<128x128xbf16>
    %cst = arith.constant dense<0.000000e+00> : vector<512x128xf32>
    %231 = tpu.matmul %229, %230, %cst {dimension_numbers = #tpu.dot_dimension_numbers<[1], [0], [0], [1], [0, 0, 1, 1], [], []>} : vector<512x128xbf16>, vector<128x128xbf16>, vector<512x128xf32> -> vector<512x128xf32>
    %232 = vector.shape_cast %231 : vector<512x128xf32> to vector<1x8x8x8x128xf32>
    %233 = vector.extract_strided_slice %232 {offsets = [0, 0, 0, 0, 0], sizes = [1, 8, 8, 8, 8], strides = [1, 1, 1, 1, 1]} : vector<1x8x8x8x128xf32> to vector<1x8x8x8x8xf32>
    %234 = arith.truncf %233 : vector<1x8x8x8x8xf32> to vector<1x8x8x8x8xbf16>
    %c0_353 = arith.constant 0 : index
    %c0_354 = arith.constant 0 : index
    %c0_355 = arith.constant 0 : index
    %c0_356 = arith.constant 0 : index
    %c0_357 = arith.constant 0 : index
    %235 = vector.load %arg8[%c0_353, %c0_354, %c0_355, %c0_356, %c0_357] : memref<1x8x8x8x8xbf16, #tpu.memory_space<vmem>>, vector<1x8x8x8x8xbf16>
    tpu.vector_store %arg8[%c0_353, %c0_354, %c0_355, %c0_356, %c0_357], %234 {strides = array<i32>} : memref<1x8x8x8x8xbf16, #tpu.memory_space<vmem>>, vector<1x8x8x8x8xbf16>,
    %cst_358 = arith.constant dense<0.000000e+00> : vector<128xf32>
    %236 = vector.multi_reduction <add>, %231, %cst_358 [0] : vector<512x128xf32> to vector<128xf32>
    %237 = vector.shape_cast %236 : vector<128xf32> to vector<1x128xf32>
    %cst_359 = arith.constant 0.001953125 : f32
    %238 = vector.broadcast %cst_359 : f32 to vector<1x128xf32>
    %239 = arith.mulf %237, %238 : vector<1x128xf32>
    %240 = vector.broadcast %239 : vector<1x128xf32> to vector<512x128xf32>
    %241 = arith.subf %231, %240 : vector<512x128xf32>
    %242 = arith.mulf %241, %241 : vector<512x128xf32>
    %cst_360 = arith.constant dense<0.000000e+00> : vector<128xf32>
    %243 = vector.multi_reduction <add>, %242, %cst_360 [0] : vector<512x128xf32> to vector<128xf32>
    %244 = vector.shape_cast %243 : vector<128xf32> to vector<1x128xf32>
    %245 = arith.sitofp %arg1 : i32 to f32
    %cst_361 = arith.constant 5.120000e+02 : f32
    %246 = arith.mulf %245, %cst_361 : f32
    %cst_362 = arith.constant 5.120000e+02 : f32
    %247 = arith.addf %246, %cst_362 : f32
    %c0_363 = arith.constant 0 : index
    %c0_364 = arith.constant 0 : index
    %248 = vector.load %arg12[%c0_363, %c0_364] : memref<1x128xf32, #tpu.memory_space<vmem>>, vector<1x128xf32>
    %249 = arith.subf %239, %248 : vector<1x128xf32>
    %c0_365 = arith.constant 0 : index
    %c0_366 = arith.constant 0 : index
    %250 = vector.load %arg12[%c0_365, %c0_366] : memref<1x128xf32, #tpu.memory_space<vmem>>, vector<1x128xf32>
    %cst_367 = arith.constant 5.120000e+02 : f32
    %251 = arith.divf %cst_367, %247 : f32
    %252 = vector.broadcast %251 : f32 to vector<1x128xf32>
    %253 = arith.mulf %249, %252 : vector<1x128xf32>
    %254 = arith.addf %250, %253 : vector<1x128xf32>
    %c0_368 = arith.constant 0 : index
    %c0_369 = arith.constant 0 : index
    %255 = vector.load %arg12[%c0_368, %c0_369] : memref<1x128xf32, #tpu.memory_space<vmem>>, vector<1x128xf32>
    tpu.vector_store %arg12[%c0_368, %c0_369], %254 {strides = array<i32>} : memref<1x128xf32, #tpu.memory_space<vmem>>, vector<1x128xf32>,
    %c0_370 = arith.constant 0 : index
    %c0_371 = arith.constant 0 : index
    %256 = vector.load %arg13[%c0_370, %c0_371] : memref<1x128xf32, #tpu.memory_space<vmem>>, vector<1x128xf32>
    %257 = arith.addf %256, %244 : vector<1x128xf32>
    %258 = arith.mulf %249, %249 : vector<1x128xf32>
    %cst_372 = arith.constant 5.120000e+02 : f32
    %259 = arith.mulf %246, %cst_372 : f32
    %260 = arith.divf %259, %247 : f32
    %261 = vector.broadcast %260 : f32 to vector<1x128xf32>
    %262 = arith.mulf %258, %261 : vector<1x128xf32>
    %263 = arith.addf %257, %262 : vector<1x128xf32>
    %c0_373 = arith.constant 0 : index
    %c0_374 = arith.constant 0 : index
    %264 = vector.load %arg13[%c0_373, %c0_374] : memref<1x128xf32, #tpu.memory_space<vmem>>, vector<1x128xf32>
    tpu.vector_store %arg13[%c0_373, %c0_374], %263 {strides = array<i32>} : memref<1x128xf32, #tpu.memory_space<vmem>>, vector<1x128xf32>,
    %c0_i32_375 = arith.constant 0 : i32
    %265 = arith.cmpi eq, %arg1, %c0_i32_375 : i32
    %266 = arith.extui %265 : i1 to i32
    %c0_i32_376 = arith.constant 0 : i32
    %267 = arith.cmpi ne, %266, %c0_i32_376 : i32
    scf.if %267 {
      %c0_377 = arith.constant 0 : index
      %c0_378 = arith.constant 0 : index
      %268 = vector.load %arg13[%c0_377, %c0_378] : memref<1x128xf32, #tpu.memory_space<vmem>>, vector<1x128xf32>
      %cst_379 = arith.constant 0.001953125 : f32
      %269 = vector.broadcast %cst_379 : f32 to vector<1x128xf32>
      %270 = arith.mulf %268, %269 : vector<1x128xf32>
      %cst_380 = arith.constant 9.99999974E-6 : f32
      %271 = vector.broadcast %cst_380 : f32 to vector<1x128xf32>
      %272 = arith.addf %270, %271 : vector<1x128xf32>
      %273 = math.rsqrt %272 : vector<1x128xf32>
      %c0_381 = arith.constant 0 : index
      %c0_382 = arith.constant 0 : index
      %274 = vector.load %arg6[%c0_381, %c0_382] : memref<1x128xf32, #tpu.memory_space<vmem>>, vector<1x128xf32>
      %275 = arith.mulf %273, %274 : vector<1x128xf32>
      %c0_383 = arith.constant 0 : index
      %c0_384 = arith.constant 0 : index
      %276 = vector.load %arg7[%c0_383, %c0_384] : memref<1x128xf32, #tpu.memory_space<vmem>>, vector<1x128xf32>
      %c0_385 = arith.constant 0 : index
      %c0_386 = arith.constant 0 : index
      %277 = vector.load %arg12[%c0_385, %c0_386] : memref<1x128xf32, #tpu.memory_space<vmem>>, vector<1x128xf32>
      %278 = arith.mulf %277, %275 : vector<1x128xf32>
      %279 = arith.subf %276, %278 : vector<1x128xf32>
      %280 = vector.extract_strided_slice %275 {offsets = [0, 0], sizes = [1, 8], strides = [1, 1]} : vector<1x128xf32> to vector<1x8xf32>
      %281 = vector.shape_cast %280 : vector<1x8xf32> to vector<1x1x8xf32>
      %c0_387 = arith.constant 0 : index
      %c0_388 = arith.constant 0 : index
      %c0_389 = arith.constant 0 : index
      %282 = vector.load %arg9[%c0_387, %c0_388, %c0_389] : memref<1x2x8xf32, #tpu.memory_space<vmem>>, vector<1x1x8xf32>
      tpu.vector_store %arg9[%c0_387, %c0_388, %c0_389], %281 {strides = array<i32>} : memref<1x2x8xf32, #tpu.memory_space<vmem>>, vector<1x1x8xf32>,
      %283 = vector.extract_strided_slice %279 {offsets = [0, 0], sizes = [1, 8], strides = [1, 1]} : vector<1x128xf32> to vector<1x8xf32>
      %284 = vector.shape_cast %283 : vector<1x8xf32> to vector<1x1x8xf32>
      %c0_390 = arith.constant 0 : index
      %c1_391 = arith.constant 1 : index
      %c0_392 = arith.constant 0 : index
      %285 = vector.load %arg9[%c0_390, %c1_391, %c0_392] : memref<1x2x8xf32, #tpu.memory_space<vmem>>, vector<1x1x8xf32>
      tpu.vector_store %arg9[%c0_390, %c1_391, %c0_392], %284 {strides = array<i32>} : memref<1x2x8xf32, #tpu.memory_space<vmem>>, vector<1x1x8xf32>,
    } else {
    }
    return
  }
  func.func @transform_0(%arg0: i32, %arg1: i32) -> (i32, i32, i32, i32) {
    %c0_i32 = arith.constant 0 : i32
    %c0_i32_0 = arith.constant 0 : i32
    %c0_i32_1 = arith.constant 0 : i32
    return %arg0, %arg1, %c0_i32, %c0_i32_0 : i32, i32, i32, i32
  }
  func.func @transform_1(%arg0: i32, %arg1: i32) -> (i32, i32, i32, i32) {
    %c8_i32 = arith.constant 8 : i32
    %0 = arith.muli %arg1, %c8_i32 : i32
    %c1_i32 = arith.constant 1 : i32
    %1 = arith.subi %0, %c1_i32 : i32
    %c0_i32 = arith.constant 0 : i32
    %2 = arith.maxsi %1, %c0_i32 : i32
    %c0_i32_0 = arith.constant 0 : i32
    %c0_i32_1 = arith.constant 0 : i32
    %c0_i32_2 = arith.constant 0 : i32
    return %arg0, %2, %c0_i32_0, %c0_i32_1 : i32, i32, i32, i32
  }
  func.func @transform_2(%arg0: i32, %arg1: i32) -> (i32, i32, i32, i32) {
    %c8_i32 = arith.constant 8 : i32
    %0 = arith.muli %arg1, %c8_i32 : i32
    %c8_i32_0 = arith.constant 8 : i32
    %1 = arith.addi %0, %c8_i32_0 : i32
    %c7_i32 = arith.constant 7 : i32
    %2 = arith.minsi %1, %c7_i32 : i32
    %c0_i32 = arith.constant 0 : i32
    %c0_i32_1 = arith.constant 0 : i32
    %c0_i32_2 = arith.constant 0 : i32
    return %arg0, %2, %c0_i32, %c0_i32_1 : i32, i32, i32, i32
  }
  func.func @transform_3(%arg0: i32, %arg1: i32) -> (i32, i32) {
    %c0_i32 = arith.constant 0 : i32
    %c0_i32_0 = arith.constant 0 : i32
    %c0_i32_1 = arith.constant 0 : i32
    return %c0_i32, %c0_i32_0 : i32, i32
  }
  func.func @transform_4(%arg0: i32, %arg1: i32) -> (i32, i32) {
    %c0_i32 = arith.constant 0 : i32
    %c0_i32_0 = arith.constant 0 : i32
    %c0_i32_1 = arith.constant 0 : i32
    return %c0_i32, %c0_i32_0 : i32, i32
  }
  func.func @transform_5(%arg0: i32, %arg1: i32) -> (i32, i32) {
    %c0_i32 = arith.constant 0 : i32
    %c0_i32_0 = arith.constant 0 : i32
    %c0_i32_1 = arith.constant 0 : i32
    return %c0_i32, %c0_i32_0 : i32, i32
  }
  func.func @transform_6(%arg0: i32, %arg1: i32) -> (i32, i32, i32, i32, i32) {
    %c0_i32 = arith.constant 0 : i32
    %c0_i32_0 = arith.constant 0 : i32
    %c0_i32_1 = arith.constant 0 : i32
    %c0_i32_2 = arith.constant 0 : i32
    return %arg0, %c0_i32, %arg1, %c0_i32_0, %c0_i32_1 : i32, i32, i32, i32, i32
  }
  func.func @transform_7(%arg0: i32, %arg1: i32) -> (i32, i32, i32) {
    %c0_i32 = arith.constant 0 : i32
    %c0_i32_0 = arith.constant 0 : i32
    %c0_i32_1 = arith.constant 0 : i32
    return %arg0, %c0_i32, %c0_i32_0 : i32, i32, i32
  }
}

</mosaic_0001>

<bundles_post_ra>
// kernel: short_conv.3
= control target key start
LH: loop header
LB: loop body
LE: loop exit
PB: predicated region body
PF: predicated region fallthrough
CT: control target
= control target key end

     0   :  { %s929_s9 = smov 0   ;;  %s931_s10 = smov 0   ;;  %s1266_s0 = inlined_call_operand.vmem [shape: bf16[2,512,8], index: 0, kind: input, shape index: {}]   ;;  %s1267_s1 = inlined_call_operand.vmem [shape: f32[2,2,8], index: 1, kind: input, shape index: {}]   ;;  %s1268_s2 = inlined_call_operand.vmem [shape: f32[2,512,8], index: 2, kind: output, shape index: {}]  }
   0x1   :  { %s933_s11 = smov 0  }
   0x2 LB: > { %s24_s12 = sadd.s32 1, %s908_s10  ;;  %p697_p0 = scmp.ge.s32.totalorder %s912_s11, 1  ;;  %s912_s11 = sphi %s933_s11, %s12_s11   ;;  %s908_s10 = sphi %s931_s10, %s1270_s10   ;;  %s904_s9 = sphi %s929_s9, %s1269_s9  }
   0x3   : > { %p26_p1 = scmp.ge.s32.totalorder %s24_s12, 2  ;;  %p142_p2 = scmp.lt.s32.totalorder %s912_s11, 3 }
   0x5   : > { %s1272_s12 = smov (%p26_p1, %s24_s12), 0  ;;  %p143_p3 = pnand %p697_p0, %p142_p2 }
   0x6   : > { %p177_p4 = scmp.lt.s32.totalorder (!%p143_p3), %s904_s9, 1 }
   0x7   : > { %146 = sbr.rel (%p143_p3) target bundleno = 84 (0x54), region = 28 }
   0xc   : > { %v329_v0 = vlaneseq  ;;  %s1274_s9 = smov (!%p177_p4, %s904_s9), 1  ;;  %vm529_vm0 = vcmask 64512  }
   0xd   : > { %s705_s13 = sshll.u32 %s1274_s9, 8  ;;  %s700_s14 = sshll.u32 %s1274_s9, 1 }
   0xe   : > { %v330_v1 = vshrl.u32 %v329_v0, 7  ;;  %s954_s17 = scalar_lea.vmem %s1266_s0, %s705_s13  ;;  %s189_s20 = scalar_lea.vmem %s1267_s1, %s700_s14 }
   0xf   : > { %v200_v4 = vld [vmem:[%s189_s20] sm:$0x3]  ;;  %v835_v6 = vld [vmem:[%s954_s17 + $0x8] sm:$0xff]   ;;  %v836_v11 = vld [vmem:[%s954_s17 + $0x10] sm:$0xff]   ;;  %s706_s21 = sshll.u32 %s1274_s9, 9 }
  0x10   : > { %v331_v2 = vsub.s32 0, %v330_v1  ;;  %v399_v3 = vsub.s32 1, %v330_v1  ;;  %v708_v5 = vld [vmem:[%s954_s17] sm:$0xff]   ;;  %v837_v12 = vld [vmem:[%s954_s17 + $0x18] sm:$0xff]   ;;  %v713_v13 = vunpack.c.l.bf16 %v835_v6  ;;  %v714_v14 = vunpack.c.h.bf16 %v835_v6  ;;  %s981_s24 = scalar_lea.vmem %s1268_s2, %s706_s21  ;;  %v839_v38 = vld [vmem:[%s954_s17 + $0x28] sm:$0xff]  }
  0x11   : > { %v709_v7 = vunpack.c.l.bf16 %v708_v5  ;;  %v710_v10 = vunpack.c.h.bf16 %v708_v5  ;;  %v717_v15 = vunpack.c.l.bf16 %v836_v11  ;;  %v718_v16 = vunpack.c.h.bf16 %v836_v11  ;;  %v838_v33 = vld [vmem:[%s954_s17 + $0x20] sm:$0xff]   ;;  %v840_v39 = vld [vmem:[%s954_s17 + $0x30] sm:$0xff]   ;;  %v841_v44 = vld [vmem:[%s954_s17 + $0x38] sm:$0xff]  }
  0x12   : > { %v961_v8 = vrot.slane %v200_v4, %v331_v2  ;;  %v963_v9 = vrot.slane %v200_v4, %v399_v3  ;;  %v721_v19 = vunpack.c.l.bf16 %v837_v12  ;;  %v722_v20 = vunpack.c.h.bf16 %v837_v12  ;;  %v842_v5 = vld [vmem:[%s954_s17 + $0x40] sm:$0xff]   ;;  %v843_v12 = vld [vmem:[%s954_s17 + $0x48] sm:$0xff]  }
  0x13   : > { %v725_v47 = vunpack.c.l.bf16 %v838_v33  ;;  %v726_v48 = vunpack.c.h.bf16 %v838_v33  ;;  %v729_v49 = vunpack.c.l.bf16 %v839_v38  ;;  %v730_v50 = vunpack.c.h.bf16 %v839_v38 }
  0x14   : > { %v333_v17 = vmul.f32 %v709_v7, %v961_v8  ;;  %v334_v18 = vmul.f32 %v710_v10, %v961_v8  ;;  %v335_v21 = vmul.f32 %v713_v13, %v961_v8  ;;  %v336_v22 = vmul.f32 %v714_v14, %v961_v8  ;;  %v844_v13 = vld [vmem:[%s954_s17 + $0x50] sm:$0xff]  }
  0x15   : > { %v337_v23 = vmul.f32 %v717_v15, %v961_v8  ;;  %v338_v24 = vmul.f32 %v718_v16, %v961_v8  ;;  %v339_v27 = vmul.f32 %v721_v19, %v961_v8  ;;  %v340_v28 = vmul.f32 %v722_v20, %v961_v8 }
  0x16   : > { %v401_v25 = vadd.f32 %v963_v9, %v333_v17  ;;  %v402_v26 = vadd.f32 %v963_v9, %v334_v18  ;;  %v403_v29 = vadd.f32 %v963_v9, %v335_v21  ;;  %v404_v30 = vadd.f32 %v963_v9, %v336_v22  ;;  %v845_v18 = vld [vmem:[%s954_s17 + $0x58] sm:$0xff]  }
  0x17   : > { %v405_v31 = vadd.f32 %v963_v9, %v337_v23  ;;  %v406_v32 = vadd.f32 %v963_v9, %v338_v24  ;;  %v407_v36 = vadd.f32 %v963_v9, %v339_v27  ;;  %v408_v37 = vadd.f32 %v963_v9, %v340_v28 }
  0x18   : > { %v465_v34 = vmax.f32 %v401_v25, 0.0  ;;  %v466_v35 = vmax.f32 %v402_v26, 0.0  ;;  %v467_v40 = vmax.f32 %v403_v29, 0.0  ;;  %v468_v41 = vmax.f32 %v404_v30, 0.0 }
  0x19   : > { %v469_v42 = vmax.f32 %v405_v31, 0.0  ;;  %v470_v43 = vmax.f32 %v406_v32, 0.0  ;;  %v471_v45 = vmax.f32 %v407_v36, 0.0  ;;  %v472_v46 = vmax.f32 %v408_v37, 0.0 }
  0x1a   : > { %530 = vst.msk [vmem:[%s981_s24] sm:$0xff] %vm529_vm0, %v465_v34  ;;  %531 = vst.msk [vmem:[%s981_s24 + $0x8] sm:$0xff] %vm529_vm0, %v466_v35  ;;  %v733_v51 = vunpack.c.l.bf16 %v840_v39  ;;  %v734_v52 = vunpack.c.h.bf16 %v840_v39  ;;  %v341_v53 = vmul.f32 %v725_v47, %v961_v8  ;;  %v342_v54 = vmul.f32 %v726_v48, %v961_v8  ;;  %v847_v48 = vld [vmem:[%s954_s17 + $0x68] sm:$0xff]  }
  0x1b   : > { %532 = vst.msk [vmem:[%s981_s24 + $0x10] sm:$0xff] %vm529_vm0, %v467_v40  ;;  %533 = vst.msk [vmem:[%s981_s24 + $0x18] sm:$0xff] %vm529_vm0, %v468_v41  ;;  %v737_v55 = vunpack.c.l.bf16 %v841_v44  ;;  %v738_v56 = vunpack.c.h.bf16 %v841_v44  ;;  %v343_v57 = vmul.f32 %v729_v49, %v961_v8  ;;  %v344_v58 = vmul.f32 %v730_v50, %v961_v8  ;;  %v848_v49 = vld [vmem:[%s954_s17 + $0x70] sm:$0xff]  }
  0x1c   : > { %534 = vst.msk [vmem:[%s981_s24 + $0x20] sm:$0xff] %vm529_vm0, %v469_v42  ;;  %535 = vst.msk [vmem:[%s981_s24 + $0x28] sm:$0xff] %vm529_vm0, %v470_v43  ;;  %v345_v59 = vmul.f32 %v733_v51, %v961_v8  ;;  %v346_v60 = vmul.f32 %v734_v52, %v961_v8  ;;  %v409_v61 = vadd.f32 %v963_v9, %v341_v53  ;;  %v741_v21 = vunpack.c.l.bf16 %v842_v5  ;;  %v846_v43 = vld [vmem:[%s954_s17 + $0x60] sm:$0xff]  }
  0x1d   : > { %536 = vst.msk [vmem:[%s981_s24 + $0x30] sm:$0xff] %vm529_vm0, %v471_v45  ;;  %537 = vst.msk [vmem:[%s981_s24 + $0x38] sm:$0xff] %vm529_vm0, %v472_v46  ;;  %v410_v62 = vadd.f32 %v963_v9, %v342_v54  ;;  %v347_v63 = vmul.f32 %v737_v55, %v961_v8  ;;  %v348_v0 = vmul.f32 %v738_v56, %v961_v8  ;;  %v742_v22 = vunpack.c.h.bf16 %v842_v5  ;;  %v849_v54 = vld [vmem:[%s954_s17 + $0x78] sm:$0xff]  }
  0x1e   : > { %v411_v1 = vadd.f32 %v963_v9, %v343_v57  ;;  %v412_v2 = vadd.f32 %v963_v9, %v344_v58  ;;  %v413_v3 = vadd.f32 %v963_v9, %v345_v59  ;;  %v414_v4 = vadd.f32 %v963_v9, %v346_v60 }
  0x1f   : > { %v473_v6 = vmax.f32 %v409_v61, 0.0  ;;  %v474_v7 = vmax.f32 %v410_v62, 0.0  ;;  %v415_v10 = vadd.f32 %v963_v9, %v347_v63  ;;  %v416_v11 = vadd.f32 %v963_v9, %v348_v0 }
  0x20   : > { %v475_v14 = vmax.f32 %v411_v1, 0.0  ;;  %v476_v15 = vmax.f32 %v412_v2, 0.0  ;;  %v477_v16 = vmax.f32 %v413_v3, 0.0  ;;  %v478_v17 = vmax.f32 %v414_v4, 0.0 }
  0x21   : > { %538 = vst.msk [vmem:[%s981_s24 + $0x40] sm:$0xff] %vm529_vm0, %v473_v6  ;;  %539 = vst.msk [vmem:[%s981_s24 + $0x48] sm:$0xff] %vm529_vm0, %v474_v7  ;;  %v479_v19 = vmax.f32 %v415_v10, 0.0  ;;  %v480_v20 = vmax.f32 %v416_v11, 0.0  ;;  %v745_v23 = vunpack.c.l.bf16 %v843_v12  ;;  %v746_v24 = vunpack.c.h.bf16 %v843_v12 }
  0x22   : > { %540 = vst.msk [vmem:[%s981_s24 + $0x50] sm:$0xff] %vm529_vm0, %v475_v14  ;;  %541 = vst.msk [vmem:[%s981_s24 + $0x58] sm:$0xff] %vm529_vm0, %v476_v15  ;;  %v749_v25 = vunpack.c.l.bf16 %v844_v13  ;;  %v750_v26 = vunpack.c.h.bf16 %v844_v13  ;;  %v349_v27 = vmul.f32 %v741_v21, %v961_v8  ;;  %v350_v28 = vmul.f32 %v742_v22, %v961_v8  ;;  %v851_v22 = vld [vmem:[%s954_s17 + $0x88] sm:$0xff]  }
  0x23   : > { %542 = vst.msk [vmem:[%s981_s24 + $0x60] sm:$0xff] %vm529_vm0, %v477_v16  ;;  %543 = vst.msk [vmem:[%s981_s24 + $0x68] sm:$0xff] %vm529_vm0, %v478_v17  ;;  %v753_v29 = vunpack.c.l.bf16 %v845_v18  ;;  %v754_v30 = vunpack.c.h.bf16 %v845_v18  ;;  %v351_v31 = vmul.f32 %v745_v23, %v961_v8  ;;  %v352_v32 = vmul.f32 %v746_v24, %v961_v8  ;;  %v850_v17 = vld [vmem:[%s954_s17 + $0x80] sm:$0xff]   ;;  %v852_v23 = vld [vmem:[%s954_s17 + $0x90] sm:$0xff]  }
  0x24   : > { %544 = vst.msk [vmem:[%s981_s24 + $0x70] sm:$0xff] %vm529_vm0, %v479_v19  ;;  %545 = vst.msk [vmem:[%s981_s24 + $0x78] sm:$0xff] %vm529_vm0, %v480_v20  ;;  %v353_v33 = vmul.f32 %v749_v25, %v961_v8  ;;  %v354_v34 = vmul.f32 %v750_v26, %v961_v8  ;;  %v417_v35 = vadd.f32 %v963_v9, %v349_v27  ;;  %v757_v57 = vunpack.c.l.bf16 %v846_v43 }
  0x25   : > { %v418_v36 = vadd.f32 %v963_v9, %v350_v28  ;;  %v355_v37 = vmul.f32 %v753_v29, %v961_v8  ;;  %v356_v38 = vmul.f32 %v754_v30, %v961_v8  ;;  %v419_v39 = vadd.f32 %v963_v9, %v351_v31  ;;  %v853_v28 = vld [vmem:[%s954_s17 + $0x98] sm:$0xff]  }
  0x26   : > { %v420_v40 = vadd.f32 %v963_v9, %v352_v32  ;;  %v421_v41 = vadd.f32 %v963_v9, %v353_v33  ;;  %v422_v42 = vadd.f32 %v963_v9, %v354_v34  ;;  %v481_v44 = vmax.f32 %v417_v35, 0.0 }
  0x27   : > { %v482_v45 = vmax.f32 %v418_v36, 0.0  ;;  %v423_v46 = vadd.f32 %v963_v9, %v355_v37  ;;  %v424_v47 = vadd.f32 %v963_v9, %v356_v38  ;;  %v483_v50 = vmax.f32 %v419_v39, 0.0 }
  0x28   : > { %v484_v51 = vmax.f32 %v420_v40, 0.0  ;;  %v485_v52 = vmax.f32 %v421_v41, 0.0  ;;  %v486_v53 = vmax.f32 %v422_v42, 0.0  ;;  %546 = vst.msk [vmem:[%s981_s24 + $0x80] sm:$0xff] %vm529_vm0, %v481_v44  ;;  %v758_v58 = vunpack.c.h.bf16 %v846_v43 }
  0x29   : > { %547 = vst.msk [vmem:[%s981_s24 + $0x88] sm:$0xff] %vm529_vm0, %v482_v45  ;;  %v487_v55 = vmax.f32 %v423_v46, 0.0  ;;  %v488_v56 = vmax.f32 %v424_v47, 0.0  ;;  %548 = vst.msk [vmem:[%s981_s24 + $0x90] sm:$0xff] %vm529_vm0, %v483_v50  ;;  %v761_v59 = vunpack.c.l.bf16 %v847_v48  ;;  %v762_v60 = vunpack.c.h.bf16 %v847_v48 }
  0x2a   : > { %549 = vst.msk [vmem:[%s981_s24 + $0x98] sm:$0xff] %vm529_vm0, %v484_v51  ;;  %550 = vst.msk [vmem:[%s981_s24 + $0xa0] sm:$0xff] %vm529_vm0, %v485_v52  ;;  %v765_v61 = vunpack.c.l.bf16 %v848_v49  ;;  %v766_v62 = vunpack.c.h.bf16 %v848_v49  ;;  %v357_v63 = vmul.f32 %v757_v57, %v961_v8  ;;  %v358_v0 = vmul.f32 %v758_v58, %v961_v8  ;;  %v855_v58 = vld [vmem:[%s954_s17 + $0xa8] sm:$0xff]  }
  0x2b   : > { %551 = vst.msk [vmem:[%s981_s24 + $0xa8] sm:$0xff] %vm529_vm0, %v486_v53  ;;  %552 = vst.msk [vmem:[%s981_s24 + $0xb0] sm:$0xff] %vm529_vm0, %v487_v55  ;;  %v769_v1 = vunpack.c.l.bf16 %v849_v54  ;;  %v770_v2 = vunpack.c.h.bf16 %v849_v54  ;;  %v359_v3 = vmul.f32 %v761_v59, %v961_v8  ;;  %v360_v4 = vmul.f32 %v762_v60, %v961_v8  ;;  %v854_v53 = vld [vmem:[%s954_s17 + $0xa0] sm:$0xff]   ;;  %v856_v59 = vld [vmem:[%s954_s17 + $0xb0] sm:$0xff]  }
  0x2c   : > { %553 = vst.msk [vmem:[%s981_s24 + $0xb8] sm:$0xff] %vm529_vm0, %v488_v56  ;;  %v361_v5 = vmul.f32 %v765_v61, %v961_v8  ;;  %v362_v6 = vmul.f32 %v766_v62, %v961_v8  ;;  %v425_v7 = vadd.f32 %v963_v9, %v357_v63  ;;  %v426_v10 = vadd.f32 %v963_v9, %v358_v0  ;;  %v857_v0 = vld [vmem:[%s954_s17 + $0xb8] sm:$0xff]  }
  0x2d   : > { %v363_v11 = vmul.f32 %v769_v1, %v961_v8  ;;  %v364_v12 = vmul.f32 %v770_v2, %v961_v8  ;;  %v427_v13 = vadd.f32 %v963_v9, %v359_v3  ;;  %v428_v14 = vadd.f32 %v963_v9, %v360_v4 }
  0x2e   : > { %v429_v15 = vadd.f32 %v963_v9, %v361_v5  ;;  %v430_v16 = vadd.f32 %v963_v9, %v362_v6  ;;  %v489_v18 = vmax.f32 %v425_v7, 0.0  ;;  %v490_v19 = vmax.f32 %v426_v10, 0.0 }
  0x2f   : > { %v431_v20 = vadd.f32 %v963_v9, %v363_v11  ;;  %v432_v21 = vadd.f32 %v963_v9, %v364_v12  ;;  %v491_v24 = vmax.f32 %v427_v13, 0.0  ;;  %v492_v25 = vmax.f32 %v428_v14, 0.0 }
  0x30   : > { %v493_v26 = vmax.f32 %v429_v15, 0.0  ;;  %v494_v27 = vmax.f32 %v430_v16, 0.0  ;;  %554 = vst.msk [vmem:[%s981_s24 + $0xc0] sm:$0xff] %vm529_vm0, %v489_v18  ;;  %555 = vst.msk [vmem:[%s981_s24 + $0xc8] sm:$0xff] %vm529_vm0, %v490_v19  ;;  %v773_v31 = vunpack.c.l.bf16 %v850_v17  ;;  %v774_v32 = vunpack.c.h.bf16 %v850_v17 }
  0x31   : > { %v495_v29 = vmax.f32 %v431_v20, 0.0  ;;  %v496_v30 = vmax.f32 %v432_v21, 0.0  ;;  %556 = vst.msk [vmem:[%s981_s24 + $0xd0] sm:$0xff] %vm529_vm0, %v491_v24  ;;  %557 = vst.msk [vmem:[%s981_s24 + $0xd8] sm:$0xff] %vm529_vm0, %v492_v25  ;;  %v777_v33 = vunpack.c.l.bf16 %v851_v22  ;;  %v778_v34 = vunpack.c.h.bf16 %v851_v22 }
  0x32   : > { %558 = vst.msk [vmem:[%s981_s24 + $0xe0] sm:$0xff] %vm529_vm0, %v493_v26  ;;  %559 = vst.msk [vmem:[%s981_s24 + $0xe8] sm:$0xff] %vm529_vm0, %v494_v27  ;;  %v781_v35 = vunpack.c.l.bf16 %v852_v23  ;;  %v782_v36 = vunpack.c.h.bf16 %v852_v23  ;;  %v365_v37 = vmul.f32 %v773_v31, %v961_v8  ;;  %v366_v38 = vmul.f32 %v774_v32, %v961_v8  ;;  %v858_v27 = vld [vmem:[%s954_s17 + $0xc0] sm:$0xff]   ;;  %v859_v32 = vld [vmem:[%s954_s17 + $0xc8] sm:$0xff]  }
  0x33   : > { %560 = vst.msk [vmem:[%s981_s24 + $0xf0] sm:$0xff] %vm529_vm0, %v495_v29  ;;  %561 = vst.msk [vmem:[%s981_s24 + $0xf8] sm:$0xff] %vm529_vm0, %v496_v30  ;;  %v785_v39 = vunpack.c.l.bf16 %v853_v28  ;;  %v786_v40 = vunpack.c.h.bf16 %v853_v28  ;;  %v367_v41 = vmul.f32 %v777_v33, %v961_v8  ;;  %v368_v42 = vmul.f32 %v778_v34, %v961_v8  ;;  %v860_v33 = vld [vmem:[%s954_s17 + $0xd0] sm:$0xff]  }
  0x34   : > { %v369_v43 = vmul.f32 %v781_v35, %v961_v8  ;;  %v370_v44 = vmul.f32 %v782_v36, %v961_v8  ;;  %v433_v45 = vadd.f32 %v963_v9, %v365_v37  ;;  %v434_v46 = vadd.f32 %v963_v9, %v366_v38  ;;  %v861_v38 = vld [vmem:[%s954_s17 + $0xd8] sm:$0xff]  }
  0x35   : > { %v371_v47 = vmul.f32 %v785_v39, %v961_v8  ;;  %v372_v48 = vmul.f32 %v786_v40, %v961_v8  ;;  %v435_v49 = vadd.f32 %v963_v9, %v367_v41  ;;  %v436_v50 = vadd.f32 %v963_v9, %v368_v42 }
  0x36   : > { %v437_v51 = vadd.f32 %v963_v9, %v369_v43  ;;  %v438_v52 = vadd.f32 %v963_v9, %v370_v44  ;;  %v497_v54 = vmax.f32 %v433_v45, 0.0  ;;  %v498_v55 = vmax.f32 %v434_v46, 0.0 }
  0x37   : > { %v439_v56 = vadd.f32 %v963_v9, %v371_v47  ;;  %v440_v57 = vadd.f32 %v963_v9, %v372_v48  ;;  %v499_v60 = vmax.f32 %v435_v49, 0.0  ;;  %v500_v61 = vmax.f32 %v436_v50, 0.0 }
  0x38   : > { %v501_v62 = vmax.f32 %v437_v51, 0.0  ;;  %v502_v63 = vmax.f32 %v438_v52, 0.0  ;;  %562 = vst.msk [vmem:[%s981_s24 + $0x100] sm:$0xff] %vm529_vm0, %v497_v54  ;;  %563 = vst.msk [vmem:[%s981_s24 + $0x108] sm:$0xff] %vm529_vm0, %v498_v55  ;;  %v789_v3 = vunpack.c.l.bf16 %v854_v53  ;;  %v790_v4 = vunpack.c.h.bf16 %v854_v53 }
  0x39   : > { %v503_v1 = vmax.f32 %v439_v56, 0.0  ;;  %v504_v2 = vmax.f32 %v440_v57, 0.0  ;;  %564 = vst.msk [vmem:[%s981_s24 + $0x110] sm:$0xff] %vm529_vm0, %v499_v60  ;;  %565 = vst.msk [vmem:[%s981_s24 + $0x118] sm:$0xff] %vm529_vm0, %v500_v61  ;;  %v793_v5 = vunpack.c.l.bf16 %v855_v58  ;;  %v794_v6 = vunpack.c.h.bf16 %v855_v58 }
  0x3a   : > { %566 = vst.msk [vmem:[%s981_s24 + $0x120] sm:$0xff] %vm529_vm0, %v501_v62  ;;  %567 = vst.msk [vmem:[%s981_s24 + $0x128] sm:$0xff] %vm529_vm0, %v502_v63  ;;  %v797_v7 = vunpack.c.l.bf16 %v856_v59  ;;  %v798_v10 = vunpack.c.h.bf16 %v856_v59  ;;  %v373_v11 = vmul.f32 %v789_v3, %v961_v8  ;;  %v374_v12 = vmul.f32 %v790_v4, %v961_v8  ;;  %v862_v63 = vld [vmem:[%s954_s17 + $0xe0] sm:$0xff]   ;;  %v863_v4 = vld [vmem:[%s954_s17 + $0xe8] sm:$0xff]  }
  0x3b   : > { %568 = vst.msk [vmem:[%s981_s24 + $0x130] sm:$0xff] %vm529_vm0, %v503_v1  ;;  %569 = vst.msk [vmem:[%s981_s24 + $0x138] sm:$0xff] %vm529_vm0, %v504_v2  ;;  %v801_v13 = vunpack.c.l.bf16 %v857_v0  ;;  %v802_v14 = vunpack.c.h.bf16 %v857_v0  ;;  %v375_v15 = vmul.f32 %v793_v5, %v961_v8  ;;  %v376_v16 = vmul.f32 %v794_v6, %v961_v8  ;;  %v864_v5 = vld [vmem:[%s954_s17 + $0xf0] sm:$0xff]  }
  0x3c   : > { %v377_v17 = vmul.f32 %v797_v7, %v961_v8  ;;  %v378_v18 = vmul.f32 %v798_v10, %v961_v8  ;;  %v441_v19 = vadd.f32 %v963_v9, %v373_v11  ;;  %v442_v20 = vadd.f32 %v963_v9, %v374_v12  ;;  %v865_v12 = vld [vmem:[%s954_s17 + $0xf8] sm:$0xff]  }
  0x3d   : > { %v379_v21 = vmul.f32 %v801_v13, %v961_v8  ;;  %v380_v22 = vmul.f32 %v802_v14, %v961_v8  ;;  %v443_v23 = vadd.f32 %v963_v9, %v375_v15  ;;  %v444_v24 = vadd.f32 %v963_v9, %v376_v16 }
  0x3e   : > { %v445_v25 = vadd.f32 %v963_v9, %v377_v17  ;;  %v446_v26 = vadd.f32 %v963_v9, %v378_v18  ;;  %v505_v28 = vmax.f32 %v441_v19, 0.0  ;;  %v506_v29 = vmax.f32 %v442_v20, 0.0 }
  0x3f   : > { %v447_v30 = vadd.f32 %v963_v9, %v379_v21  ;;  %v448_v31 = vadd.f32 %v963_v9, %v380_v22  ;;  %v507_v34 = vmax.f32 %v443_v23, 0.0  ;;  %v508_v35 = vmax.f32 %v444_v24, 0.0 }
  0x40   : > { %v509_v36 = vmax.f32 %v445_v25, 0.0  ;;  %v510_v37 = vmax.f32 %v446_v26, 0.0  ;;  %570 = vst.msk [vmem:[%s981_s24 + $0x140] sm:$0xff] %vm529_vm0, %v505_v28  ;;  %571 = vst.msk [vmem:[%s981_s24 + $0x148] sm:$0xff] %vm529_vm0, %v506_v29  ;;  %v805_v41 = vunpack.c.l.bf16 %v858_v27  ;;  %v806_v42 = vunpack.c.h.bf16 %v858_v27 }
  0x41   : > { %v511_v39 = vmax.f32 %v447_v30, 0.0  ;;  %v512_v40 = vmax.f32 %v448_v31, 0.0  ;;  %572 = vst.msk [vmem:[%s981_s24 + $0x150] sm:$0xff] %vm529_vm0, %v507_v34  ;;  %573 = vst.msk [vmem:[%s981_s24 + $0x158] sm:$0xff] %vm529_vm0, %v508_v35  ;;  %v809_v43 = vunpack.c.l.bf16 %v859_v32  ;;  %v810_v44 = vunpack.c.h.bf16 %v859_v32 }
  0x42   : > { %574 = vst.msk [vmem:[%s981_s24 + $0x160] sm:$0xff] %vm529_vm0, %v509_v36  ;;  %575 = vst.msk [vmem:[%s981_s24 + $0x168] sm:$0xff] %vm529_vm0, %v510_v37  ;;  %v813_v45 = vunpack.c.l.bf16 %v860_v33  ;;  %v814_v46 = vunpack.c.h.bf16 %v860_v33  ;;  %v381_v47 = vmul.f32 %v805_v41, %v961_v8  ;;  %v382_v48 = vmul.f32 %v806_v42, %v961_v8 }
  0x43   : > { %576 = vst.msk [vmem:[%s981_s24 + $0x170] sm:$0xff] %vm529_vm0, %v511_v39  ;;  %577 = vst.msk [vmem:[%s981_s24 + $0x178] sm:$0xff] %vm529_vm0, %v512_v40  ;;  %v817_v49 = vunpack.c.l.bf16 %v861_v38  ;;  %v818_v50 = vunpack.c.h.bf16 %v861_v38  ;;  %v383_v51 = vmul.f32 %v809_v43, %v961_v8  ;;  %v384_v52 = vmul.f32 %v810_v44, %v961_v8 }
  0x44   : > { %v385_v53 = vmul.f32 %v813_v45, %v961_v8  ;;  %v386_v54 = vmul.f32 %v814_v46, %v961_v8  ;;  %v449_v55 = vadd.f32 %v963_v9, %v381_v47  ;;  %v450_v56 = vadd.f32 %v963_v9, %v382_v48 }
  0x45   : > { %v387_v57 = vmul.f32 %v817_v49, %v961_v8  ;;  %v388_v58 = vmul.f32 %v818_v50, %v961_v8  ;;  %v451_v59 = vadd.f32 %v963_v9, %v383_v51  ;;  %v452_v60 = vadd.f32 %v963_v9, %v384_v52 }
  0x46   : > { %v453_v61 = vadd.f32 %v963_v9, %v385_v53  ;;  %v454_v62 = vadd.f32 %v963_v9, %v386_v54  ;;  %v513_v0 = vmax.f32 %v449_v55, 0.0  ;;  %v514_v1 = vmax.f32 %v450_v56, 0.0 }
  0x47   : > { %v455_v2 = vadd.f32 %v963_v9, %v387_v57  ;;  %v456_v3 = vadd.f32 %v963_v9, %v388_v58  ;;  %v515_v6 = vmax.f32 %v451_v59, 0.0  ;;  %v516_v7 = vmax.f32 %v452_v60, 0.0 }
  0x48   : > { %v517_v10 = vmax.f32 %v453_v61, 0.0  ;;  %v518_v11 = vmax.f32 %v454_v62, 0.0  ;;  %578 = vst.msk [vmem:[%s981_s24 + $0x180] sm:$0xff] %vm529_vm0, %v513_v0  ;;  %579 = vst.msk [vmem:[%s981_s24 + $0x188] sm:$0xff] %vm529_vm0, %v514_v1  ;;  %v821_v15 = vunpack.c.l.bf16 %v862_v63  ;;  %v822_v16 = vunpack.c.h.bf16 %v862_v63 }
  0x49   : > { %v519_v13 = vmax.f32 %v455_v2, 0.0  ;;  %v520_v14 = vmax.f32 %v456_v3, 0.0  ;;  %580 = vst.msk [vmem:[%s981_s24 + $0x190] sm:$0xff] %vm529_vm0, %v515_v6  ;;  %581 = vst.msk [vmem:[%s981_s24 + $0x198] sm:$0xff] %vm529_vm0, %v516_v7  ;;  %v825_v17 = vunpack.c.l.bf16 %v863_v4  ;;  %v826_v18 = vunpack.c.h.bf16 %v863_v4 }
  0x4a   : > { %582 = vst.msk [vmem:[%s981_s24 + $0x1a0] sm:$0xff] %vm529_vm0, %v517_v10  ;;  %583 = vst.msk [vmem:[%s981_s24 + $0x1a8] sm:$0xff] %vm529_vm0, %v518_v11  ;;  %v829_v19 = vunpack.c.l.bf16 %v864_v5  ;;  %v830_v20 = vunpack.c.h.bf16 %v864_v5  ;;  %v389_v21 = vmul.f32 %v821_v15, %v961_v8  ;;  %v390_v22 = vmul.f32 %v822_v16, %v961_v8 }
  0x4b   : > { %584 = vst.msk [vmem:[%s981_s24 + $0x1b0] sm:$0xff] %vm529_vm0, %v519_v13  ;;  %585 = vst.msk [vmem:[%s981_s24 + $0x1b8] sm:$0xff] %vm529_vm0, %v520_v14  ;;  %v833_v23 = vunpack.c.l.bf16 %v865_v12  ;;  %v834_v24 = vunpack.c.h.bf16 %v865_v12  ;;  %v391_v25 = vmul.f32 %v825_v17, %v961_v8  ;;  %v392_v26 = vmul.f32 %v826_v18, %v961_v8 }
  0x4c   : > { %v393_v27 = vmul.f32 %v829_v19, %v961_v8  ;;  %v394_v28 = vmul.f32 %v830_v20, %v961_v8  ;;  %v457_v29 = vadd.f32 %v963_v9, %v389_v21  ;;  %v458_v30 = vadd.f32 %v963_v9, %v390_v22 }
  0x4d   : > { %v395_v31 = vmul.f32 %v833_v23, %v961_v8  ;;  %v396_v32 = vmul.f32 %v834_v24, %v961_v8  ;;  %v459_v33 = vadd.f32 %v963_v9, %v391_v25  ;;  %v460_v34 = vadd.f32 %v963_v9, %v392_v26 }
  0x4e   : > { %v461_v35 = vadd.f32 %v963_v9, %v393_v27  ;;  %v462_v36 = vadd.f32 %v963_v9, %v394_v28  ;;  %v521_v37 = vmax.f32 %v457_v29, 0.0  ;;  %v522_v38 = vmax.f32 %v458_v30, 0.0 }
  0x4f   : > { %v463_v39 = vadd.f32 %v963_v9, %v395_v31  ;;  %v464_v8 = vadd.f32 %v963_v9, %v396_v32  ;;  %v523_v40 = vmax.f32 %v459_v33, 0.0  ;;  %v524_v41 = vmax.f32 %v460_v34, 0.0 }
  0x50   : > { %v525_v42 = vmax.f32 %v461_v35, 0.0  ;;  %v526_v43 = vmax.f32 %v462_v36, 0.0  ;;  %586 = vst.msk [vmem:[%s981_s24 + $0x1c0] sm:$0xff] %vm529_vm0, %v521_v37  ;;  %587 = vst.msk [vmem:[%s981_s24 + $0x1c8] sm:$0xff] %vm529_vm0, %v522_v38 }
  0x51   : > { %v527_v44 = vmax.f32 %v463_v39, 0.0  ;;  %v528_v45 = vmax.f32 %v464_v8, 0.0  ;;  %588 = vst.msk [vmem:[%s981_s24 + $0x1d0] sm:$0xff] %vm529_vm0, %v523_v40  ;;  %589 = vst.msk [vmem:[%s981_s24 + $0x1d8] sm:$0xff] %vm529_vm0, %v524_v41 }
  0x52   : > { %590 = vst.msk [vmem:[%s981_s24 + $0x1e0] sm:$0xff] %vm529_vm0, %v525_v42  ;;  %591 = vst.msk [vmem:[%s981_s24 + $0x1e8] sm:$0xff] %vm529_vm0, %v526_v43 }
  0x53   : > { %592 = vst.msk [vmem:[%s981_s24 + $0x1f0] sm:$0xff] %vm529_vm0, %v527_v44  ;;  %593 = vst.msk [vmem:[%s981_s24 + $0x1f8] sm:$0xff] %vm529_vm0, %v528_v45 }
  0x54 PF: > { %s12_s11 = sadd.s32 1, %s912_s11   ;;  %s1269_s9 = smov %s908_s10 }
  0x55   : > { %p9_p5 = scmp.ge.s32.totalorder %s12_s11, 4   ;;  %s1270_s10 = smov %s1272_s12 }
  0x57   :  { %11 = sbr.rel (!%p9_p5) target bundleno = 2 (0x2), region = 61 }

// kernel: short_conv.2
= control target key start
LH: loop header
LB: loop body
LE: loop exit
PB: predicated region body
PF: predicated region fallthrough
CT: control target
= control target key end

     0   :  { %s9860_s24 = smov 0   ;;  %s9862_s1 = smov 0   ;;  %s12947_s0 = inlined_call_operand.vmem [shape: f32[2,8,8,32], index: 0, kind: input, shape index: {}, may-alias: {0,1,2}]   ;;  %s12948_s1 = inlined_call_operand.vmem [shape: f32[2,8,8,32], index: 1, kind: input, shape index: {}, may-alias: {0,1,2}]   ;;  %s12949_s2 = inlined_call_operand.vmem [shape: f32[2,8,8,32], index: 2, kind: input, shape index: {}, may-alias: {0,1,2}]   ;;  %s12950_s3 = inlined_call_operand.vmem [shape: bf16[128,128], index: 3, kind: input, shape index: {}]   ;;  %s12951_s4 = inlined_call_operand.vmem [shape: f32[1,128], index: 4, kind: input, shape index: {}]   ;;  %s12952_s5 = inlined_call_operand.vmem [shape: f32[1,128], index: 5, kind: input, shape index: {}]   ;;  %s12953_s6 = inlined_call_operand.vmem [shape: bf16[2,8,8,8,8], index: 6, kind: output, shape index: {0}]   ;;  %s12954_s7 = inlined_call_operand.vmem [shape: f32[2,2,8], index: 7, kind: output, shape index: {1}]  }
   0x1   :  { %s9864_s2 = smov 0  }
   0x2 LB: > { %s30_s25 = sadd.s32 1, %s9781_s1  ;;  %p9259_p0 = scmp.ge.s32.totalorder %s9785_s2, 1  ;;  %s9785_s2 = sphi %s9864_s2, %s18_s2   ;;  %s9781_s1 = sphi %s9862_s1, %s13082_s1   ;;  %s9777_s24 = sphi %s9860_s24, %s13081_s24  }
   0x3   : > { %p32_p1 = scmp.ge.s32.totalorder %s30_s25, 2  ;;  %p323_p2 = scmp.lt.s32.totalorder %s9785_s2, 3 }
   0x5   : > { %s13084_s25 = smov (%p32_p1, %s30_s25), 0  ;;  %p324_p3 = pnand %p9259_p0, %p323_p2 }
   0x7   : > { %327 = sbr.rel (%p324_p3) target bundleno = 1782 (0x6f6), region = 44 }
   0xc   : > { %p392_p4 = scmp.lt.s32.totalorder %s9777_s24, 1  ;;  %vm452_vm0 = vcmask 322560   ;;  %vm454_vm1 = vcmask 319488   ;;  %v9787_v0 = vmov 0   ;;  %s12967_s30 = smov 4   ;;  %vm1020_vm5 = vcmask 1042432  }
   0xd   : > { %458 = vst.msk [vmem:[#allocation2 + $0x10] sm:$0xf] %vm452_vm0, %v9787_v0  ;;  %453 = vst.msk [vmem:[#allocation2] sm:$0xf] %vm452_vm0, %v9787_v0  ;;  %vm840_vm2 = vsmask.f32 3328 }
   0xe   : > { %456 = vst.msk [vmem:[#allocation2 + $0x8] sm:$0xf] %vm452_vm0, %v9787_v0  ;;  %460 = vst.msk [vmem:[#allocation2 + $0x18] sm:$0xf] %vm452_vm0, %v9787_v0  ;;  %s13086_s24 = smov (!%p392_p4, %s9777_s24), 1  ;;  %vm1021_vm6 = vcmask 1046532  }
   0xf   : > { %462 = vst.msk [vmem:[#allocation2 + $0x20] sm:$0xf] %vm452_vm0, %v9787_v0  ;;  %464 = vst.msk [vmem:[#allocation2 + $0x28] sm:$0xf] %vm452_vm0, %v9787_v0  ;;  %s9513_s26 = sshll.u32 %s13086_s24, 6  ;;  %s9789_s8 = smov 12  }
  0x10   : > { %466 = vst.msk [vmem:[#allocation2 + $0x30] sm:$0xf] %vm452_vm0, %v9787_v0  ;;  %468 = vst.msk [vmem:[#allocation2 + $0x38] sm:$0xf] %vm452_vm0, %v9787_v0  ;;  %s9920_s29 = scalar_lea.vmem %s12947_s0, %s9513_s26  ;;  %vm841_vm3 = vsmask.f32 7440 }
  0x11   : > { %470 = vst.msk [vmem:[#allocation2 + $0x40] sm:$0xf] %vm452_vm0, %v9787_v0  ;;  %472 = vst.msk [vmem:[#allocation2 + $0x48] sm:$0xf] %vm452_vm0, %v9787_v0  ;;  %v542_v1 = vld [vmem:[%s9920_s29 + $0x8] sm:$0xff]  ;;  %v541_v2 = vld [vmem:[%s9920_s29] sm:$0xff] }
  0x12   : > { %455 = vst.msk [vmem:[#allocation2 + $0x4] sm:$0x1] %vm454_vm1, %v9787_v0  ;;  %457 = vst.msk [vmem:[#allocation2 + $0xc] sm:$0x1] %vm454_vm1, %v9787_v0  ;;  %v543_v3 = vld [vmem:[%s9920_s29 + $0x10] sm:$0xff]  ;;  %v9519_v4 = vpack.c.bf16 %v542_v1, %v542_v1  ;;  %v9518_v5 = vpack.c.bf16 %v541_v2, %v541_v2  ;;  %v544_v7 = vld [vmem:[%s9920_s29 + $0x18] sm:$0xff] }
  0x13   : > { %459 = vst.msk [vmem:[#allocation2 + $0x14] sm:$0x1] %vm454_vm1, %v9787_v0  ;;  %461 = vst.msk [vmem:[#allocation2 + $0x1c] sm:$0x1] %vm454_vm1, %v9787_v0  ;;  %v9520_v6 = vpack.c.bf16 %v543_v3, %v543_v3  ;;  %v9521_v15 = vpack.c.bf16 %v544_v7, %v544_v7  ;;  %v545_v16 = vld [vmem:[%s9920_s29 + $0x20] sm:$0xff]  ;;  %v546_v21 = vld [vmem:[%s9920_s29 + $0x28] sm:$0xff] }
  0x14   : > { %463 = vst.msk [vmem:[#allocation2 + $0x24] sm:$0x1] %vm454_vm1, %v9787_v0  ;;  %465 = vst.msk [vmem:[#allocation2 + $0x2c] sm:$0x1] %vm454_vm1, %v9787_v0  ;;  %v590_v8 = vshrl.u32 %v9519_v4, 16  ;;  %v593_v9 = vshll.u32 %v9519_v4, 16  ;;  %v9522_v20 = vpack.c.bf16 %v545_v16, %v545_v16  ;;  %v9523_v26 = vpack.c.bf16 %v546_v21, %v546_v21 }
  0x15   : > { %467 = vst.msk [vmem:[#allocation2 + $0x34] sm:$0x1] %vm454_vm1, %v9787_v0  ;;  %469 = vst.msk [vmem:[#allocation2 + $0x3c] sm:$0x1] %vm454_vm1, %v9787_v0  ;;  %v582_v10 = vshrl.u32 %v9518_v5, 16  ;;  %v585_v11 = vshll.u32 %v9518_v5, 16 }
  0x16   : > { %471 = vst.msk [vmem:[#allocation2 + $0x44] sm:$0x1] %vm454_vm1, %v9787_v0  ;;  %473 = vst.msk [vmem:[#allocation2 + $0x4c] sm:$0x1] %vm454_vm1, %v9787_v0  ;;  %v592_v12 = vrot.slane %v590_v8, 7  ;;  %v598_v14 = vshrl.u32 %v9520_v6, 16 }
  0x17   : > { %v584_v13 = vrot.slane %v582_v10, 7  ;;  %v601_v19 = vshll.u32 %v9520_v6, 16  ;;  %v606_v25 = vshrl.u32 %v9521_v15, 16  ;;  %v609_v27 = vshll.u32 %v9521_v15, 16  ;;  %v547_v32 = vld [vmem:[%s9920_s29 + $0x30] sm:$0xff]  ;;  %v548_v39 = vld [vmem:[%s9920_s29 + $0x38] sm:$0xff]  ;;  %vm9944_vm4 = vmor %vm840_vm2, %vm841_vm3 }
  0x18   : > { %v595_v17 = vor.u32 %v593_v9, %v592_v12  ;;  %v596_v22 = vrot.slane %v592_v12, 4  ;;  %v600_v24 = vrot.slane %v598_v14, 7  ;;  %v614_v31 = vshrl.u32 %v9522_v20, 16  ;;  %v824_v40 = vld [vmem:[#allocation2] sm:$0xf]  ;;  %vm9956_vm7 = vmor %vm1020_vm5, %vm1021_vm6  ;;  %s9790_s9 = smov 72  }
  0x19   : > { %v587_v18 = vor.u32 %v585_v11, %v584_v13  ;;  %v588_v23 = vrot.slane %v584_v13, 4  ;;  %v608_v30 = vrot.slane %v606_v25, 7  ;;  %v622_v33 = vshrl.u32 %v9523_v26, 16  ;;  %v1459_v49 = vld [vmem:[#allocation2 + $0x48] sm:$0xf]  ;;  %s9791_s10 = smov 24  }
  0x1a   : > { %649 = vrot.lane.b32.xlu1 %v595_v17, %s12967_s30  ;;  %v604_v28 = vrot.slane %v600_v24, 4  ;;  %v603_v29 = vor.u32 %v601_v19, %v600_v24  ;;  %v617_v34 = vshll.u32 %v9522_v20, 16  ;;  %v616_v37 = vrot.slane %v614_v31, 7  ;;  %v825_v59 = vld [vmem:[#allocation2 + $0x4] sm:$0x1]  ;;  %s9792_s11 = smov 84  }
  0x1b   : > { %645 = vrot.lane.b32.xlu0 %v587_v18, %s12967_s30  ;;  %v612_v35 = vrot.slane %v608_v30, 4  ;;  %v611_v36 = vor.u32 %v609_v27, %v608_v30  ;;  %v9524_v38 = vpack.c.bf16 %v547_v32, %v547_v32  ;;  %v624_v41 = vrot.slane %v622_v33, 7  ;;  %v988_v10 = vld [vmem:[#allocation2] sm:$0xe]  ;;  %v989_v14 = vld [vmem:[#allocation2 + $0x4] sm:$0x1] }
  0x1c   : > { %v625_v42 = vshll.u32 %v9523_v26, 16  ;;  %v620_v43 = vrot.slane %v616_v37, 4  ;;  %v619_v44 = vor.u32 %v617_v34, %v616_v37  ;;  %v9525_v46 = vpack.c.bf16 %v548_v39, %v548_v39  ;;  %v1403_v18 = vld [vmem:[#allocation2 + $0x48] sm:$0xf]  ;;  %v807_v24 = vld [vmem:[#allocation2] sm:$0xf] }
  0x1d   : > { %v630_v45 = vshrl.u32 %v9524_v38, 16  ;;  %v844_v47 = vshrl.u32 %v824_v40, 16  ;;  %v847_v48 = vshll.u32 %v824_v40, 16  ;;  %v628_v50 = vrot.slane %v624_v41, 4  ;;  %v1460_v5 = vld [vmem:[#allocation2 + $0x4c] sm:$0x1] }
  0x1e   : > { %651 = vrot.lane.b32.xlu1 %v596_v22, %s12967_s30  ;;  %v627_v51 = vor.u32 %v625_v42, %v624_v41  ;;  %v633_v53 = vshll.u32 %v9524_v38, 16  ;;  %v638_v54 = vshrl.u32 %v9525_v46, 16  ;;  %v1560_v57 = vshrl.u32 %v1459_v49, 16  ;;  %v706_v25 = vld [vmem:[#allocation2 + $0x10] sm:$0xf]  ;;  %s9793_s12 = smov 36  }
  0x1f   : > { %647 = vrot.lane.b32.xlu0 %v588_v23, %s12967_s30  ;;  %v632_v52 = vrot.slane %v630_v45, 7  ;;  %v846_v55 = vrot.slane %v844_v47, 4  ;;  %v849_v56 = vrot.slane %v847_v48, 5  ;;  %v1563_v58 = vshll.u32 %v1459_v49, 16  ;;  %v697_v26 = vld [vmem:[#allocation2 + $0x8] sm:$0xf] }
  0x20   : > { %v640_v62 = vrot.slane %v638_v54, 7  ;;  %v641_v63 = vshll.u32 %v9525_v46, 16  ;;  %v853_v2 = vshll.u32 %v825_v59, 16  ;;  %v1562_v3 = vrot.slane %v1560_v57, 4  ;;  %v709_v32 = vld [vmem:[#allocation2 + $0x14] sm:$0x1] }
  0x21   : > { %v636_v60 = vrot.slane %v632_v52, 4  ;;  %v635_v61 = vor.u32 %v633_v53, %v632_v52  ;;  %v850_v1 = vor.u32 %v849_v56, %v846_v55  ;;  %v1565_v4 = vrot.slane %v1563_v58, 5  ;;  %v703_v33 = vld [vmem:[#allocation2 + $0xc] sm:$0x1]  ;;  %v715_v38 = vld [vmem:[#allocation2 + $0x1c] sm:$0x1] }
  0x22   : > { %655 = vrot.lane.b32.xlu1 %v604_v28, %s12967_s30  ;;  %v644_v6 = vrot.slane %v640_v62, 4  ;;  %v643_v7 = vor.u32 %v641_v63, %v640_v62  ;;  %v855_v9 = vrot.slane %v853_v2, 5  ;;  %v1569_v12 = vshll.u32 %v1460_v5, 16  ;;  %v712_v39 = vld [vmem:[#allocation2 + $0x18] sm:$0xf]  ;;  %s9794_s13 = smov 60  }
  0x23   : > { %653 = vrot.lane.b32.xlu0 %v603_v29, %s12967_s30  ;;  %v851_v8 = vrot.slane %v850_v1, 4  ;;  %v1566_v11 = vor.u32 %v1565_v4, %v1562_v3  ;;  %v9279_v15 = vrot.slane %v988_v10, 9  ;;  %v1025_v17 = vrot.slane %v989_v14, 5  ;;  %v721_v46 = vld [vmem:[#allocation2 + $0x24] sm:$0x1]  ;;  %s9795_s14 = smov 96  }
  0x24   : > { %v9954_v20 = vrot.slane %v1569_v12, 5  ;;  %vm476_vm8 = vcmask 1044320   ;;  %vm815_vm9 = vcmask 93184   ;;  %vm694_vm10 = vcmask 289824   ;;  %v718_v47 = vld [vmem:[#allocation2 + $0x20] sm:$0xf] }
  0x25   : > { %v856_v16 = vsel %vm9944_vm4, %v851_v8, %v855_v9  ;;  %v9952_v19 = vrot.slane %v1566_v11, 4  ;;  %v9964_v22 = vsel %vm9956_vm7, %v9279_v15, %v1025_v17  ;;  %477 = vst.msk [vmem:[#allocation3] sm:$0xf] %vm476_vm8, %v9787_v0  ;;  %478 = vst.msk [vmem:[#allocation3 + $0x4] sm:$0xf] %vm476_vm8, %v9787_v0  ;;  %vm700_vm13 = vcmask 286752  }
  0x26   : > { %659 = vrot.lane.b32.xlu1 %v612_v35, %s12967_s30  ;;  %479 = vst.msk [vmem:[#allocation3 + $0x8] sm:$0xf] %vm476_vm8, %v9787_v0  ;;  %480 = vst.msk [vmem:[#allocation3 + $0xc] sm:$0xf] %vm476_vm8, %v9787_v0  ;;  %vm695_vm11 = vsmask.f32 7938 }
  0x27   : > { %657 = vrot.lane.b32.xlu0 %v611_v36, %s12967_s30  ;;  %v1572_v23 = vsel %vm9944_vm4, %v9952_v19, %v9954_v20  ;;  %481 = vst.msk [vmem:[#allocation3 + $0x10] sm:$0xf] %vm476_vm8, %v9787_v0  ;;  %482 = vst.msk [vmem:[#allocation3 + $0x14] sm:$0xf] %vm476_vm8, %v9787_v0  ;;  %vm701_vm14 = vsmask.f32 256 }
  0x28   : > { %483 = vst.msk [vmem:[#allocation3 + $0x18] sm:$0xf] %vm476_vm8, %v9787_v0  ;;  %484 = vst.msk [vmem:[#allocation3 + $0x1c] sm:$0xf] %vm476_vm8, %v9787_v0  ;;  %v727_v52 = vld [vmem:[#allocation2 + $0x2c] sm:$0x1] }
  0x29   : > { %485 = vst.msk [vmem:[#allocation3 + $0x20] sm:$0xf] %vm476_vm8, %v9787_v0  ;;  %486 = vst.msk [vmem:[#allocation3 + $0x24] sm:$0xf] %vm476_vm8, %v9787_v0  ;;  %v724_v53 = vld [vmem:[#allocation2 + $0x28] sm:$0xf] }
  0x2a   : > { %663 = vrot.lane.b32.xlu1 %v620_v43, %s12967_s30  ;;  %487 = vst.msk [vmem:[#allocation3 + $0x28] sm:$0xf] %vm476_vm8, %v9787_v0  ;;  %488 = vst.msk [vmem:[#allocation3 + $0x2c] sm:$0xf] %vm476_vm8, %v9787_v0  ;;  %v733_v59 = vld [vmem:[#allocation2 + $0x34] sm:$0x1] }
  0x2b   : > { %661 = vrot.lane.b32.xlu0 %v619_v44, %s12967_s30  ;;  %489 = vst.msk [vmem:[#allocation3 + $0x30] sm:$0xf] %vm476_vm8, %v9787_v0  ;;  %490 = vst.msk [vmem:[#allocation3 + $0x34] sm:$0xf] %vm476_vm8, %v9787_v0  ;;  %v739_v3 = vld [vmem:[#allocation2 + $0x3c] sm:$0x1] }
  0x2c   : > { %491 = vst.msk [vmem:[#allocation3 + $0x38] sm:$0xf] %vm476_vm8, %v9787_v0  ;;  %492 = vst.msk [vmem:[#allocation3 + $0x3c] sm:$0xf] %vm476_vm8, %v9787_v0  ;;  %v736_v4 = vld [vmem:[#allocation2 + $0x38] sm:$0xf] }
  0x2d   : > { %493 = vst.msk [vmem:[#allocation3 + $0x40] sm:$0xf] %vm476_vm8, %v9787_v0  ;;  %494 = vst.msk [vmem:[#allocation3 + $0x44] sm:$0xf] %vm476_vm8, %v9787_v0  ;;  %v745_v10 = vld [vmem:[#allocation2 + $0x44] sm:$0x1] }
  0x2e   : > { %667 = vrot.lane.b32.xlu1 %v628_v50, %s12967_s30  ;;  %495 = vst.msk [vmem:[#allocation3 + $0x48] sm:$0xf] %vm476_vm8, %v9787_v0  ;;  %496 = vst.msk [vmem:[#allocation3 + $0x4c] sm:$0xf] %vm476_vm8, %v9787_v0  ;;  %v742_v11 = vld [vmem:[#allocation2 + $0x40] sm:$0xf] }
  0x2f   : > { %665 = vrot.lane.b32.xlu0 %v627_v51, %s12967_s30  ;;  %497 = vst.msk [vmem:[#allocation3 + $0x50] sm:$0xf] %vm476_vm8, %v9787_v0  ;;  %498 = vst.msk [vmem:[#allocation3 + $0x54] sm:$0xf] %vm476_vm8, %v9787_v0  ;;  %vm979_vm0 = vcmask 191584   ;;  %vm1079_vm1 = vcmask 289984  }
  0x30   : > { %499 = vst.msk [vmem:[#allocation3 + $0x58] sm:$0xf] %vm476_vm8, %v9787_v0  ;;  %500 = vst.msk [vmem:[#allocation3 + $0x5c] sm:$0xf] %vm476_vm8, %v9787_v0  ;;  %s9796_s19 = smov 48   ;;  %vm1128_vm2 = vcmask 388384  }
  0x31   : > { %501 = vst.msk [vmem:[#allocation3 + $0x60] sm:$0xf] %vm476_vm8, %v9787_v0  ;;  %502 = vst.msk [vmem:[#allocation3 + $0x64] sm:$0xf] %vm476_vm8, %v9787_v0  ;;  %s9797_s20 = smov 124   ;;  %s9799_s21 = smov 20  }
  0x32   : > { %671 = vrot.lane.b32.xlu1 %v636_v60, %s12967_s30  ;;  %503 = vst.msk [vmem:[#allocation3 + $0x68] sm:$0xf] %vm476_vm8, %v9787_v0  ;;  %504 = vst.msk [vmem:[#allocation3 + $0x6c] sm:$0xf] %vm476_vm8, %v9787_v0  ;;  %v730_v60 = vld [vmem:[#allocation2 + $0x30] sm:$0xf] }
  0x33   : > { %669 = vrot.lane.b32.xlu0 %v635_v61, %s12967_s30  ;;  %505 = vst.msk [vmem:[#allocation3 + $0x70] sm:$0xf] %vm476_vm8, %v9787_v0  ;;  %506 = vst.msk [vmem:[#allocation3 + $0x74] sm:$0xf] %vm476_vm8, %v9787_v0  ;;  %s12975_s22 = smov 32   ;;  %s12973_s23 = smov 44  }
  0x34   : > { %507 = vst.msk [vmem:[#allocation3 + $0x78] sm:$0xf] %vm476_vm8, %v9787_v0  ;;  %508 = vst.msk [vmem:[#allocation3 + $0x7c] sm:$0xf] %vm476_vm8, %v9787_v0  ;;  %vm1289_vm3 = vcmask 486784   ;;  %vm1386_vm5 = vcmask 585184  }
  0x35   : > { %509 = vst.msk [vmem:[#allocation3 + $0x80] sm:$0xf] %vm476_vm8, %v9787_v0  ;;  %510 = vst.msk [vmem:[#allocation3 + $0x84] sm:$0xf] %vm476_vm8, %v9787_v0  ;;  %vm1436_vm6 = vcmask 683584   ;;  %s12971_s26 = smov 56  }
  0x36   : > { %675 = vrot.lane.b32.xlu1 %v644_v6, %s12967_s30  ;;  %511 = vst.msk [vmem:[#allocation3 + $0x88] sm:$0xf] %vm476_vm8, %v9787_v0  ;;  %512 = vst.msk [vmem:[#allocation3 + $0x8c] sm:$0xf] %vm476_vm8, %v9787_v0  ;;  %s12969_s27 = smov 68   ;;  %s9804_s28 = smov 80  }
  0x37   : > { %673 = vrot.lane.b32.xlu0 %v643_v7, %s12967_s30  ;;  %513 = vst.msk [vmem:[#allocation3 + $0x90] sm:$0xf] %vm476_vm8, %v9787_v0  ;;  %514 = vst.msk [vmem:[#allocation3 + $0x94] sm:$0xf] %vm476_vm8, %v9787_v0  ;;  %s9805_s29 = smov 92   ;;  %s9806_s15 = smov 120  }
  0x38   : > { %515 = vst.msk [vmem:[#allocation3 + $0x98] sm:$0xf] %vm476_vm8, %v9787_v0  ;;  %516 = vst.msk [vmem:[#allocation3 + $0x9c] sm:$0xf] %vm476_vm8, %v9787_v0  ;;  %s12965_s16 = smov 16   ;;  %s12963_s17 = smov 28  }
  0x39   : > { %517 = vst.msk [vmem:[#allocation3 + $0xa0] sm:$0xf] %vm476_vm8, %v9787_v0  ;;  %518 = vst.msk [vmem:[#allocation3 + $0xa4] sm:$0xf] %vm476_vm8, %v9787_v0  ;;  %s12955_s18 = smov 40  }
  0x3a   : > { %1426 = vrot.lane.b32.xlu1 %v1403_v18, %s9790_s9  ;;  %519 = vst.msk [vmem:[#allocation3 + $0xa8] sm:$0xf] %vm476_vm8, %v9787_v0  ;;  %520 = vst.msk [vmem:[#allocation3 + $0xac] sm:$0xf] %vm476_vm8, %v9787_v0 }
  0x3b   : > { %955 = vrot.lane.b32.xlu0 %v856_v16, %s9789_s8  ;;  %521 = vst.msk [vmem:[#allocation3 + $0xb0] sm:$0xf] %vm476_vm8, %v9787_v0  ;;  %522 = vst.msk [vmem:[#allocation3 + $0xb4] sm:$0xf] %vm476_vm8, %v9787_v0 }
  0x3c   : > { %523 = vst.msk [vmem:[#allocation3 + $0xb8] sm:$0xf] %vm476_vm8, %v9787_v0  ;;  %524 = vst.msk [vmem:[#allocation3 + $0xbc] sm:$0xf] %vm476_vm8, %v9787_v0 }
  0x3d   : > { %525 = vst.msk [vmem:[#allocation3 + $0xc0] sm:$0xf] %vm476_vm8, %v9787_v0  ;;  %526 = vst.msk [vmem:[#allocation3 + $0xc4] sm:$0xf] %vm476_vm8, %v9787_v0 }
  0x3e   : > { %527 = vst.msk [vmem:[#allocation3 + $0xc8] sm:$0xf] %vm476_vm8, %v9787_v0  ;;  %528 = vst.msk [vmem:[#allocation3 + $0xcc] sm:$0xf] %vm476_vm8, %v9787_v0  ;;  %1587 = vrot.lane.b32.xlu1 %v1572_v23, %s9792_s11 }
  0x3f   : > { %529 = vst.msk [vmem:[#allocation3 + $0xd0] sm:$0xf] %vm476_vm8, %v9787_v0  ;;  %530 = vst.msk [vmem:[#allocation3 + $0xd4] sm:$0xf] %vm476_vm8, %v9787_v0  ;;  %1055 = vrot.lane.b32.xlu0 %v9964_v22, %s9791_s10 }
  0x40   : > { %531 = vst.msk [vmem:[#allocation3 + $0xd8] sm:$0xf] %vm476_vm8, %v9787_v0  ;;  %532 = vst.msk [vmem:[#allocation3 + $0xdc] sm:$0xf] %vm476_vm8, %v9787_v0 }
  0x41   : > { %533 = vst.msk [vmem:[#allocation3 + $0xe0] sm:$0xf] %vm476_vm8, %v9787_v0  ;;  %534 = vst.msk [vmem:[#allocation3 + $0xe4] sm:$0xf] %vm476_vm8, %v9787_v0 }
  0x42   : > { %535 = vst.msk [vmem:[#allocation3 + $0xe8] sm:$0xf] %vm476_vm8, %v9787_v0  ;;  %536 = vst.msk [vmem:[#allocation3 + $0xec] sm:$0xf] %vm476_vm8, %v9787_v0 }
  0x43   : > { %537 = vst.msk [vmem:[#allocation3 + $0xf0] sm:$0xf] %vm476_vm8, %v9787_v0  ;;  %538 = vst.msk [vmem:[#allocation3 + $0xf4] sm:$0xf] %vm476_vm8, %v9787_v0 }
  0x44   : > { %539 = vst.msk [vmem:[#allocation3 + $0xf8] sm:$0xf] %vm476_vm8, %v9787_v0  ;;  %540 = vst.msk [vmem:[#allocation3 + $0xfc] sm:$0xf] %vm476_vm8, %v9787_v0  ;;  %vm1597_vm8 = vcmask 781984  }
  0x45   : > { %816 = vst.msk [vmem:[#allocation3] sm:$0xf] %vm815_vm9, %v807_v24  ;;  %vm10107_vm12 = vmand %vm694_vm10, %vm695_vm11  ;;  %vm1694_vm10 = vcmask 880384   ;;  %vm8728_vm11 = vcmask 60416  }
  0x46   : > { %vm10115_vm15 = vmand %vm700_vm13, %vm701_vm14 }
  0x8c   : > { %v650_v27 = vpop.permute.xlu1 %649 }
  0x8d   : > { %v646_v28 = vpop.permute.xlu0 %645  ;;  %v707_v29 = vsel %vm10107_vm12, %v650_v27, %v706_v25 }
  0x8e   : > { %v698_v30 = vsel %vm10107_vm12, %v646_v28, %v697_v26  ;;  %708 = vst [vmem:[#allocation2 + $0x10] sm:$0xf] %v707_v29 }
  0x8f   : > { %699 = vst [vmem:[#allocation2 + $0x8] sm:$0xf] %v698_v30 }
  0x90   : > { %v652_v34 = vpop.permute.xlu1 %651 }
  0x91   : > { %v648_v35 = vpop.permute.xlu0 %647  ;;  %v710_v36 = vsel %vm10115_vm15, %v652_v34, %v709_v32 }
  0x92   : > { %v704_v37 = vsel %vm10115_vm15, %v648_v35, %v703_v33  ;;  %711 = vst [vmem:[#allocation2 + $0x14] sm:$0x1] %v710_v36 }
  0x93   : > { %705 = vst [vmem:[#allocation2 + $0xc] sm:$0x1] %v704_v37 }
  0x94   : > { %v656_v40 = vpop.permute.xlu1 %655 }
  0x95   : > { %v654_v41 = vpop.permute.xlu0 %653  ;;  %v716_v42 = vsel %vm10115_vm15, %v656_v40, %v715_v38  ;;  %v1089_v45 = vld [vmem:[#allocation2 + $0x10] sm:$0xf] }
  0x96   : > { %v713_v43 = vsel %vm10107_vm12, %v654_v41, %v712_v39  ;;  %v1088_v44 = vld [vmem:[#allocation2 + $0x8] sm:$0xf]  ;;  %717 = vst [vmem:[#allocation2 + $0x1c] sm:$0x1] %v716_v42  ;;  %1106 = vrot.lane.b32.xlu1 %v1089_v45, %s9793_s12  ;;  %v1396_v22 = vld [vmem:[#allocation2 + $0x10] sm:$0xf] }
  0x97   : > { %714 = vst [vmem:[#allocation2 + $0x18] sm:$0xf] %v713_v43  ;;  %1104 = vrot.lane.b32.xlu0 %v1088_v44, %s9793_s12  ;;  %v992_v25 = vld [vmem:[#allocation2 + $0x10] sm:$0xe]  ;;  %v990_v32 = vld [vmem:[#allocation2 + $0x8] sm:$0xe] }
  0x98   : > { %v660_v48 = vpop.permute.xlu1 %659  ;;  %v9281_v30 = vrot.slane %v992_v25, 9  ;;  %v9280_v40 = vrot.slane %v990_v32, 9 }
  0x99   : > { %v658_v49 = vpop.permute.xlu0 %657  ;;  %v722_v50 = vsel %vm10115_vm15, %v660_v48, %v721_v46  ;;  %v993_v26 = vld [vmem:[#allocation2 + $0x14] sm:$0x1] }
  0x9a   : > { %v719_v51 = vsel %vm10107_vm12, %v658_v49, %v718_v47  ;;  %723 = vst [vmem:[#allocation2 + $0x24] sm:$0x1] %v722_v50  ;;  %v991_v27 = vld [vmem:[#allocation2 + $0xc] sm:$0x1]  ;;  %v1033_v31 = vrot.slane %v993_v26, 5 }
  0x9b   : > { %720 = vst [vmem:[#allocation2 + $0x20] sm:$0xf] %v719_v51  ;;  %v1029_v33 = vrot.slane %v991_v27, 5 }
  0x9c   : > { %v664_v54 = vpop.permute.xlu1 %663  ;;  %v1034_v45 = vsel %vm9956_vm7, %v9281_v30, %v1033_v31 }
  0x9d   : > { %v662_v55 = vpop.permute.xlu0 %661  ;;  %v728_v56 = vsel %vm10115_vm15, %v664_v54, %v727_v52  ;;  %v995_v36 = vld [vmem:[#allocation2 + $0x1c] sm:$0x1]  ;;  %v1030_v46 = vsel %vm9956_vm7, %v9280_v40, %v1029_v33 }
  0x9e   : > { %v725_v57 = vsel %vm10107_vm12, %v662_v55, %v724_v53  ;;  %v1090_v58 = vld [vmem:[#allocation2 + $0x18] sm:$0xf]  ;;  %729 = vst [vmem:[#allocation2 + $0x2c] sm:$0x1] %v728_v56  ;;  %v1037_v44 = vrot.slane %v995_v36, 5 }
  0x9f   : > { %726 = vst [vmem:[#allocation2 + $0x28] sm:$0xf] %v725_v57  ;;  %1108 = vrot.lane.b32.xlu0 %v1090_v58, %s9793_s12  ;;  %v1397_v0 = vld [vmem:[#allocation2 + $0x18] sm:$0xf]  ;;  %v828_v53 = vld [vmem:[#allocation2 + $0x10] sm:$0xf] }
  0xa0   : > { %v668_v61 = vpop.permute.xlu1 %667  ;;  %v994_v35 = vld [vmem:[#allocation2 + $0x18] sm:$0xe]  ;;  %v1299_v58 = vld [vmem:[#allocation2 + $0xc] sm:$0x1]  ;;  %v10192_v26 = vld [vmem:[#allocation2 + $0x1c] sm:$0x1] }
  0xa1   : > { %v666_v62 = vpop.permute.xlu0 %665  ;;  %v734_v63 = vsel %vm10115_vm15, %v668_v61, %v733_v59  ;;  %v997_v39 = vld [vmem:[#allocation2 + $0x24] sm:$0x1]  ;;  %v9282_v43 = vrot.slane %v994_v35, 9  ;;  %v1298_v61 = vld [vmem:[#allocation2 + $0x8] sm:$0xe] }
  0xa2   : > { %v731_v1 = vsel %vm10107_vm12, %v666_v62, %v730_v60  ;;  %v1091_v2 = vld [vmem:[#allocation2 + $0x20] sm:$0xf]  ;;  %735 = vst [vmem:[#allocation2 + $0x34] sm:$0x1] %v734_v63  ;;  %v1041_v42 = vrot.slane %v997_v39, 5  ;;  %v1332_v63 = vrot.slane %v1299_v58, 5 }
  0xa3   : > { %732 = vst [vmem:[#allocation2 + $0x30] sm:$0xf] %v731_v1  ;;  %1110 = vrot.lane.b32.xlu1 %v1091_v2, %s9793_s12  ;;  %v1398_v24 = vld [vmem:[#allocation2 + $0x20] sm:$0xf]  ;;  %v1038_v52 = vsel %vm9956_vm7, %v9282_v43, %v1037_v44  ;;  %v1300_v62 = vld [vmem:[#allocation2 + $0x10] sm:$0xe] }
  0xa4   : > { %v672_v5 = vpop.permute.xlu1 %671  ;;  %v996_v34 = vld [vmem:[#allocation2 + $0x20] sm:$0xe]  ;;  %v1301_v1 = vld [vmem:[#allocation2 + $0x14] sm:$0x1]  ;;  %v872_v2 = vshrl.u32 %v828_v53, 16 }
  0xa5   : > { %v670_v6 = vpop.permute.xlu0 %669  ;;  %v740_v7 = vsel %vm10115_vm15, %v672_v5, %v739_v3  ;;  %v9283_v41 = vrot.slane %v996_v34, 9  ;;  %v999_v50 = vld [vmem:[#allocation2 + $0x2c] sm:$0x1]  ;;  %v875_v3 = vshll.u32 %v828_v53, 16  ;;  %v1305_v25 = vld [vmem:[#allocation2 + $0x24] sm:$0x1] }
  0xa6   : > { %v737_v8 = vsel %vm10107_vm12, %v670_v6, %v736_v4  ;;  %v1092_v9 = vld [vmem:[#allocation2 + $0x28] sm:$0xf]  ;;  %741 = vst [vmem:[#allocation2 + $0x3c] sm:$0x1] %v740_v7  ;;  %v1045_v57 = vrot.slane %v999_v50, 5  ;;  %v1344_v36 = vrot.slane %v1305_v25, 5 }
  0xa7   : > { %738 = vst [vmem:[#allocation2 + $0x38] sm:$0xf] %v737_v8  ;;  %1112 = vrot.lane.b32.xlu0 %v1092_v9, %s9793_s12  ;;  %v1399_v29 = vld [vmem:[#allocation2 + $0x28] sm:$0xf]  ;;  %v1042_v51 = vsel %vm9956_vm7, %v9283_v41, %v1041_v42  ;;  %v1302_v8 = vld [vmem:[#allocation2 + $0x18] sm:$0xe] }
  0xa8   : > { %v676_v12 = vpop.permute.xlu1 %675  ;;  %v998_v47 = vld [vmem:[#allocation2 + $0x28] sm:$0xe]  ;;  %v1303_v9 = vld [vmem:[#allocation2 + $0x1c] sm:$0x1]  ;;  %v1610_v31 = vld [vmem:[#allocation2 + $0x20] sm:$0xe] }
  0xa9   : > { %v674_v14 = vpop.permute.xlu0 %673  ;;  %v746_v15 = vsel %vm10115_vm15, %v676_v12, %v745_v10  ;;  %v1001_v49 = vld [vmem:[#allocation2 + $0x34] sm:$0x1]  ;;  %v9284_v56 = vrot.slane %v998_v47, 9  ;;  %v9287_v10 = vrot.slane %v1298_v61, 9  ;;  %v9288_v12 = vrot.slane %v1300_v62, 9 }
  0xaa   : > { %v743_v16 = vsel %vm10107_vm12, %v674_v14, %v742_v11  ;;  %v1093_v17 = vld [vmem:[#allocation2 + $0x30] sm:$0xf]  ;;  %747 = vst [vmem:[#allocation2 + $0x44] sm:$0x1] %v746_v15  ;;  %v1049_v55 = vrot.slane %v1001_v49, 5  ;;  %v1336_v14 = vrot.slane %v1301_v1, 5 }
  0xab   : > { %744 = vst [vmem:[#allocation2 + $0x40] sm:$0xf] %v743_v16  ;;  %1114 = vrot.lane.b32.xlu1 %v1093_v17, %s9793_s12  ;;  %v1400_v28 = vld [vmem:[#allocation2 + $0x30] sm:$0xf]  ;;  %v1046_v5 = vsel %vm9956_vm7, %v9284_v56, %v1045_v57  ;;  %v10184_v15 = vld [vmem:[#allocation2 + $0x14] sm:$0x1] }
  0xac   : > { %v1000_v48 = vld [vmem:[#allocation2 + $0x30] sm:$0xe]  ;;  %v829_v16 = vld [vmem:[#allocation2 + $0x14] sm:$0x1]  ;;  %v9289_v17 = vrot.slane %v1302_v8, 9  ;;  %v1640_v30 = vrot.slane %v10184_v15, 5  ;;  %v1337_v41 = vsel %vm9956_vm7, %v9288_v12, %v1336_v14 }
  0xad   : > { %v956_v18 = vpop.permute.xlu0 %955  ;;  %v9285_v54 = vrot.slane %v1000_v48, 9  ;;  %v1003_v60 = vld [vmem:[#allocation2 + $0x3c] sm:$0x1]  ;;  %v10182_v11 = vld [vmem:[#allocation2 + $0x10] sm:$0xe]  ;;  %v881_v34 = vshll.u32 %v829_v16, 16 }
  0xae   : > { %v1094_v19 = vld [vmem:[#allocation2 + $0x38] sm:$0xf]  ;;  %980 = vst.msk [vmem:[#allocation3] sm:$0xf] %vm979_vm0, %v956_v18  ;;  %v1053_v7 = vrot.slane %v1003_v60, 5  ;;  %v1340_v18 = vrot.slane %v1303_v9, 5 }
  0xaf   : > { %1116 = vrot.lane.b32.xlu0 %v1094_v19, %s9793_s12  ;;  %v1401_v38 = vld [vmem:[#allocation2 + $0x38] sm:$0xf]  ;;  %v1050_v4 = vsel %vm9956_vm7, %v9285_v54, %v1049_v55  ;;  %v1306_v27 = vld [vmem:[#allocation2 + $0x28] sm:$0xe]  ;;  %v1611_v32 = vld [vmem:[#allocation2 + $0x24] sm:$0x1] }
  0xb0   : > { %v1002_v59 = vld [vmem:[#allocation2 + $0x38] sm:$0xe]  ;;  %v826_v39 = vld [vmem:[#allocation2 + $0x8] sm:$0xf]  ;;  %v1341_v40 = vsel %vm9956_vm7, %v9289_v17, %v1340_v18  ;;  %v9291_v42 = vrot.slane %v1306_v27, 9  ;;  %v9297_v48 = vrot.slane %v1610_v31, 9 }
  0xb1   : > { %v1056_v20 = vpop.permute.xlu0 %1055  ;;  %v9286_v6 = vrot.slane %v1002_v59, 9  ;;  %v10186_v19 = vld [vmem:[#allocation2 + $0x18] sm:$0xe]  ;;  %v1308_v44 = vld [vmem:[#allocation2 + $0x30] sm:$0xe]  ;;  %v1648_v49 = vrot.slane %v1611_v32, 5 }
  0xb2   : > { %v1095_v23 = vld [vmem:[#allocation2 + $0x40] sm:$0xf]  ;;  %1080 = vst.msk [vmem:[#allocation3] sm:$0xf] %vm1079_vm1, %v1056_v20  ;;  %v874_v20 = vrot.slane %v872_v2, 4  ;;  %v9296_v33 = vrot.slane %v10186_v19, 9 }
  0xb3   : > { %1412 = vrot.lane.b32.xlu0 %v1396_v22, %s9790_s9  ;;  %1118 = vrot.lane.b32.xlu1 %v1095_v23, %s9793_s12  ;;  %v1402_v37 = vld [vmem:[#allocation2 + $0x40] sm:$0xf]  ;;  %v877_v22 = vrot.slane %v875_v3, 5  ;;  %v1333_v23 = vsel %vm9956_vm7, %v9287_v10, %v1332_v63  ;;  %v1311_v47 = vld [vmem:[#allocation2 + $0x3c] sm:$0x1]  ;;  %v861_v53 = vshll.u32 %v826_v39, 16 }
  0xb4   : > { %v1612_v50 = vld [vmem:[#allocation2 + $0x28] sm:$0xe]  ;;  %v9292_v54 = vrot.slane %v1308_v44, 9  ;;  %v10208_v57 = vrot.slane %v881_v34, 5  ;;  %v1613_v58 = vld [vmem:[#allocation2 + $0x2c] sm:$0x1] }
  0xb5   : > { %v1356_v62 = vrot.slane %v1311_v47, 5  ;;  %v833_v63 = vld [vmem:[#allocation2 + $0x24] sm:$0x1]  ;;  %v836_v1 = vld [vmem:[#allocation2 + $0x30] sm:$0xf]  ;;  %v863_v9 = vrot.slane %v861_v53, 5 }
  0xb6   : > { %v1312_v2 = vld [vmem:[#allocation2 + $0x40] sm:$0xe]  ;;  %v1313_v3 = vld [vmem:[#allocation2 + $0x44] sm:$0x1]  ;;  %v827_v12 = vld [vmem:[#allocation2 + $0xc] sm:$0x1] }
  0xb7   : > { %1416 = vrot.lane.b32.xlu0 %v1398_v24, %s9790_s9  ;;  %1414 = vrot.lane.b32.xlu1 %v1397_v0, %s9790_s9  ;;  %v1054_v24 = vsel %vm9956_vm7, %v9286_v6, %v1053_v7  ;;  %v1304_v0 = vld [vmem:[#allocation2 + $0x20] sm:$0xe]  ;;  %v1652_v6 = vrot.slane %v1613_v58, 5  ;;  %v928_v14 = vshrl.u32 %v836_v1, 16  ;;  %v931_v15 = vshll.u32 %v836_v1, 16 }
  0xb8   : > { %v9290_v35 = vrot.slane %v1304_v0, 9  ;;  %v9294_v17 = vrot.slane %v1312_v2, 9  ;;  %v1360_v18 = vrot.slane %v1313_v3, 5  ;;  %v909_v19 = vshll.u32 %v833_v63, 16  ;;  %v1137_v25 = vld [vmem:[#allocation2 + $0x8] sm:$0xf] }
  0xb9   : > { %v1141_v31 = vld [vmem:[#allocation2 + $0x18] sm:$0xf]  ;;  %v837_v32 = vld [vmem:[#allocation2 + $0x34] sm:$0x1]  ;;  %v930_v34 = vrot.slane %v928_v14, 4 }
  0xba   : > { %v1345_v60 = vsel %vm9956_vm7, %v9290_v35, %v1344_v36  ;;  %v933_v35 = vrot.slane %v931_v15, 5  ;;  %v1182_v44 = vshrl.u32 %v1141_v31, 16  ;;  %v1142_v1 = vld [vmem:[#allocation2 + $0x1c] sm:$0x1] }
  0xbb   : > { %1420 = vrot.lane.b32.xlu0 %v1400_v28, %s9790_s9  ;;  %1418 = vrot.lane.b32.xlu1 %v1399_v29, %s9790_s9  ;;  %v1307_v28 = vld [vmem:[#allocation2 + $0x2c] sm:$0x1]  ;;  %v9295_v29 = vrot.slane %v10182_v11, 9  ;;  %v1191_v15 = vshll.u32 %v1142_v1, 16  ;;  %v9722_v1 = vld [vmem:[%s12950_s3 + $0x30] sm:$0xff]  }
  0xbc   : > { %v1348_v43 = vrot.slane %v1307_v28, 5  ;;  %v1184_v2 = vrot.slane %v1182_v44, 4 }
  0xbd   : > { %v1641_v11 = vsel %vm9956_vm7, %v9295_v29, %v1640_v30  ;;  %v867_v29 = vshll.u32 %v827_v12, 16  ;;  %v834_v30 = vld [vmem:[#allocation2 + $0x28] sm:$0xf] }
  0xbe   : > { %v1349_v59 = vsel %vm9956_vm7, %v9291_v42, %v1348_v43  ;;  %v914_v42 = vshrl.u32 %v834_v30, 16  ;;  %v917_v43 = vshll.u32 %v834_v30, 16 }
  0xbf   : > { %1424 = vrot.lane.b32.xlu0 %v1402_v37, %s9790_s9  ;;  %1422 = vrot.lane.b32.xlu1 %v1401_v38, %s9790_s9  ;;  %v1644_v37 = vrot.slane %v10192_v26, 5  ;;  %v878_v38 = vor.u32 %v877_v22, %v874_v20  ;;  %v830_v20 = vld [vmem:[#allocation2 + $0x18] sm:$0xf]  ;;  %v1649_v22 = vsel %vm9956_vm7, %v9297_v48, %v1648_v49  ;;  %v869_v49 = vrot.slane %v867_v29, 5 }
  0xc0   : > { %v886_v36 = vshrl.u32 %v830_v20, 16  ;;  %v919_v63 = vrot.slane %v917_v43, 5 }
  0xc1   : > { %v10206_v56 = vrot.slane %v878_v38, 4  ;;  %v10236_v38 = vrot.slane %v909_v19, 5 }
  0xc2   : > { %v888_v53 = vrot.slane %v886_v36, 4  ;;  %v10251_v36 = vrot.slane %v1191_v15, 5 }
  0xc3   : > { %1059 = vrot.lane.b32.xlu0 %v1034_v45, %s9791_s10  ;;  %1057 = vrot.lane.b32.xlu1 %v1030_v46, %s9791_s10  ;;  %v1309_v45 = vld [vmem:[#allocation2 + $0x34] sm:$0x1]  ;;  %v1310_v46 = vld [vmem:[#allocation2 + $0x38] sm:$0xe] }
  0xc4   : > { %v1352_v55 = vrot.slane %v1309_v45, 5  ;;  %v9293_v61 = vrot.slane %v1310_v46, 9  ;;  %v1185_v45 = vshll.u32 %v1141_v31, 16  ;;  %v838_v46 = vld [vmem:[#allocation2 + $0x38] sm:$0xf] }
  0xc6   : > { %v1353_v10 = vsel %vm9956_vm7, %v9292_v54, %v1352_v55  ;;  %v1357_v16 = vsel %vm9956_vm7, %v9293_v61, %v1356_v62  ;;  %v945_v61 = vshll.u32 %v838_v46, 16  ;;  %v916_v62 = vrot.slane %v914_v42, 4 }
  0xc7   : > { %1063 = vrot.lane.b32.xlu0 %v1042_v51, %s9791_s10  ;;  %1061 = vrot.lane.b32.xlu1 %v1038_v52, %s9791_s10  ;;  %v832_v51 = vld [vmem:[#allocation2 + $0x20] sm:$0xf]  ;;  %v858_v52 = vshrl.u32 %v826_v39, 16  ;;  %v831_v39 = vld [vmem:[#allocation2 + $0x1c] sm:$0x1]  ;;  %v1187_v3 = vrot.slane %v1185_v45, 5 }
  0xc8   : > { %v903_v7 = vshll.u32 %v832_v51, 16  ;;  %v895_v55 = vshll.u32 %v831_v39, 16  ;;  %v920_v19 = vor.u32 %v919_v63, %v916_v62  ;;  %v1143_v39 = vld [vmem:[#allocation2 + $0x20] sm:$0xf]  ;;  %v1147_v63 = vld [vmem:[#allocation2 + $0x30] sm:$0xf] }
  0xc9   : > { %v860_v8 = vrot.slane %v858_v52, 4  ;;  %v934_v52 = vor.u32 %v933_v35, %v930_v34  ;;  %v1149_v34 = vld [vmem:[#allocation2 + $0x38] sm:$0xf] }
  0xca   : > { %v905_v27 = vrot.slane %v903_v7, 5 }
  0xcb   : > { %1067 = vrot.lane.b32.xlu0 %v1050_v4, %s9791_s10  ;;  %1065 = vrot.lane.b32.xlu1 %v1046_v5, %s9791_s10  ;;  %v9298_v4 = vrot.slane %v1612_v50, 9  ;;  %v900_v5 = vshrl.u32 %v832_v51, 16  ;;  %v864_v28 = vor.u32 %v863_v9, %v860_v8  ;;  %v937_v50 = vshll.u32 %v837_v32, 16  ;;  %v1138_v51 = vld [vmem:[#allocation2 + $0xc] sm:$0x1] }
  0xcc   : > { %v1139_v8 = vld [vmem:[#allocation2 + $0x10] sm:$0xf]  ;;  %v1140_v32 = vld [vmem:[#allocation2 + $0x14] sm:$0x1] }
  0xcd   : > { %v902_v0 = vrot.slane %v900_v5, 4  ;;  %v1653_v26 = vsel %vm9956_vm7, %v9298_v4, %v1652_v6  ;;  %v865_v48 = vrot.slane %v864_v28, 4  ;;  %v1163_v5 = vshll.u32 %v1138_v51, 16 }
  0xce   : > { %v939_v9 = vrot.slane %v937_v50, 5  ;;  %v1171_v29 = vshll.u32 %v1139_v8, 16  ;;  %v1177_v45 = vshll.u32 %v1140_v32, 16  ;;  %v1196_v50 = vshrl.u32 %v1143_v39, 16 }
  0xcf   : > { %1362 = vrot.lane.b32.xlu0 %v1333_v23, %s9794_s13  ;;  %1069 = vrot.lane.b32.xlu1 %v1054_v24, %s9791_s10  ;;  %v1645_v23 = vsel %vm9956_vm7, %v9296_v33, %v1644_v37  ;;  %v884_v24 = vsel %vm9944_vm4, %v10206_v56, %v10208_v57  ;;  %v889_v33 = vshll.u32 %v830_v20, 16  ;;  %v1361_v37 = vsel %vm9956_vm7, %v9294_v17, %v1360_v18  ;;  %v1145_v56 = vld [vmem:[#allocation2 + $0x28] sm:$0xf] }
  0xd0   : > { %v906_v47 = vor.u32 %v905_v27, %v902_v0  ;;  %v1210_v6 = vshrl.u32 %v1145_v56, 16  ;;  %v1213_v7 = vshll.u32 %v1145_v56, 16  ;;  %v947_v17 = vrot.slane %v945_v61, 5 }
  0xd1   : > { %v891_v54 = vrot.slane %v889_v33, 5  ;;  %v935_v18 = vrot.slane %v934_v52, 4  ;;  %v1188_v20 = vor.u32 %v1187_v3, %v1184_v2  ;;  %v10244_v0 = vrot.slane %v1163_v5, 5  ;;  %v9721_v52 = vld [vmem:[%s12950_s3 + $0x38] sm:$0xff]  }
  0xd2   : > { %v907_v4 = vrot.slane %v906_v47, 4  ;;  %v1212_v27 = vrot.slane %v1210_v6, 4  ;;  %v1215_v28 = vrot.slane %v1213_v7, 5  ;;  %v1173_v44 = vrot.slane %v1171_v29, 5  ;;  %v1449_v6 = vld [vmem:[#allocation2 + $0x20] sm:$0xf]  ;;  %9568 = vmatprep.subr.bf16.mxu0 %v9721_v52  ;;  %9648 = vmatprep.subr.bf16.mxu1 %v9721_v52 }
  0xd3   : > { %1366 = vrot.lane.b32.xlu0 %v1341_v40, %s9794_s13  ;;  %1364 = vrot.lane.b32.xlu1 %v1337_v41, %s9794_s13  ;;  %v1154_v40 = vshrl.u32 %v1137_v25, 16  ;;  %v1157_v41 = vshll.u32 %v1137_v25, 16  ;;  %v1146_v25 = vld [vmem:[#allocation2 + $0x2c] sm:$0x1]  ;;  %v1238_v47 = vshrl.u32 %v1149_v34, 16  ;;  %v1199_v51 = vshll.u32 %v1143_v39, 16 }
  0xd4   : > { %v912_v30 = vsel %vm9944_vm4, %v907_v4, %v10236_v38  ;;  %v1219_v38 = vshll.u32 %v1146_v25, 16  ;;  %v1216_v43 = vor.u32 %v1215_v28, %v1212_v27  ;;  %v10282_v4 = vrot.slane %v1177_v45, 5  ;;  %9569 = vmatpush3.bf16.msra.mxu0 %v9721_v52  ;;  %9656 = vmatpush3.bf16.msra.mxu1 %v9721_v52  ;;  %v1453_v29 = vld [vmem:[#allocation2 + $0x30] sm:$0xf]  ;;  %v1450_v39 = vld [vmem:[#allocation2 + $0x24] sm:$0x1] }
  0xd5   : > { %v1156_v57 = vrot.slane %v1154_v40, 4  ;;  %v1159_v58 = vrot.slane %v1157_v41, 5  ;;  %v921_v40 = vrot.slane %v920_v19, 4  ;;  %v10255_v41 = vrot.slane %v1188_v20, 4  ;;  %9570 = vmatprep.subr.bf16.mxu0 %v9722_v1  ;;  %9649 = vmatprep.subr.bf16.mxu1 %v9722_v1  ;;  %v1148_v20 = vld [vmem:[#allocation2 + $0x34] sm:$0x1] }
  0xd6   : > { %v10275_v61 = vrot.slane %v1219_v38, 5  ;;  %v10280_v2 = vrot.slane %v1216_v43, 4  ;;  %v1240_v5 = vrot.slane %v1238_v47, 4  ;;  %v1518_v43 = vshrl.u32 %v1453_v29, 16 }
  0xd7   : > { %1370 = vrot.lane.b32.xlu0 %v1349_v59, %s9794_s13  ;;  %1368 = vrot.lane.b32.xlu1 %v1345_v60, %s9794_s13  ;;  %v835_v59 = vld [vmem:[#allocation2 + $0x2c] sm:$0x1]  ;;  %v942_v60 = vshrl.u32 %v838_v46, 16  ;;  %v1160_v14 = vor.u32 %v1159_v58, %v1156_v57  ;;  %v1150_v46 = vld [vmem:[#allocation2 + $0x3c] sm:$0x1] }
  0xd8   : > { %v923_v12 = vshll.u32 %v835_v59, 16  ;;  %v1144_v57 = vld [vmem:[#allocation2 + $0x24] sm:$0x1]  ;;  %v1445_v58 = vld [vmem:[#allocation2 + $0x10] sm:$0xf]  ;;  %v1247_v62 = vshll.u32 %v1150_v46, 16  ;;  %9571 = vmatpush3.bf16.msra.mxu0 %v9722_v1  ;;  %9657 = vmatpush3.bf16.msra.mxu1 %v9722_v1 }
  0xd9   : > { %v1161_v35 = vrot.slane %v1160_v14, 4  ;;  %v1446_v14 = vld [vmem:[#allocation2 + $0x14] sm:$0x1]  ;;  %v1465_v15 = vshll.u32 %v1445_v58, 16  ;;  %v1205_v19 = vshll.u32 %v1144_v57, 16  ;;  %v1521_v46 = vshll.u32 %v1453_v29, 16 }
  0xda   : > { %v1471_v32 = vshll.u32 %v1446_v14, 16 }
  0xdb   : > { %1374 = vrot.lane.b32.xlu0 %v1357_v16, %s9794_s13  ;;  %1372 = vrot.lane.b32.xlu1 %v1353_v10, %s9794_s13  ;;  %v892_v10 = vor.u32 %v891_v54, %v888_v53  ;;  %v944_v16 = vrot.slane %v942_v60, 4  ;;  %v1166_v54 = vsel %vm9944_vm4, %v1161_v35, %v10244_v0  ;;  %v1194_v60 = vsel %vm9944_vm4, %v10255_v41, %v10251_v36 }
  0xdc   : > { %v1222_v0 = vsel %vm9944_vm4, %v10280_v2, %v10275_v61  ;;  %v1467_v35 = vrot.slane %v1465_v15, 5  ;;  %v1523_v2 = vrot.slane %v1521_v46, 5 }
  0xdd   : > { %v893_v31 = vrot.slane %v892_v10, 4  ;;  %v948_v33 = vor.u32 %v947_v17, %v944_v16  ;;  %v1462_v10 = vshrl.u32 %v1445_v58, 16  ;;  %v1224_v16 = vshrl.u32 %v1147_v63, 16  ;;  %v1451_v58 = vld [vmem:[#allocation2 + $0x28] sm:$0xf] }
  0xde   : > { %v1227_v17 = vshll.u32 %v1147_v63, 16  ;;  %v1520_v63 = vrot.slane %v1518_v43, 4 }
  0xdf   : > { %1670 = vrot.lane.b32.xlu0 %v1641_v11, %s9795_s14  ;;  %1376 = vrot.lane.b32.xlu1 %v1361_v37, %s9794_s13  ;;  %v897_v11 = vrot.slane %v895_v55, 5  ;;  %v949_v55 = vrot.slane %v948_v33, 4  ;;  %v1226_v36 = vrot.slane %v1224_v16, 4  ;;  %v1455_v16 = vld [vmem:[#allocation2 + $0x38] sm:$0xf] }
  0xe0   : > { %v1229_v33 = vrot.slane %v1227_v17, 5  ;;  %v808_v17 = vld [vmem:[#allocation2 + $0x8] sm:$0xf] }
  0xe1   : > { %v898_v53 = vsel %vm9944_vm4, %v893_v31, %v897_v11  ;;  %v1151_v11 = vld [vmem:[#allocation2 + $0x40] sm:$0xf]  ;;  %817 = vst.msk [vmem:[#allocation3 + $0x4] sm:$0xf] %vm815_vm9, %v808_v17 }
  0xe2   : > { %v1252_v27 = vshrl.u32 %v1151_v11, 16  ;;  %v1255_v28 = vshll.u32 %v1151_v11, 16 }
  0xe3   : > { %1674 = vrot.lane.b32.xlu0 %v1649_v22, %s9795_s14  ;;  %1672 = vrot.lane.b32.xlu1 %v1645_v23, %s9795_s14  ;;  %v839_v22 = vld [vmem:[#allocation2 + $0x3c] sm:$0x1]  ;;  %v1168_v23 = vshrl.u32 %v1139_v8, 16  ;;  %v1198_v8 = vrot.slane %v1196_v50, 4 }
  0xe4   : > { %v951_v37 = vshll.u32 %v839_v22, 16  ;;  %v1490_v22 = vshrl.u32 %v1449_v6, 16  ;;  %v1257_v45 = vrot.slane %v1255_v28, 5  ;;  %v1458_v28 = vld [vmem:[#allocation2 + $0x44] sm:$0x1] }
  0xe5   : > { %v1170_v42 = vrot.slane %v1168_v23, 4  ;;  %v1493_v23 = vshll.u32 %v1449_v6, 16  ;;  %v1448_v6 = vld [vmem:[#allocation2 + $0x1c] sm:$0x1] }
  0xe6   : > { %v953_v56 = vrot.slane %v951_v37, 5  ;;  %v1233_v37 = vshll.u32 %v1148_v20, 16  ;;  %v1492_v41 = vrot.slane %v1490_v22, 4 }
  0xe7   : > { %959 = vrot.lane.b32.xlu0 %v884_v24, %s9789_s8  ;;  %1676 = vrot.lane.b32.xlu1 %v1653_v26, %s9795_s14  ;;  %v870_v24 = vsel %vm9944_vm4, %v865_v48, %v869_v49  ;;  %v925_v26 = vrot.slane %v923_v12, 5  ;;  %v940_v48 = vsel %vm9944_vm4, %v935_v18, %v939_v9  ;;  %v1241_v49 = vshll.u32 %v1149_v34, 16  ;;  %v1447_v34 = vld [vmem:[#allocation2 + $0x18] sm:$0xf] }
  0xe8   : > { %v1174_v3 = vor.u32 %v1173_v44, %v1170_v42  ;;  %v1201_v9 = vrot.slane %v1199_v51, 5  ;;  %v954_v12 = vsel %vm9944_vm4, %v949_v55, %v953_v56  ;;  %v10288_v18 = vrot.slane %v1247_v62, 5  ;;  %v1152_v42 = vld [vmem:[#allocation2 + $0x44] sm:$0x1]  ;;  %v1454_v62 = vld [vmem:[#allocation2 + $0x34] sm:$0x1] }
  0xe9   : > { %v926_v59 = vsel %vm9944_vm4, %v921_v40, %v925_v26  ;;  %v1243_v7 = vrot.slane %v1241_v49, 5  ;;  %v1464_v26 = vrot.slane %v1462_v10, 4  ;;  %v1207_v40 = vrot.slane %v1205_v19, 5 }
  0xea   : > { %v1175_v25 = vrot.slane %v1174_v3, 4  ;;  %v1202_v31 = vor.u32 %v1201_v9, %v1198_v8  ;;  %v1495_v38 = vrot.slane %v1493_v23, 5  ;;  %v1254_v44 = vrot.slane %v1252_v27, 4 }
  0xeb   : > { %963 = vrot.lane.b32.xlu0 %v912_v30, %s9789_s8  ;;  %957 = vrot.lane.b32.xlu1 %v870_v24, %s9789_s8  ;;  %v9723_v30 = vld [vmem:[%s12950_s3 + $0x28] sm:$0xff]   ;;  %v1244_v24 = vor.u32 %v1243_v7, %v1240_v5  ;;  %v1476_v47 = vshrl.u32 %v1447_v34, 16  ;;  %v10305_v51 = vrot.slane %v1471_v32, 5  ;;  %v1479_v52 = vshll.u32 %v1447_v34, 16  ;;  %v809_v5 = vld [vmem:[#allocation2 + $0x10] sm:$0xf] }
  0xec   : > { %9572 = vmatprep.subr.bf16.mxu0 %v9723_v30  ;;  %9650 = vmatprep.subr.bf16.mxu1 %v9723_v30  ;;  %v1180_v49 = vsel %vm9944_vm4, %v1175_v25, %v10282_v4  ;;  %v1468_v55 = vor.u32 %v1467_v35, %v1464_v26  ;;  %v1230_v56 = vor.u32 %v1229_v33, %v1226_v36  ;;  %v1235_v57 = vrot.slane %v1233_v37, 5  ;;  %v810_v37 = vld [vmem:[#allocation2 + $0x18] sm:$0xf] }
  0xed   : > { %v1245_v50 = vrot.slane %v1244_v24, 4  ;;  %9573 = vmatpush3.bf16.msra.mxu0 %v9723_v30  ;;  %9658 = vmatpush3.bf16.msra.mxu1 %v9723_v30  ;;  %v1261_v61 = vshll.u32 %v1152_v42, 16  ;;  %v1258_v1 = vor.u32 %v1257_v45, %v1254_v44  ;;  %v1478_v3 = vrot.slane %v1476_v47, 4  ;;  %818 = vst.msk [vmem:[#allocation3 + $0x8] sm:$0xf] %vm815_vm9, %v809_v5 }
  0xee   : > { %v1481_v7 = vrot.slane %v1479_v52, 5  ;;  %v1504_v9 = vshrl.u32 %v1451_v58, 16  ;;  %v1507_v10 = vshll.u32 %v1451_v58, 16  ;;  %v1469_v14 = vrot.slane %v1468_v55, 4  ;;  %819 = vst.msk [vmem:[#allocation3 + $0xc] sm:$0xf] %vm815_vm9, %v810_v37 }
  0xef   : > { %967 = vrot.lane.b32.xlu0 %v940_v48, %s9789_s8  ;;  %961 = vrot.lane.b32.xlu1 %v898_v53, %s9789_s8  ;;  %v9724_v48 = vld [vmem:[%s12950_s3 + $0x20] sm:$0xff]   ;;  %v1250_v11 = vsel %vm9944_vm4, %v1245_v50, %v10288_v18  ;;  %v1231_v15 = vrot.slane %v1230_v56, 4  ;;  %v1263_v22 = vrot.slane %v1261_v61, 5  ;;  %v1527_v23 = vshll.u32 %v1454_v62, 16  ;;  %v1456_v52 = vld [vmem:[#allocation2 + $0x3c] sm:$0x1] }
  0xf0   : > { %v1457_v53 = vld [vmem:[#allocation2 + $0x40] sm:$0xf]  ;;  %9574 = vmatprep.subr.bf16.mxu0 %v9724_v48  ;;  %9651 = vmatprep.subr.bf16.mxu1 %v9724_v48  ;;  %v1259_v25 = vrot.slane %v1258_v1, 4  ;;  %v1524_v18 = vor.u32 %v1523_v2, %v1520_v63  ;;  %v1485_v27 = vshll.u32 %v1448_v6, 16  ;;  %v1482_v30 = vor.u32 %v1481_v7, %v1478_v3  ;;  %v814_v2 = vld [vmem:[#allocation2 + $0x38] sm:$0xf]  ;;  %v10343_v3 = vpop.permute.xlu1 %1426 }
  0xf1   : > { %v1546_v4 = vshrl.u32 %v1457_v53, 16  ;;  %v1549_v8 = vshll.u32 %v1457_v53, 16  ;;  %9575 = vmatpush3.bf16.msra.mxu0 %v9724_v48  ;;  %9659 = vmatpush3.bf16.msra.mxu1 %v9724_v48  ;;  %v1506_v26 = vrot.slane %v1504_v9, 4  ;;  %v1509_v32 = vrot.slane %v1507_v10, 5  ;;  %v9725_v53 = vld [vmem:[%s12950_s3 + $0x18] sm:$0xff]   ;;  %13012 = vst [vmem:[#allocation6_spill] sm:$0xff] %v10343_v3 }
  0xf2   : > { %v1474_v34 = vsel %vm9944_vm4, %v1469_v14, %v10305_v51  ;;  %v1236_v35 = vsel %vm9944_vm4, %v1231_v15, %v1235_v57  ;;  %v1532_v36 = vshrl.u32 %v1455_v16, 16  ;;  %v1535_v33 = vshll.u32 %v1455_v16, 16  ;;  %v812_v51 = vld [vmem:[#allocation2 + $0x28] sm:$0xf]  ;;  %9576 = vmatprep.subr.bf16.mxu0 %v9725_v53  ;;  %9652 = vmatprep.subr.bf16.mxu1 %v9725_v53  ;;  %823 = vst.msk [vmem:[#allocation3 + $0x1c] sm:$0xf] %vm815_vm9, %v814_v2 }
  0xf3   : > { %1265 = vrot.lane.b32.xlu0 %v1166_v54, %s9796_s19  ;;  %965 = vrot.lane.b32.xlu1 %v926_v59, %s9789_s8  ;;  %v1203_v54 = vrot.slane %v1202_v31, 4  ;;  %v1496_v59 = vor.u32 %v1495_v38, %v1492_v41  ;;  %v1548_v29 = vrot.slane %v1546_v4, 4  ;;  %v1551_v24 = vrot.slane %v1549_v8, 5  ;;  %v1452_v31 = vld [vmem:[#allocation2 + $0x2c] sm:$0x1]  ;;  %v9726_v4 = vld [vmem:[%s12950_s3 + $0x10] sm:$0xff]  }
  0xf4   : > { %v1529_v41 = vrot.slane %v1527_v23, 5  ;;  %v1487_v38 = vrot.slane %v1485_v27, 5  ;;  %v1555_v42 = vshll.u32 %v1458_v28, 16  ;;  %v1264_v43 = vsel %vm9944_vm4, %v1259_v25, %v1263_v22  ;;  %821 = vst.msk [vmem:[#allocation3 + $0x14] sm:$0xf] %vm815_vm9, %v812_v51  ;;  %v9727_v7 = vld [vmem:[%s12950_s3 + $0x8] sm:$0xff]   ;;  %v10360_v17 = vpop.permute.xlu1 %1587 }
  0xf5   : > { %v1497_v19 = vrot.slane %v1496_v59, 4  ;;  %v1525_v44 = vrot.slane %v1524_v18, 4  ;;  %v1483_v45 = vrot.slane %v1482_v30, 4  ;;  %v1513_v46 = vshll.u32 %v1452_v31, 16  ;;  %v1614_v59 = vld [vmem:[#allocation2 + $0x30] sm:$0xe]  ;;  %9577 = vmatpush3.bf16.msra.mxu0 %v9725_v53  ;;  %9660 = vmatpush3.bf16.msra.mxu1 %v9725_v53 }
  0xf6   : > { %v1552_v47 = vor.u32 %v1551_v24, %v1548_v29  ;;  %v1510_v48 = vor.u32 %v1509_v32, %v1506_v26  ;;  %v1537_v50 = vrot.slane %v1535_v33, 5  ;;  %v1557_v57 = vrot.slane %v1555_v42, 5  ;;  %9578 = vmatprep.subr.bf16.mxu0 %v9726_v4  ;;  %9653 = vmatprep.subr.bf16.mxu1 %v9726_v4  ;;  %v1619_v14 = vld [vmem:[#allocation2 + $0x44] sm:$0x1]  ;;  %v1616_v15 = vld [vmem:[#allocation2 + $0x38] sm:$0xe] }
  0xf7   : > { %1269 = vrot.lane.b32.xlu0 %v1194_v60, %s9796_s19  ;;  %969 = vrot.lane.b32.xlu1 %v954_v12, %s9789_s8  ;;  %v1499_v60 = vshll.u32 %v1450_v39, 16  ;;  %v1208_v12 = vsel %vm9944_vm4, %v1203_v54, %v1207_v40  ;;  %v813_v39 = vld [vmem:[#allocation2 + $0x30] sm:$0xf]  ;;  %v1530_v55 = vsel %vm9944_vm4, %v1525_v44, %v1529_v41  ;;  %v1488_v56 = vsel %vm9944_vm4, %v1483_v45, %v1487_v38  ;;  %v1617_v16 = vld [vmem:[#allocation2 + $0x3c] sm:$0x1] }
  0xf8   : > { %822 = vst.msk [vmem:[#allocation3 + $0x18] sm:$0xf] %vm815_vm9, %v813_v39  ;;  %v1515_v58 = vrot.slane %v1513_v46, 5  ;;  %v1553_v61 = vrot.slane %v1552_v47, 4  ;;  %v1511_v62 = vrot.slane %v1510_v48, 4  ;;  %v1541_v1 = vshll.u32 %v1456_v52, 16 }
  0xf9   : > { %v1501_v20 = vrot.slane %v1499_v60, 5  ;;  %v1615_v60 = vld [vmem:[#allocation2 + $0x34] sm:$0x1]  ;;  %v9299_v5 = vrot.slane %v1614_v59, 9  ;;  %9579 = vmatpush3.bf16.msra.mxu0 %v9726_v4  ;;  %9661 = vmatpush3.bf16.msra.mxu1 %v9726_v4  ;;  %13013 = vst [vmem:[#allocation7_spill] sm:$0xff] %v10360_v17  ;;  %v1664_v18 = vrot.slane %v1619_v14, 5 }
  0xfa   : > { %v1656_v6 = vrot.slane %v1615_v60, 5  ;;  %v1558_v8 = vsel %vm9944_vm4, %v1553_v61, %v1557_v57  ;;  %v1516_v9 = vsel %vm9944_vm4, %v1511_v62, %v1515_v58  ;;  %v1620_v22 = vld [vmem:[#allocation2 + $0x48] sm:$0xe]  ;;  %v1621_v23 = vld [vmem:[#allocation2 + $0x4c] sm:$0x1]  ;;  %9580 = vmatprep.subr.bf16.mxu0 %v9727_v7  ;;  %9654 = vmatprep.subr.bf16.mxu1 %v9727_v7  ;;  %v9300_v27 = vrot.slane %v1616_v15, 9 }
  0xfb   : > { %1273 = vrot.lane.b32.xlu0 %v1222_v0, %s9796_s19  ;;  %1267 = vrot.lane.b32.xlu1 %v1180_v49, %s9796_s19  ;;  %v811_v0 = vld [vmem:[#allocation2 + $0x20] sm:$0xf]  ;;  %v1502_v40 = vsel %vm9944_vm4, %v1497_v19, %v1501_v20  ;;  %v1534_v49 = vrot.slane %v1532_v36, 4  ;;  %v1660_v28 = vrot.slane %v1617_v16, 5  ;;  %v9302_v29 = vrot.slane %v1620_v22, 9 }
  0xfc   : > { %820 = vst.msk [vmem:[#allocation3 + $0x10] sm:$0xf] %vm815_vm9, %v811_v0  ;;  %v1657_v19 = vsel %vm9956_vm7, %v9299_v5, %v1656_v6  ;;  %v9728_v0 = vld [vmem:[%s12950_s3] sm:$0xff]   ;;  %v1668_v30 = vrot.slane %v1621_v23, 5  ;;  %v1755_v37 = vld [vmem:[#allocation2 + $0x10] sm:$0xf] }
  0xfd   : > { %v1538_v63 = vor.u32 %v1537_v50, %v1534_v49  ;;  %v1751_v24 = vld [vmem:[#allocation2] sm:$0xf]  ;;  %9581 = vmatpush3.bf16.msra.mxu0 %v9727_v7  ;;  %9662 = vmatpush3.bf16.msra.mxu1 %v9727_v7  ;;  %v1661_v26 = vsel %vm9956_vm7, %v9300_v27, %v1660_v28  ;;  %v1796_v42 = vshrl.u32 %v1755_v37, 16  ;;  %v1752_v44 = vld [vmem:[#allocation2 + $0x4] sm:$0x1] }
  0xfe   : > { %9582 = vmatprep.subr.bf16.mxu0 %v9728_v0  ;;  %9655 = vmatprep.subr.bf16.mxu1 %v9728_v0  ;;  %v1703_v36 = vld [vmem:[#allocation2] sm:$0xf]  ;;  %v1669_v33 = vsel %vm9956_vm7, %v9302_v29, %v1668_v30  ;;  %v1705_v50 = vld [vmem:[#allocation2 + $0x10] sm:$0xf]  ;;  %v1704_v51 = vld [vmem:[#allocation2 + $0x8] sm:$0xf] }
  0xff   : > { %1277 = vrot.lane.b32.xlu0 %v1250_v11, %s9796_s19  ;;  %1271 = vrot.lane.b32.xlu1 %v1208_v12, %s9796_s19  ;;  %v1539_v10 = vrot.slane %v1538_v63, 4  ;;  %v1543_v11 = vrot.slane %v1541_v1, 5  ;;  %v1618_v12 = vld [vmem:[#allocation2 + $0x40] sm:$0xe]  ;;  %v1757_v52 = vld [vmem:[#allocation2 + $0x18] sm:$0xf] }
 0x100   : > { %v9301_v20 = vrot.slane %v1618_v12, 9  ;;  %v1759_v49 = vld [vmem:[#allocation2 + $0x20] sm:$0xf]  ;;  %v1754_v58 = vld [vmem:[#allocation2 + $0xc] sm:$0x1]  ;;  %v1810_v2 = vshrl.u32 %v1757_v52, 16 }
 0x101   : > { %v1544_v25 = vsel %vm9944_vm4, %v1539_v10, %v1543_v11  ;;  %9583 = vmatpush3.bf16.msra.mxu0 %v9728_v0  ;;  %9663 = vmatpush3.bf16.msra.mxu1 %v9728_v0  ;;  %v1824_v61 = vshrl.u32 %v1759_v49, 16  ;;  %v1827_v62 = vshll.u32 %v1759_v49, 16  ;;  %v1813_v4 = vshll.u32 %v1757_v52, 16  ;;  %v1707_v5 = vld [vmem:[#allocation2 + $0x20] sm:$0xf] }
 0x102   : > { %v1665_v31 = vsel %vm9956_vm7, %v9301_v20, %v1664_v18  ;;  %v1706_v6 = vld [vmem:[#allocation2 + $0x18] sm:$0xf]  ;;  %v1763_v7 = vld [vmem:[#allocation2 + $0x30] sm:$0xf]  ;;  %v1791_v11 = vshll.u32 %v1754_v58, 16 }
 0x103   : > { %1573 = vrot.lane.b32.xlu0 %v1474_v34, %s9792_s11  ;;  %1275 = vrot.lane.b32.xlu1 %v1236_v35, %s9796_s19  ;;  %v1768_v34 = vshrl.u32 %v1751_v24, 16  ;;  %v1771_v35 = vshll.u32 %v1751_v24, 16  ;;  %v1761_v12 = vld [vmem:[#allocation2 + $0x28] sm:$0xf]  ;;  %v1760_v16 = vld [vmem:[#allocation2 + $0x24] sm:$0x1] }
 0x104   : > { %v1829_v20 = vrot.slane %v1827_v62, 5  ;;  %v1758_v0 = vld [vmem:[#allocation2 + $0x1c] sm:$0x1]  ;;  %v1815_v18 = vrot.slane %v1813_v4, 5  ;;  %v1852_v27 = vshrl.u32 %v1763_v7, 16  ;;  %v1855_v28 = vshll.u32 %v1763_v7, 16 }
 0x105   : > { %v1770_v41 = vrot.slane %v1768_v34, 4  ;;  %v1773_v38 = vrot.slane %v1771_v35, 5  ;;  %v1709_v29 = vld [vmem:[#allocation2 + $0x30] sm:$0xf]  ;;  %v1708_v30 = vld [vmem:[#allocation2 + $0x28] sm:$0xf] }
 0x106   : > { %v1838_v24 = vshrl.u32 %v1761_v12, 16  ;;  %v1793_v34 = vrot.slane %v1791_v11, 5  ;;  %v1833_v35 = vshll.u32 %v1760_v16, 16  ;;  %v1854_v49 = vrot.slane %v1852_v27, 4  ;;  %v1911_v11 = vld [vmem:[#allocation2] sm:$0xe] }
 0x107   : > { %1577 = vrot.lane.b32.xlu0 %v1502_v40, %s9792_s11  ;;  %1279 = vrot.lane.b32.xlu1 %v1264_v43, %s9796_s19  ;;  %v1753_v40 = vld [vmem:[#allocation2 + $0x8] sm:$0xf]  ;;  %v1799_v43 = vshll.u32 %v1755_v37, 16  ;;  %v1774_v53 = vor.u32 %v1773_v38, %v1770_v41  ;;  %v1710_v37 = vld [vmem:[#allocation2 + $0x38] sm:$0xf]  ;;  %v1819_v38 = vshll.u32 %v1758_v0, 16 }
 0x108   : > { %v10375_v32 = vpop.permute.xlu1 %1106  ;;  %v1782_v45 = vshrl.u32 %v1753_v40, 16  ;;  %v1785_v46 = vshll.u32 %v1753_v40, 16  ;;  %v1840_v52 = vrot.slane %v1838_v24, 4  ;;  %v1835_v58 = vrot.slane %v1833_v35, 5  ;;  %v1912_v0 = vld [vmem:[#allocation2 + $0x4] sm:$0x1] }
 0x109   : > { %v1105_v54 = vpop.permute.xlu0 %1104  ;;  %v1801_v57 = vrot.slane %v1799_v43, 5 }
 0x10a   : > { %1129 = vst.msk [vmem:[#allocation3] sm:$0xf] %vm1128_vm2, %v1105_v54  ;;  %v1777_v54 = vshll.u32 %v1752_v44, 16  ;;  %v1784_v59 = vrot.slane %v1782_v45, 4  ;;  %v1787_v60 = vrot.slane %v1785_v46, 5 }
 0x10b   : > { %1581 = vrot.lane.b32.xlu0 %v1530_v55, %s9792_s11  ;;  %1575 = vrot.lane.b32.xlu1 %v1488_v56, %s9792_s11  ;;  %v1756_v55 = vld [vmem:[#allocation2 + $0x14] sm:$0x1]  ;;  %v1798_v56 = vrot.slane %v1796_v42, 4 }
 0x10c   : > { %v1805_v10 = vshll.u32 %v1756_v55, 16  ;;  %v1788_v15 = vor.u32 %v1787_v60, %v1784_v59  ;;  %v1764_v46 = vld [vmem:[#allocation2 + $0x34] sm:$0x1]  ;;  %v1821_v59 = vrot.slane %v1819_v38, 5 }
 0x10d   : > { %v1802_v14 = vor.u32 %v1801_v57, %v1798_v56  ;;  %v1861_v4 = vshll.u32 %v1764_v46, 16  ;;  %v1919_v46 = vld [vmem:[#allocation2 + $0x20] sm:$0xe] }
 0x10e   : > { %v1789_v44 = vrot.slane %v1788_v15, 4 }
 0x10f   : > { %1585 = vrot.lane.b32.xlu0 %v1558_v8, %s9792_s11  ;;  %1579 = vrot.lane.b32.xlu1 %v1516_v9, %s9792_s11  ;;  %v1775_v8 = vrot.slane %v1774_v53, 4  ;;  %v1779_v9 = vrot.slane %v1777_v54, 5  ;;  %v1803_v40 = vrot.slane %v1802_v14, 4 }
 0x110   : > { %v1794_v62 = vsel %vm9944_vm4, %v1789_v44, %v1793_v34 }
 0x111   : > { %v10381_v39 = vpop.permute.xlu0 %1108 }
 0x113   : > { %1678 = vrot.lane.b32.xlu0 %v1657_v19, %s9795_s14  ;;  %1583 = vrot.lane.b32.xlu1 %v1544_v25, %s9792_s11  ;;  %v1826_v19 = vrot.slane %v1824_v61, 4  ;;  %v1812_v25 = vrot.slane %v1810_v2, 4 }
 0x115   : > { %v10385_v47 = vpop.permute.xlu1 %1110  ;;  %v1830_v41 = vor.u32 %v1829_v20, %v1826_v19  ;;  %v1816_v45 = vor.u32 %v1815_v18, %v1812_v25  ;;  %v1863_v19 = vrot.slane %v1861_v4, 5 }
 0x117   : > { %1682 = vrot.lane.b32.xlu0 %v1665_v31, %s9795_s14  ;;  %1680 = vrot.lane.b32.xlu1 %v1661_v26, %s9795_s14  ;;  %v1841_v31 = vshll.u32 %v1761_v12, 16  ;;  %v1807_v26 = vrot.slane %v1805_v10, 5  ;;  %v1831_v57 = vrot.slane %v1830_v41, 4  ;;  %v1766_v10 = vld [vmem:[#allocation2 + $0x3c] sm:$0x1] }
 0x119   : > { %v10387_v48 = vpop.permute.xlu0 %1112  ;;  %v1843_v53 = vrot.slane %v1841_v31, 5  ;;  %v1808_v56 = vsel %vm9944_vm4, %v1803_v40, %v1807_v26  ;;  %v1836_v15 = vsel %vm9944_vm4, %v1831_v57, %v1835_v58  ;;  %v1914_v40 = vld [vmem:[#allocation2 + $0xc] sm:$0x1] }
 0x11b   : > { %1719 = vrot.lane.b32.xlu0 %v1703_v36, %s9797_s20  ;;  %1684 = vrot.lane.b32.xlu1 %v1669_v33, %s9795_s14  ;;  %v1765_v36 = vld [vmem:[#allocation2 + $0x38] sm:$0xf]  ;;  %v1780_v33 = vsel %vm9944_vm4, %v1775_v8, %v1779_v9  ;;  %s9798_s14 = smov 8   ;;  %v1844_v7 = vor.u32 %v1843_v53, %v1840_v52  ;;  %v1949_v52 = vrot.slane %v1914_v40, 5  ;;  %v1920_v53 = vld [vmem:[#allocation2 + $0x24] sm:$0x1] }
 0x11c   : > { %v1866_v54 = vshrl.u32 %v1765_v36, 16  ;;  %v1869_v55 = vshll.u32 %v1765_v36, 16 }
 0x11d   : > { %v10391_v63 = vpop.permute.xlu1 %1114  ;;  %v1845_v18 = vrot.slane %v1844_v7, 4  ;;  %v1923_v7 = vld [vmem:[#allocation2 + $0x30] sm:$0xe] }
 0x11e   : > { %v1868_v8 = vrot.slane %v1866_v54, 4  ;;  %v1871_v9 = vrot.slane %v1869_v55, 5  ;;  %v1917_v54 = vld [vmem:[#allocation2 + $0x18] sm:$0xe]  ;;  %v1918_v55 = vld [vmem:[#allocation2 + $0x1c] sm:$0x1] }
 0x11f   : > { %1723 = vrot.lane.b32.xlu0 %v1705_v50, %s9797_s20  ;;  %1721 = vrot.lane.b32.xlu1 %v1704_v51, %s9797_s20  ;;  %v1857_v50 = vrot.slane %v1855_v28, 5  ;;  %v1762_v51 = vld [vmem:[#allocation2 + $0x2c] sm:$0x1]  ;;  %v1875_v28 = vshll.u32 %v1766_v10, 16 }
 0x120   : > { %v1872_v27 = vor.u32 %v1871_v9, %v1868_v8  ;;  %v1924_v8 = vld [vmem:[#allocation2 + $0x34] sm:$0x1]  ;;  %v1921_v9 = vld [vmem:[#allocation2 + $0x28] sm:$0xe]  ;;  %v1922_v10 = vld [vmem:[#allocation2 + $0x2c] sm:$0x1] }
 0x121   : > { %v10393_v1 = vpop.permute.xlu0 %1116  ;;  %v1858_v2 = vor.u32 %v1857_v50, %v1854_v49  ;;  %v1877_v36 = vrot.slane %v1875_v28, 5  ;;  %v1926_v28 = vld [vmem:[#allocation2 + $0x3c] sm:$0x1] }
 0x122   : > { %v1873_v35 = vrot.slane %v1872_v27, 4  ;;  %v1925_v27 = vld [vmem:[#allocation2 + $0x38] sm:$0xe] }
 0x123   : > { %1727 = vrot.lane.b32.xlu0 %v1707_v5, %s9797_s20  ;;  %1725 = vrot.lane.b32.xlu1 %v1706_v6, %s9797_s20  ;;  %v1847_v5 = vshll.u32 %v1762_v51, 16  ;;  %v1817_v6 = vrot.slane %v1816_v45, 4  ;;  %v1859_v16 = vrot.slane %v1858_v2, 4  ;;  %v1913_v45 = vld [vmem:[#allocation2 + $0x8] sm:$0xe] }
 0x124   : > { %v1878_v49 = vsel %vm9944_vm4, %v1873_v35, %v1877_v36  ;;  %v9310_v36 = vrot.slane %v1925_v27, 9 }
 0x125   : > { %v10397_v22 = vpop.permute.xlu1 %1118  ;;  %v10399_v23 = vpop.permute.xlu0 %1412  ;;  %v1849_v20 = vrot.slane %v1847_v5, 5  ;;  %v1822_v25 = vsel %vm9944_vm4, %v1817_v6, %v1821_v59  ;;  %v1864_v26 = vsel %vm9944_vm4, %v1859_v16, %v1863_v19  ;;  %v9307_v59 = vrot.slane %v1919_v46, 9 }
 0x126   : > { %v9306_v5 = vrot.slane %v1917_v54, 9  ;;  %v1957_v6 = vrot.slane %v1918_v55, 5  ;;  %v9309_v19 = vrot.slane %v1923_v7, 9  ;;  %v2008_v7 = vld [vmem:[#allocation2 + $0x10] sm:$0xf] }
 0x127   : > { %1731 = vrot.lane.b32.xlu0 %v1709_v29, %s9797_s20  ;;  %1729 = vrot.lane.b32.xlu1 %v1708_v30, %s9797_s20  ;;  %v9303_v29 = vrot.slane %v1911_v11, 9  ;;  %v1945_v30 = vrot.slane %v1912_v0, 5  ;;  %v1850_v34 = vsel %vm9944_vm4, %v1845_v18, %v1849_v20  ;;  %v1969_v0 = vrot.slane %v1924_v8, 5  ;;  %v2063_v8 = vld [vmem:[#allocation2 + $0x28] sm:$0xf] }
 0x128   : > { %v1958_v20 = vsel %vm9956_vm7, %v9306_v5, %v1957_v6  ;;  %v1965_v18 = vrot.slane %v1922_v10, 5  ;;  %v2061_v5 = vld [vmem:[#allocation2 + $0x20] sm:$0xf]  ;;  %v2009_v6 = vld [vmem:[#allocation2 + $0x18] sm:$0xf] }
 0x129   : > { %v10405_v42 = vpop.permute.xlu1 %1414  ;;  %v10407_v43 = vpop.permute.xlu0 %1416  ;;  %v1946_v41 = vsel %vm9956_vm7, %v9303_v29, %v1945_v30  ;;  %v2055_v29 = vld [vmem:[#allocation2 + $0x8] sm:$0xf]  ;;  %v2114_v27 = vshrl.u32 %v2061_v5, 16 }
 0x12a   : > { %v2075_v40 = vshll.u32 %v2055_v29, 16 }
 0x12b   : > { %1879 = vrot.lane.b32.xlu0 %v1780_v33, %s9798_s14  ;;  %1733 = vrot.lane.b32.xlu1 %v1710_v37, %s9797_s20  ;;  %v1915_v33 = vld [vmem:[#allocation2 + $0x10] sm:$0xe]  ;;  %v1916_v37 = vld [vmem:[#allocation2 + $0x14] sm:$0x1] }
 0x12c   : > { %v9305_v50 = vrot.slane %v1915_v33, 9  ;;  %v1953_v51 = vrot.slane %v1916_v37, 5  ;;  %v1973_v33 = vrot.slane %v1926_v28, 5  ;;  %v2072_v37 = vshrl.u32 %v2055_v29, 16 }
 0x12d   : > { %v10413_v60 = vpop.permute.xlu1 %1418  ;;  %v10415_v61 = vpop.permute.xlu0 %1420  ;;  %v2117_v28 = vshll.u32 %v2061_v5, 16 }
 0x12e   : > { %v1954_v2 = vsel %vm9956_vm7, %v9305_v50, %v1953_v51  ;;  %v2007_v50 = vld [vmem:[#allocation2 + $0x8] sm:$0xf]  ;;  %v1974_v51 = vsel %vm9956_vm7, %v9310_v36, %v1973_v33  ;;  %v2131_v36 = vshll.u32 %v2063_v8, 16 }
 0x12f   : > { %1883 = vrot.lane.b32.xlu0 %v1808_v56, %s9798_s14  ;;  %1881 = vrot.lane.b32.xlu1 %v1794_v62, %s9798_s14  ;;  %v9304_v56 = vrot.slane %v1913_v45, 9  ;;  %v1961_v62 = vrot.slane %v1920_v53, 5  ;;  %v2077_v53 = vrot.slane %v2075_v40, 5  ;;  %v2011_v33 = vld [vmem:[#allocation2 + $0x28] sm:$0xf] }
 0x130   : > { %v2065_v40 = vld [vmem:[#allocation2 + $0x30] sm:$0xf] }
 0x131   : > { %v10421_v12 = vpop.permute.xlu1 %1422  ;;  %v10423_v14 = vpop.permute.xlu0 %1424  ;;  %v1950_v4 = vsel %vm9956_vm7, %v9304_v56, %v1949_v52  ;;  %v1962_v16 = vsel %vm9956_vm7, %v9307_v59, %v1961_v62  ;;  %v2074_v52 = vrot.slane %v2072_v37, 4  ;;  %v2056_v56 = vld [vmem:[#allocation2 + $0xc] sm:$0x1]  ;;  %v2010_v37 = vld [vmem:[#allocation2 + $0x20] sm:$0xf]  ;;  %v2145_v17 = vshll.u32 %v2065_v40, 16 }
 0x132   : > { %13014 = vst [vmem:[#allocation8_spill] sm:$0xff] %v10421_v12  ;;  %v2081_v10 = vshll.u32 %v2056_v56, 16  ;;  %v2116_v56 = vrot.slane %v2114_v27, 4  ;;  %v2014_v27 = vld [vmem:[#allocation2 + $0x40] sm:$0xf] }
 0x133   : > { %1887 = vrot.lane.b32.xlu0 %v1836_v15, %s9798_s14  ;;  %1885 = vrot.lane.b32.xlu1 %v1822_v25, %s9798_s14  ;;  %v9308_v25 = vrot.slane %v1921_v9, 9  ;;  %v2078_v9 = vor.u32 %v2077_v53, %v2074_v52  ;;  %v2067_v52 = vld [vmem:[#allocation2 + $0x38] sm:$0xf] }
 0x135   : > { %v10431_v24 = vpop.permute.xlu1 %1057  ;;  %v10433_v31 = vpop.permute.xlu0 %1059  ;;  %v1966_v35 = vsel %vm9956_vm7, %v9308_v25, %v1965_v18 }
 0x137   : > { %1891 = vrot.lane.b32.xlu0 %v1864_v26, %s9798_s14  ;;  %1889 = vrot.lane.b32.xlu1 %v1850_v34, %s9798_s14  ;;  %v1970_v34 = vsel %vm9956_vm7, %v9309_v19, %v1969_v0  ;;  %v2060_v0 = vld [vmem:[#allocation2 + $0x1c] sm:$0x1] }
 0x139   : > { %v10443_v38 = vpop.permute.xlu1 %1061  ;;  %v10445_v44 = vpop.permute.xlu0 %1063 }
 0x13b   : > { %1975 = vrot.lane.b32.xlu0 %v1946_v41, %s9799_s21  ;;  %1893 = vrot.lane.b32.xlu1 %v1878_v49, %s9798_s14  ;;  %v2057_v41 = vld [vmem:[#allocation2 + $0x10] sm:$0xf]  ;;  %v2059_v49 = vld [vmem:[#allocation2 + $0x18] sm:$0xf] }
 0x13c   : > { %v2086_v54 = vshrl.u32 %v2057_v41, 16  ;;  %v2089_v55 = vshll.u32 %v2057_v41, 16  ;;  %v2100_v59 = vshrl.u32 %v2059_v49, 16  ;;  %v2103_v62 = vshll.u32 %v2059_v49, 16 }
 0x13d   : > { %v10451_v57 = vpop.permute.xlu1 %1065  ;;  %v10453_v58 = vpop.permute.xlu0 %1067  ;;  %v2079_v41 = vrot.slane %v2078_v9, 4  ;;  %v2083_v49 = vrot.slane %v2081_v10, 5  ;;  %v2064_v9 = vld [vmem:[#allocation2 + $0x2c] sm:$0x1]  ;;  %v2156_v10 = vshrl.u32 %v2067_v52, 16 }
 0x13e   : > { %v2088_v19 = vrot.slane %v2086_v54, 4  ;;  %v2102_v25 = vrot.slane %v2100_v59, 4  ;;  %v2105_v18 = vrot.slane %v2103_v62, 5  ;;  %v2119_v59 = vrot.slane %v2117_v28, 5 }
 0x13f   : > { %1979 = vrot.lane.b32.xlu0 %v1954_v2, %s9799_s21  ;;  %1977 = vrot.lane.b32.xlu1 %v1950_v4, %s9799_s21 }
 0x140   : > { %v2106_v54 = vor.u32 %v2105_v18, %v2102_v25  ;;  %v2069_v25 = vld [vmem:[#allocation2 + $0x40] sm:$0xf]  ;;  %v2084_v18 = vsel %vm9944_vm4, %v2079_v41, %v2083_v49 }
 0x141   : > { %v10461_v11 = vpop.permute.xlu1 %1069  ;;  %v10463_v15 = vpop.permute.xlu0 %1362  ;;  %v2173_v12 = vshll.u32 %v2069_v25, 16 }
 0x143   : > { %1983 = vrot.lane.b32.xlu0 %v1962_v16, %s9799_s21  ;;  %1981 = vrot.lane.b32.xlu1 %v1958_v20, %s9799_s21  ;;  %v2058_v16 = vld [vmem:[#allocation2 + $0x14] sm:$0x1]  ;;  %v2091_v20 = vrot.slane %v2089_v55, 5  ;;  %v2062_v55 = vld [vmem:[#allocation2 + $0x24] sm:$0x1] }
 0x145   : > { %v10471_v30 = vpop.permute.xlu1 %1364  ;;  %v10473_v26 = vpop.permute.xlu0 %1366  ;;  %v2092_v53 = vor.u32 %v2091_v20, %v2088_v19 }
 0x147   : > { %1987 = vrot.lane.b32.xlu0 %v1970_v34, %s9799_s21  ;;  %1985 = vrot.lane.b32.xlu1 %v1966_v35, %s9799_s21  ;;  %v2128_v35 = vshrl.u32 %v2063_v8, 16  ;;  %v2133_v8 = vrot.slane %v2131_v36, 5  ;;  %v2093_v28 = vrot.slane %v2092_v53, 4  ;;  %v2120_v36 = vor.u32 %v2119_v59, %v2116_v56 }
 0x149   : > { %v10481_v45 = vpop.permute.xlu1 %1368  ;;  %v10483_v46 = vpop.permute.xlu0 %1370  ;;  %v2121_v49 = vrot.slane %v2120_v36, 4  ;;  %v2219_v36 = vld [vmem:[#allocation2 + $0x18] sm:$0xe] }
 0x14b   : > { %2023 = vrot.lane.b32.xlu0 %v2007_v50, %s12975_s22  ;;  %1989 = vrot.lane.b32.xlu1 %v1974_v51, %s9799_s21  ;;  %v2095_v50 = vshll.u32 %v2058_v16, 16  ;;  %v2109_v51 = vshll.u32 %v2060_v0, 16  ;;  %v2159_v16 = vshll.u32 %v2067_v52, 16  ;;  %v2123_v0 = vshll.u32 %v2062_v55, 16 }
 0x14c   : > { %v2137_v52 = vshll.u32 %v2064_v9, 16 }
 0x14d   : > { %v10489_v2 = vpop.permute.xlu1 %1372  ;;  %v10491_v4 = vpop.permute.xlu0 %1374  ;;  %v2097_v19 = vrot.slane %v2095_v50, 5  ;;  %v2111_v20 = vrot.slane %v2109_v51, 5  ;;  %v2068_v50 = vld [vmem:[#allocation2 + $0x3c] sm:$0x1]  ;;  %v2158_v51 = vrot.slane %v2156_v10, 4  ;;  %v2161_v55 = vrot.slane %v2159_v16, 5 }
 0x14e   : > { %v2125_v53 = vrot.slane %v2123_v0, 5  ;;  %v2175_v10 = vrot.slane %v2173_v12, 5 }
 0x14f   : > { %2027 = vrot.lane.b32.xlu0 %v2009_v6, %s12975_s22  ;;  %2025 = vrot.lane.b32.xlu1 %v2008_v7, %s12975_s22  ;;  %v2013_v6 = vld [vmem:[#allocation2 + $0x38] sm:$0xf]  ;;  %v2130_v7 = vrot.slane %v2128_v35, 4  ;;  %v2107_v35 = vrot.slane %v2106_v54, 4 }
 0x150   : > { %v2126_v12 = vsel %vm9944_vm4, %v2121_v49, %v2125_v53  ;;  %v2222_v49 = vld [vmem:[#allocation2 + $0x24] sm:$0x1]  ;;  %v2224_v53 = vld [vmem:[#allocation2 + $0x2c] sm:$0x1] }
 0x151   : > { %v10495_v29 = vpop.permute.xlu1 %1376  ;;  %v10497_v34 = vpop.permute.xlu0 %1670  ;;  %v2134_v3 = vor.u32 %v2133_v8, %v2130_v7  ;;  %v2112_v41 = vsel %vm9944_vm4, %v2107_v35, %v2111_v20  ;;  %v2165_v7 = vshll.u32 %v2068_v50, 16  ;;  %v2217_v35 = vld [vmem:[#allocation2 + $0x10] sm:$0xe] }
 0x152   : > { %13015 = vst [vmem:[#allocation9_spill] sm:$0xff] %v10495_v29  ;;  %v2147_v29 = vrot.slane %v2145_v17, 5  ;;  %v2098_v17 = vsel %vm9944_vm4, %v2093_v28, %v2097_v19 }
 0x153   : > { %2031 = vrot.lane.b32.xlu0 %v2011_v33, %s12975_s22  ;;  %2029 = vrot.lane.b32.xlu1 %v2010_v37, %s12975_s22  ;;  %v2142_v33 = vshrl.u32 %v2065_v40, 16  ;;  %v2012_v37 = vld [vmem:[#allocation2 + $0x30] sm:$0xf]  ;;  %v2135_v59 = vrot.slane %v2134_v3, 4 }
 0x155   : > { %v10501_v62 = vpop.permute.xlu1 %1672  ;;  %v10503_v5 = vpop.permute.xlu0 %1674 }
 0x156   : > { %13016 = vst [vmem:[#allocation10_spill] sm:$0xff] %v10501_v62  ;;  %13017 = vst [vmem:[#allocation11_spill] sm:$0xff] %v10503_v5  ;;  %v2066_v5 = vld [vmem:[#allocation2 + $0x34] sm:$0x1] }
 0x157   : > { %2035 = vrot.lane.b32.xlu0 %v2013_v6, %s12975_s22  ;;  %2033 = vrot.lane.b32.xlu1 %v2012_v37, %s12975_s22  ;;  %v2144_v6 = vrot.slane %v2142_v33, 4  ;;  %v2170_v37 = vshrl.u32 %v2069_v25, 16  ;;  %v2070_v33 = vld [vmem:[#allocation2 + $0x44] sm:$0x1] }
 0x158   : > { %v2179_v16 = vshll.u32 %v2070_v33, 16 }
 0x159   : > { %v10509_v40 = vpop.permute.xlu1 %1676  ;;  %v960_v62 = vpop.permute.xlu0 %959  ;;  %v2148_v8 = vor.u32 %v2147_v29, %v2144_v6  ;;  %v2172_v9 = vrot.slane %v2170_v37, 4 }
 0x15a   : > { %982 = vst.msk [vmem:[#allocation3 + $0x8] sm:$0xf] %vm979_vm0, %v960_v62  ;;  %v2151_v62 = vshll.u32 %v2066_v5, 16 }
 0x15b   : > { %1082 = vst.msk [vmem:[#allocation3 + $0x8] sm:$0xf] %vm1079_vm1, %v10433_v31  ;;  %2183 = vrot.lane.b32.xlu0 %v2084_v18, %s12973_s23  ;;  %2037 = vrot.lane.b32.xlu1 %v2014_v27, %s12975_s22  ;;  %v2139_v31 = vrot.slane %v2137_v52, 5  ;;  %v2149_v19 = vrot.slane %v2148_v8, 4  ;;  %v2176_v20 = vor.u32 %v2175_v10, %v2172_v9  ;;  %v2181_v18 = vrot.slane %v2179_v16, 5 }
 0x15c   : > { %1131 = vst.msk [vmem:[#allocation3 + $0x8] sm:$0xf] %vm1128_vm2, %v10381_v39  ;;  %v2162_v39 = vor.u32 %v2161_v55, %v2158_v51  ;;  %v2153_v5 = vrot.slane %v2151_v62, 5  ;;  %v2220_v52 = vld [vmem:[#allocation2 + $0x1c] sm:$0x1]  ;;  %v9312_v55 = vrot.slane %v2217_v35, 9 }
 0x15d   : > { %v958_v54 = vpop.permute.xlu1 %957  ;;  %v964_v56 = vpop.permute.xlu0 %963  ;;  %v2227_v8 = vld [vmem:[#allocation2 + $0x38] sm:$0xe] }
 0x15e   : > { %981 = vst.msk [vmem:[#allocation3 + $0x4] sm:$0xf] %vm979_vm0, %v958_v54  ;;  %984 = vst.msk [vmem:[#allocation3 + $0x10] sm:$0xf] %vm979_vm0, %v964_v56 }
 0x15f   : > { %1081 = vst.msk [vmem:[#allocation3 + $0x4] sm:$0xf] %vm1079_vm1, %v10431_v24  ;;  %1084 = vst.msk [vmem:[#allocation3 + $0x10] sm:$0xf] %vm1079_vm1, %v10445_v44  ;;  %2185 = vrot.lane.b32.xlu1 %v2098_v17, %s12973_s23  ;;  %2187 = vrot.lane.b32.xlu0 %v2112_v41, %s12973_s23  ;;  %v2167_v24 = vrot.slane %v2165_v7, 5  ;;  %v2140_v44 = vsel %vm9944_vm4, %v2135_v59, %v2139_v31  ;;  %v9313_v17 = vrot.slane %v2219_v36, 9 }
 0x160   : > { %1130 = vst.msk [vmem:[#allocation3 + $0x4] sm:$0xf] %vm1128_vm2, %v10375_v32  ;;  %1133 = vst.msk [vmem:[#allocation3 + $0x10] sm:$0xf] %vm1128_vm2, %v10387_v48  ;;  %v2163_v32 = vrot.slane %v2162_v39, 4  ;;  %v2265_v7 = vrot.slane %v2224_v53, 5 }
 0x161   : > { %v962_v3 = vpop.permute.xlu1 %961  ;;  %v968_v29 = vpop.permute.xlu0 %967  ;;  %v2216_v48 = vld [vmem:[#allocation2 + $0xc] sm:$0x1]  ;;  %v2221_v41 = vld [vmem:[#allocation2 + $0x20] sm:$0xe]  ;;  %v2228_v39 = vld [vmem:[#allocation2 + $0x3c] sm:$0x1] }
 0x162   : > { %983 = vst.msk [vmem:[#allocation3 + $0xc] sm:$0xf] %vm979_vm0, %v962_v3  ;;  %986 = vst.msk [vmem:[#allocation3 + $0x18] sm:$0xf] %vm979_vm0, %v968_v29  ;;  %v2168_v27 = vsel %vm9944_vm4, %v2163_v32, %v2167_v24  ;;  %v2249_v28 = vrot.slane %v2216_v48, 5  ;;  %v9314_v59 = vrot.slane %v2221_v41, 9 }
 0x163   : > { %1083 = vst.msk [vmem:[#allocation3 + $0xc] sm:$0xf] %vm1079_vm1, %v10443_v38  ;;  %1086 = vst.msk [vmem:[#allocation3 + $0x18] sm:$0xf] %vm1079_vm1, %v10453_v58  ;;  %2189 = vrot.lane.b32.xlu1 %v2126_v12, %s12973_s23  ;;  %2191 = vrot.lane.b32.xlu0 %v2140_v44, %s12973_s23  ;;  %v2215_v38 = vld [vmem:[#allocation2 + $0x8] sm:$0xe]  ;;  %v2154_v58 = vsel %vm9944_vm4, %v2149_v19, %v2153_v5 }
 0x164   : > { %1132 = vst.msk [vmem:[#allocation3 + $0xc] sm:$0xf] %vm1128_vm2, %v10385_v47  ;;  %1135 = vst.msk [vmem:[#allocation3 + $0x18] sm:$0xf] %vm1128_vm2, %v10393_v1  ;;  %v2177_v47 = vrot.slane %v2176_v20, 4  ;;  %v9311_v6 = vrot.slane %v2215_v38, 9 }
 0x165   : > { %v966_v0 = vpop.permute.xlu1 %965  ;;  %v1266_v25 = vpop.permute.xlu0 %1265  ;;  %v2218_v1 = vld [vmem:[#allocation2 + $0x14] sm:$0x1]  ;;  %v9317_v29 = vrot.slane %v2227_v8, 9  ;;  %v2273_v12 = vrot.slane %v2228_v39, 5  ;;  %v2361_v20 = vld [vmem:[#allocation2 + $0x18] sm:$0xf] }
 0x166   : > { %985 = vst.msk [vmem:[#allocation3 + $0x14] sm:$0xf] %vm979_vm0, %v966_v0  ;;  %v2250_v37 = vsel %vm9956_vm7, %v9311_v6, %v2249_v28  ;;  %v13020_v38 = vld [vmem:[#allocation11_spill] sm:$0xff] }
 0x167   : > { %1290 = vst.msk [vmem:[#allocation3] sm:$0xf] %vm1289_vm3, %v1266_v25  ;;  %2193 = vrot.lane.b32.xlu1 %v2154_v58, %s12973_s23  ;;  %2195 = vrot.lane.b32.xlu0 %v2168_v27, %s12973_s23  ;;  %v2274_v16 = vsel %vm9956_vm7, %v9317_v29, %v2273_v12  ;;  %v2363_v25 = vld [vmem:[#allocation2 + $0x20] sm:$0xf]  ;;  %v2390_v58 = vshrl.u32 %v2361_v20, 16  ;;  %v13021_v27 = vld [vmem:[#allocation6_spill] sm:$0xff] }
 0x168   : > { %1085 = vst.msk [vmem:[#allocation3 + $0x14] sm:$0xf] %vm1079_vm1, %v10451_v57  ;;  %v2253_v57 = vrot.slane %v2218_v1, 5  ;;  %v2393_v1 = vshll.u32 %v2361_v20, 16  ;;  %v13022_v36 = vld [vmem:[#allocation7_spill] sm:$0xff] }
 0x169   : > { %1387 = vst.msk [vmem:[#allocation3] sm:$0xf] %vm1386_vm5, %v10463_v15  ;;  %v970_v50 = vpop.permute.xlu1 %969  ;;  %v1270_v51 = vpop.permute.xlu0 %1269  ;;  %v2182_v15 = vsel %vm9944_vm4, %v2177_v47, %v2181_v18  ;;  %v13019_v18 = vld [vmem:[#allocation9_spill] sm:$0xff]  ;;  %v2360_v47 = vld [vmem:[#allocation2 + $0x14] sm:$0x1] }
 0x16a   : > { %1134 = vst.msk [vmem:[#allocation3 + $0x14] sm:$0xf] %vm1128_vm2, %v10391_v63  ;;  %v2257_v63 = vrot.slane %v2220_v52, 5  ;;  %v2362_v41 = vld [vmem:[#allocation2 + $0x1c] sm:$0x1] }
 0x16b   : > { %1437 = vst.msk [vmem:[#allocation3] sm:$0xf] %vm1436_vm6, %v10399_v23  ;;  %2197 = vrot.lane.b32.xlu1 %v2182_v15, %s12973_s23  ;;  %2279 = vrot.lane.b32.xlu0 %v2250_v37, %s12971_s26  ;;  %v2223_v23 = vld [vmem:[#allocation2 + $0x28] sm:$0xe]  ;;  %v2313_v15 = vld [vmem:[#allocation2 + $0x20] sm:$0xf] }
 0x16c   : > { %987 = vst.msk [vmem:[#allocation3 + $0x1c] sm:$0xf] %vm979_vm0, %v970_v50  ;;  %v2258_v31 = vsel %vm9956_vm7, %v9313_v17, %v2257_v63  ;;  %v9315_v62 = vrot.slane %v2223_v23, 9  ;;  %v2312_v50 = vld [vmem:[#allocation2 + $0x18] sm:$0xf]  ;;  %v2385_v63 = vshll.u32 %v2360_v47, 16 }
 0x16d   : > { %1292 = vst.msk [vmem:[#allocation3 + $0x8] sm:$0xf] %vm1289_vm3, %v1270_v51  ;;  %v1268_v54 = vpop.permute.xlu1 %1267  ;;  %v1274_v56 = vpop.permute.xlu0 %1273  ;;  %v2404_v51 = vshrl.u32 %v2363_v25, 16  ;;  %v2367_v37 = vld [vmem:[#allocation2 + $0x30] sm:$0xf]  ;;  %v2399_v39 = vshll.u32 %v2362_v41, 16 }
 0x16e   : > { %1087 = vst.msk [vmem:[#allocation3 + $0x1c] sm:$0xf] %vm1079_vm1, %v10461_v11  ;;  %v2261_v11 = vrot.slane %v2222_v49, 5  ;;  %v13023_v17 = vld [vmem:[#allocation10_spill] sm:$0xff]  ;;  %v2392_v49 = vrot.slane %v2390_v58, 4  ;;  %v2435_v8 = vshll.u32 %v2367_v37, 16 }
 0x16f   : > { %1389 = vst.msk [vmem:[#allocation3 + $0x8] sm:$0xf] %vm1386_vm5, %v10473_v26  ;;  %v2254_v26 = vsel %vm9956_vm7, %v9312_v55, %v2253_v57  ;;  %2283 = vrot.lane.b32.xlu0 %v2258_v31, %s12971_s26  ;;  %v2407_v55 = vshll.u32 %v2363_v25, 16  ;;  %v2365_v57 = vld [vmem:[#allocation2 + $0x28] sm:$0xf] }
 0x170   : > { %1136 = vst.msk [vmem:[#allocation3 + $0x1c] sm:$0xf] %vm1128_vm2, %v10397_v22  ;;  %v2225_v22 = vld [vmem:[#allocation2 + $0x30] sm:$0xe]  ;;  %2281 = vrot.lane.b32.xlu1 %v2254_v26, %s12971_s26  ;;  %v2314_v23 = vld [vmem:[#allocation2 + $0x28] sm:$0xf] }
 0x171   : > { %1439 = vst.msk [vmem:[#allocation3 + $0x8] sm:$0xf] %vm1436_vm6, %v10407_v43  ;;  %v2226_v43 = vld [vmem:[#allocation2 + $0x34] sm:$0x1]  ;;  %v1272_v33 = vpop.permute.xlu1 %1271  ;;  %v1278_v9 = vpop.permute.xlu0 %1277  ;;  %v9316_v10 = vrot.slane %v2225_v22, 9  ;;  %v2409_v22 = vrot.slane %v2407_v55, 5 }
 0x172   : > { %1291 = vst.msk [vmem:[#allocation3 + $0x4] sm:$0xf] %vm1289_vm3, %v1268_v54  ;;  %1294 = vst.msk [vmem:[#allocation3 + $0x10] sm:$0xf] %vm1289_vm3, %v1274_v56  ;;  %v2269_v3 = vrot.slane %v2226_v43, 5  ;;  %v2395_v54 = vrot.slane %v2393_v1, 5 }
 0x173   : > { %1388 = vst.msk [vmem:[#allocation3 + $0x4] sm:$0xf] %vm1386_vm5, %v10471_v30  ;;  %1391 = vst.msk [vmem:[#allocation3 + $0x10] sm:$0xf] %vm1386_vm5, %v10483_v46  ;;  %v2262_v30 = vsel %vm9956_vm7, %v9314_v59, %v2261_v11  ;;  %v2266_v46 = vsel %vm9956_vm7, %v9315_v62, %v2265_v7  ;;  %v2364_v56 = vld [vmem:[#allocation2 + $0x24] sm:$0x1] }
 0x174   : > { %1438 = vst.msk [vmem:[#allocation3 + $0x4] sm:$0xf] %vm1436_vm6, %v10405_v42  ;;  %1441 = vst.msk [vmem:[#allocation3 + $0x10] sm:$0xf] %vm1436_vm6, %v10415_v61  ;;  %2285 = vrot.lane.b32.xlu1 %v2262_v30, %s12971_s26  ;;  %2287 = vrot.lane.b32.xlu0 %v2266_v46, %s12971_s26  ;;  %v2229_v42 = vld [vmem:[#allocation2 + $0x40] sm:$0xe] }
 0x175   : > { %1293 = vst.msk [vmem:[#allocation3 + $0xc] sm:$0xf] %vm1289_vm3, %v1272_v33  ;;  %1296 = vst.msk [vmem:[#allocation3 + $0x18] sm:$0xf] %vm1289_vm3, %v1278_v9  ;;  %v2230_v61 = vld [vmem:[#allocation2 + $0x44] sm:$0x1]  ;;  %v1276_v5 = vpop.permute.xlu1 %1275  ;;  %v1574_v24 = vpop.permute.xlu0 %1573 }
 0x176   : > { %1390 = vst.msk [vmem:[#allocation3 + $0xc] sm:$0xf] %vm1386_vm5, %v10481_v45  ;;  %1393 = vst.msk [vmem:[#allocation3 + $0x18] sm:$0xf] %vm1386_vm5, %v10491_v4  ;;  %v2359_v45 = vld [vmem:[#allocation2 + $0x10] sm:$0xf]  ;;  %v2270_v4 = vsel %vm9956_vm7, %v9316_v10, %v2269_v3 }
 0x177   : > { %1440 = vst.msk [vmem:[#allocation3 + $0xc] sm:$0xf] %vm1436_vm6, %v10413_v60  ;;  %1443 = vst.msk [vmem:[#allocation3 + $0x18] sm:$0xf] %vm1436_vm6, %v10423_v14  ;;  %v9318_v44 = vrot.slane %v2229_v42, 9  ;;  %v2277_v19 = vrot.slane %v2230_v61, 5  ;;  %v2396_v42 = vor.u32 %v2395_v54, %v2392_v49 }
 0x178   : > { %1295 = vst.msk [vmem:[#allocation3 + $0x14] sm:$0xf] %vm1289_vm3, %v1276_v5  ;;  %2289 = vrot.lane.b32.xlu1 %v2270_v4, %s12971_s26  ;;  %2291 = vrot.lane.b32.xlu0 %v2274_v16, %s12971_s26  ;;  %v13018_v60 = vld [vmem:[#allocation8_spill] sm:$0xff]  ;;  %v2376_v14 = vshrl.u32 %v2359_v45, 16  ;;  %v2379_v32 = vshll.u32 %v2359_v45, 16  ;;  %v2418_v59 = vshrl.u32 %v2365_v57, 16 }
 0x179   : > { %1598 = vst.msk [vmem:[#allocation3] sm:$0xf] %vm1597_vm8, %v1574_v24  ;;  %v1280_v48 = vpop.permute.xlu1 %1279  ;;  %v1578_v0 = vpop.permute.xlu0 %1577  ;;  %v2421_v11 = vshll.u32 %v2365_v57, 16  ;;  %v2315_v62 = vld [vmem:[#allocation2 + $0x30] sm:$0xf]  ;;  %v2406_v7 = vrot.slane %v2404_v51, 4 }
 0x17a   : > { %1392 = vst.msk [vmem:[#allocation3 + $0x14] sm:$0xf] %vm1386_vm5, %v10489_v2  ;;  %v2278_v2 = vsel %vm9956_vm7, %v9318_v44, %v2277_v19  ;;  %v2378_v28 = vrot.slane %v2376_v14, 4  ;;  %v2381_v35 = vrot.slane %v2379_v32, 5  ;;  %v2432_v43 = vshrl.u32 %v2367_v37, 16 }
 0x17b   : > { %1695 = vst.msk [vmem:[#allocation3] sm:$0xf] %vm1694_vm10, %v10497_v34  ;;  %v2311_v34 = vld [vmem:[#allocation2 + $0x10] sm:$0xf]  ;;  %v2369_v33 = vld [vmem:[#allocation2 + $0x38] sm:$0xf]  ;;  %v2410_v16 = vor.u32 %v2409_v22, %v2406_v7 }
 0x17c   : > { %1442 = vst.msk [vmem:[#allocation3 + $0x14] sm:$0xf] %vm1436_vm6, %v13018_v60  ;;  %2293 = vrot.lane.b32.xlu1 %v2278_v2, %s12971_s26  ;;  %2327 = vrot.lane.b32.xlu0 %v2311_v34, %s12969_s27  ;;  %v2382_v53 = vor.u32 %v2381_v35, %v2378_v28  ;;  %v2387_v9 = vrot.slane %v2385_v63, 5  ;;  %v2413_v30 = vshll.u32 %v2364_v56, 16  ;;  %v2366_v10 = vld [vmem:[#allocation2 + $0x2c] sm:$0x1] }
 0x17d   : > { %1297 = vst.msk [vmem:[#allocation3 + $0x1c] sm:$0xf] %vm1289_vm3, %v1280_v48  ;;  %v1576_v52 = vpop.permute.xlu1 %1575  ;;  %v1582_v6 = vpop.permute.xlu0 %1581  ;;  %v2371_v46 = vld [vmem:[#allocation2 + $0x40] sm:$0xf]  ;;  %v2316_v3 = vld [vmem:[#allocation2 + $0x38] sm:$0xf] }
 0x17e   : > { %1600 = vst.msk [vmem:[#allocation3 + $0x8] sm:$0xf] %vm1597_vm8, %v1578_v0  ;;  %1599 = vst.msk [vmem:[#allocation3 + $0x4] sm:$0xf] %vm1597_vm8, %v1576_v52  ;;  %v2317_v29 = vld [vmem:[#allocation2 + $0x40] sm:$0xf] }
 0x17f   : > { %1394 = vst.msk [vmem:[#allocation3 + $0x1c] sm:$0xf] %vm1386_vm5, %v13019_v18  ;;  %v2383_v12 = vrot.slane %v2382_v53, 4  ;;  %v2420_v61 = vrot.slane %v2418_v59, 4  ;;  %v2423_v5 = vrot.slane %v2421_v11, 5  ;;  %v2434_v44 = vrot.slane %v2432_v43, 4 }
 0x180   : > { %1697 = vst.msk [vmem:[#allocation3 + $0x8] sm:$0xf] %vm1694_vm10, %v13020_v38  ;;  %1696 = vst.msk [vmem:[#allocation3 + $0x4] sm:$0xf] %vm1694_vm10, %v13023_v17  ;;  %2329 = vrot.lane.b32.xlu1 %v2312_v50, %s12969_s27  ;;  %2331 = vrot.lane.b32.xlu0 %v2313_v15, %s12969_s27  ;;  %v2368_v24 = vld [vmem:[#allocation2 + $0x34] sm:$0x1] }
 0x181   : > { %1444 = vst.msk [vmem:[#allocation3 + $0x1c] sm:$0xf] %vm1436_vm6, %v13021_v27  ;;  %v1580_v26 = vpop.permute.xlu1 %1579  ;;  %v1586_v31 = vpop.permute.xlu0 %1585  ;;  %v2446_v19 = vshrl.u32 %v2369_v33, 16  ;;  %v2373_v60 = vld [vmem:[#allocation2 + $0x48] sm:$0xf]  ;;  %v2449_v32 = vshll.u32 %v2369_v33, 16  ;;  %v2424_v38 = vor.u32 %v2423_v5, %v2420_v61  ;;  %v2388_v35 = vsel %vm9944_vm4, %v2383_v12, %v2387_v9 }
 0x182   : > { %1605 = vst.msk [vmem:[#allocation3 + $0x1c] sm:$0xf] %vm1597_vm8, %v13022_v36  ;;  %1602 = vst.msk [vmem:[#allocation3 + $0x10] sm:$0xf] %vm1597_vm8, %v1582_v6  ;;  %v2460_v20 = vshrl.u32 %v2371_v46, 16  ;;  %v2463_v48 = vshll.u32 %v2371_v46, 16 }
 0x183   : > { %1601 = vst.msk [vmem:[#allocation3 + $0xc] sm:$0xf] %vm1597_vm8, %v1580_v26  ;;  %1604 = vst.msk [vmem:[#allocation3 + $0x18] sm:$0xf] %vm1597_vm8, %v1586_v31  ;;  %v2401_v0 = vrot.slane %v2399_v39, 5  ;;  %v2415_v2 = vrot.slane %v2413_v30, 5 }
 0x184   : > { %1698 = vst.msk [vmem:[#allocation3 + $0xc] sm:$0xf] %vm1694_vm10, %v10509_v40  ;;  %2333 = vrot.lane.b32.xlu1 %v2314_v23, %s12969_s27  ;;  %2335 = vrot.lane.b32.xlu0 %v2315_v62, %s12969_s27  ;;  %v2437_v40 = vrot.slane %v2435_v8, 5  ;;  %v2427_v34 = vshll.u32 %v2366_v10, 16  ;;  %v2318_v25 = vld [vmem:[#allocation2 + $0x48] sm:$0xf] }
 0x185   : > { %v1584_v45 = vpop.permute.xlu1 %1583  ;;  %v1679_v4 = vpop.permute.xlu0 %1678  ;;  %v2397_v18 = vrot.slane %v2396_v42, 4  ;;  %v2474_v58 = vshrl.u32 %v2373_v60, 16  ;;  %v2477_v27 = vshll.u32 %v2373_v60, 16  ;;  %v2411_v1 = vrot.slane %v2410_v16, 4  ;;  %v2370_v52 = vld [vmem:[#allocation2 + $0x3c] sm:$0x1] }
 0x186   : > { %1603 = vst.msk [vmem:[#allocation3 + $0x14] sm:$0xf] %vm1597_vm8, %v1584_v45  ;;  %v2441_v36 = vshll.u32 %v2368_v24, 16  ;;  %v2448_v6 = vrot.slane %v2446_v19, 4  ;;  %v2438_v51 = vor.u32 %v2437_v40, %v2434_v44  ;;  %v2451_v55 = vrot.slane %v2449_v32, 5 }
 0x187   : > { %1699 = vst.msk [vmem:[#allocation3 + $0x10] sm:$0xf] %vm1694_vm10, %v1679_v4  ;;  %v9729_v14 = vld [vmem:[#allocation3] sm:$0xff]   ;;  %v2462_v57 = vrot.slane %v2460_v20, 4  ;;  %v2465_v15 = vrot.slane %v2463_v48, 5  ;;  %v2425_v17 = vrot.slane %v2424_v38, 4  ;;  %v2402_v54 = vsel %vm9944_vm4, %v2397_v18, %v2401_v0 }
 0x188   : > { %2337 = vrot.lane.b32.xlu1 %v2316_v3, %s12969_s27  ;;  %2339 = vrot.lane.b32.xlu0 %v2317_v29, %s12969_s27  ;;  %v2372_v37 = vld [vmem:[#allocation2 + $0x44] sm:$0x1]  ;;  %v2429_v63 = vrot.slane %v2427_v34, 5  ;;  %v2476_v41 = vrot.slane %v2474_v58, 4  ;;  %v2479_v49 = vrot.slane %v2477_v27, 5  ;;  %v2416_v56 = vsel %vm9944_vm4, %v2411_v1, %v2415_v2 }
 0x189   : > { %9584 = vmatprep.mubr.bf16.mxu0 %v9729_v14  ;;  %v1681_v47 = vpop.permute.xlu1 %1680  ;;  %v1683_v28 = vpop.permute.xlu0 %1682  ;;  %v2443_v59 = vrot.slane %v2441_v36, 5  ;;  %v2455_v11 = vshll.u32 %v2370_v52, 16  ;;  %v2374_v26 = vld [vmem:[#allocation2 + $0x4c] sm:$0x1]  ;;  %v2439_v31 = vrot.slane %v2438_v51, 4  ;;  %v2452_v62 = vor.u32 %v2451_v55, %v2448_v6 }
 0x18a   : > { %1700 = vst.msk [vmem:[#allocation3 + $0x14] sm:$0xf] %vm1694_vm10, %v1681_v47  ;;  %1701 = vst.msk [vmem:[#allocation3 + $0x18] sm:$0xf] %vm1694_vm10, %v1683_v28  ;;  %v2466_v7 = vor.u32 %v2465_v15, %v2462_v57  ;;  %v2469_v22 = vshll.u32 %v2372_v37, 16  ;;  %v2480_v43 = vor.u32 %v2479_v49, %v2476_v41  ;;  %v2483_v8 = vshll.u32 %v2374_v26, 16 }
 0x18b   : > { %v9730_v50 = vld [vmem:[#allocation3 + $0x8] sm:$0xff]   ;;  %v2430_v9 = vsel %vm9944_vm4, %v2425_v17, %v2429_v63  ;;  %v2457_v10 = vrot.slane %v2455_v11, 5  ;;  %v2444_v46 = vsel %vm9944_vm4, %v2439_v31, %v2443_v59  ;;  %v2453_v3 = vrot.slane %v2452_v62, 4  ;;  %v2519_v42 = vld [vmem:[#allocation2 + $0x10] sm:$0xe] }
 0x18c   : > { %2341 = vrot.lane.b32.xlu1 %v2318_v25, %s12969_s27  ;;  %2487 = vrot.lane.b32.xlu0 %v2388_v35, %s9804_s28  ;;  %v2467_v29 = vrot.slane %v2466_v7, 4  ;;  %v2471_v12 = vrot.slane %v2469_v22, 5  ;;  %v2520_v61 = vld [vmem:[#allocation2 + $0x14] sm:$0x1]  ;;  %v2481_v5 = vrot.slane %v2480_v43, 4  ;;  %v2485_v24 = vrot.slane %v2483_v8, 5 }
 0x18d   : > { %9585 = vmatmul.mubr.bf16.vlgmr.msra.gmra.mxu0 %v9730_v50  ;;  %v1685_v23 = vpop.permute.xlu1 %1684  ;;  %v1720_v53 = vpop.permute.xlu0 %1719  ;;  %v2458_v44 = vsel %vm9944_vm4, %v2453_v3, %v2457_v10  ;;  %v9319_v19 = vrot.slane %v2519_v42, 9  ;;  %v2553_v60 = vrot.slane %v2520_v61, 5  ;;  %v2521_v14 = vld [vmem:[#allocation2 + $0x18] sm:$0xe]  ;;  %v2522_v32 = vld [vmem:[#allocation2 + $0x1c] sm:$0x1] }
 0x18e   : > { %1702 = vst.msk [vmem:[#allocation3 + $0x1c] sm:$0xf] %vm1694_vm10, %v1685_v23  ;;  %v2472_v40 = vsel %vm9944_vm4, %v2467_v29, %v2471_v12  ;;  %v2523_v20 = vld [vmem:[#allocation2 + $0x20] sm:$0xe]  ;;  %v2524_v48 = vld [vmem:[#allocation2 + $0x24] sm:$0x1]  ;;  %v2486_v0 = vsel %vm9944_vm4, %v2481_v5, %v2485_v24 }
 0x18f   : > { %1743 = vst.msk [vmem:[#allocation3 + $0x20] sm:$0xf] %vm815_vm9, %v1720_v53  ;;  %v9320_v25 = vrot.slane %v2521_v14, 9  ;;  %v2525_v18 = vld [vmem:[#allocation2 + $0x28] sm:$0xe]  ;;  %v2554_v38 = vsel %vm9956_vm7, %v9319_v19, %v2553_v60  ;;  %v2557_v58 = vrot.slane %v2522_v32, 5 }
 0x190   : > { %2489 = vrot.lane.b32.xlu1 %v2402_v54, %s9804_s28  ;;  %2491 = vrot.lane.b32.xlu0 %v2416_v56, %s9804_s28  ;;  %v9321_v27 = vrot.slane %v2523_v20, 9  ;;  %v2561_v47 = vrot.slane %v2524_v48, 5  ;;  %v2526_v28 = vld [vmem:[#allocation2 + $0x2c] sm:$0x1]  ;;  %v2527_v35 = vld [vmem:[#allocation2 + $0x30] sm:$0xe] }
 0x191   : > { %v1722_v39 = vpop.permute.xlu1 %1721  ;;  %v1724_v33 = vpop.permute.xlu0 %1723  ;;  %v9731_v30 = vld [vmem:[#allocation3 + $0x10] sm:$0xff]   ;;  %v2528_v1 = vld [vmem:[#allocation2 + $0x34] sm:$0x1]  ;;  %v9322_v6 = vrot.slane %v2525_v18, 9  ;;  %v2565_v50 = vrot.slane %v2526_v28, 5  ;;  %v2558_v51 = vsel %vm9956_vm7, %v9320_v25, %v2557_v58  ;;  %v9323_v57 = vrot.slane %v2527_v35, 9 }
 0x192   : > { %1744 = vst.msk [vmem:[#allocation3 + $0x24] sm:$0xf] %vm815_vm9, %v1722_v39  ;;  %1745 = vst.msk [vmem:[#allocation3 + $0x28] sm:$0xf] %vm815_vm9, %v1724_v33  ;;  %9588 = vmatprep.mubr.bf16.mxu0 %v9731_v30  ;;  %v2562_v55 = vsel %vm9956_vm7, %v9321_v27, %v2561_v47  ;;  %v2569_v15 = vrot.slane %v2528_v1, 5 }
 0x193   : > { %v2529_v37 = vld [vmem:[#allocation2 + $0x38] sm:$0xe]  ;;  %v2530_v17 = vld [vmem:[#allocation2 + $0x3c] sm:$0x1]  ;;  %v2531_v63 = vld [vmem:[#allocation2 + $0x40] sm:$0xe]  ;;  %v2566_v53 = vsel %vm9956_vm7, %v9322_v6, %v2565_v50 }
 0x194   : > { %2493 = vrot.lane.b32.xlu1 %v2430_v9, %s9804_s28  ;;  %2495 = vrot.lane.b32.xlu0 %v2444_v46, %s9804_s28  ;;  %v2532_v41 = vld [vmem:[#allocation2 + $0x44] sm:$0x1]  ;;  %v9324_v54 = vrot.slane %v2529_v37, 9  ;;  %v2533_v56 = vld [vmem:[#allocation2 + $0x48] sm:$0xe]  ;;  %v2570_v11 = vsel %vm9956_vm7, %v9323_v57, %v2569_v15  ;;  %v2573_v26 = vrot.slane %v2530_v17, 5 }
 0x195   : > { %v1726_v45 = vpop.permute.xlu1 %1725  ;;  %v1728_v4 = vpop.permute.xlu0 %1727  ;;  %v9732_v16 = vld [vmem:[#allocation3 + $0x18] sm:$0xff]   ;;  %v9325_v31 = vrot.slane %v2531_v63, 9  ;;  %v2577_v62 = vrot.slane %v2532_v41, 5  ;;  %v9326_v7 = vrot.slane %v2533_v56, 9  ;;  %v2663_v39 = vld [vmem:[#allocation2] sm:$0xf] }
 0x196   : > { %1746 = vst.msk [vmem:[#allocation3 + $0x2c] sm:$0xf] %vm815_vm9, %v1726_v45  ;;  %1747 = vst.msk [vmem:[#allocation3 + $0x30] sm:$0xf] %vm815_vm9, %v1728_v4  ;;  %9589 = vmatmul.mubr.bf16.gmra.mxu0 %v9732_v16  ;;  %v2534_v59 = vld [vmem:[#allocation2 + $0x4c] sm:$0x1]  ;;  %v2574_v33 = vsel %vm9956_vm7, %v9324_v54, %v2573_v26 }
 0x197   : > { %v2581_v22 = vrot.slane %v2534_v59, 5  ;;  %v2578_v9 = vsel %vm9956_vm7, %v9325_v31, %v2577_v62  ;;  %v2615_v30 = vld [vmem:[#allocation2] sm:$0xf]  ;;  %v2680_v46 = vshrl.u32 %v2663_v39, 16  ;;  %v2683_v3 = vshll.u32 %v2663_v39, 16 }
 0x198   : > { %2497 = vrot.lane.b32.xlu1 %v2458_v44, %s9804_s28  ;;  %2499 = vrot.lane.b32.xlu0 %v2472_v40, %s9804_s28  ;;  %v2665_v29 = vld [vmem:[#allocation2 + $0x8] sm:$0xf]  ;;  %v2667_v12 = vld [vmem:[#allocation2 + $0x10] sm:$0xf]  ;;  %v2664_v60 = vld [vmem:[#allocation2 + $0x4] sm:$0x1] }
 0x199   : > { %v1730_v2 = vpop.permute.xlu1 %1729  ;;  %v1732_v34 = vpop.permute.xlu0 %1731  ;;  %v2582_v10 = vsel %vm9956_vm7, %v9326_v7, %v2581_v22  ;;  %v2694_v5 = vshrl.u32 %v2665_v29, 16  ;;  %v2697_v24 = vshll.u32 %v2665_v29, 16  ;;  %v2708_v45 = vshrl.u32 %v2667_v12, 16  ;;  %v2669_v14 = vld [vmem:[#allocation2 + $0x18] sm:$0xf] }
 0x19a   : > { %1748 = vst.msk [vmem:[#allocation3 + $0x34] sm:$0xf] %vm815_vm9, %v1730_v2  ;;  %1749 = vst.msk [vmem:[#allocation3 + $0x38] sm:$0xf] %vm815_vm9, %v1732_v34  ;;  %v2711_v4 = vshll.u32 %v2667_v12, 16  ;;  %v2682_v16 = vrot.slane %v2680_v46, 4 }
 0x19b   : > { %v2685_v44 = vrot.slane %v2683_v3, 5  ;;  %v2616_v32 = vld [vmem:[#allocation2 + $0x8] sm:$0xf]  ;;  %v2617_v20 = vld [vmem:[#allocation2 + $0x10] sm:$0xf]  ;;  %v2696_v2 = vrot.slane %v2694_v5, 4 }
 0x19c   : > { %2501 = vrot.lane.b32.xlu1 %v2486_v0, %s9804_s28  ;;  %2583 = vrot.lane.b32.xlu0 %v2554_v38, %s9805_s29  ;;  %v2671_v48 = vld [vmem:[#allocation2 + $0x20] sm:$0xf]  ;;  %v2666_v0 = vld [vmem:[#allocation2 + $0xc] sm:$0x1]  ;;  %v2699_v34 = vrot.slane %v2697_v24, 5  ;;  %v2710_v25 = vrot.slane %v2708_v45, 4 }
 0x19d   : > { %v1734_v36 = vpop.permute.xlu1 %1733  ;;  %v1880_v52 = vpop.permute.xlu0 %1879  ;;  %v2713_v18 = vrot.slane %v2711_v4, 5  ;;  %v2686_v38 = vor.u32 %v2685_v44, %v2682_v16  ;;  %v2689_v58 = vshll.u32 %v2664_v60, 16  ;;  %v2668_v27 = vld [vmem:[#allocation2 + $0x14] sm:$0x1]  ;;  %v2722_v47 = vshrl.u32 %v2669_v14, 16 }
 0x19e   : > { %1750 = vst.msk [vmem:[#allocation3 + $0x3c] sm:$0xf] %vm815_vm9, %v1734_v36  ;;  %v2725_v28 = vshll.u32 %v2669_v14, 16  ;;  %v2736_v36 = vshrl.u32 %v2671_v48, 16  ;;  %v2618_v6 = vld [vmem:[#allocation2 + $0x18] sm:$0xf] }
 0x19f   : > { %1903 = vst.msk [vmem:[#allocation3 + $0x20] sm:$0xf] %vm979_vm0, %v1880_v52  ;;  %v2739_v52 = vshll.u32 %v2671_v48, 16  ;;  %v2619_v50 = vld [vmem:[#allocation2 + $0x20] sm:$0xf]  ;;  %v2703_v57 = vshll.u32 %v2666_v0, 16  ;;  %v2714_v15 = vor.u32 %v2713_v18, %v2710_v25 }
 0x1a0   : > { %2585 = vrot.lane.b32.xlu1 %v2558_v51, %s9805_s29  ;;  %2587 = vrot.lane.b32.xlu0 %v2562_v55, %s9805_s29  ;;  %v2673_v51 = vld [vmem:[#allocation2 + $0x28] sm:$0xf]  ;;  %v2700_v55 = vor.u32 %v2699_v34, %v2696_v2  ;;  %v2717_v37 = vshll.u32 %v2668_v27, 16  ;;  %v2675_v17 = vld [vmem:[#allocation2 + $0x30] sm:$0xf]  ;;  %v2687_v63 = vrot.slane %v2686_v38, 4 }
 0x1a1   : > { %v1882_v49 = vpop.permute.xlu1 %1881  ;;  %v1884_v23 = vpop.permute.xlu0 %1883  ;;  %v2691_v41 = vrot.slane %v2689_v58, 5  ;;  %v2620_v59 = vld [vmem:[#allocation2 + $0x28] sm:$0xf]  ;;  %v2741_v26 = vrot.slane %v2739_v52, 5  ;;  %v2750_v31 = vshrl.u32 %v2673_v51, 16  ;;  %v2753_v62 = vshll.u32 %v2673_v51, 16 }
 0x1a2   : > { %1904 = vst.msk [vmem:[#allocation3 + $0x24] sm:$0xf] %vm979_vm0, %v1882_v49  ;;  %1905 = vst.msk [vmem:[#allocation3 + $0x28] sm:$0xf] %vm979_vm0, %v1884_v23  ;;  %v2670_v49 = vld [vmem:[#allocation2 + $0x1c] sm:$0x1] }
 0x1a3   : > { %v2724_v23 = vrot.slane %v2722_v47, 4  ;;  %v2621_v7 = vld [vmem:[#allocation2 + $0x30] sm:$0xf]  ;;  %v2672_v22 = vld [vmem:[#allocation2 + $0x24] sm:$0x1]  ;;  %v2705_v39 = vrot.slane %v2703_v57, 5  ;;  %v2692_v46 = vsel %vm9944_vm4, %v2687_v63, %v2691_v41 }
 0x1a4   : > { %2589 = vrot.lane.b32.xlu1 %v2566_v53, %s9805_s29  ;;  %2591 = vrot.lane.b32.xlu0 %v2570_v11, %s9805_s29  ;;  %v2727_v53 = vrot.slane %v2725_v28, 5  ;;  %v2738_v11 = vrot.slane %v2736_v36, 4  ;;  %v2701_v3 = vrot.slane %v2700_v55, 4  ;;  %v2715_v29 = vrot.slane %v2714_v15, 4  ;;  %v2674_v45 = vld [vmem:[#allocation2 + $0x2c] sm:$0x1] }
 0x1a5   : > { %v1886_v43 = vpop.permute.xlu1 %1885  ;;  %v1888_v8 = vpop.permute.xlu0 %1887  ;;  %v2745_v24 = vshll.u32 %v2672_v22, 16  ;;  %v2752_v4 = vrot.slane %v2750_v31, 4  ;;  %v2755_v16 = vrot.slane %v2753_v62, 5  ;;  %v2676_v44 = vld [vmem:[#allocation2 + $0x34] sm:$0x1]  ;;  %v2759_v0 = vshll.u32 %v2674_v45, 16 }
 0x1a6   : > { %1906 = vst.msk [vmem:[#allocation3 + $0x2c] sm:$0xf] %vm979_vm0, %v1886_v43  ;;  %1907 = vst.msk [vmem:[#allocation3 + $0x30] sm:$0xf] %vm979_vm0, %v1888_v8  ;;  %v2764_v43 = vshrl.u32 %v2675_v17, 16  ;;  %v2767_v8 = vshll.u32 %v2675_v17, 16  ;;  %v2728_v12 = vor.u32 %v2727_v53, %v2724_v23  ;;  %v2742_v5 = vor.u32 %v2741_v26, %v2738_v11 }
 0x1a7   : > { %v2747_v38 = vrot.slane %v2745_v24, 5  ;;  %v2773_v58 = vshll.u32 %v2676_v44, 16  ;;  %v2756_v27 = vor.u32 %v2755_v16, %v2752_v4  ;;  %v2678_v28 = vld [vmem:[#allocation2 + $0x3c] sm:$0x1]  ;;  %v2761_v36 = vrot.slane %v2759_v0, 5 }
 0x1a8   : > { %2593 = vrot.lane.b32.xlu1 %v2574_v33, %s9805_s29  ;;  %2595 = vrot.lane.b32.xlu0 %v2578_v9, %s9805_s29  ;;  %v2719_v33 = vrot.slane %v2717_v37, 5  ;;  %v2731_v9 = vshll.u32 %v2670_v49, 16  ;;  %v2729_v25 = vrot.slane %v2728_v12, 4  ;;  %v2743_v18 = vrot.slane %v2742_v5, 4  ;;  %v2823_v57 = vld [vmem:[#allocation2] sm:$0xe] }
 0x1a9   : > { %v1890_v42 = vpop.permute.xlu1 %1889  ;;  %v1892_v61 = vpop.permute.xlu0 %1891  ;;  %v2775_v51 = vrot.slane %v2773_v58, 5  ;;  %v2787_v55 = vshll.u32 %v2678_v28, 16  ;;  %v2824_v15 = vld [vmem:[#allocation2 + $0x4] sm:$0x1]  ;;  %v2757_v17 = vrot.slane %v2756_v27, 4  ;;  %v9327_v49 = vrot.slane %v2823_v57, 9 }
 0x1aa   : > { %1908 = vst.msk [vmem:[#allocation3 + $0x34] sm:$0xf] %vm979_vm0, %v1890_v42  ;;  %1909 = vst.msk [vmem:[#allocation3 + $0x38] sm:$0xf] %vm979_vm0, %v1892_v61  ;;  %v2733_v48 = vrot.slane %v2731_v9, 5  ;;  %v2748_v37 = vsel %vm9944_vm4, %v2743_v18, %v2747_v38  ;;  %v2857_v23 = vrot.slane %v2824_v15, 5 }
 0x1ab   : > { %v2789_v26 = vrot.slane %v2787_v55, 5  ;;  %v2826_v31 = vld [vmem:[#allocation2 + $0xc] sm:$0x1]  ;;  %v2827_v62 = vld [vmem:[#allocation2 + $0x10] sm:$0xe] }
 0x1ac   : > { %2597 = vrot.lane.b32.xlu1 %v2582_v10, %s9805_s29  ;;  %2631 = vrot.lane.b32.xlu0 %v2615_v30, %s9806_s15  ;;  %v2677_v30 = vld [vmem:[#allocation2 + $0x38] sm:$0xf]  ;;  %v2858_v22 = vsel %vm9956_vm7, %v9327_v49, %v2857_v23  ;;  %v2832_v12 = vld [vmem:[#allocation2 + $0x24] sm:$0x1]  ;;  %v2838_v27 = vld [vmem:[#allocation2 + $0x3c] sm:$0x1] }
 0x1ad   : > { %v1894_v40 = vpop.permute.xlu1 %1893  ;;  %v1976_v19 = vpop.permute.xlu0 %1975  ;;  %v2622_v10 = vld [vmem:[#allocation2 + $0x38] sm:$0xf]  ;;  %v2778_v60 = vshrl.u32 %v2677_v30, 16  ;;  %v2781_v14 = vshll.u32 %v2677_v30, 16  ;;  %v2861_v30 = vrot.slane %v2826_v31, 5  ;;  %s12957_s29 = smov 52  }
 0x1ae   : > { %1910 = vst.msk [vmem:[#allocation3 + $0x3c] sm:$0xf] %vm979_vm0, %v1894_v40  ;;  %v2766_v40 = vrot.slane %v2764_v43, 4  ;;  %v2837_v58 = vld [vmem:[#allocation2 + $0x38] sm:$0xe] }
 0x1af   : > { %1999 = vst.msk [vmem:[#allocation3 + $0x20] sm:$0xf] %vm1079_vm1, %v1976_v19  ;;  %v2769_v19 = vrot.slane %v2767_v8, 5  ;;  %v2969_v55 = vld [vmem:[#allocation2 + $0x10] sm:$0xf] }
 0x1b0   : > { %2633 = vrot.lane.b32.xlu1 %v2616_v32, %s9806_s15  ;;  %2635 = vrot.lane.b32.xlu0 %v2617_v20, %s9806_s15  ;;  %v2706_v32 = vsel %vm9944_vm4, %v2701_v3, %v2705_v39  ;;  %v2720_v20 = vsel %vm9944_vm4, %v2715_v29, %v2719_v33  ;;  %v2825_v39 = vld [vmem:[#allocation2 + $0x8] sm:$0xe]  ;;  %v2829_v33 = vld [vmem:[#allocation2 + $0x18] sm:$0xe]  ;;  %v2830_v3 = vld [vmem:[#allocation2 + $0x1c] sm:$0x1] }
 0x1b1   : > { %v1978_v35 = vpop.permute.xlu1 %1977  ;;  %v1980_v1 = vpop.permute.xlu0 %1979  ;;  %v2770_v47 = vor.u32 %v2769_v19, %v2766_v40  ;;  %v2831_v29 = vld [vmem:[#allocation2 + $0x20] sm:$0xe]  ;;  %v9330_v24 = vrot.slane %v2829_v33, 9  ;;  %v2869_v45 = vrot.slane %v2830_v3, 5  ;;  %v2873_v40 = vrot.slane %v2832_v12, 5 }
 0x1b2   : > { %2000 = vst.msk [vmem:[#allocation3 + $0x24] sm:$0xf] %vm1079_vm1, %v1978_v35  ;;  %2001 = vst.msk [vmem:[#allocation3 + $0x28] sm:$0xf] %vm1079_vm1, %v1980_v1  ;;  %v2780_v35 = vrot.slane %v2778_v60, 4  ;;  %v2783_v1 = vrot.slane %v2781_v14, 5 }
 0x1b3   : > { %v2771_v63 = vrot.slane %v2770_v47, 4  ;;  %v9331_v44 = vrot.slane %v2831_v29, 9  ;;  %v2833_v19 = vld [vmem:[#allocation2 + $0x28] sm:$0xe]  ;;  %v2834_v60 = vld [vmem:[#allocation2 + $0x2c] sm:$0x1]  ;;  %v2870_v0 = vsel %vm9956_vm7, %v9330_v24, %v2869_v45 }
 0x1b4   : > { %2637 = vrot.lane.b32.xlu1 %v2618_v6, %s9806_s15  ;;  %2639 = vrot.lane.b32.xlu0 %v2619_v50, %s9806_s15  ;;  %v2734_v50 = vsel %vm9944_vm4, %v2729_v25, %v2733_v48  ;;  %v2784_v41 = vor.u32 %v2783_v1, %v2780_v35  ;;  %v2835_v14 = vld [vmem:[#allocation2 + $0x30] sm:$0xe]  ;;  %v2877_v25 = vrot.slane %v2834_v60, 5  ;;  %v2967_v47 = vld [vmem:[#allocation2 + $0x8] sm:$0xf]  ;;  %v2998_v23 = vshrl.u32 %v2969_v55, 16 }
 0x1b5   : > { %v1982_v54 = vpop.permute.xlu1 %1981  ;;  %v1984_v56 = vpop.permute.xlu0 %1983  ;;  %v9333_v18 = vrot.slane %v2835_v14, 9  ;;  %v2973_v31 = vld [vmem:[#allocation2 + $0x20] sm:$0xf]  ;;  %v2923_v45 = vld [vmem:[#allocation2 + $0x28] sm:$0xf] }
 0x1b6   : > { %2002 = vst.msk [vmem:[#allocation3 + $0x2c] sm:$0xf] %vm1079_vm1, %v1982_v54  ;;  %2003 = vst.msk [vmem:[#allocation3 + $0x30] sm:$0xf] %vm1079_vm1, %v1984_v56  ;;  %v2762_v56 = vsel %vm9944_vm4, %v2757_v17, %v2761_v36  ;;  %v2785_v11 = vrot.slane %v2784_v41, 4  ;;  %v3000_v33 = vrot.slane %v2998_v23, 4 }
 0x1b7   : > { %v3026_v3 = vshrl.u32 %v2973_v31, 16  ;;  %v3029_v29 = vshll.u32 %v2973_v31, 16  ;;  %v2922_v24 = vld [vmem:[#allocation2 + $0x20] sm:$0xf]  ;;  %v2979_v60 = vld [vmem:[#allocation2 + $0x38] sm:$0xf] }
 0x1b8   : > { %2641 = vrot.lane.b32.xlu1 %v2620_v59, %s9806_s15  ;;  %2643 = vrot.lane.b32.xlu0 %v2621_v7, %s9806_s15  ;;  %v2776_v59 = vsel %vm9944_vm4, %v2771_v63, %v2775_v51  ;;  %v2828_v7 = vld [vmem:[#allocation2 + $0x14] sm:$0x1]  ;;  %v2790_v9 = vsel %vm9944_vm4, %v2785_v11, %v2789_v26  ;;  %v2987_v51 = vshll.u32 %v2967_v47, 16  ;;  %v2919_v63 = vld [vmem:[#allocation2 + $0x8] sm:$0xf] }
 0x1b9   : > { %v1986_v42 = vpop.permute.xlu1 %1985  ;;  %v1988_v61 = vpop.permute.xlu0 %1987  ;;  %v2978_v23 = vld [vmem:[#allocation2 + $0x34] sm:$0x1] }
 0x1ba   : > { %2004 = vst.msk [vmem:[#allocation3 + $0x34] sm:$0xf] %vm1079_vm1, %v1986_v42  ;;  %2005 = vst.msk [vmem:[#allocation3 + $0x38] sm:$0xf] %vm1079_vm1, %v1988_v61  ;;  %v9328_v42 = vrot.slane %v2825_v39, 9  ;;  %v2989_v49 = vrot.slane %v2987_v51, 5 }
 0x1bb   : > { %v2970_v39 = vld [vmem:[#allocation2 + $0x14] sm:$0x1]  ;;  %v2926_v51 = vld [vmem:[#allocation2 + $0x40] sm:$0xf] }
 0x1bc   : > { %2645 = vrot.lane.b32.xlu1 %v2622_v10, %s9806_s15  ;;  %2791 = vrot.lane.b32.xlu0 %v2692_v46, %s12967_s30  ;;  %v9329_v10 = vrot.slane %v2827_v62, 9  ;;  %v2865_v46 = vrot.slane %v2828_v7, 5  ;;  %v2862_v4 = vsel %vm9956_vm7, %v9328_v42, %v2861_v30  ;;  %v2920_v62 = vld [vmem:[#allocation2 + $0x10] sm:$0xf]  ;;  %v2921_v7 = vld [vmem:[#allocation2 + $0x18] sm:$0xf] }
 0x1bd   : > { %v1990_v2 = vpop.permute.xlu1 %1989  ;;  %v2024_v34 = vpop.permute.xlu0 %2023  ;;  %v2972_v30 = vld [vmem:[#allocation2 + $0x1c] sm:$0x1] }
 0x1be   : > { %2006 = vst.msk [vmem:[#allocation3 + $0x3c] sm:$0xf] %vm1079_vm1, %v1990_v2  ;;  %v2866_v16 = vsel %vm9956_vm7, %v9329_v10, %v2865_v46  ;;  %v9332_v2 = vrot.slane %v2833_v19, 9  ;;  %v3021_v19 = vshll.u32 %v2972_v30, 16  ;;  %v3063_v30 = vshll.u32 %v2978_v23, 16 }
 0x1bf   : > { %2047 = vst.msk [vmem:[#allocation3 + $0x20] sm:$0xf] %vm1128_vm2, %v2024_v34  ;;  %v2874_v34 = vsel %vm9956_vm7, %v9331_v44, %v2873_v40  ;;  %v3007_v40 = vshll.u32 %v2970_v39, 16 }
 0x1c0   : > { %2793 = vrot.lane.b32.xlu1 %v2706_v32, %s12967_s30  ;;  %2795 = vrot.lane.b32.xlu0 %v2720_v20, %s12967_s30  ;;  %v2836_v32 = vld [vmem:[#allocation2 + $0x34] sm:$0x1]  ;;  %v2878_v1 = vsel %vm9956_vm7, %v9332_v2, %v2877_v25  ;;  %v2976_v25 = vld [vmem:[#allocation2 + $0x2c] sm:$0x1] }
 0x1c1   : > { %v2026_v52 = vpop.permute.xlu1 %2025  ;;  %v2028_v6 = vpop.permute.xlu0 %2027  ;;  %v2881_v38 = vrot.slane %v2836_v32, 5 }
 0x1c2   : > { %2048 = vst.msk [vmem:[#allocation3 + $0x24] sm:$0xf] %vm1128_vm2, %v2026_v52  ;;  %2049 = vst.msk [vmem:[#allocation3 + $0x28] sm:$0xf] %vm1128_vm2, %v2028_v6  ;;  %v9334_v52 = vrot.slane %v2837_v58, 9  ;;  %v2885_v6 = vrot.slane %v2838_v27, 5 }
 0x1c3   : > { %v2882_v36 = vsel %vm9956_vm7, %v9333_v18, %v2881_v38 }
 0x1c4   : > { %2797 = vrot.lane.b32.xlu1 %v2734_v50, %s12967_s30  ;;  %2799 = vrot.lane.b32.xlu0 %v2748_v37, %s12967_s30  ;;  %v2984_v50 = vshrl.u32 %v2967_v47, 16  ;;  %v2971_v37 = vld [vmem:[#allocation2 + $0x18] sm:$0xf]  ;;  %v2886_v17 = vsel %vm9956_vm7, %v9334_v52, %v2885_v6  ;;  %v2924_v47 = vld [vmem:[#allocation2 + $0x30] sm:$0xf]  ;;  %v3023_v52 = vrot.slane %v3021_v19, 5 }
 0x1c5   : > { %v2030_v53 = vpop.permute.xlu1 %2029  ;;  %v2032_v54 = vpop.permute.xlu0 %2031 }
 0x1c6   : > { %2050 = vst.msk [vmem:[#allocation3 + $0x2c] sm:$0xf] %vm1128_vm2, %v2030_v53  ;;  %2051 = vst.msk [vmem:[#allocation3 + $0x30] sm:$0xf] %vm1128_vm2, %v2032_v54  ;;  %v2986_v41 = vrot.slane %v2984_v50, 4  ;;  %v3001_v53 = vshll.u32 %v2969_v55, 16 }
 0x1c7   : > { %v2968_v54 = vld [vmem:[#allocation2 + $0xc] sm:$0x1]  ;;  %v2981_v50 = vld [vmem:[#allocation2 + $0x40] sm:$0xf] }
 0x1c8   : > { %2801 = vrot.lane.b32.xlu1 %v2762_v56, %s12967_s30  ;;  %2803 = vrot.lane.b32.xlu0 %v2776_v59, %s12967_s30  ;;  %v3012_v56 = vshrl.u32 %v2971_v37, 16  ;;  %v3015_v59 = vshll.u32 %v2971_v37, 16  ;;  %v3049_v37 = vshll.u32 %v2976_v25, 16  ;;  %v3085_v31 = vshll.u32 %v2981_v50, 16 }
 0x1c9   : > { %v2034_v43 = vpop.permute.xlu1 %2033  ;;  %v2036_v8 = vpop.permute.xlu0 %2035 }
 0x1ca   : > { %2052 = vst.msk [vmem:[#allocation3 + $0x34] sm:$0xf] %vm1128_vm2, %v2034_v43  ;;  %2053 = vst.msk [vmem:[#allocation3 + $0x38] sm:$0xf] %vm1128_vm2, %v2036_v8  ;;  %v2990_v43 = vor.u32 %v2989_v49, %v2986_v41  ;;  %v2993_v8 = vshll.u32 %v2968_v54, 16  ;;  %v3014_v10 = vrot.slane %v3012_v56, 4 }
 0x1cb   : > { %v3017_v46 = vrot.slane %v3015_v59, 5  ;;  %v2980_v56 = vld [vmem:[#allocation2 + $0x3c] sm:$0x1] }
 0x1cc   : > { %2805 = vrot.lane.b32.xlu1 %v2790_v9, %s12967_s30  ;;  %2887 = vrot.lane.b32.xlu0 %v2858_v22, %s12965_s16  ;;  %v2975_v22 = vld [vmem:[#allocation2 + $0x28] sm:$0xf]  ;;  %v3003_v9 = vrot.slane %v3001_v53, 5  ;;  %v2991_v14 = vrot.slane %v2990_v43, 4  ;;  %v3051_v43 = vrot.slane %v3049_v37, 5 }
 0x1cd   : > { %v2038_v61 = vpop.permute.xlu1 %2037  ;;  %v2184_v5 = vpop.permute.xlu0 %2183  ;;  %v3018_v32 = vor.u32 %v3017_v46, %v3014_v10  ;;  %v3077_v10 = vshll.u32 %v2980_v56, 16  ;;  %v3135_v37 = vld [vmem:[#allocation2 + $0x28] sm:$0xe] }
 0x1ce   : > { %2054 = vst.msk [vmem:[#allocation3 + $0x3c] sm:$0xf] %vm1128_vm2, %v2038_v61  ;;  %v3040_v61 = vshrl.u32 %v2975_v22, 16  ;;  %v3004_v44 = vor.u32 %v3003_v9, %v3000_v33 }
 0x1cf   : > { %2207 = vst.msk [vmem:[#allocation3 + $0x20] sm:$0xf] %vm1289_vm3, %v2184_v5  ;;  %v3043_v5 = vshll.u32 %v2975_v22, 16  ;;  %v3019_v41 = vrot.slane %v3018_v32, 4 }
 0x1d0   : > { %2889 = vrot.lane.b32.xlu1 %v2862_v4, %s12965_s16  ;;  %2891 = vrot.lane.b32.xlu0 %v2866_v16, %s12965_s16  ;;  %v2977_v4 = vld [vmem:[#allocation2 + $0x30] sm:$0xf]  ;;  %v2995_v16 = vrot.slane %v2993_v8, 5  ;;  %v3042_v18 = vrot.slane %v3040_v61, 4 }
 0x1d1   : > { %v2186_v20 = vpop.permute.xlu1 %2185  ;;  %v2188_v48 = vpop.permute.xlu0 %2187  ;;  %v3045_v38 = vrot.slane %v3043_v5, 5  ;;  %v3054_v58 = vshrl.u32 %v2977_v4, 16  ;;  %v3057_v27 = vshll.u32 %v2977_v4, 16  ;;  %v3024_v33 = vsel %vm9944_vm4, %v3019_v41, %v3023_v52 }
 0x1d2   : > { %2208 = vst.msk [vmem:[#allocation3 + $0x24] sm:$0xf] %vm1289_vm3, %v2186_v20  ;;  %2209 = vst.msk [vmem:[#allocation3 + $0x28] sm:$0xf] %vm1289_vm3, %v2188_v48  ;;  %v2974_v20 = vld [vmem:[#allocation2 + $0x24] sm:$0x1]  ;;  %v2996_v55 = vsel %vm9944_vm4, %v2991_v14, %v2995_v16 }
 0x1d3   : > { %v3028_v48 = vrot.slane %v3026_v3, 4  ;;  %v3035_v6 = vshll.u32 %v2974_v20, 16  ;;  %v3046_v49 = vor.u32 %v3045_v38, %v3042_v18  ;;  %v3056_v53 = vrot.slane %v3054_v58, 4  ;;  %v3128_v14 = vld [vmem:[#allocation2 + $0xc] sm:$0x1] }
 0x1d4   : > { %2893 = vrot.lane.b32.xlu1 %v2870_v0, %s12965_s16  ;;  %2895 = vrot.lane.b32.xlu0 %v2874_v34, %s12965_s16  ;;  %v3031_v0 = vrot.slane %v3029_v29, 5  ;;  %v3059_v54 = vrot.slane %v3057_v27, 5  ;;  %v2982_v29 = vld [vmem:[#allocation2 + $0x44] sm:$0x1]  ;;  %v3079_v4 = vrot.slane %v3077_v10, 5  ;;  %v3161_v18 = vrot.slane %v3128_v14, 5 }
 0x1d5   : > { %v2190_v28 = vpop.permute.xlu1 %2189  ;;  %v2192_v35 = vpop.permute.xlu0 %2191  ;;  %v3037_v22 = vrot.slane %v3035_v6, 5  ;;  %v3047_v9 = vrot.slane %v3046_v49, 4  ;;  %v3091_v16 = vshll.u32 %v2982_v29, 16  ;;  %v3129_v38 = vld [vmem:[#allocation2 + $0x10] sm:$0xe] }
 0x1d6   : > { %2210 = vst.msk [vmem:[#allocation3 + $0x2c] sm:$0xf] %vm1289_vm3, %v2190_v28  ;;  %2211 = vst.msk [vmem:[#allocation3 + $0x30] sm:$0xf] %vm1289_vm3, %v2192_v35  ;;  %v2925_v28 = vld [vmem:[#allocation2 + $0x38] sm:$0xf]  ;;  %v3060_v46 = vor.u32 %v3059_v54, %v3056_v53 }
 0x1d7   : > { %v3068_v35 = vshrl.u32 %v2979_v60, 16  ;;  %v3130_v58 = vld [vmem:[#allocation2 + $0x14] sm:$0x1]  ;;  %v3131_v27 = vld [vmem:[#allocation2 + $0x18] sm:$0xe] }
 0x1d8   : > { %2897 = vrot.lane.b32.xlu1 %v2878_v1, %s12965_s16  ;;  %2899 = vrot.lane.b32.xlu0 %v2882_v36, %s12965_s16  ;;  %v3071_v1 = vshll.u32 %v2979_v60, 16  ;;  %v3009_v36 = vrot.slane %v3007_v40, 5  ;;  %v3061_v40 = vrot.slane %v3060_v46, 4  ;;  %v3165_v52 = vrot.slane %v3130_v58, 5  ;;  %v3137_v53 = vld [vmem:[#allocation2 + $0x30] sm:$0xe] }
 0x1d9   : > { %v2194_v57 = vpop.permute.xlu1 %2193  ;;  %v2196_v15 = vpop.permute.xlu0 %2195  ;;  %v3070_v59 = vrot.slane %v3068_v35, 4  ;;  %v3141_v10 = vld [vmem:[#allocation2 + $0x40] sm:$0xe]  ;;  %v3142_v46 = vld [vmem:[#allocation2 + $0x44] sm:$0x1] }
 0x1da   : > { %2212 = vst.msk [vmem:[#allocation3 + $0x34] sm:$0xf] %vm1289_vm3, %v2194_v57  ;;  %2213 = vst.msk [vmem:[#allocation3 + $0x38] sm:$0xf] %vm1289_vm3, %v2196_v15  ;;  %v3005_v57 = vrot.slane %v3004_v44, 4  ;;  %v3032_v15 = vor.u32 %v3031_v0, %v3028_v48  ;;  %v3052_v44 = vsel %vm9944_vm4, %v3047_v9, %v3051_v43  ;;  %v3093_v48 = vrot.slane %v3091_v16, 5 }
 0x1db   : > { %v3127_v0 = vld [vmem:[#allocation2 + $0x8] sm:$0xe]  ;;  %v9340_v43 = vrot.slane %v3137_v53, 9  ;;  %v3273_v16 = vld [vmem:[#allocation2 + $0x18] sm:$0xf] }
 0x1dc   : > { %2901 = vrot.lane.b32.xlu1 %v2886_v17, %s12965_s16  ;;  %2935 = vrot.lane.b32.xlu0 %v2919_v63, %s12963_s17  ;;  %v3275_v14 = vld [vmem:[#allocation2 + $0x20] sm:$0xf]  ;;  %v3277_v58 = vld [vmem:[#allocation2 + $0x28] sm:$0xf]  ;;  %s9815_s16 = smov 112  }
 0x1dd   : > { %v2198_v11 = vpop.permute.xlu1 %2197  ;;  %v2280_v26 = vpop.permute.xlu0 %2279 }
 0x1de   : > { %2214 = vst.msk [vmem:[#allocation3 + $0x3c] sm:$0xf] %vm1289_vm3, %v2198_v11  ;;  %v3073_v11 = vrot.slane %v3071_v1, 5 }
 0x1df   : > { %2303 = vst.msk [vmem:[#allocation3 + $0x20] sm:$0xf] %vm1386_vm5, %v2280_v26  ;;  %v3082_v26 = vshrl.u32 %v2981_v50, 16 }
 0x1e0   : > { %2937 = vrot.lane.b32.xlu1 %v2920_v62, %s12963_s17  ;;  %2939 = vrot.lane.b32.xlu0 %v2921_v7, %s12963_s17  ;;  %v3010_v62 = vsel %vm9944_vm4, %v3005_v57, %v3009_v36  ;;  %v3033_v7 = vrot.slane %v3032_v15, 4  ;;  %v3074_v3 = vor.u32 %v3073_v11, %v3070_v59  ;;  %v9336_v36 = vrot.slane %v3129_v38, 9  ;;  %v3133_v57 = vld [vmem:[#allocation2 + $0x20] sm:$0xe]  ;;  %v3134_v15 = vld [vmem:[#allocation2 + $0x24] sm:$0x1] }
 0x1e1   : > { %v2284_v42 = vpop.permute.xlu0 %2283  ;;  %v9338_v23 = vrot.slane %v3133_v57, 9  ;;  %v3173_v56 = vrot.slane %v3134_v15, 5  ;;  %v9339_v59 = vrot.slane %v3135_v37, 9  ;;  %v3319_v38 = vshll.u32 %v3275_v14, 16 }
 0x1e2   : > { %v2282_v12 = vpop.permute.xlu1 %2281  ;;  %2305 = vst.msk [vmem:[#allocation3 + $0x28] sm:$0xf] %vm1386_vm5, %v2284_v42  ;;  %v3087_v42 = vrot.slane %v3085_v31, 5  ;;  %v3075_v19 = vrot.slane %v3074_v3, 4  ;;  %v3166_v49 = vsel %vm9956_vm7, %v9336_v36, %v3165_v52  ;;  %v3139_v31 = vld [vmem:[#allocation2 + $0x38] sm:$0xe] }
 0x1e3   : > { %2304 = vst.msk [vmem:[#allocation3 + $0x24] sm:$0xf] %vm1386_vm5, %v2282_v12  ;;  %v3084_v12 = vrot.slane %v3082_v26, 4  ;;  %v3138_v26 = vld [vmem:[#allocation2 + $0x34] sm:$0x1]  ;;  %v9341_v9 = vrot.slane %v3139_v31, 9 }
 0x1e4   : > { %2941 = vrot.lane.b32.xlu1 %v2922_v24, %s12963_s17  ;;  %2943 = vrot.lane.b32.xlu0 %v2923_v45, %s12963_s17  ;;  %v3038_v24 = vsel %vm9944_vm4, %v3033_v7, %v3037_v22  ;;  %v3065_v45 = vrot.slane %v3063_v30, 5  ;;  %v3276_v52 = vld [vmem:[#allocation2 + $0x24] sm:$0x1]  ;;  %v3228_v31 = vld [vmem:[#allocation2 + $0x38] sm:$0xf] }
 0x1e5   : > { %v3088_v60 = vor.u32 %v3087_v42, %v3084_v12  ;;  %v3271_v12 = vld [vmem:[#allocation2 + $0x10] sm:$0xf] }
 0x1e6   : > { %v2286_v2 = vpop.permute.xlu1 %2285  ;;  %v2288_v34 = vpop.permute.xlu0 %2287 }
 0x1e7   : > { %2306 = vst.msk [vmem:[#allocation3 + $0x2c] sm:$0xf] %vm1386_vm5, %v2286_v2  ;;  %2307 = vst.msk [vmem:[#allocation3 + $0x30] sm:$0xf] %vm1386_vm5, %v2288_v34  ;;  %v3066_v2 = vsel %vm9944_vm4, %v3061_v40, %v3065_v45  ;;  %v3080_v34 = vsel %vm9944_vm4, %v3075_v19, %v3079_v4  ;;  %v3089_v25 = vrot.slane %v3088_v60, 4  ;;  %v3288_v45 = vshrl.u32 %v3271_v12, 16 }
 0x1e8   : > { %2945 = vrot.lane.b32.xlu1 %v2924_v47, %s12963_s17  ;;  %2947 = vrot.lane.b32.xlu0 %v2925_v28, %s12963_s17  ;;  %v3132_v47 = vld [vmem:[#allocation2 + $0x1c] sm:$0x1]  ;;  %v9335_v28 = vrot.slane %v3127_v0, 9  ;;  %v3291_v4 = vshll.u32 %v3271_v12, 16  ;;  %v3223_v60 = vld [vmem:[#allocation2 + $0x10] sm:$0xf] }
 0x1e9   : > { %v3094_v6 = vsel %vm9944_vm4, %v3089_v25, %v3093_v48  ;;  %v3290_v48 = vrot.slane %v3288_v45, 4  ;;  %v3272_v25 = vld [vmem:[#allocation2 + $0x14] sm:$0x1] }
 0x1ea   : > { %v2290_v17 = vpop.permute.xlu1 %2289  ;;  %v2292_v63 = vpop.permute.xlu0 %2291  ;;  %v3162_v50 = vsel %vm9956_vm7, %v9335_v28, %v3161_v18  ;;  %v3293_v0 = vrot.slane %v3291_v4, 5  ;;  %v3316_v18 = vshrl.u32 %v3275_v14, 16  ;;  %v3279_v28 = vld [vmem:[#allocation2 + $0x30] sm:$0xf] }
 0x1eb   : > { %2308 = vst.msk [vmem:[#allocation3 + $0x34] sm:$0xf] %vm1386_vm5, %v2290_v17  ;;  %2309 = vst.msk [vmem:[#allocation3 + $0x38] sm:$0xf] %vm1386_vm5, %v2292_v63  ;;  %v3136_v17 = vld [vmem:[#allocation2 + $0x2c] sm:$0x1] }
 0x1ec   : > { %2949 = vrot.lane.b32.xlu1 %v2926_v51, %s12963_s17  ;;  %3095 = vrot.lane.b32.xlu0 %v2996_v55, %s12955_s18  ;;  %v9337_v51 = vrot.slane %v3131_v27, 9  ;;  %v3169_v55 = vrot.slane %v3132_v47, 5  ;;  %v3177_v11 = vrot.slane %v3136_v17, 5  ;;  %v3224_v27 = vld [vmem:[#allocation2 + $0x18] sm:$0xf]  ;;  %v3318_v37 = vrot.slane %v3316_v18, 4 }
 0x1ed   : > { %v3225_v47 = vld [vmem:[#allocation2 + $0x20] sm:$0xf]  ;;  %v3321_v17 = vrot.slane %v3319_v38, 5  ;;  %s13028_s17 = smov 16  }
 0x1ee   : > { %v2294_v8 = vpop.permute.xlu1 %2293  ;;  %v2328_v39 = vpop.permute.xlu0 %2327  ;;  %v3170_v54 = vsel %vm9956_vm7, %v9337_v51, %v3169_v55  ;;  %v3330_v51 = vshrl.u32 %v3277_v58, 16  ;;  %v3333_v55 = vshll.u32 %v3277_v58, 16 }
 0x1ef   : > { %2310 = vst.msk [vmem:[#allocation3 + $0x3c] sm:$0xf] %vm1386_vm5, %v2294_v8  ;;  %v3181_v8 = vrot.slane %v3138_v26, 5  ;;  %v3283_v26 = vld [vmem:[#allocation2 + $0x40] sm:$0xf] }
 0x1f0   : > { %2351 = vst.msk [vmem:[#allocation3 + $0x20] sm:$0xf] %vm1436_vm6, %v2328_v39  ;;  %3097 = vrot.lane.b32.xlu1 %v3010_v62, %s12955_s18  ;;  %3099 = vrot.lane.b32.xlu0 %v3024_v33, %s12955_s18  ;;  %v3140_v62 = vld [vmem:[#allocation2 + $0x3c] sm:$0x1]  ;;  %v3174_v39 = vsel %vm9956_vm7, %v9338_v23, %v3173_v56  ;;  %v3178_v33 = vsel %vm9956_vm7, %v9339_v59, %v3177_v11  ;;  %v3227_v23 = vld [vmem:[#allocation2 + $0x30] sm:$0xf] }
 0x1f1   : > { %v3185_v30 = vrot.slane %v3140_v62, 5  ;;  %v3182_v42 = vsel %vm9956_vm7, %v9340_v43, %v3181_v8  ;;  %v3278_v59 = vld [vmem:[#allocation2 + $0x2c] sm:$0x1]  ;;  %v3281_v11 = vld [vmem:[#allocation2 + $0x38] sm:$0xf]  ;;  %v3335_v43 = vrot.slane %v3333_v55, 5 }
 0x1f2   : > { %v2330_v61 = vpop.permute.xlu1 %2329  ;;  %v2332_v5 = vpop.permute.xlu0 %2331  ;;  %v3280_v8 = vld [vmem:[#allocation2 + $0x34] sm:$0x1]  ;;  %v3361_v12 = vshll.u32 %v3281_v11, 16  ;;  %v3339_v4 = vshll.u32 %v3278_v59, 16 }
 0x1f3   : > { %2352 = vst.msk [vmem:[#allocation3 + $0x24] sm:$0xf] %vm1436_vm6, %v2330_v61  ;;  %2353 = vst.msk [vmem:[#allocation3 + $0x28] sm:$0xf] %vm1436_vm6, %v2332_v5  ;;  %v3186_v61 = vsel %vm9956_vm7, %v9341_v9, %v3185_v30  ;;  %v9342_v5 = vrot.slane %v3141_v10, 9  ;;  %v3322_v9 = vor.u32 %v3321_v17, %v3318_v37 }
 0x1f4   : > { %3101 = vrot.lane.b32.xlu1 %v3038_v24, %s12955_s18  ;;  %3103 = vrot.lane.b32.xlu0 %v3052_v44, %s12955_s18  ;;  %v3189_v24 = vrot.slane %v3142_v46, 5  ;;  %v3285_v46 = vld [vmem:[#allocation2 + $0x48] sm:$0xf]  ;;  %v3363_v18 = vrot.slane %v3361_v12, 5  ;;  %v3433_v12 = vld [vmem:[#allocation2 + $0x18] sm:$0xe] }
 0x1f6   : > { %v2334_v32 = vpop.permute.xlu1 %2333  ;;  %v2336_v20 = vpop.permute.xlu0 %2335  ;;  %v3190_v19 = vsel %vm9956_vm7, %v9342_v5, %v3189_v24 }
 0x1f7   : > { %2354 = vst.msk [vmem:[#allocation3 + $0x2c] sm:$0xf] %vm1436_vm6, %v2334_v32  ;;  %2355 = vst.msk [vmem:[#allocation3 + $0x30] sm:$0xf] %vm1436_vm6, %v2336_v20  ;;  %v3302_v32 = vshrl.u32 %v3273_v16, 16  ;;  %v3305_v20 = vshll.u32 %v3273_v16, 16 }
 0x1f8   : > { %3105 = vrot.lane.b32.xlu1 %v3066_v2, %s12955_s18  ;;  %3107 = vrot.lane.b32.xlu0 %v3080_v34, %s12955_s18  ;;  %v3230_v16 = vld [vmem:[#allocation2 + $0x48] sm:$0xf] }
 0x1f9   : > { %v3307_v36 = vrot.slane %v3305_v20, 5 }
 0x1fa   : > { %v2338_v35 = vpop.permute.xlu1 %2337  ;;  %v2340_v1 = vpop.permute.xlu0 %2339 }
 0x1fb   : > { %2356 = vst.msk [vmem:[#allocation3 + $0x34] sm:$0xf] %vm1436_vm6, %v2338_v35  ;;  %2357 = vst.msk [vmem:[#allocation3 + $0x38] sm:$0xf] %vm1436_vm6, %v2340_v1  ;;  %v3274_v35 = vld [vmem:[#allocation2 + $0x1c] sm:$0x1] }
 0x1fc   : > { %3109 = vrot.lane.b32.xlu1 %v3094_v6, %s12955_s18  ;;  %3191 = vrot.lane.b32.xlu0 %v3162_v50, %s12957_s29  ;;  %s12959_s18 = smov 64   ;;  %v3304_v1 = vrot.slane %v3302_v32, 4  ;;  %v3294_v6 = vor.u32 %v3293_v0, %v3290_v48  ;;  %v3297_v50 = vshll.u32 %v3272_v25, 16  ;;  %v3311_v53 = vshll.u32 %v3274_v35, 16 }
 0x1fd   : > { %v3323_v0 = vrot.slane %v3322_v9, 4 }
 0x1fe   : > { %v2342_v63 = vpop.permute.xlu1 %2341  ;;  %v2488_v41 = vpop.permute.xlu0 %2487  ;;  %v3308_v56 = vor.u32 %v3307_v36, %v3304_v1  ;;  %v3295_v62 = vrot.slane %v3294_v6, 4  ;;  %v3313_v24 = vrot.slane %v3311_v53, 5  ;;  %v3286_v1 = vld [vmem:[#allocation2 + $0x4c] sm:$0x1] }
 0x1ff   : > { %2358 = vst.msk [vmem:[#allocation3 + $0x3c] sm:$0xf] %vm1436_vm6, %v2342_v63  ;;  %v3344_v63 = vshrl.u32 %v3279_v28, 16 }
 0x200   : > { %2511 = vst.msk [vmem:[#allocation3 + $0x20] sm:$0xf] %vm1597_vm8, %v2488_v41  ;;  %3193 = vrot.lane.b32.xlu1 %v3166_v49, %s12957_s29  ;;  %3195 = vrot.lane.b32.xlu0 %v3170_v54, %s12957_s29  ;;  %v3347_v41 = vshll.u32 %v3279_v28, 16  ;;  %v3226_v49 = vld [vmem:[#allocation2 + $0x28] sm:$0xf]  ;;  %v3325_v54 = vshll.u32 %v3276_v52, 16 }
 0x201   : > { %v3346_v30 = vrot.slane %v3344_v63, 4  ;;  %v3309_v5 = vrot.slane %v3308_v56, 4 }
 0x202   : > { %v2490_v7 = vpop.permute.xlu1 %2489  ;;  %v2492_v22 = vpop.permute.xlu0 %2491  ;;  %v3349_v10 = vrot.slane %v3347_v41, 5  ;;  %v3327_v45 = vrot.slane %v3325_v54, 5 }
 0x203   : > { %2512 = vst.msk [vmem:[#allocation3 + $0x24] sm:$0xf] %vm1597_vm8, %v2490_v7  ;;  %2513 = vst.msk [vmem:[#allocation3 + $0x28] sm:$0xf] %vm1597_vm8, %v2492_v22  ;;  %v3299_v7 = vrot.slane %v3297_v50, 5  ;;  %v3332_v22 = vrot.slane %v3330_v51, 4  ;;  %v3314_v51 = vsel %vm9944_vm4, %v3309_v5, %v3313_v24 }
 0x204   : > { %3197 = vrot.lane.b32.xlu1 %v3174_v39, %s12957_s29  ;;  %3199 = vrot.lane.b32.xlu0 %v3178_v33, %s12957_s29  ;;  %v3328_v55 = vsel %vm9944_vm4, %v3323_v0, %v3327_v45  ;;  %v3436_v5 = vld [vmem:[#allocation2 + $0x24] sm:$0x1] }
 0x205   : > { %v3300_v20 = vsel %vm9944_vm4, %v3295_v62, %v3299_v7 }
 0x206   : > { %v2494_v3 = vpop.permute.xlu1 %2493  ;;  %v2496_v29 = vpop.permute.xlu0 %2495 }
 0x207   : > { %2514 = vst.msk [vmem:[#allocation3 + $0x2c] sm:$0xf] %vm1597_vm8, %v2494_v3  ;;  %2515 = vst.msk [vmem:[#allocation3 + $0x30] sm:$0xf] %vm1597_vm8, %v2496_v29  ;;  %v3229_v3 = vld [vmem:[#allocation2 + $0x40] sm:$0xf] }
 0x208   : > { %3201 = vrot.lane.b32.xlu1 %v3182_v42, %s12957_s29  ;;  %3203 = vrot.lane.b32.xlu0 %v3186_v61, %s12957_s29  ;;  %v3358_v29 = vshrl.u32 %v3281_v11, 16  ;;  %v3372_v42 = vshrl.u32 %v3283_v26, 16  ;;  %v3375_v61 = vshll.u32 %v3283_v26, 16 }
 0x20a   : > { %v2498_v44 = vpop.permute.xlu1 %2497  ;;  %v2500_v40 = vpop.permute.xlu0 %2499  ;;  %v3360_v25 = vrot.slane %v3358_v29, 4  ;;  %v3374_v38 = vrot.slane %v3372_v42, 4  ;;  %v3377_v58 = vrot.slane %v3375_v61, 5  ;;  %v3434_v42 = vld [vmem:[#allocation2 + $0x1c] sm:$0x1] }
 0x20b   : > { %2516 = vst.msk [vmem:[#allocation3 + $0x34] sm:$0xf] %vm1597_vm8, %v2498_v44  ;;  %2517 = vst.msk [vmem:[#allocation3 + $0x38] sm:$0xf] %vm1597_vm8, %v2500_v40  ;;  %v3336_v44 = vor.u32 %v3335_v43, %v3332_v22  ;;  %v3353_v40 = vshll.u32 %v3280_v8, 16 }
 0x20c   : > { %3205 = vrot.lane.b32.xlu1 %v3190_v19, %s12957_s29  ;;  %3239 = vrot.lane.b32.xlu0 %v3223_v60, %s12959_s18  ;;  %v3386_v19 = vshrl.u32 %v3285_v46, 16  ;;  %v3389_v60 = vshll.u32 %v3285_v46, 16  ;;  %s12961_s29 = smov 76   ;;  %v3364_v17 = vor.u32 %v3363_v18, %v3360_v25  ;;  %v3378_v63 = vor.u32 %v3377_v58, %v3374_v38  ;;  %v3431_v22 = vld [vmem:[#allocation2 + $0x10] sm:$0xe] }
 0x20d   : > { %v3337_v28 = vrot.slane %v3336_v44, 4  ;;  %v3355_v35 = vrot.slane %v3353_v40, 5  ;;  %v3432_v43 = vld [vmem:[#allocation2 + $0x14] sm:$0x1]  ;;  %v3435_v61 = vld [vmem:[#allocation2 + $0x20] sm:$0xe] }
 0x20e   : > { %v2502_v2 = vpop.permute.xlu1 %2501  ;;  %v2584_v34 = vpop.permute.xlu0 %2583  ;;  %v3388_v36 = vrot.slane %v3386_v19, 4  ;;  %v3391_v52 = vrot.slane %v3389_v60, 5  ;;  %v3379_v62 = vrot.slane %v3378_v63, 4  ;;  %v3465_v29 = vrot.slane %v3432_v43, 5 }
 0x20f   : > { %2518 = vst.msk [vmem:[#allocation3 + $0x3c] sm:$0xf] %vm1597_vm8, %v2502_v2  ;;  %v3350_v2 = vor.u32 %v3349_v10, %v3346_v30  ;;  %v3469_v44 = vrot.slane %v3434_v42, 5  ;;  %v9345_v19 = vrot.slane %v3435_v61, 9  ;;  %v3473_v60 = vrot.slane %v3436_v5, 5 }
 0x210   : > { %2607 = vst.msk [vmem:[#allocation3 + $0x20] sm:$0xf] %vm1694_vm10, %v2584_v34  ;;  %3241 = vrot.lane.b32.xlu1 %v3224_v27, %s12959_s18  ;;  %3243 = vrot.lane.b32.xlu0 %v3225_v47, %s12959_s18  ;;  %v3282_v34 = vld [vmem:[#allocation2 + $0x3c] sm:$0x1]  ;;  %v3341_v27 = vrot.slane %v3339_v4, 5 }
 0x211   : > { %v3284_v47 = vld [vmem:[#allocation2 + $0x44] sm:$0x1]  ;;  %v3351_v37 = vrot.slane %v3350_v2, 4  ;;  %v3474_v38 = vsel %vm9956_vm7, %v9345_v19, %v3473_v60  ;;  %v3533_v42 = vld [vmem:[#allocation2 + $0x30] sm:$0xf] }
 0x212   : > { %v2586_v57 = vpop.permute.xlu1 %2585  ;;  %v2588_v15 = vpop.permute.xlu0 %2587  ;;  %v3381_v41 = vshll.u32 %v3284_v47, 16  ;;  %v3342_v56 = vsel %vm9944_vm4, %v3337_v28, %v3341_v27  ;;  %v3441_v47 = vld [vmem:[#allocation2 + $0x38] sm:$0xe]  ;;  %v3442_v28 = vld [vmem:[#allocation2 + $0x3c] sm:$0x1] }
 0x213   : > { %2608 = vst.msk [vmem:[#allocation3 + $0x24] sm:$0xf] %vm1694_vm10, %v2586_v57  ;;  %2609 = vst.msk [vmem:[#allocation3 + $0x28] sm:$0xf] %vm1694_vm10, %v2588_v15  ;;  %v3367_v15 = vshll.u32 %v3282_v34, 16  ;;  %v3356_v26 = vsel %vm9944_vm4, %v3351_v37, %v3355_v35 }
 0x214   : > { %3245 = vrot.lane.b32.xlu1 %v3226_v49, %s12959_s18  ;;  %3247 = vrot.lane.b32.xlu0 %v3227_v23, %s12959_s18  ;;  %v3392_v49 = vor.u32 %v3391_v52, %v3388_v36  ;;  %v3395_v23 = vshll.u32 %v3286_v1, 16  ;;  %v3383_v7 = vrot.slane %v3381_v41, 5  ;;  %v3443_v35 = vld [vmem:[#allocation2 + $0x40] sm:$0xe]  ;;  %v3444_v1 = vld [vmem:[#allocation2 + $0x44] sm:$0x1] }
 0x215   : > { %v3369_v11 = vrot.slane %v3367_v15, 5  ;;  %v3485_v15 = vrot.slane %v3442_v28, 5  ;;  %v9349_v37 = vrot.slane %v3443_v35, 9  ;;  %v3722_v61 = vld [vmem:[#allocation2 + $0xc] sm:$0x1] }
 0x216   : > { %v2590_v39 = vpop.permute.xlu1 %2589  ;;  %v2592_v33 = vpop.permute.xlu0 %2591  ;;  %v3393_v8 = vrot.slane %v3392_v49, 4  ;;  %v3384_v46 = vsel %vm9944_vm4, %v3379_v62, %v3383_v7  ;;  %v3528_v7 = vld [vmem:[#allocation2 + $0x8] sm:$0xf]  ;;  %v3723_v5 = vld [vmem:[#allocation2 + $0x10] sm:$0xe]  ;;  %v3757_v19 = vrot.slane %v3722_v61, 5 }
 0x217   : > { %2610 = vst.msk [vmem:[#allocation3 + $0x2c] sm:$0xf] %vm1694_vm10, %v2590_v39  ;;  %2611 = vst.msk [vmem:[#allocation3 + $0x30] sm:$0xf] %vm1694_vm10, %v2592_v33  ;;  %v3397_v39 = vrot.slane %v3395_v23, 5  ;;  %v9353_v60 = vrot.slane %v3723_v5, 9 }
 0x218   : > { %3249 = vrot.lane.b32.xlu1 %v3228_v31, %s12959_s18  ;;  %3251 = vrot.lane.b32.xlu0 %v3229_v3, %s12959_s18  ;;  %v3365_v31 = vrot.slane %v3364_v17, 4  ;;  %v9343_v3 = vrot.slane %v3431_v22, 9  ;;  %v3489_v17 = vrot.slane %v3444_v1, 5  ;;  %v3529_v22 = vld [vmem:[#allocation2 + $0x10] sm:$0xf] }
 0x219   : > { %v3398_v24 = vsel %vm9944_vm4, %v3393_v8, %v3397_v39  ;;  %v3719_v39 = vld [vmem:[#allocation2] sm:$0xe]  ;;  %v3815_v5 = vld [vmem:[#allocation2 + $0x8] sm:$0xf] }
 0x21a   : > { %v2594_v14 = vpop.permute.xlu1 %2593  ;;  %v2596_v32 = vpop.permute.xlu0 %2595  ;;  %v9733_v48 = vld [vmem:[#allocation3 + $0x20] sm:$0xff]   ;;  %v3370_v10 = vsel %vm9944_vm4, %v3365_v31, %v3369_v11  ;;  %v3466_v40 = vsel %vm9956_vm7, %v9343_v3, %v3465_v29 }
 0x21b   : > { %2612 = vst.msk [vmem:[#allocation3 + $0x34] sm:$0xf] %vm1694_vm10, %v2594_v14  ;;  %2613 = vst.msk [vmem:[#allocation3 + $0x38] sm:$0xf] %vm1694_vm10, %v2596_v32  ;;  %9592 = vmatprep.mubr.bf16.mxu0 %v9733_v48  ;;  %v3437_v14 = vld [vmem:[#allocation2 + $0x28] sm:$0xe] }
 0x21c   : > { %3253 = vrot.lane.b32.xlu1 %v3230_v16, %s12959_s18  ;;  %3399 = vrot.lane.b32.xlu0 %v3300_v20, %s12961_s29  ;;  %v9344_v16 = vrot.slane %v3433_v12, 9  ;;  %v3438_v32 = vld [vmem:[#allocation2 + $0x2c] sm:$0x1]  ;;  %s9813_s18 = smov 88   ;;  %v3439_v20 = vld [vmem:[#allocation2 + $0x30] sm:$0xe] }
 0x21d   : > { %v3440_v48 = vld [vmem:[#allocation2 + $0x34] sm:$0x1]  ;;  %v9346_v34 = vrot.slane %v3437_v14, 9  ;;  %v3477_v25 = vrot.slane %v3438_v32, 5  ;;  %v9347_v58 = vrot.slane %v3439_v20, 9 }
 0x21e   : > { %v2598_v6 = vpop.permute.xlu1 %2597  ;;  %v2632_v50 = vpop.permute.xlu0 %2631  ;;  %v9734_v57 = vld [vmem:[#allocation3 + $0x28] sm:$0xff]   ;;  %v3470_v18 = vsel %vm9956_vm7, %v9344_v16, %v3469_v44  ;;  %v3481_v27 = vrot.slane %v3440_v48, 5  ;;  %v3532_v12 = vld [vmem:[#allocation2 + $0x28] sm:$0xf]  ;;  %v3727_v48 = vld [vmem:[#allocation2 + $0x20] sm:$0xe] }
 0x21f   : > { %2614 = vst.msk [vmem:[#allocation3 + $0x3c] sm:$0xf] %vm1694_vm10, %v2598_v6  ;;  %9593 = vmatmul.mubr.bf16.gmra.mxu0 %v9734_v57  ;;  %v3478_v6 = vsel %vm9956_vm7, %v9346_v34, %v3477_v25  ;;  %v3534_v44 = vld [vmem:[#allocation2 + $0x38] sm:$0xf]  ;;  %v3726_v20 = vld [vmem:[#allocation2 + $0x1c] sm:$0x1] }
 0x220   : > { %2655 = vst.msk [vmem:[#allocation3 + $0x40] sm:$0xf] %vm815_vm9, %v2632_v50  ;;  %3401 = vrot.lane.b32.xlu1 %v3314_v51, %s12961_s29  ;;  %3403 = vrot.lane.b32.xlu0 %v3328_v55, %s12961_s29  ;;  %v9348_v50 = vrot.slane %v3441_v47, 9  ;;  %v3445_v51 = vld [vmem:[#allocation2 + $0x48] sm:$0xe]  ;;  %v3482_v57 = vsel %vm9956_vm7, %v9347_v58, %v3481_v27  ;;  %v3765_v27 = vrot.slane %v3726_v20, 5 }
 0x221   : > { %v3446_v55 = vld [vmem:[#allocation2 + $0x4c] sm:$0x1]  ;;  %v9350_v63 = vrot.slane %v3445_v51, 9  ;;  %v3725_v32 = vld [vmem:[#allocation2 + $0x18] sm:$0xe]  ;;  %v9355_v1 = vrot.slane %v3727_v48, 9 }
 0x222   : > { %v2634_v53 = vpop.permute.xlu1 %2633  ;;  %v2636_v54 = vpop.permute.xlu0 %2635  ;;  %v9735_v59 = vld [vmem:[#allocation3 + $0x30] sm:$0xff]   ;;  %v3493_v41 = vrot.slane %v3446_v55, 5  ;;  %v9354_v58 = vrot.slane %v3725_v32, 9  ;;  %v3731_v51 = vld [vmem:[#allocation2 + $0x30] sm:$0xe] }
 0x223   : > { %2656 = vst.msk [vmem:[#allocation3 + $0x44] sm:$0xf] %vm815_vm9, %v2634_v53  ;;  %2657 = vst.msk [vmem:[#allocation3 + $0x48] sm:$0xf] %vm815_vm9, %v2636_v54  ;;  %9596 = vmatprep.mubr.bf16.mxu0 %v9735_v59  ;;  %v3486_v53 = vsel %vm9956_vm7, %v9348_v50, %v3485_v15  ;;  %v3490_v54 = vsel %vm9956_vm7, %v9349_v37, %v3489_v17  ;;  %v3527_v59 = vld [vmem:[#allocation2] sm:$0xf] }
 0x224   : > { %3405 = vrot.lane.b32.xlu1 %v3342_v56, %s12961_s29  ;;  %3407 = vrot.lane.b32.xlu0 %v3356_v26, %s12961_s29  ;;  %v3494_v56 = vsel %vm9956_vm7, %v9350_v63, %v3493_v41  ;;  %v3732_v55 = vld [vmem:[#allocation2 + $0x34] sm:$0x1] }
 0x226   : > { %v2638_v33 = vpop.permute.xlu1 %2637  ;;  %v2640_v9 = vpop.permute.xlu0 %2639  ;;  %v9736_v30 = vld [vmem:[#allocation3 + $0x38] sm:$0xff]  }
 0x227   : > { %2658 = vst.msk [vmem:[#allocation3 + $0x4c] sm:$0xf] %vm815_vm9, %v2638_v33  ;;  %2659 = vst.msk [vmem:[#allocation3 + $0x50] sm:$0xf] %vm815_vm9, %v2640_v9  ;;  %9597 = vmatmul.mubr.bf16.gmra.mxu0 %v9736_v30  ;;  %v3720_v33 = vld [vmem:[#allocation2 + $0x4] sm:$0x1] }
 0x228   : > { %3409 = vrot.lane.b32.xlu1 %v3370_v10, %s12961_s29  ;;  %3411 = vrot.lane.b32.xlu0 %v3384_v46, %s12961_s29  ;;  %v3530_v9 = vld [vmem:[#allocation2 + $0x18] sm:$0xf]  ;;  %v3531_v30 = vld [vmem:[#allocation2 + $0x20] sm:$0xf]  ;;  %v9351_v10 = vrot.slane %v3719_v39, 9  ;;  %v3753_v46 = vrot.slane %v3720_v33, 5 }
 0x22a   : > { %v2642_v45 = vpop.permute.xlu1 %2641  ;;  %v2644_v4 = vpop.permute.xlu0 %2643 }
 0x22b   : > { %2660 = vst.msk [vmem:[#allocation3 + $0x54] sm:$0xf] %vm815_vm9, %v2642_v45  ;;  %2661 = vst.msk [vmem:[#allocation3 + $0x58] sm:$0xf] %vm815_vm9, %v2644_v4  ;;  %v3754_v45 = vsel %vm9956_vm7, %v9351_v10, %v3753_v46  ;;  %v3865_v10 = vld [vmem:[#allocation2 + $0x10] sm:$0xf] }
 0x22c   : > { %3413 = vrot.lane.b32.xlu1 %v3398_v24, %s12961_s29  ;;  %3495 = vrot.lane.b32.xlu0 %v3466_v40, %s9813_s18  ;;  %s9814_s29 = smov 116   ;;  %v3724_v24 = vld [vmem:[#allocation2 + $0x14] sm:$0x1]  ;;  %v3721_v40 = vld [vmem:[#allocation2 + $0x8] sm:$0xe] }
 0x22d   : > { %v3761_v14 = vrot.slane %v3724_v24, 5  ;;  %v9352_v34 = vrot.slane %v3721_v40, 9  ;;  %v3897_v40 = vshll.u32 %v3865_v10, 16 }
 0x22e   : > { %v2646_v0 = vpop.permute.xlu1 %2645  ;;  %v2792_v2 = vpop.permute.xlu0 %2791 }
 0x22f   : > { %2662 = vst.msk [vmem:[#allocation3 + $0x5c] sm:$0xf] %vm815_vm9, %v2646_v0  ;;  %v3728_v0 = vld [vmem:[#allocation2 + $0x24] sm:$0x1]  ;;  %v3758_v47 = vsel %vm9956_vm7, %v9352_v34, %v3757_v19  ;;  %v3762_v35 = vsel %vm9956_vm7, %v9353_v60, %v3761_v14  ;;  %v3869_v34 = vld [vmem:[#allocation2 + $0x20] sm:$0xf] }
 0x230   : > { %2815 = vst.msk [vmem:[#allocation3 + $0x40] sm:$0xf] %vm979_vm0, %v2792_v2  ;;  %3497 = vrot.lane.b32.xlu1 %v3470_v18, %s9813_s18  ;;  %3499 = vrot.lane.b32.xlu0 %v3474_v38, %s9813_s18 }
 0x232   : > { %v2794_v36 = vpop.permute.xlu1 %2793  ;;  %v2796_v52 = vpop.permute.xlu0 %2795 }
 0x233   : > { %2816 = vst.msk [vmem:[#allocation3 + $0x44] sm:$0xf] %vm979_vm0, %v2794_v36  ;;  %2817 = vst.msk [vmem:[#allocation3 + $0x48] sm:$0xf] %vm979_vm0, %v2796_v52  ;;  %v3769_v36 = vrot.slane %v3728_v0, 5 }
 0x234   : > { %3501 = vrot.lane.b32.xlu1 %v3478_v6, %s9813_s18  ;;  %3503 = vrot.lane.b32.xlu0 %v3482_v57, %s9813_s18  ;;  %v3729_v52 = vld [vmem:[#allocation2 + $0x28] sm:$0xe]  ;;  %v3730_v6 = vld [vmem:[#allocation2 + $0x2c] sm:$0x1]  ;;  %v3816_v0 = vld [vmem:[#allocation2 + $0x10] sm:$0xf] }
 0x235   : > { %v9356_v63 = vrot.slane %v3729_v52, 9  ;;  %v3773_v41 = vrot.slane %v3730_v6, 5  ;;  %v3868_v52 = vld [vmem:[#allocation2 + $0x1c] sm:$0x1] }
 0x236   : > { %v2798_v49 = vpop.permute.xlu1 %2797  ;;  %v2800_v23 = vpop.permute.xlu0 %2799 }
 0x237   : > { %2818 = vst.msk [vmem:[#allocation3 + $0x4c] sm:$0xf] %vm979_vm0, %v2798_v49  ;;  %2819 = vst.msk [vmem:[#allocation3 + $0x50] sm:$0xf] %vm979_vm0, %v2800_v23  ;;  %v3766_v49 = vsel %vm9956_vm7, %v9354_v58, %v3765_v27  ;;  %v3871_v58 = vld [vmem:[#allocation2 + $0x28] sm:$0xf] }
 0x238   : > { %3505 = vrot.lane.b32.xlu1 %v3486_v53, %s9813_s18  ;;  %3507 = vrot.lane.b32.xlu0 %v3490_v54, %s9813_s18  ;;  %v3770_v53 = vsel %vm9956_vm7, %v9355_v1, %v3769_v36  ;;  %v9357_v54 = vrot.slane %v3731_v51, 9  ;;  %v3899_v36 = vrot.slane %v3897_v40, 5  ;;  %v3922_v51 = vshrl.u32 %v3869_v34, 16 }
 0x23a   : > { %v2802_v11 = vpop.permute.xlu1 %2801  ;;  %v2804_v26 = vpop.permute.xlu0 %2803 }
 0x23b   : > { %2820 = vst.msk [vmem:[#allocation3 + $0x54] sm:$0xf] %vm979_vm0, %v2802_v11  ;;  %2821 = vst.msk [vmem:[#allocation3 + $0x58] sm:$0xf] %vm979_vm0, %v2804_v26  ;;  %v3733_v11 = vld [vmem:[#allocation2 + $0x38] sm:$0xe] }
 0x23c   : > { %3509 = vrot.lane.b32.xlu1 %v3494_v56, %s9813_s18  ;;  %3543 = vrot.lane.b32.xlu0 %v3527_v59, %s9814_s29  ;;  %s9517_s18 = sshll.u32 %s13086_s24, 8  ;;  %v3777_v56 = vrot.slane %v3732_v55, 5  ;;  %v3734_v26 = vld [vmem:[#allocation2 + $0x3c] sm:$0x1]  ;;  %v3925_v55 = vshll.u32 %v3869_v34, 16 }
 0x23d   : > { %s10988_s30 = scalar_lea.vmem %s12953_s6, %s9517_s18  ;;  %v3781_v39 = vrot.slane %v3734_v26, 5  ;;  %v3875_v26 = vld [vmem:[#allocation2 + $0x38] sm:$0xf]  ;;  %s13029_s18 = smov 28  }
 0x23e   : > { %v2806_v31 = vpop.permute.xlu1 %2805  ;;  %v2888_v62 = vpop.permute.xlu0 %2887 }
 0x23f   : > { %2822 = vst.msk [vmem:[#allocation3 + $0x5c] sm:$0xf] %vm979_vm0, %v2806_v31  ;;  %v3863_v31 = vld [vmem:[#allocation2 + $0x8] sm:$0xf] }
 0x240   : > { %2911 = vst.msk [vmem:[#allocation3 + $0x40] sm:$0xf] %vm1079_vm1, %v2888_v62  ;;  %3545 = vrot.lane.b32.xlu1 %v3528_v7, %s9814_s29  ;;  %3547 = vrot.lane.b32.xlu0 %v3529_v22, %s9814_s29  ;;  %v3774_v22 = vsel %vm9956_vm7, %v9356_v63, %v3773_v41  ;;  %v3880_v33 = vshrl.u32 %v3863_v31, 16  ;;  %v3939_v63 = vshll.u32 %v3871_v58, 16  ;;  %v3818_v41 = vld [vmem:[#allocation2 + $0x20] sm:$0xf] }
 0x242   : > { %v2890_v43 = vpop.permute.xlu1 %2889  ;;  %v2892_v8 = vpop.permute.xlu0 %2891  ;;  %v3882_v24 = vrot.slane %v3880_v33, 4  ;;  %v3820_v33 = vld [vmem:[#allocation2 + $0x30] sm:$0xf] }
 0x243   : > { %2912 = vst.msk [vmem:[#allocation3 + $0x44] sm:$0xf] %vm1079_vm1, %v2890_v43  ;;  %2913 = vst.msk [vmem:[#allocation3 + $0x48] sm:$0xf] %vm1079_vm1, %v2892_v8  ;;  %v3778_v43 = vsel %vm9956_vm7, %v9357_v54, %v3777_v56  ;;  %v9358_v8 = vrot.slane %v3733_v11, 9  ;;  %v3917_v11 = vshll.u32 %v3868_v52, 16 }
 0x244   : > { %3549 = vrot.lane.b32.xlu1 %v3530_v9, %s9814_s29  ;;  %3551 = vrot.lane.b32.xlu0 %v3531_v30, %s9814_s29  ;;  %v3883_v9 = vshll.u32 %v3863_v31, 16 }
 0x245   : > { %v3782_v61 = vsel %vm9956_vm7, %v9358_v8, %v3781_v39 }
 0x246   : > { %v2894_v3 = vpop.permute.xlu1 %2893  ;;  %v2896_v29 = vpop.permute.xlu0 %2895 }
 0x247   : > { %2914 = vst.msk [vmem:[#allocation3 + $0x4c] sm:$0xf] %vm1079_vm1, %v2894_v3  ;;  %2915 = vst.msk [vmem:[#allocation3 + $0x50] sm:$0xf] %vm1079_vm1, %v2896_v29 }
 0x248   : > { %3553 = vrot.lane.b32.xlu1 %v3532_v12, %s9814_s29  ;;  %3555 = vrot.lane.b32.xlu0 %v3533_v42, %s9814_s29  ;;  %v3867_v12 = vld [vmem:[#allocation2 + $0x18] sm:$0xf] }
 0x249   : > { %v3908_v60 = vshrl.u32 %v3867_v12, 16  ;;  %v3911_v14 = vshll.u32 %v3867_v12, 16  ;;  %v3872_v12 = vld [vmem:[#allocation2 + $0x2c] sm:$0x1] }
 0x24a   : > { %v2898_v4 = vpop.permute.xlu1 %2897  ;;  %v2900_v16 = vpop.permute.xlu0 %2899  ;;  %v3945_v34 = vshll.u32 %v3872_v12, 16 }
 0x24b   : > { %2916 = vst.msk [vmem:[#allocation3 + $0x54] sm:$0xf] %vm1079_vm1, %v2898_v4  ;;  %2917 = vst.msk [vmem:[#allocation3 + $0x58] sm:$0xf] %vm1079_vm1, %v2900_v16  ;;  %v3864_v4 = vld [vmem:[#allocation2 + $0xc] sm:$0x1] }
 0x24c   : > { %3557 = vrot.lane.b32.xlu1 %v3534_v44, %s9814_s29  ;;  %3783 = vrot.lane.b32.xlu0 %v3754_v45, %s9789_s8  ;;  %v3885_v16 = vrot.slane %v3883_v9, 5  ;;  %v3894_v44 = vshrl.u32 %v3865_v10, 16  ;;  %v3910_v6 = vrot.slane %v3908_v60, 4  ;;  %v3941_v10 = vrot.slane %v3939_v63, 5 }
 0x24d   : > { %v10990_v2 = vpop.f32.mrf.mxu0 }
 0x24e   : > { %v2902_v25 = vpop.permute.xlu1 %2901  ;;  %v8666_v18 = vpack.c.bf16 %v10990_v2, %v10990_v2  ;;  %v2936_v38 = vpop.permute.xlu0 %2935  ;;  %v3896_v1 = vrot.slane %v3894_v44, 4  ;;  %v3822_v44 = vld [vmem:[#allocation2 + $0x40] sm:$0xf] }
 0x24f   : > { %2918 = vst.msk [vmem:[#allocation3 + $0x5c] sm:$0xf] %vm1079_vm1, %v2902_v25  ;;  %v10998_v28 = vpop.f32.mrf.mxu0 }
 0x250   : > { %2959 = vst.msk [vmem:[#allocation3 + $0x40] sm:$0xf] %vm1128_vm2, %v2936_v38  ;;  %3785 = vrot.lane.b32.xlu1 %v3758_v47, %s9789_s8  ;;  %v8664_v50 = vpack.c.bf16 %v10998_v28, %v10998_v28  ;;  %3787 = vrot.lane.b32.xlu0 %v3762_v35, %s9789_s8  ;;  %v3889_v38 = vshll.u32 %v3864_v4, 16  ;;  %v3886_v47 = vor.u32 %v3885_v16, %v3882_v24  ;;  %v3866_v35 = vld [vmem:[#allocation2 + $0x14] sm:$0x1] }
 0x251   : > { %8731 = vst.msk [vmem:[%s10988_s30 + $0x8] sm:$0xf] %vm8728_vm11, %v8666_v18  ;;  %v11008_v57 = vpop.f32.mrf.mxu0  ;;  %v3817_v18 = vld [vmem:[#allocation2 + $0x18] sm:$0xf]  ;;  %v3900_v56 = vor.u32 %v3899_v36, %v3896_v1  ;;  %v3877_v16 = vld [vmem:[#allocation2 + $0x40] sm:$0xf] }
 0x252   : > { %8729 = vst.msk [vmem:[%s10988_s30] sm:$0xf] %vm8728_vm11, %v8664_v50  ;;  %v2938_v15 = vpop.permute.xlu1 %2937  ;;  %v8667_v37 = vpack.c.bf16 %v11008_v57, %v11008_v57  ;;  %v2940_v17 = vpop.permute.xlu0 %2939  ;;  %v3913_v50 = vrot.slane %v3911_v14, 5  ;;  %v3891_v54 = vrot.slane %v3889_v38, 5  ;;  %v3887_v31 = vrot.slane %v3886_v47, 4 }
 0x253   : > { %2960 = vst.msk [vmem:[#allocation3 + $0x44] sm:$0xf] %vm1128_vm2, %v2938_v15  ;;  %2961 = vst.msk [vmem:[#allocation3 + $0x48] sm:$0xf] %vm1128_vm2, %v2940_v17  ;;  %v11018_v23 = vpop.f32.mrf.mxu0  ;;  %v3936_v17 = vshrl.u32 %v3871_v58, 16  ;;  %v3901_v60 = vrot.slane %v3900_v56, 4 }
 0x254   : > { %8732 = vst.msk [vmem:[%s10988_s30 + $0xc] sm:$0xf] %vm8728_vm11, %v8667_v37  ;;  %3789 = vrot.lane.b32.xlu1 %v3766_v49, %s9789_s8  ;;  %v8665_v59 = vpack.c.bf16 %v11018_v23, %v11018_v23  ;;  %3791 = vrot.lane.b32.xlu0 %v3770_v53, %s9789_s8  ;;  %v3819_v49 = vld [vmem:[#allocation2 + $0x28] sm:$0xf]  ;;  %v3873_v53 = vld [vmem:[#allocation2 + $0x30] sm:$0xf]  ;;  %v3892_v40 = vsel %vm9944_vm4, %v3887_v31, %v3891_v54 }
 0x255   : > { %v3938_v9 = vrot.slane %v3936_v17, 4  ;;  %v3978_v1 = vshrl.u32 %v3877_v16, 16  ;;  %v3981_v36 = vshll.u32 %v3877_v16, 16  ;;  %v3947_v17 = vrot.slane %v3945_v34, 5  ;;  %v3878_v54 = vld [vmem:[#allocation2 + $0x44] sm:$0x1] }
 0x256   : > { %8730 = vst.msk [vmem:[%s10988_s30 + $0x4] sm:$0xf] %vm8728_vm11, %v8665_v59  ;;  %v2942_v62 = vpop.permute.xlu1 %2941  ;;  %v2944_v7 = vpop.permute.xlu0 %2943  ;;  %v3903_v59 = vshll.u32 %v3866_v35, 16  ;;  %v4027_v16 = vld [vmem:[#allocation2 + $0x18] sm:$0xe] }
 0x257   : > { %2962 = vst.msk [vmem:[#allocation3 + $0x4c] sm:$0xf] %vm1128_vm2, %v2942_v62  ;;  %2963 = vst.msk [vmem:[#allocation3 + $0x50] sm:$0xf] %vm1128_vm2, %v2944_v7  ;;  %v11038_v30 = vpop.f32.mrf.mxu0  ;;  %v3914_v62 = vor.u32 %v3913_v50, %v3910_v6  ;;  %v3870_v7 = vld [vmem:[#allocation2 + $0x24] sm:$0x1] }
 0x258   : > { %3793 = vrot.lane.b32.xlu1 %v3774_v22, %s9789_s8  ;;  %3795 = vrot.lane.b32.xlu0 %v3778_v43, %s9789_s8  ;;  %v8670_v46 = vpack.c.bf16 %v11038_v30, %v11038_v30  ;;  %v3924_v22 = vrot.slane %v3922_v51, 4  ;;  %v3927_v43 = vrot.slane %v3925_v55, 5  ;;  %v3905_v24 = vrot.slane %v3903_v59, 5 }
 0x259   : > { %v11044_v42 = vpop.f32.mrf.mxu0  ;;  %v3931_v4 = vshll.u32 %v3870_v7, 16  ;;  %v3915_v14 = vrot.slane %v3914_v62, 4  ;;  %v3980_v56 = vrot.slane %v3978_v1, 4  ;;  %v3983_v59 = vrot.slane %v3981_v36, 5 }
 0x25a   : > { %v2946_v3 = vpop.permute.xlu1 %2945  ;;  %v2948_v29 = vpop.permute.xlu0 %2947  ;;  %8735 = vst.msk [vmem:[%s10988_s30 + $0x18] sm:$0xf] %vm8728_vm11, %v8670_v46  ;;  %v8668_v45 = vpack.c.bf16 %v11044_v42, %v11044_v42  ;;  %v3950_v46 = vshrl.u32 %v3873_v53, 16  ;;  %v3906_v52 = vsel %vm9944_vm4, %v3901_v60, %v3905_v24  ;;  %v9361_v34 = vrot.slane %v4027_v16, 9 }
 0x25b   : > { %2964 = vst.msk [vmem:[#allocation3 + $0x54] sm:$0xf] %vm1128_vm2, %v2946_v3  ;;  %2965 = vst.msk [vmem:[#allocation3 + $0x58] sm:$0xf] %vm1128_vm2, %v2948_v29  ;;  %v11054_v19 = vpop.f32.mrf.mxu0  ;;  %v3953_v3 = vshll.u32 %v3873_v53, 16  ;;  %v3933_v51 = vrot.slane %v3931_v4, 5 }
 0x25c   : > { %3797 = vrot.lane.b32.xlu1 %v3782_v61, %s9789_s8  ;;  %3831 = vrot.lane.b32.xlu0 %v3815_v5, %s9791_s10  ;;  %8733 = vst.msk [vmem:[%s10988_s30 + $0x10] sm:$0xf] %vm8728_vm11, %v8668_v45  ;;  %v8671_v32 = vpack.c.bf16 %v11054_v19, %v11054_v19  ;;  %v3821_v29 = vld [vmem:[#allocation2 + $0x38] sm:$0xf]  ;;  %v3964_v61 = vshrl.u32 %v3875_v26, 16  ;;  %v3967_v5 = vshll.u32 %v3875_v26, 16 }
 0x25d   : > { %v11062_v25 = vpop.f32.mrf.mxu0  ;;  %v3919_v45 = vrot.slane %v3917_v11, 5  ;;  %v3952_v38 = vrot.slane %v3950_v46, 4  ;;  %v3955_v58 = vrot.slane %v3953_v3, 5  ;;  %v4026_v4 = vld [vmem:[#allocation2 + $0x14] sm:$0x1] }
 0x25e   : > { %v2950_v20 = vpop.permute.xlu1 %2949  ;;  %v3096_v48 = vpop.permute.xlu0 %3095  ;;  %8736 = vst.msk [vmem:[%s10988_s30 + $0x1c] sm:$0xf] %vm8728_vm11, %v8671_v32  ;;  %v8669_v27 = vpack.c.bf16 %v11062_v25, %v11062_v25  ;;  %v3928_v32 = vor.u32 %v3927_v43, %v3924_v22  ;;  %v3966_v47 = vrot.slane %v3964_v61, 4  ;;  %v3969_v35 = vrot.slane %v3967_v5, 5 }
 0x25f   : > { %2966 = vst.msk [vmem:[#allocation3 + $0x5c] sm:$0xf] %vm1128_vm2, %v2950_v20  ;;  %v3920_v6 = vsel %vm9944_vm4, %v3915_v14, %v3919_v45  ;;  %v3987_v22 = vshll.u32 %v3878_v54, 16  ;;  %v4025_v45 = vld [vmem:[#allocation2 + $0x10] sm:$0xe] }
 0x260   : > { %3119 = vst.msk [vmem:[#allocation3 + $0x40] sm:$0xf] %vm1289_vm3, %v3096_v48  ;;  %3833 = vrot.lane.b32.xlu1 %v3816_v0, %s9791_s10  ;;  %3835 = vrot.lane.b32.xlu0 %v3817_v18, %s9791_s10  ;;  %v3942_v0 = vor.u32 %v3941_v10, %v3938_v9  ;;  %v3874_v18 = vld [vmem:[#allocation2 + $0x34] sm:$0x1]  ;;  %v3929_v50 = vrot.slane %v3928_v32, 4  ;;  %v3970_v53 = vor.u32 %v3969_v35, %v3966_v47  ;;  %v9360_v32 = vrot.slane %v4025_v45, 9 }
 0x261   : > { %8734 = vst.msk [vmem:[%s10988_s30 + $0x14] sm:$0xf] %vm8728_vm11, %v8669_v27  ;;  %v3876_v27 = vld [vmem:[#allocation2 + $0x3c] sm:$0x1]  ;;  %v3959_v63 = vshll.u32 %v3874_v18, 16  ;;  %v3989_v3 = vrot.slane %v3987_v22, 5 }
 0x262   : > { %v3098_v15 = vpop.permute.xlu1 %3097  ;;  %v3100_v37 = vpop.permute.xlu0 %3099  ;;  %v3934_v31 = vsel %vm9944_vm4, %v3929_v50, %v3933_v51  ;;  %v4024_v9 = vld [vmem:[#allocation2 + $0xc] sm:$0x1]  ;;  %v4169_v22 = vld [vmem:[#allocation2 + $0x18] sm:$0xf] }
 0x263   : > { %3120 = vst.msk [vmem:[#allocation3 + $0x44] sm:$0xf] %vm1289_vm3, %v3098_v15  ;;  %3121 = vst.msk [vmem:[#allocation3 + $0x48] sm:$0xf] %vm1289_vm3, %v3100_v37  ;;  %v3943_v37 = vrot.slane %v3942_v0, 4  ;;  %v3961_v62 = vrot.slane %v3959_v63, 5 }
 0x264   : > { %3837 = vrot.lane.b32.xlu1 %v3818_v41, %s9791_s10  ;;  %3839 = vrot.lane.b32.xlu0 %v3819_v49, %s9791_s10  ;;  %v3973_v41 = vshll.u32 %v3876_v27, 16  ;;  %v3956_v49 = vor.u32 %v3955_v58, %v3952_v38  ;;  %v4057_v24 = vrot.slane %v4024_v9, 5  ;;  %v4029_v38 = vld [vmem:[#allocation2 + $0x20] sm:$0xe]  ;;  %v4030_v58 = vld [vmem:[#allocation2 + $0x24] sm:$0x1] }
 0x265   : > { %v3948_v43 = vsel %vm9944_vm4, %v3943_v37, %v3947_v17  ;;  %v4031_v27 = vld [vmem:[#allocation2 + $0x28] sm:$0xe]  ;;  %v4032_v47 = vld [vmem:[#allocation2 + $0x2c] sm:$0x1]  ;;  %v9362_v36 = vrot.slane %v4029_v38, 9 }
 0x266   : > { %v3102_v8 = vpop.permute.xlu1 %3101  ;;  %v3104_v39 = vpop.permute.xlu0 %3103  ;;  %v3975_v7 = vrot.slane %v3973_v41, 5  ;;  %v9363_v51 = vrot.slane %v4031_v27, 9  ;;  %v4034_v37 = vld [vmem:[#allocation2 + $0x34] sm:$0x1]  ;;  %v4035_v17 = vld [vmem:[#allocation2 + $0x38] sm:$0xe] }
 0x267   : > { %3122 = vst.msk [vmem:[#allocation3 + $0x4c] sm:$0xf] %vm1289_vm3, %v3102_v8  ;;  %3123 = vst.msk [vmem:[#allocation3 + $0x50] sm:$0xf] %vm1289_vm3, %v3104_v39  ;;  %v3957_v8 = vrot.slane %v3956_v49, 4  ;;  %v3971_v39 = vrot.slane %v3970_v53, 4 }
 0x268   : > { %3841 = vrot.lane.b32.xlu1 %v3820_v33, %s9791_s10  ;;  %3843 = vrot.lane.b32.xlu0 %v3821_v29, %s9791_s10  ;;  %v3984_v33 = vor.u32 %v3983_v59, %v3980_v56  ;;  %v4023_v29 = vld [vmem:[#allocation2 + $0x8] sm:$0xe]  ;;  %v4036_v63 = vld [vmem:[#allocation2 + $0x3c] sm:$0x1]  ;;  %v4077_v54 = vrot.slane %v4034_v37, 5 }
 0x269   : > { %v3962_v12 = vsel %vm9944_vm4, %v3957_v8, %v3961_v62  ;;  %v3976_v61 = vsel %vm9944_vm4, %v3971_v39, %v3975_v7  ;;  %v4038_v62 = vld [vmem:[#allocation2 + $0x44] sm:$0x1]  ;;  %v4167_v7 = vld [vmem:[#allocation2 + $0x10] sm:$0xf]  ;;  %v4121_v37 = vld [vmem:[#allocation2 + $0x20] sm:$0xf] }
 0x26a   : > { %v3106_v20 = vpop.permute.xlu1 %3105  ;;  %v3108_v48 = vpop.permute.xlu0 %3107  ;;  %v3985_v5 = vrot.slane %v3984_v33, 4 }
 0x26b   : > { %3124 = vst.msk [vmem:[#allocation3 + $0x54] sm:$0xf] %vm1289_vm3, %v3106_v20  ;;  %3125 = vst.msk [vmem:[#allocation3 + $0x58] sm:$0xf] %vm1289_vm3, %v3108_v48  ;;  %v4061_v20 = vrot.slane %v4026_v4, 5 }
 0x26c   : > { %3845 = vrot.lane.b32.xlu1 %v3822_v44, %s9791_s10  ;;  %3991 = vrot.lane.b32.xlu0 %v3892_v40, %s9793_s12  ;;  %v4028_v44 = vld [vmem:[#allocation2 + $0x1c] sm:$0x1]  ;;  %v9359_v40 = vrot.slane %v4023_v29, 9  ;;  %v3990_v48 = vsel %vm9944_vm4, %v3985_v5, %v3989_v3  ;;  %v4085_v3 = vrot.slane %v4038_v62, 5  ;;  %v4184_v29 = vshrl.u32 %v4167_v7, 16 }
 0x26d   : > { %v4065_v18 = vrot.slane %v4028_v44, 5  ;;  %v4201_v5 = vshll.u32 %v4169_v22, 16 }
 0x26e   : > { %v3110_v55 = vpop.permute.xlu1 %3109  ;;  %v3192_v15 = vpop.permute.xlu0 %3191  ;;  %v4058_v0 = vsel %vm9956_vm7, %v9359_v40, %v4057_v24 }
 0x26f   : > { %3126 = vst.msk [vmem:[#allocation3 + $0x5c] sm:$0xf] %vm1289_vm3, %v3110_v55  ;;  %v4066_v50 = vsel %vm9956_vm7, %v9361_v34, %v4065_v18  ;;  %v4073_v55 = vrot.slane %v4032_v47, 5  ;;  %v4170_v34 = vld [vmem:[#allocation2 + $0x1c] sm:$0x1]  ;;  %v4203_v38 = vrot.slane %v4201_v5, 5 }
 0x270   : > { %3215 = vst.msk [vmem:[#allocation3 + $0x40] sm:$0xf] %vm1386_vm5, %v3192_v15  ;;  %3993 = vrot.lane.b32.xlu1 %v3906_v52, %s9793_s12  ;;  %3995 = vrot.lane.b32.xlu0 %v3920_v6, %s9793_s12  ;;  %v4069_v52 = vrot.slane %v4030_v58, 5  ;;  %v4062_v6 = vsel %vm9956_vm7, %v9360_v32, %v4061_v20  ;;  %v4033_v15 = vld [vmem:[#allocation2 + $0x30] sm:$0xe] }
 0x271   : > { %v9364_v53 = vrot.slane %v4033_v15, 9  ;;  %v4074_v59 = vsel %vm9956_vm7, %v9363_v51, %v4073_v55  ;;  %v4168_v20 = vld [vmem:[#allocation2 + $0x14] sm:$0x1]  ;;  %v4172_v58 = vld [vmem:[#allocation2 + $0x24] sm:$0x1] }
 0x272   : > { %v3194_v11 = vpop.permute.xlu1 %3193  ;;  %v3196_v26 = vpop.permute.xlu0 %3195  ;;  %v4070_v56 = vsel %vm9956_vm7, %v9362_v36, %v4069_v52  ;;  %v4120_v55 = vld [vmem:[#allocation2 + $0x18] sm:$0xf]  ;;  %v4193_v15 = vshll.u32 %v4168_v20, 16 }
 0x273   : > { %3216 = vst.msk [vmem:[#allocation3 + $0x44] sm:$0xf] %vm1386_vm5, %v3194_v11  ;;  %3217 = vst.msk [vmem:[#allocation3 + $0x48] sm:$0xf] %vm1386_vm5, %v3196_v26  ;;  %v9365_v11 = vrot.slane %v4035_v17, 9  ;;  %v4081_v26 = vrot.slane %v4036_v63, 5  ;;  %v4078_v33 = vsel %vm9956_vm7, %v9364_v53, %v4077_v54 }
 0x274   : > { %3997 = vrot.lane.b32.xlu1 %v3934_v31, %s9793_s12  ;;  %3999 = vrot.lane.b32.xlu0 %v3948_v43, %s9793_s12  ;;  %v4037_v31 = vld [vmem:[#allocation2 + $0x40] sm:$0xe]  ;;  %v4207_v63 = vshll.u32 %v4170_v34, 16 }
 0x275   : > { %v4171_v43 = vld [vmem:[#allocation2 + $0x20] sm:$0xf]  ;;  %v9366_v9 = vrot.slane %v4037_v31, 9 }
 0x276   : > { %v3198_v10 = vpop.permute.xlu1 %3197  ;;  %v3200_v46 = vpop.permute.xlu0 %3199  ;;  %v4212_v24 = vshrl.u32 %v4171_v43, 16  ;;  %v4215_v45 = vshll.u32 %v4171_v43, 16 }
 0x277   : > { %3218 = vst.msk [vmem:[#allocation3 + $0x4c] sm:$0xf] %vm1386_vm5, %v3198_v10  ;;  %3219 = vst.msk [vmem:[#allocation3 + $0x50] sm:$0xf] %vm1386_vm5, %v3200_v46  ;;  %v4173_v10 = vld [vmem:[#allocation2 + $0x28] sm:$0xf]  ;;  %v4082_v46 = vsel %vm9956_vm7, %v9365_v11, %v4081_v26  ;;  %v4086_v32 = vsel %vm9956_vm7, %v9366_v9, %v4085_v3 }
 0x278   : > { %4001 = vrot.lane.b32.xlu1 %v3962_v12, %s9793_s12  ;;  %4003 = vrot.lane.b32.xlu0 %v3976_v61, %s9793_s12  ;;  %v4187_v12 = vshll.u32 %v4167_v7, 16  ;;  %v4198_v61 = vshrl.u32 %v4169_v22, 16  ;;  %v4226_v4 = vshrl.u32 %v4173_v10, 16  ;;  %v4229_v16 = vshll.u32 %v4173_v10, 16  ;;  %v4179_v7 = vld [vmem:[#allocation2 + $0x40] sm:$0xf] }
 0x279   : > { %v4214_v27 = vrot.slane %v4212_v24, 4  ;;  %v4217_v47 = vrot.slane %v4215_v45, 5  ;;  %v4123_v10 = vld [vmem:[#allocation2 + $0x30] sm:$0xf]  ;;  %v11154_v3 = vrot.slane %v4207_v63, 5  ;;  %v4268_v45 = vshrl.u32 %v4179_v7, 16 }
 0x27a   : > { %v3202_v60 = vpop.permute.xlu1 %3201  ;;  %v3204_v14 = vpop.permute.xlu0 %3203  ;;  %v4200_v18 = vrot.slane %v4198_v61, 4  ;;  %v4231_v36 = vrot.slane %v4229_v16, 5  ;;  %v4180_v24 = vld [vmem:[#allocation2 + $0x44] sm:$0x1]  ;;  %v4124_v16 = vld [vmem:[#allocation2 + $0x38] sm:$0xf] }
 0x27b   : > { %3220 = vst.msk [vmem:[#allocation3 + $0x54] sm:$0xf] %vm1386_vm5, %v3202_v60  ;;  %3221 = vst.msk [vmem:[#allocation3 + $0x58] sm:$0xf] %vm1386_vm5, %v3204_v14  ;;  %v4119_v60 = vld [vmem:[#allocation2 + $0x10] sm:$0xf]  ;;  %v4218_v11 = vor.u32 %v4217_v47, %v4214_v27 }
 0x27c   : > { %4005 = vrot.lane.b32.xlu1 %v3990_v48, %s9793_s12  ;;  %4087 = vrot.lane.b32.xlu0 %v4058_v0, %s9796_s19  ;;  %v4175_v14 = vld [vmem:[#allocation2 + $0x30] sm:$0xf]  ;;  %v4186_v48 = vrot.slane %v4184_v29, 4  ;;  %v4189_v0 = vrot.slane %v4187_v12, 5  ;;  %v4204_v53 = vor.u32 %v4203_v38, %v4200_v18  ;;  %v4181_v18 = vld [vmem:[#allocation2 + $0x48] sm:$0xf] }
 0x27d   : > { %v4240_v52 = vshrl.u32 %v4175_v14, 16  ;;  %v11168_v38 = vld [vmem:[#allocation2 + $0x10] sm:$0xe]  ;;  %v4277_v27 = vshll.u32 %v4180_v24, 16  ;;  %v11174_v47 = vld [vmem:[#allocation2 + $0x14] sm:$0x1] }
 0x27e   : > { %v3206_v35 = vpop.permute.xlu1 %3205  ;;  %v3240_v1 = vpop.permute.xlu0 %3239  ;;  %v4190_v17 = vor.u32 %v4189_v0, %v4186_v48  ;;  %v11160_v61 = vrot.slane %v4204_v53, 4  ;;  %v4361_v53 = vrot.slane %v11174_v47, 5 }
 0x27f   : > { %3222 = vst.msk [vmem:[#allocation3 + $0x5c] sm:$0xf] %vm1386_vm5, %v3206_v35  ;;  %v4174_v35 = vld [vmem:[#allocation2 + $0x2c] sm:$0x1]  ;;  %v4242_v31 = vrot.slane %v4240_v52, 4 }
 0x280   : > { %3263 = vst.msk [vmem:[#allocation3 + $0x40] sm:$0xf] %vm1436_vm6, %v3240_v1  ;;  %4089 = vrot.lane.b32.xlu1 %v4062_v6, %s9796_s19  ;;  %4091 = vrot.lane.b32.xlu0 %v4066_v50, %s9796_s19  ;;  %v4228_v1 = vrot.slane %v4226_v4, 4  ;;  %v4243_v6 = vshll.u32 %v4175_v14, 16  ;;  %v4235_v54 = vshll.u32 %v4174_v35, 16  ;;  %v4271_v4 = vshll.u32 %v4179_v7, 16 }
 0x281   : > { %v11176_v35 = vld [vmem:[#allocation2 + $0x18] sm:$0xe]  ;;  %v11180_v52 = vld [vmem:[#allocation2 + $0x1c] sm:$0x1] }
 0x282   : > { %v3242_v41 = vpop.permute.xlu1 %3241  ;;  %v3244_v49 = vpop.permute.xlu0 %3243  ;;  %v4232_v26 = vor.u32 %v4231_v36, %v4228_v1  ;;  %v4245_v62 = vrot.slane %v4243_v6, 5  ;;  %v11162_v5 = vrot.slane %v4235_v54, 5  ;;  %v4270_v1 = vrot.slane %v4268_v45, 4  ;;  %v11182_v6 = vld [vmem:[#allocation2 + $0x20] sm:$0xe] }
 0x283   : > { %3264 = vst.msk [vmem:[#allocation3 + $0x44] sm:$0xf] %vm1436_vm6, %v3242_v41  ;;  %3265 = vst.msk [vmem:[#allocation3 + $0x48] sm:$0xf] %vm1436_vm6, %v3244_v49  ;;  %v4221_v41 = vshll.u32 %v4172_v58, 16  ;;  %v4273_v36 = vrot.slane %v4271_v4, 5  ;;  %v4210_v4 = vsel %vm9944_vm4, %v11160_v61, %v11154_v3 }
 0x284   : > { %4093 = vrot.lane.b32.xlu1 %v4070_v56, %s9796_s19  ;;  %4095 = vrot.lane.b32.xlu0 %v4074_v59, %s9796_s19  ;;  %v4177_v49 = vld [vmem:[#allocation2 + $0x38] sm:$0xf]  ;;  %v4176_v56 = vld [vmem:[#allocation2 + $0x34] sm:$0x1]  ;;  %v4122_v59 = vld [vmem:[#allocation2 + $0x28] sm:$0xf]  ;;  %v4246_v14 = vor.u32 %v4245_v62, %v4242_v31 }
 0x285   : > { %v4257_v9 = vshll.u32 %v4177_v49, 16  ;;  %v11156_v29 = vrot.slane %v4221_v41, 5  ;;  %v4249_v12 = vshll.u32 %v4176_v56, 16  ;;  %v11190_v54 = vld [vmem:[#allocation2 + $0x24] sm:$0x1]  ;;  %v4274_v7 = vor.u32 %v4273_v36, %v4270_v1 }
 0x286   : > { %v3246_v8 = vpop.permute.xlu1 %3245  ;;  %v3248_v39 = vpop.permute.xlu0 %3247  ;;  %v3575_v56 = vld [vmem:[#allocation2] sm:$0xf]  ;;  %v11199_v31 = vld [vmem:[#allocation2 + $0x28] sm:$0xe]  ;;  %v11201_v62 = vld [vmem:[#allocation2 + $0x2c] sm:$0x1] }
 0x287   : > { %3266 = vst.msk [vmem:[#allocation3 + $0x4c] sm:$0xf] %vm1436_vm6, %v3246_v8  ;;  %3267 = vst.msk [vmem:[#allocation3 + $0x50] sm:$0xf] %vm1436_vm6, %v3248_v39  ;;  %v4195_v8 = vrot.slane %v4193_v15, 5  ;;  %v4259_v34 = vrot.slane %v4257_v9, 5 }
 0x288   : > { %4097 = vrot.lane.b32.xlu1 %v4078_v33, %s9796_s19  ;;  %4099 = vrot.lane.b32.xlu0 %v4082_v46, %s9796_s19  ;;  %v4178_v39 = vld [vmem:[#allocation2 + $0x3c] sm:$0x1]  ;;  %v4254_v33 = vshrl.u32 %v4177_v49, 16  ;;  %v4191_v46 = vrot.slane %v4190_v17, 4  ;;  %v11172_v58 = vrot.slane %v4249_v12, 5  ;;  %v4282_v15 = vshrl.u32 %v4181_v18, 16 }
 0x289   : > { %v9367_v49 = vrot.slane %v11168_v38, 9  ;;  %v3595_v12 = vshll.u32 %v3575_v56, 16  ;;  %v3581_v1 = vld [vmem:[#allocation2 + $0x18] sm:$0xf] }
 0x28a   : > { %v3250_v44 = vpop.permute.xlu1 %3249  ;;  %v3252_v40 = vpop.permute.xlu0 %3251  ;;  %v4256_v0 = vrot.slane %v4254_v33, 4  ;;  %v3579_v33 = vld [vmem:[#allocation2 + $0x10] sm:$0xf] }
 0x28b   : > { %3268 = vst.msk [vmem:[#allocation3 + $0x54] sm:$0xf] %vm1436_vm6, %v3250_v44  ;;  %3269 = vst.msk [vmem:[#allocation3 + $0x58] sm:$0xf] %vm1436_vm6, %v3252_v40  ;;  %v4125_v44 = vld [vmem:[#allocation2 + $0x40] sm:$0xf] }
 0x28c   : > { %4101 = vrot.lane.b32.xlu1 %v4086_v32, %s9796_s19  ;;  %4135 = vrot.lane.b32.xlu0 %v4119_v60, %s9794_s13  ;;  %v11164_v40 = vrot.slane %v4218_v11, 4  ;;  %v11166_v60 = vrot.slane %v4232_v26, 4  ;;  %v4263_v32 = vshll.u32 %v4178_v39, 16  ;;  %v4260_v41 = vor.u32 %v4259_v34, %v4256_v0  ;;  %v3577_v39 = vld [vmem:[#allocation2 + $0x8] sm:$0xf] }
 0x28d   : > { %v11196_v11 = vrot.slane %v4277_v27, 5  ;;  %v9368_v26 = vrot.slane %v11176_v35, 9  ;;  %v3606_v0 = vshrl.u32 %v3577_v39, 16  ;;  %v3609_v3 = vshll.u32 %v3577_v39, 16 }
 0x28e   : > { %v3254_v50 = vpop.permute.xlu1 %3253  ;;  %v3400_v51 = vpop.permute.xlu0 %3399  ;;  %v3620_v61 = vshrl.u32 %v3579_v33, 16  ;;  %v3623_v34 = vshll.u32 %v3579_v33, 16 }
 0x28f   : > { %3270 = vst.msk [vmem:[#allocation3 + $0x5c] sm:$0xf] %vm1436_vm6, %v3254_v50  ;;  %v4126_v50 = vld [vmem:[#allocation2 + $0x48] sm:$0xf] }
 0x290   : > { %3423 = vst.msk [vmem:[#allocation3 + $0x40] sm:$0xf] %vm1597_vm8, %v3400_v51  ;;  %4137 = vrot.lane.b32.xlu1 %v4120_v55, %s9794_s13  ;;  %4139 = vrot.lane.b32.xlu0 %v4121_v37, %s9794_s13  ;;  %v11184_v51 = vrot.slane %v4246_v14, 4  ;;  %v11186_v55 = vrot.slane %v4263_v32, 5  ;;  %v4285_v37 = vshll.u32 %v4181_v18, 16  ;;  %v4369_v32 = vrot.slane %v11190_v54, 5 }
 0x291   : > { %v4182_v14 = vld [vmem:[#allocation2 + $0x4c] sm:$0x1]  ;;  %v4373_v18 = vrot.slane %v11201_v62, 5 }
 0x292   : > { %v3402_v22 = vpop.permute.xlu1 %3401  ;;  %v3404_v43 = vpop.permute.xlu0 %3403  ;;  %v4287_v9 = vrot.slane %v4285_v37, 5 }
 0x293   : > { %3424 = vst.msk [vmem:[#allocation3 + $0x44] sm:$0xf] %vm1597_vm8, %v3402_v22  ;;  %3425 = vst.msk [vmem:[#allocation3 + $0x48] sm:$0xf] %vm1597_vm8, %v3404_v43  ;;  %v4365_v22 = vrot.slane %v11180_v52, 5  ;;  %v9369_v43 = vrot.slane %v11182_v6, 9 }
 0x294   : > { %4141 = vrot.lane.b32.xlu1 %v4122_v59, %s9794_s13  ;;  %4143 = vrot.lane.b32.xlu0 %v4123_v10, %s9794_s13  ;;  %v4196_v59 = vsel %vm9944_vm4, %v4191_v46, %v4195_v8  ;;  %v4284_v8 = vrot.slane %v4282_v15, 4  ;;  %v11207_v10 = vld [vmem:[#allocation2 + $0x30] sm:$0xe]  ;;  %v3592_v46 = vshrl.u32 %v3575_v56, 16  ;;  %v11231_v15 = vld [vmem:[#allocation2 + $0x3c] sm:$0x1] }
 0x296   : > { %v3406_v20 = vpop.permute.xlu1 %3405  ;;  %v3408_v48 = vpop.permute.xlu0 %3407  ;;  %v4288_v36 = vor.u32 %v4287_v9, %v4284_v8  ;;  %v3594_v37 = vrot.slane %v3592_v46, 4  ;;  %v11243_v8 = vld [vmem:[#allocation2 + $0x40] sm:$0xe]  ;;  %v3576_v9 = vld [vmem:[#allocation2 + $0x4] sm:$0x1] }
 0x297   : > { %3426 = vst.msk [vmem:[#allocation3 + $0x4c] sm:$0xf] %vm1597_vm8, %v3406_v20  ;;  %3427 = vst.msk [vmem:[#allocation3 + $0x50] sm:$0xf] %vm1597_vm8, %v3408_v48  ;;  %v11220_v20 = vld [vmem:[#allocation2 + $0x34] sm:$0x1] }
 0x298   : > { %4145 = vrot.lane.b32.xlu1 %v4124_v16, %s9794_s13  ;;  %4147 = vrot.lane.b32.xlu0 %v4125_v44, %s9794_s13  ;;  %v4224_v16 = vsel %vm9944_vm4, %v11164_v40, %v11156_v29  ;;  %v11217_v44 = vrot.slane %v4260_v41, 4  ;;  %v11224_v48 = vld [vmem:[#allocation2 + $0x38] sm:$0xe]  ;;  %v4275_v29 = vrot.slane %v4274_v7, 4  ;;  %v9370_v40 = vrot.slane %v11199_v31, 9 }
 0x299   : > { %v4252_v7 = vsel %vm9944_vm4, %v11184_v51, %v11172_v58  ;;  %v3578_v46 = vld [vmem:[#allocation2 + $0xc] sm:$0x1]  ;;  %v3580_v58 = vld [vmem:[#allocation2 + $0x14] sm:$0x1]  ;;  %v3634_v51 = vshrl.u32 %v3581_v1, 16 }
 0x29a   : > { %v3410_v17 = vpop.permute.xlu1 %3409  ;;  %v3412_v63 = vpop.permute.xlu0 %3411 }
 0x29b   : > { %3428 = vst.msk [vmem:[#allocation3 + $0x54] sm:$0xf] %vm1597_vm8, %v3410_v17  ;;  %3429 = vst.msk [vmem:[#allocation3 + $0x58] sm:$0xf] %vm1597_vm8, %v3412_v63  ;;  %v3597_v17 = vrot.slane %v3595_v12, 5  ;;  %v3608_v12 = vrot.slane %v3606_v0, 4  ;;  %v4266_v0 = vsel %vm9944_vm4, %v11217_v44, %v11186_v55 }
 0x29c   : > { %4149 = vrot.lane.b32.xlu1 %v4126_v50, %s9794_s13  ;;  %4295 = vrot.lane.b32.xlu0 %v4196_v59, %s9790_s9  ;;  %v4291_v50 = vshll.u32 %v4182_v14, 16  ;;  %v3583_v63 = vld [vmem:[#allocation2 + $0x20] sm:$0xf]  ;;  %v4238_v59 = vsel %vm9944_vm4, %v11166_v60, %v11162_v5  ;;  %v3622_v5 = vrot.slane %v3620_v61, 4  ;;  %v3625_v60 = vrot.slane %v3623_v34, 5 }
 0x29d   : > { %v4289_v14 = vrot.slane %v4288_v36, 4  ;;  %v3598_v27 = vor.u32 %v3597_v17, %v3594_v37  ;;  %v4381_v61 = vrot.slane %v11231_v15, 5  ;;  %v9373_v34 = vrot.slane %v11243_v8, 9  ;;  %v4473_v8 = vld [vmem:[#allocation2 + $0x8] sm:$0xf] }
 0x29e   : > { %v3414_v24 = vpop.permute.xlu1 %3413  ;;  %v3496_v45 = vpop.permute.xlu0 %3495  ;;  %v4293_v33 = vrot.slane %v4291_v50, 5  ;;  %v3615_v50 = vshll.u32 %v3578_v46, 16  ;;  %v3626_v37 = vor.u32 %v3625_v60, %v3622_v5  ;;  %v3629_v17 = vshll.u32 %v3580_v58, 16  ;;  %v3584_v46 = vld [vmem:[#allocation2 + $0x24] sm:$0x1] }
 0x29f   : > { %3430 = vst.msk [vmem:[#allocation3 + $0x5c] sm:$0xf] %vm1597_vm8, %v3414_v24  ;;  %v3611_v24 = vrot.slane %v3609_v3, 5  ;;  %v4280_v3 = vsel %vm9944_vm4, %v4275_v29, %v11196_v11  ;;  %v3636_v55 = vrot.slane %v3634_v51, 4  ;;  %v4362_v60 = vsel %vm9956_vm7, %v9367_v49, %v4361_v53  ;;  %v3589_v53 = vld [vmem:[#allocation2 + $0x38] sm:$0xf] }
 0x2a0   : > { %3519 = vst.msk [vmem:[#allocation3 + $0x40] sm:$0xf] %vm1694_vm10, %v3496_v45  ;;  %4297 = vrot.lane.b32.xlu1 %v4210_v4, %s9790_s9  ;;  %4299 = vrot.lane.b32.xlu0 %v4224_v16, %s9790_s9  ;;  %v3637_v45 = vshll.u32 %v3581_v1, 16  ;;  %v3648_v4 = vshrl.u32 %v3583_v63, 16  ;;  %v3651_v16 = vshll.u32 %v3583_v63, 16  ;;  %v3657_v49 = vshll.u32 %v3584_v46, 16 }
 0x2a1   : > { %v3585_v1 = vld [vmem:[#allocation2 + $0x28] sm:$0xf]  ;;  %v3612_v36 = vor.u32 %v3611_v24, %v3608_v12  ;;  %v3582_v63 = vld [vmem:[#allocation2 + $0x1c] sm:$0x1] }
 0x2a2   : > { %v3498_v41 = vpop.permute.xlu1 %3497  ;;  %v3500_v56 = vpop.permute.xlu0 %3499  ;;  %v3639_v11 = vrot.slane %v3637_v45, 5  ;;  %v11262_v44 = vrot.slane %v3648_v4, 4  ;;  %v11264_v29 = vrot.slane %v3651_v16, 5  ;;  %v3662_v12 = vshrl.u32 %v3585_v1, 16 }
 0x2a3   : > { %3520 = vst.msk [vmem:[#allocation3 + $0x44] sm:$0xf] %vm1694_vm10, %v3498_v41  ;;  %3521 = vst.msk [vmem:[#allocation3 + $0x48] sm:$0xf] %vm1694_vm10, %v3500_v56  ;;  %v3601_v41 = vshll.u32 %v3576_v9, 16  ;;  %v3665_v51 = vshll.u32 %v3585_v1, 16 }
 0x2a4   : > { %4301 = vrot.lane.b32.xlu1 %v4238_v59, %s9790_s9  ;;  %4303 = vrot.lane.b32.xlu0 %v4252_v7, %s9790_s9  ;;  %v3587_v59 = vld [vmem:[#allocation2 + $0x30] sm:$0xf]  ;;  %v4294_v7 = vsel %vm9944_vm4, %v4289_v14, %v4293_v33  ;;  %v11276_v33 = vld [vmem:[#allocation2 + $0x44] sm:$0x1]  ;;  %v3631_v45 = vrot.slane %v3629_v17, 5  ;;  %v3613_v38 = vrot.slane %v3612_v36, 4  ;;  %v3640_v47 = vor.u32 %v3639_v11, %v3636_v55 }
 0x2a5   : > { %v3603_v9 = vrot.slane %v3601_v41, 5  ;;  %v3676_v4 = vshrl.u32 %v3587_v59, 16  ;;  %v3679_v16 = vshll.u32 %v3587_v59, 16  ;;  %v3643_v14 = vshll.u32 %v3582_v63, 16  ;;  %v3588_v1 = vld [vmem:[#allocation2 + $0x34] sm:$0x1] }
 0x2a6   : > { %v3502_v39 = vpop.permute.xlu1 %3501  ;;  %v3504_v56 = vpop.permute.xlu0 %3503  ;;  %v4366_v36 = vsel %vm9956_vm7, %v9368_v26, %v4365_v22  ;;  %v3654_v55 = vor.u32 %v11264_v29, %v11262_v44  ;;  %v3667_v11 = vrot.slane %v3665_v51, 5  ;;  %v3690_v59 = vshrl.u32 %v3589_v53, 16  ;;  %v4341_v44 = vld [vmem:[#allocation2 + $0x48] sm:$0xe]  ;;  %v4342_v29 = vld [vmem:[#allocation2 + $0x4c] sm:$0x1] }
 0x2a7   : > { %3522 = vst.msk [vmem:[#allocation3 + $0x4c] sm:$0xf] %vm1694_vm10, %v3502_v39  ;;  %3523 = vst.msk [vmem:[#allocation3 + $0x50] sm:$0xf] %vm1694_vm10, %v3504_v56  ;;  %v3599_v39 = vrot.slane %v3598_v27, 4  ;;  %v3617_v27 = vrot.slane %v3615_v50, 5 }
 0x2a8   : > { %4305 = vrot.lane.b32.xlu1 %v4266_v0, %s9790_s9  ;;  %4307 = vrot.lane.b32.xlu0 %v4280_v3, %s9790_s9  ;;  %v3627_v56 = vrot.slane %v3626_v37, 4  ;;  %v3586_v0 = vld [vmem:[#allocation2 + $0x2c] sm:$0x1]  ;;  %v11282_v3 = vrot.slane %v3662_v12, 4  ;;  %v4370_v37 = vsel %vm9956_vm7, %v9369_v43, %v4369_v32  ;;  %v3678_v35 = vrot.slane %v3676_v4, 4 }
 0x2a9   : > { %v3604_v41 = vsel %vm9944_vm4, %v3599_v39, %v3603_v9  ;;  %v3681_v52 = vrot.slane %v3679_v16, 5  ;;  %v3693_v26 = vshll.u32 %v3589_v53, 16  ;;  %v4385_v6 = vrot.slane %v11276_v33, 5 }
 0x2aa   : > { %v3506_v24 = vpop.permute.xlu1 %3505  ;;  %v3508_v5 = vpop.permute.xlu0 %3507  ;;  %v9737_v58 = vld [vmem:[#allocation3 + $0x40] sm:$0xff]   ;;  %v3641_v54 = vrot.slane %v3640_v47, 4  ;;  %v3645_v22 = vrot.slane %v3643_v14, 5  ;;  %v3659_v43 = vrot.slane %v3657_v49, 5  ;;  %v4374_v32 = vsel %vm9956_vm7, %v9370_v40, %v4373_v18 }
 0x2ab   : > { %3524 = vst.msk [vmem:[#allocation3 + $0x54] sm:$0xf] %vm1694_vm10, %v3506_v24  ;;  %3525 = vst.msk [vmem:[#allocation3 + $0x58] sm:$0xf] %vm1694_vm10, %v3508_v5  ;;  %9600 = vmatprep.mubr.bf16.mxu0 %v9737_v58  ;;  %v3685_v39 = vshll.u32 %v3588_v1, 16  ;;  %v13024_v12 = vrot.slane %v11220_v20, 5  ;;  %v3618_v31 = vsel %vm9944_vm4, %v3613_v38, %v3617_v27  ;;  %v3632_v62 = vsel %vm9944_vm4, %v3627_v56, %v3631_v45 }
 0x2ac   : > { %4309 = vrot.lane.b32.xlu1 %v4294_v7, %s9790_s9  ;;  %4391 = vrot.lane.b32.xlu0 %v4362_v60, %s9792_s11  ;;  %v3671_v7 = vshll.u32 %v3586_v0, 16  ;;  %v13025_v24 = vrot.slane %v11207_v10, 9  ;;  %v3655_v40 = vrot.slane %v3654_v55, 4  ;;  %v3668_v18 = vor.u32 %v3667_v11, %v11282_v3  ;;  %v3590_v58 = vld [vmem:[#allocation2 + $0x3c] sm:$0x1] }
 0x2ad   : > { %v3682_v20 = vor.u32 %v3681_v52, %v3678_v35  ;;  %v3692_v10 = vrot.slane %v3690_v59, 4  ;;  %v3695_v51 = vrot.slane %v3693_v26, 5  ;;  %v9374_v33 = vrot.slane %v4341_v44, 9  ;;  %v4471_v56 = vld [vmem:[#allocation2] sm:$0xf] }
 0x2ae   : > { %v3510_v50 = vpop.permute.xlu1 %3509  ;;  %v3544_v17 = vpop.permute.xlu0 %3543  ;;  %v9738_v63 = vld [vmem:[#allocation3 + $0x48] sm:$0xff]   ;;  %v4378_v5 = vsel %vm9956_vm7, %v13025_v24, %v13024_v12  ;;  %v4389_v27 = vrot.slane %v4342_v29, 5  ;;  %v3673_v45 = vrot.slane %v3671_v7, 5  ;;  %v3687_v4 = vrot.slane %v3685_v39, 5  ;;  %v4472_v7 = vld [vmem:[#allocation2 + $0x4] sm:$0x1] }
 0x2af   : > { %3526 = vst.msk [vmem:[#allocation3 + $0x5c] sm:$0xf] %vm1694_vm10, %v3510_v50  ;;  %9601 = vmatmul.mubr.bf16.gmra.mxu0 %v9738_v63  ;;  %v13026_v47 = vrot.slane %v11224_v48, 9  ;;  %v4386_v49 = vsel %vm9956_vm7, %v9373_v34, %v4385_v6  ;;  %v3699_v0 = vshll.u32 %v3590_v58, 16  ;;  %v3660_v48 = vsel %vm9944_vm4, %v3655_v40, %v3659_v43  ;;  %v4475_v34 = vld [vmem:[#allocation2 + $0x10] sm:$0xf] }
 0x2b0   : > { %3567 = vst.msk [vmem:[#allocation3 + $0x60] sm:$0xf] %vm815_vm9, %v3544_v17  ;;  %4393 = vrot.lane.b32.xlu1 %v4366_v36, %s9792_s11  ;;  %4395 = vrot.lane.b32.xlu0 %v4370_v37, %s9792_s11  ;;  %v3669_v15 = vrot.slane %v3668_v18, 4  ;;  %v3696_v3 = vor.u32 %v3695_v51, %v3692_v10  ;;  %v4390_v1 = vsel %vm9956_vm7, %v9374_v33, %v4389_v27  ;;  %v4423_v50 = vld [vmem:[#allocation2] sm:$0xf]  ;;  %v4488_v17 = vshrl.u32 %v4471_v56, 16 }
 0x2b1   : > { %3711 = vst.msk [vmem:[#allocation3 + $0x60] sm:$0xf] %vm979_vm0, %v3604_v41  ;;  %v4382_v14 = vsel %vm9956_vm7, %v13026_v47, %v4381_v61  ;;  %v3646_v41 = vsel %vm9944_vm4, %v3641_v54, %v3645_v22  ;;  %v3683_v61 = vrot.slane %v3682_v20, 4  ;;  %v4491_v36 = vshll.u32 %v4471_v56, 16  ;;  %v4424_v39 = vld [vmem:[#allocation2 + $0x8] sm:$0xf] }
 0x2b2   : > { %v3546_v9 = vpop.permute.xlu1 %3545  ;;  %v3548_v46 = vpop.permute.xlu0 %3547  ;;  %v9739_v60 = vld [vmem:[#allocation3 + $0x50] sm:$0xff]   ;;  %v3674_v55 = vsel %vm9944_vm4, %v3669_v15, %v3673_v45  ;;  %v3697_v35 = vrot.slane %v3696_v3, 4  ;;  %v3701_v52 = vrot.slane %v3699_v0, 5  ;;  %v4502_v59 = vshrl.u32 %v4473_v8, 16  ;;  %v4474_v24 = vld [vmem:[#allocation2 + $0xc] sm:$0x1] }
 0x2b3   : > { %3568 = vst.msk [vmem:[#allocation3 + $0x64] sm:$0xf] %vm815_vm9, %v3546_v9  ;;  %3569 = vst.msk [vmem:[#allocation3 + $0x68] sm:$0xf] %vm815_vm9, %v3548_v46  ;;  %9604 = vmatprep.mubr.bf16.mxu0 %v9739_v60  ;;  %v3688_v11 = vsel %vm9944_vm4, %v3683_v61, %v3687_v4  ;;  %v4505_v26 = vshll.u32 %v4473_v8, 16  ;;  %v4516_v6 = vshrl.u32 %v4475_v34, 16 }
 0x2b4   : > { %4397 = vrot.lane.b32.xlu1 %v4374_v32, %s9792_s11  ;;  %4399 = vrot.lane.b32.xlu0 %v4378_v5, %s9792_s11  ;;  %3712 = vst.msk [vmem:[#allocation3 + $0x64] sm:$0xf] %vm979_vm0, %v3618_v31  ;;  %3713 = vst.msk [vmem:[#allocation3 + $0x68] sm:$0xf] %vm979_vm0, %v3632_v62  ;;  %v4490_v54 = vrot.slane %v4488_v17, 4  ;;  %v4493_v22 = vrot.slane %v4491_v36, 5  ;;  %v3702_v46 = vsel %vm9944_vm4, %v3697_v35, %v3701_v52 }
 0x2b5   : > { %v4519_v43 = vshll.u32 %v4475_v34, 16  ;;  %v4477_v32 = vld [vmem:[#allocation2 + $0x18] sm:$0xf]  ;;  %v4425_v9 = vld [vmem:[#allocation2 + $0x10] sm:$0xf]  ;;  %v4504_v5 = vrot.slane %v4502_v59, 4 }
 0x2b6   : > { %v3550_v16 = vpop.permute.xlu1 %3549  ;;  %v3552_v38 = vpop.permute.xlu0 %3551  ;;  %v9740_v53 = vld [vmem:[#allocation3 + $0x58] sm:$0xff]   ;;  %v4479_v12 = vld [vmem:[#allocation2 + $0x20] sm:$0xf]  ;;  %v4507_v60 = vrot.slane %v4505_v26, 5  ;;  %v4518_v31 = vrot.slane %v4516_v6, 4  ;;  %v4530_v62 = vshrl.u32 %v4477_v32, 16  ;;  %v4494_v40 = vor.u32 %v4493_v22, %v4490_v54 }
 0x2b7   : > { %3570 = vst.msk [vmem:[#allocation3 + $0x6c] sm:$0xf] %vm815_vm9, %v3550_v16  ;;  %3571 = vst.msk [vmem:[#allocation3 + $0x70] sm:$0xf] %vm815_vm9, %v3552_v38  ;;  %9605 = vmatmul.mubr.bf16.gmra.mxu0 %v9740_v53  ;;  %v4497_v18 = vshll.u32 %v4472_v7, 16  ;;  %v4521_v58 = vrot.slane %v4519_v43, 5 }
 0x2b8   : > { %4401 = vrot.lane.b32.xlu1 %v4382_v14, %s9792_s11  ;;  %4403 = vrot.lane.b32.xlu0 %v4386_v49, %s9792_s11  ;;  %3714 = vst.msk [vmem:[#allocation3 + $0x6c] sm:$0xf] %vm979_vm0, %v3646_v41  ;;  %3715 = vst.msk [vmem:[#allocation3 + $0x70] sm:$0xf] %vm979_vm0, %v3660_v48  ;;  %v4476_v20 = vld [vmem:[#allocation2 + $0x14] sm:$0x1]  ;;  %v4508_v47 = vor.u32 %v4507_v60, %v4504_v5 }
 0x2b9   : > { %v4533_v10 = vshll.u32 %v4477_v32, 16  ;;  %v4544_v27 = vshrl.u32 %v4479_v12, 16  ;;  %v4547_v45 = vshll.u32 %v4479_v12, 16  ;;  %v4426_v4 = vld [vmem:[#allocation2 + $0x18] sm:$0xf]  ;;  %v4511_v14 = vshll.u32 %v4474_v24, 16 }
 0x2ba   : > { %v3554_v37 = vpop.permute.xlu1 %3553  ;;  %v3556_v63 = vpop.permute.xlu0 %3555  ;;  %v4427_v16 = vld [vmem:[#allocation2 + $0x20] sm:$0xf]  ;;  %v4481_v38 = vld [vmem:[#allocation2 + $0x28] sm:$0xf]  ;;  %v4525_v49 = vshll.u32 %v4476_v20, 16  ;;  %v4532_v53 = vrot.slane %v4530_v62, 4  ;;  %v4522_v48 = vor.u32 %v4521_v58, %v4518_v31 }
 0x2bb   : > { %3572 = vst.msk [vmem:[#allocation3 + $0x74] sm:$0xf] %vm815_vm9, %v3554_v37  ;;  %3573 = vst.msk [vmem:[#allocation3 + $0x78] sm:$0xf] %vm815_vm9, %v3556_v63  ;;  %v4483_v41 = vld [vmem:[#allocation2 + $0x30] sm:$0xf] }
 0x2bc   : > { %4405 = vrot.lane.b32.xlu1 %v4390_v1, %s9792_s11  ;;  %4439 = vrot.lane.b32.xlu0 %v4423_v50, %s9815_s16  ;;  %3716 = vst.msk [vmem:[#allocation3 + $0x74] sm:$0xf] %vm979_vm0, %v3674_v55  ;;  %3717 = vst.msk [vmem:[#allocation3 + $0x78] sm:$0xf] %vm979_vm0, %v3688_v11  ;;  %v4495_v56 = vrot.slane %v4494_v40, 4  ;;  %v4499_v0 = vrot.slane %v4497_v18, 5 }
 0x2bd   : > { %v4478_v15 = vld [vmem:[#allocation2 + $0x1c] sm:$0x1]  ;;  %v4535_v61 = vrot.slane %v4533_v10, 5  ;;  %v4480_v34 = vld [vmem:[#allocation2 + $0x24] sm:$0x1]  ;;  %v4546_v1 = vrot.slane %v4544_v27, 4 }
 0x2be   : > { %v3558_v44 = vpop.permute.xlu1 %3557  ;;  %v3784_v29 = vpop.permute.xlu0 %3783  ;;  %v4549_v50 = vrot.slane %v4547_v45, 5  ;;  %v4558_v17 = vshrl.u32 %v4481_v38, 16  ;;  %v4561_v36 = vshll.u32 %v4481_v38, 16  ;;  %v4428_v37 = vld [vmem:[#allocation2 + $0x28] sm:$0xf]  ;;  %v4572_v55 = vshrl.u32 %v4483_v41, 16 }
 0x2bf   : > { %3574 = vst.msk [vmem:[#allocation3 + $0x7c] sm:$0xf] %vm815_vm9, %v3558_v44  ;;  %v4429_v63 = vld [vmem:[#allocation2 + $0x30] sm:$0xf]  ;;  %v4575_v11 = vshll.u32 %v4483_v41, 16  ;;  %v4513_v35 = vrot.slane %v4511_v14, 5  ;;  %v4500_v6 = vsel %vm9944_vm4, %v4495_v56, %v4499_v0  ;;  %v4536_v7 = vor.u32 %v4535_v61, %v4532_v53 }
 0x2c0   : > { %3807 = vst.msk [vmem:[#allocation3 + $0x60] sm:$0xf] %vm1079_vm1, %v3784_v29  ;;  %4441 = vrot.lane.b32.xlu1 %v4424_v39, %s9815_s16  ;;  %4443 = vrot.lane.b32.xlu0 %v4425_v9, %s9815_s16  ;;  %v4527_v52 = vrot.slane %v4525_v49, 5  ;;  %v4539_v59 = vshll.u32 %v4478_v15, 16  ;;  %v4485_v26 = vld [vmem:[#allocation2 + $0x38] sm:$0xf]  ;;  %v4550_v39 = vor.u32 %v4549_v50, %v4546_v1 }
 0x2c1   : > { %3718 = vst.msk [vmem:[#allocation3 + $0x7c] sm:$0xf] %vm979_vm0, %v3702_v46  ;;  %v4509_v54 = vrot.slane %v4508_v47, 4  ;;  %v4523_v22 = vrot.slane %v4522_v48, 4  ;;  %v4553_v43 = vshll.u32 %v4480_v34, 16  ;;  %v4560_v46 = vrot.slane %v4558_v17, 4 }
 0x2c2   : > { %v3786_v51 = vpop.permute.xlu1 %3785  ;;  %v3788_v33 = vpop.permute.xlu0 %3787  ;;  %v4430_v29 = vld [vmem:[#allocation2 + $0x38] sm:$0xf]  ;;  %v4482_v9 = vld [vmem:[#allocation2 + $0x2c] sm:$0x1]  ;;  %v4563_v12 = vrot.slane %v4561_v36, 5  ;;  %v4574_v5 = vrot.slane %v4572_v55, 4 }
 0x2c3   : > { %3808 = vst.msk [vmem:[#allocation3 + $0x64] sm:$0xf] %vm1079_vm1, %v3786_v51  ;;  %3809 = vst.msk [vmem:[#allocation3 + $0x68] sm:$0xf] %vm1079_vm1, %v3788_v33  ;;  %v4484_v24 = vld [vmem:[#allocation2 + $0x34] sm:$0x1]  ;;  %v4514_v40 = vsel %vm9944_vm4, %v4509_v54, %v4513_v35  ;;  %v4528_v33 = vsel %vm9944_vm4, %v4523_v22, %v4527_v52 }
 0x2c4   : > { %4445 = vrot.lane.b32.xlu1 %v4426_v4, %s9815_s16  ;;  %4447 = vrot.lane.b32.xlu0 %v4427_v16, %s9815_s16  ;;  %v4577_v60 = vrot.slane %v4575_v11, 5  ;;  %v4586_v31 = vshrl.u32 %v4485_v26, 16  ;;  %v4589_v62 = vshll.u32 %v4485_v26, 16  ;;  %v4541_v18 = vrot.slane %v4539_v59, 5  ;;  %v4486_v47 = vld [vmem:[#allocation2 + $0x3c] sm:$0x1] }
 0x2c5   : > { %v4555_v20 = vrot.slane %v4553_v43, 5  ;;  %v4567_v58 = vshll.u32 %v4482_v9, 16  ;;  %v4537_v27 = vrot.slane %v4536_v7, 4  ;;  %v4551_v45 = vrot.slane %v4550_v39, 4  ;;  %v4631_v61 = vld [vmem:[#allocation2] sm:$0xe] }
 0x2c6   : > { %v3790_v3 = vpop.permute.xlu1 %3789  ;;  %v3792_v8 = vpop.permute.xlu0 %3791  ;;  %v4581_v4 = vshll.u32 %v4484_v24, 16  ;;  %v4564_v16 = vor.u32 %v4563_v12, %v4560_v46  ;;  %v4578_v38 = vor.u32 %v4577_v60, %v4574_v5  ;;  %v4588_v14 = vrot.slane %v4586_v31, 4  ;;  %v4775_v59 = vld [vmem:[#allocation2 + $0x8] sm:$0xf]  ;;  %v4634_v26 = vld [vmem:[#allocation2 + $0xc] sm:$0x1] }
 0x2c7   : > { %3810 = vst.msk [vmem:[#allocation3 + $0x6c] sm:$0xf] %vm1079_vm1, %v3790_v3  ;;  %3811 = vst.msk [vmem:[#allocation3 + $0x70] sm:$0xf] %vm1079_vm1, %v3792_v8  ;;  %v4591_v49 = vrot.slane %v4589_v62, 5  ;;  %v4569_v53 = vrot.slane %v4567_v58, 5  ;;  %v4542_v0 = vsel %vm9944_vm4, %v4537_v27, %v4541_v18  ;;  %v4556_v8 = vsel %vm9944_vm4, %v4551_v45, %v4555_v20 }
 0x2c8   : > { %4449 = vrot.lane.b32.xlu1 %v4428_v37, %s9815_s16  ;;  %4451 = vrot.lane.b32.xlu0 %v4429_v63, %s9815_s16  ;;  %v4583_v48 = vrot.slane %v4581_v4, 5  ;;  %v4595_v15 = vshll.u32 %v4486_v47, 16  ;;  %v4632_v3 = vld [vmem:[#allocation2 + $0x4] sm:$0x1]  ;;  %v4565_v34 = vrot.slane %v4564_v16, 4  ;;  %v4579_v1 = vrot.slane %v4578_v38, 4 }
 0x2c9   : > { %v4592_v50 = vor.u32 %v4591_v49, %v4588_v14  ;;  %v9375_v17 = vrot.slane %v4631_v61, 9  ;;  %v4665_v36 = vrot.slane %v4632_v3, 5  ;;  %v4636_v54 = vld [vmem:[#allocation2 + $0x14] sm:$0x1]  ;;  %v4633_v43 = vld [vmem:[#allocation2 + $0x8] sm:$0xe] }
 0x2ca   : > { %v3794_v32 = vpop.permute.xlu1 %3793  ;;  %v3796_v44 = vpop.permute.xlu0 %3795  ;;  %v4570_v55 = vsel %vm9944_vm4, %v4565_v34, %v4569_v53  ;;  %v4584_v11 = vsel %vm9944_vm4, %v4579_v1, %v4583_v48  ;;  %v4597_v52 = vrot.slane %v4595_v15, 5  ;;  %v4638_v7 = vld [vmem:[#allocation2 + $0x1c] sm:$0x1]  ;;  %v4792_v39 = vshrl.u32 %v4775_v59, 16  ;;  %v4777_v60 = vld [vmem:[#allocation2 + $0x10] sm:$0xf] }
 0x2cb   : > { %3812 = vst.msk [vmem:[#allocation3 + $0x74] sm:$0xf] %vm1079_vm1, %v3794_v32  ;;  %3813 = vst.msk [vmem:[#allocation3 + $0x78] sm:$0xf] %vm1079_vm1, %v3796_v44  ;;  %v4593_v35 = vrot.slane %v4592_v50, 4  ;;  %v4666_v22 = vsel %vm9956_vm7, %v9375_v17, %v4665_v36  ;;  %v4795_v9 = vshll.u32 %v4775_v59, 16 }
 0x2cc   : > { %4453 = vrot.lane.b32.xlu1 %v4430_v29, %s9815_s16  ;;  %4599 = vrot.lane.b32.xlu0 %v4500_v6, %s9797_s20  ;;  %v4635_v6 = vld [vmem:[#allocation2 + $0x10] sm:$0xe]  ;;  %v4637_v29 = vld [vmem:[#allocation2 + $0x18] sm:$0xe]  ;;  %v4669_v12 = vrot.slane %v4634_v26, 5  ;;  %v4673_v5 = vrot.slane %v4636_v54, 5 }
 0x2cd   : > { %v4598_v46 = vsel %vm9944_vm4, %v4593_v35, %v4597_v52  ;;  %v9377_v24 = vrot.slane %v4635_v6, 9  ;;  %v4779_v31 = vld [vmem:[#allocation2 + $0x18] sm:$0xf]  ;;  %v9376_v62 = vrot.slane %v4633_v43, 9  ;;  %v4677_v18 = vrot.slane %v4638_v7, 5  ;;  %s9816_s11 = smov 108  }
 0x2ce   : > { %v3798_v10 = vpop.permute.xlu1 %3797  ;;  %v3832_v51 = vpop.permute.xlu0 %3831  ;;  %v4806_v27 = vshrl.u32 %v4777_v60, 16  ;;  %v4809_v45 = vshll.u32 %v4777_v60, 16  ;;  %v4820_v38 = vshrl.u32 %v4779_v31, 16  ;;  %v4823_v47 = vshll.u32 %v4779_v31, 16  ;;  %v4781_v14 = vld [vmem:[#allocation2 + $0x20] sm:$0xf] }
 0x2cf   : > { %3814 = vst.msk [vmem:[#allocation3 + $0x7c] sm:$0xf] %vm1079_vm1, %v3798_v10  ;;  %v4776_v10 = vld [vmem:[#allocation2 + $0xc] sm:$0x1]  ;;  %v4670_v4 = vsel %vm9956_vm7, %v9376_v62, %v4669_v12  ;;  %v4674_v16 = vsel %vm9956_vm7, %v9377_v24, %v4673_v5  ;;  %v4727_v15 = vld [vmem:[#allocation2 + $0x8] sm:$0xf] }
 0x2d0   : > { %3855 = vst.msk [vmem:[#allocation3 + $0x60] sm:$0xf] %vm1128_vm2, %v3832_v51  ;;  %4601 = vrot.lane.b32.xlu1 %v4514_v40, %s9797_s20  ;;  %4603 = vrot.lane.b32.xlu0 %v4528_v33, %s9797_s20  ;;  %v9378_v40 = vrot.slane %v4637_v29, 9  ;;  %v4794_v51 = vrot.slane %v4792_v39, 4  ;;  %v4797_v33 = vrot.slane %v4795_v9, 5  ;;  %v4811_v34 = vrot.slane %v4809_v45, 5 }
 0x2d1   : > { %v4778_v3 = vld [vmem:[#allocation2 + $0x14] sm:$0x1]  ;;  %v4780_v50 = vld [vmem:[#allocation2 + $0x1c] sm:$0x1]  ;;  %v4822_v17 = vrot.slane %v4820_v38, 4  ;;  %v4825_v36 = vrot.slane %v4823_v47, 5 }
 0x2d2   : > { %v3834_v41 = vpop.permute.xlu1 %3833  ;;  %v3836_v56 = vpop.permute.xlu0 %3835  ;;  %v4678_v53 = vsel %vm9956_vm7, %v9378_v40, %v4677_v18  ;;  %v4798_v61 = vor.u32 %v4797_v33, %v4794_v51  ;;  %v4728_v6 = vld [vmem:[#allocation2 + $0x10] sm:$0xf]  ;;  %v4729_v54 = vld [vmem:[#allocation2 + $0x18] sm:$0xf]  ;;  %v4815_v43 = vshll.u32 %v4778_v3, 16 }
 0x2d3   : > { %3856 = vst.msk [vmem:[#allocation3 + $0x64] sm:$0xf] %vm1128_vm2, %v3834_v41  ;;  %3857 = vst.msk [vmem:[#allocation3 + $0x68] sm:$0xf] %vm1128_vm2, %v3836_v56  ;;  %v4801_v41 = vshll.u32 %v4776_v10, 16  ;;  %v4826_v7 = vor.u32 %v4825_v36, %v4822_v17 }
 0x2d4   : > { %4605 = vrot.lane.b32.xlu1 %v4542_v0, %s9797_s20  ;;  %4607 = vrot.lane.b32.xlu0 %v4556_v8, %s9797_s20  ;;  %v4808_v8 = vrot.slane %v4806_v27, 4  ;;  %v4799_v29 = vrot.slane %v4798_v61, 4  ;;  %v4782_v39 = vld [vmem:[#allocation2 + $0x24] sm:$0x1]  ;;  %v4817_v62 = vrot.slane %v4815_v43, 5 }
 0x2d5   : > { %v4803_v35 = vrot.slane %v4801_v41, 5  ;;  %v4843_v18 = vshll.u32 %v4782_v39, 16  ;;  %v4827_v33 = vrot.slane %v4826_v7, 4  ;;  %v4935_v38 = vld [vmem:[#allocation2 + $0x8] sm:$0xe] }
 0x2d6   : > { %v3838_v37 = vpop.permute.xlu1 %3837  ;;  %v3840_v63 = vpop.permute.xlu0 %3839  ;;  %v4939_v17 = vld [vmem:[#allocation2 + $0x18] sm:$0xe]  ;;  %v4940_v36 = vld [vmem:[#allocation2 + $0x1c] sm:$0x1]  ;;  %v5083_v39 = vld [vmem:[#allocation2 + $0x20] sm:$0xf] }
 0x2d7   : > { %3858 = vst.msk [vmem:[#allocation3 + $0x6c] sm:$0xf] %vm1128_vm2, %v3838_v37  ;;  %3859 = vst.msk [vmem:[#allocation3 + $0x70] sm:$0xf] %vm1128_vm2, %v3840_v63  ;;  %v4834_v37 = vshrl.u32 %v4781_v14, 16  ;;  %v4837_v63 = vshll.u32 %v4781_v14, 16  ;;  %v4804_v10 = vsel %vm9944_vm4, %v4799_v29, %v4803_v35 }
 0x2d8   : > { %4609 = vrot.lane.b32.xlu1 %v4570_v55, %s9797_s20  ;;  %4611 = vrot.lane.b32.xlu0 %v4584_v11, %s9797_s20  ;;  %v4845_v41 = vrot.slane %v4843_v18, 5  ;;  %v4977_v29 = vrot.slane %v4940_v36, 5  ;;  %v5081_v7 = vld [vmem:[#allocation2 + $0x18] sm:$0xf] }
 0x2d9   : > { %v4836_v9 = vrot.slane %v4834_v37, 4  ;;  %v9383_v37 = vrot.slane %v4935_v38, 9 }
 0x2da   : > { %v3842_v32 = vpop.permute.xlu1 %3841  ;;  %v3844_v44 = vpop.permute.xlu0 %3843 }
 0x2db   : > { %3860 = vst.msk [vmem:[#allocation3 + $0x74] sm:$0xf] %vm1128_vm2, %v3842_v32  ;;  %3861 = vst.msk [vmem:[#allocation3 + $0x78] sm:$0xf] %vm1128_vm2, %v3844_v44  ;;  %v4829_v32 = vshll.u32 %v4780_v50, 16 }
 0x2dc   : > { %4613 = vrot.lane.b32.xlu1 %v4598_v46, %s9797_s20  ;;  %4695 = vrot.lane.b32.xlu0 %v4666_v22, %s9798_s14  ;;  %v4812_v22 = vor.u32 %v4811_v34, %v4808_v8  ;;  %v4839_v46 = vrot.slane %v4837_v63, 5  ;;  %v5079_v34 = vld [vmem:[#allocation2 + $0x10] sm:$0xf] }
 0x2dd   : > { %v4831_v40 = vrot.slane %v4829_v32, 5  ;;  %v9385_v32 = vrot.slane %v4939_v17, 9 }
 0x2de   : > { %v3846_v20 = vpop.permute.xlu1 %3845  ;;  %v3992_v58 = vpop.permute.xlu0 %3991  ;;  %v4813_v51 = vrot.slane %v4812_v22, 4  ;;  %v4840_v27 = vor.u32 %v4839_v46, %v4836_v9 }
 0x2df   : > { %3862 = vst.msk [vmem:[#allocation3 + $0x7c] sm:$0xf] %vm1128_vm2, %v3846_v20  ;;  %v11420_v49 = vpop.f32.mrf.mxu0  ;;  %v4832_v61 = vsel %vm9944_vm4, %v4827_v33, %v4831_v40  ;;  %v5113_v40 = vshll.u32 %v5081_v7, 16  ;;  %v5127_v33 = vshll.u32 %v5083_v39, 16 }
 0x2e0   : > { %4015 = vst.msk [vmem:[#allocation3 + $0x60] sm:$0xf] %vm1289_vm3, %v3992_v58  ;;  %4697 = vrot.lane.b32.xlu1 %v4670_v4, %s9798_s14  ;;  %4699 = vrot.lane.b32.xlu0 %v4674_v16, %s9798_s14  ;;  %v8674_v56 = vpack.c.bf16 %v11420_v49, %v11420_v49  ;;  %v4730_v58 = vld [vmem:[#allocation2 + $0x20] sm:$0xf]  ;;  %v4936_v4 = vld [vmem:[#allocation2 + $0xc] sm:$0x1] }
 0x2e1   : > { %v11428_v1 = vpop.f32.mrf.mxu0  ;;  %v4841_v3 = vrot.slane %v4840_v27, 4  ;;  %v4969_v8 = vrot.slane %v4936_v4, 5  ;;  %v5085_v27 = vld [vmem:[#allocation2 + $0x28] sm:$0xf]  ;;  %v5031_v4 = vld [vmem:[#allocation2 + $0x10] sm:$0xf] }
 0x2e2   : > { %v3994_v0 = vpop.permute.xlu1 %3993  ;;  %v3996_v48 = vpop.permute.xlu0 %3995  ;;  %8739 = vst.msk [vmem:[%s10988_s30 + $0x28] sm:$0xf] %vm8728_vm11, %v8674_v56  ;;  %v8672_v55 = vpack.c.bf16 %v11428_v1, %v11428_v1  ;;  %v4937_v56 = vld [vmem:[#allocation2 + $0x10] sm:$0xe] }
 0x2e3   : > { %4016 = vst.msk [vmem:[#allocation3 + $0x64] sm:$0xf] %vm1289_vm3, %v3994_v0  ;;  %4017 = vst.msk [vmem:[#allocation3 + $0x68] sm:$0xf] %vm1289_vm3, %v3996_v48  ;;  %v11436_v11 = vpop.f32.mrf.mxu0  ;;  %v4938_v0 = vld [vmem:[#allocation2 + $0x14] sm:$0x1]  ;;  %v4846_v22 = vsel %vm9944_vm4, %v4841_v3, %v4845_v41  ;;  %v4970_v43 = vsel %vm9956_vm7, %v9383_v37, %v4969_v8 }
 0x2e4   : > { %4701 = vrot.lane.b32.xlu1 %v4678_v53, %s9798_s14  ;;  %4743 = vrot.lane.b32.xlu0 %v4727_v15, %s9799_s21  ;;  %8737 = vst.msk [vmem:[%s10988_s30 + $0x20] sm:$0xf] %vm8728_vm11, %v8672_v55  ;;  %v8675_v52 = vpack.c.bf16 %v11436_v11, %v11436_v11  ;;  %v4818_v15 = vsel %vm9944_vm4, %v4813_v51, %v4817_v62  ;;  %v9384_v63 = vrot.slane %v4937_v56, 9  ;;  %v4973_v55 = vrot.slane %v4938_v0, 5  ;;  %v5082_v41 = vld [vmem:[#allocation2 + $0x1c] sm:$0x1] }
 0x2e5   : > { %v11444_v44 = vpop.f32.mrf.mxu0  ;;  %v5110_v62 = vshrl.u32 %v5081_v7, 16  ;;  %v5124_v51 = vshrl.u32 %v5083_v39, 16  ;;  %v5115_v0 = vrot.slane %v5113_v40, 5  ;;  %v5129_v3 = vrot.slane %v5127_v33, 5  ;;  %v5033_v37 = vld [vmem:[#allocation2 + $0x20] sm:$0xf] }
 0x2e6   : > { %v3998_v59 = vpop.permute.xlu1 %3997  ;;  %v4000_v26 = vpop.permute.xlu0 %3999  ;;  %8740 = vst.msk [vmem:[%s10988_s30 + $0x2c] sm:$0xf] %vm8728_vm11, %v8675_v52  ;;  %v8673_v12 = vpack.c.bf16 %v11444_v44, %v11444_v44  ;;  %v4974_v18 = vsel %vm9956_vm7, %v9384_v63, %v4973_v55  ;;  %v5138_v8 = vshrl.u32 %v5085_v27, 16 }
 0x2e7   : > { %4018 = vst.msk [vmem:[#allocation3 + $0x6c] sm:$0xf] %vm1289_vm3, %v3998_v59  ;;  %4019 = vst.msk [vmem:[#allocation3 + $0x70] sm:$0xf] %vm1289_vm3, %v4000_v26  ;;  %v11452_v24 = vpop.f32.mrf.mxu0  ;;  %v4941_v59 = vld [vmem:[#allocation2 + $0x20] sm:$0xe] }
 0x2e8   : > { %4745 = vrot.lane.b32.xlu1 %v4728_v6, %s9799_s21  ;;  %4747 = vrot.lane.b32.xlu0 %v4729_v54, %s9799_s21  ;;  %8738 = vst.msk [vmem:[%s10988_s30 + $0x24] sm:$0xf] %vm8728_vm11, %v8673_v12  ;;  %v8678_v5 = vpack.c.bf16 %v11452_v24, %v11452_v24  ;;  %v4942_v26 = vld [vmem:[#allocation2 + $0x24] sm:$0x1]  ;;  %v5096_v6 = vshrl.u32 %v5079_v34, 16  ;;  %v5099_v54 = vshll.u32 %v5079_v34, 16 }
 0x2e9   : > { %v11460_v20 = vpop.f32.mrf.mxu0  ;;  %v9386_v9 = vrot.slane %v4941_v59, 9  ;;  %v4981_v46 = vrot.slane %v4942_v26, 5  ;;  %v5112_v56 = vrot.slane %v5110_v62, 4  ;;  %v5141_v34 = vshll.u32 %v5085_v27, 16  ;;  %v5240_v62 = vld [vmem:[#allocation2 + $0x14] sm:$0x1] }
 0x2ea   : > { %v4002_v60 = vpop.permute.xlu1 %4001  ;;  %v4004_v31 = vpop.permute.xlu0 %4003  ;;  %8743 = vst.msk [vmem:[%s10988_s30 + $0x38] sm:$0xf] %vm8728_vm11, %v8678_v5  ;;  %v8676_v45 = vpack.c.bf16 %v11460_v20, %v11460_v20 }
 0x2eb   : > { %4020 = vst.msk [vmem:[#allocation3 + $0x74] sm:$0xf] %vm1289_vm3, %v4002_v60  ;;  %4021 = vst.msk [vmem:[#allocation3 + $0x78] sm:$0xf] %vm1289_vm3, %v4004_v31  ;;  %v11470_v16 = vpop.f32.mrf.mxu0  ;;  %v5098_v60 = vrot.slane %v5096_v6, 4  ;;  %v5101_v31 = vrot.slane %v5099_v54, 5  ;;  %v5116_v55 = vor.u32 %v5115_v0, %v5112_v56 }
 0x2ec   : > { %4749 = vrot.lane.b32.xlu1 %v4730_v58, %s9799_s21  ;;  %4903 = vrot.lane.b32.xlu0 %v4804_v10, %s12975_s22  ;;  %8741 = vst.msk [vmem:[%s10988_s30 + $0x30] sm:$0xf] %vm8728_vm11, %v8676_v45  ;;  %v8679_v47 = vpack.c.bf16 %v11470_v16, %v11470_v16  ;;  %v4978_v58 = vsel %vm9956_vm7, %v9385_v32, %v4977_v29  ;;  %v5080_v10 = vld [vmem:[#allocation2 + $0x14] sm:$0x1]  ;;  %v5086_v6 = vld [vmem:[#allocation2 + $0x2c] sm:$0x1] }
 0x2ed   : > { %v11478_v48 = vpop.f32.mrf.mxu0  ;;  %v4982_v45 = vsel %vm9956_vm7, %v9386_v9, %v4981_v46  ;;  %v5140_v54 = vrot.slane %v5138_v8, 4  ;;  %v5147_v39 = vshll.u32 %v5086_v6, 16  ;;  %v5034_v9 = vld [vmem:[#allocation2 + $0x28] sm:$0xf] }
 0x2ee   : > { %v4006_v14 = vpop.permute.xlu1 %4005  ;;  %v4088_v53 = vpop.permute.xlu0 %4087  ;;  %8744 = vst.msk [vmem:[%s10988_s30 + $0x3c] sm:$0xf] %vm8728_vm11, %v8679_v47  ;;  %v8677_v50 = vpack.c.bf16 %v11478_v48, %v11478_v48 }
 0x2ef   : > { %4022 = vst.msk [vmem:[#allocation3 + $0x7c] sm:$0xf] %vm1289_vm3, %v4006_v14  ;;  %v5102_v14 = vor.u32 %v5101_v31, %v5098_v60  ;;  %v5239_v31 = vld [vmem:[#allocation2 + $0x10] sm:$0xe] }
 0x2f0   : > { %4111 = vst.msk [vmem:[#allocation3 + $0x60] sm:$0xf] %vm1386_vm5, %v4088_v53  ;;  %4905 = vrot.lane.b32.xlu1 %v4818_v15, %s12975_s22  ;;  %4907 = vrot.lane.b32.xlu0 %v4832_v61, %s12975_s22  ;;  %v5105_v53 = vshll.u32 %v5080_v10, 16  ;;  %v5084_v15 = vld [vmem:[#allocation2 + $0x24] sm:$0x1]  ;;  %v5126_v61 = vrot.slane %v5124_v51, 4 }
 0x2f1   : > { %8742 = vst.msk [vmem:[%s10988_s30 + $0x34] sm:$0xf] %vm8728_vm11, %v8677_v50  ;;  %v5032_v50 = vld [vmem:[#allocation2 + $0x18] sm:$0xf]  ;;  %v5103_v59 = vrot.slane %v5102_v14, 4  ;;  %v9391_v10 = vrot.slane %v5239_v31, 9 }
 0x2f2   : > { %v4090_v35 = vpop.permute.xlu1 %4089  ;;  %v4092_v52 = vpop.permute.xlu0 %4091  ;;  %v5107_v63 = vrot.slane %v5105_v53, 5  ;;  %v5130_v26 = vor.u32 %v5129_v3, %v5126_v61  ;;  %v5244_v14 = vld [vmem:[#allocation2 + $0x24] sm:$0x1] }
 0x2f3   : > { %4112 = vst.msk [vmem:[#allocation3 + $0x64] sm:$0xf] %vm1386_vm5, %v4090_v35  ;;  %4113 = vst.msk [vmem:[#allocation3 + $0x68] sm:$0xf] %vm1386_vm5, %v4092_v52  ;;  %v5119_v35 = vshll.u32 %v5082_v41, 16  ;;  %v5133_v52 = vshll.u32 %v5084_v15, 16 }
 0x2f4   : > { %4909 = vrot.lane.b32.xlu1 %v4846_v22, %s12975_s22  ;;  %4999 = vrot.lane.b32.xlu0 %v4970_v43, %s12973_s23  ;;  %v5143_v22 = vrot.slane %v5141_v34, 5  ;;  %v5108_v46 = vsel %vm9944_vm4, %v5103_v59, %v5107_v63  ;;  %v5281_v8 = vrot.slane %v5244_v14, 5  ;;  %v5245_v34 = vld [vmem:[#allocation2 + $0x28] sm:$0xe] }
 0x2f5   : > { %v5121_v29 = vrot.slane %v5119_v35, 5  ;;  %v5135_v7 = vrot.slane %v5133_v52, 5  ;;  %v4641_v52 = vld [vmem:[#allocation2 + $0x28] sm:$0xe] }
 0x2f6   : > { %v4094_v12 = vpop.permute.xlu1 %4093  ;;  %v4096_v5 = vpop.permute.xlu0 %4095  ;;  %v5144_v60 = vor.u32 %v5143_v22, %v5140_v54  ;;  %v4783_v22 = vld [vmem:[#allocation2 + $0x28] sm:$0xf] }
 0x2f7   : > { %4114 = vst.msk [vmem:[#allocation3 + $0x6c] sm:$0xf] %vm1386_vm5, %v4094_v12  ;;  %4115 = vst.msk [vmem:[#allocation3 + $0x70] sm:$0xf] %vm1386_vm5, %v4096_v5  ;;  %v5117_v12 = vrot.slane %v5116_v55, 4  ;;  %v5131_v5 = vrot.slane %v5130_v26, 4 }
 0x2f8   : > { %5001 = vrot.lane.b32.xlu1 %v4974_v18, %s12973_s23  ;;  %5003 = vrot.lane.b32.xlu0 %v4978_v58, %s12973_s23  ;;  %v5149_v58 = vrot.slane %v5147_v39, 5  ;;  %v5145_v27 = vrot.slane %v5144_v60, 4  ;;  %v9394_v55 = vrot.slane %v5245_v34, 9  ;;  %v4848_v60 = vshrl.u32 %v4783_v22, 16  ;;  %v4731_v34 = vld [vmem:[#allocation2 + $0x28] sm:$0xf] }
 0x2f9   : > { %v5122_v51 = vsel %vm9944_vm4, %v5117_v12, %v5121_v29  ;;  %v5136_v33 = vsel %vm9944_vm4, %v5131_v5, %v5135_v7  ;;  %v4644_v29 = vld [vmem:[#allocation2 + $0x34] sm:$0x1]  ;;  %v9380_v7 = vrot.slane %v4641_v52, 9  ;;  %v4645_v12 = vld [vmem:[#allocation2 + $0x38] sm:$0xe]  ;;  %v4851_v31 = vshll.u32 %v4783_v22, 16 }
 0x2fa   : > { %v4098_v38 = vpop.permute.xlu1 %4097  ;;  %v4100_v47 = vpop.permute.xlu0 %4099  ;;  %v5150_v15 = vsel %vm9944_vm4, %v5145_v27, %v5149_v58  ;;  %v4646_v5 = vld [vmem:[#allocation2 + $0x3c] sm:$0x1]  ;;  %v4689_v58 = vrot.slane %v4644_v29, 5  ;;  %v4732_v22 = vld [vmem:[#allocation2 + $0x30] sm:$0xf] }
 0x2fb   : > { %4116 = vst.msk [vmem:[#allocation3 + $0x74] sm:$0xf] %vm1386_vm5, %v4098_v38  ;;  %4117 = vst.msk [vmem:[#allocation3 + $0x78] sm:$0xf] %vm1386_vm5, %v4100_v47  ;;  %v5242_v38 = vld [vmem:[#allocation2 + $0x1c] sm:$0x1] }
 0x2fc   : > { %5005 = vrot.lane.b32.xlu1 %v4982_v45, %s12973_s23  ;;  %5047 = vrot.lane.b32.xlu0 %v5031_v4, %s12971_s26  ;;  %v5273_v45 = vrot.slane %v5240_v62, 5  ;;  %v5241_v4 = vld [vmem:[#allocation2 + $0x18] sm:$0xe]  ;;  %v5243_v47 = vld [vmem:[#allocation2 + $0x20] sm:$0xe]  ;;  %v5277_v0 = vrot.slane %v5242_v38, 5 }
 0x2fd   : > { %v9392_v56 = vrot.slane %v5241_v4, 9  ;;  %v9393_v3 = vrot.slane %v5243_v47, 9  ;;  %v4693_v27 = vrot.slane %v4646_v5, 5  ;;  %v4850_v38 = vrot.slane %v4848_v60, 4  ;;  %v4788_v52 = vld [vmem:[#allocation2 + $0x3c] sm:$0x1] }
 0x2fe   : > { %v4102_v17 = vpop.permute.xlu1 %4101  ;;  %v4136_v36 = vpop.permute.xlu0 %4135  ;;  %v5274_v61 = vsel %vm9956_vm7, %v9391_v10, %v5273_v45  ;;  %v4785_v10 = vld [vmem:[#allocation2 + $0x30] sm:$0xf]  ;;  %v4853_v47 = vrot.slane %v4851_v31, 5 }
 0x2ff   : > { %4118 = vst.msk [vmem:[#allocation3 + $0x7c] sm:$0xf] %vm1386_vm5, %v4102_v17  ;;  %v4639_v17 = vld [vmem:[#allocation2 + $0x20] sm:$0xe]  ;;  %v5278_v59 = vsel %vm9956_vm7, %v9392_v56, %v5277_v0  ;;  %v5282_v26 = vsel %vm9956_vm7, %v9393_v3, %v5281_v8  ;;  %v4862_v14 = vshrl.u32 %v4785_v10, 16 }
 0x300   : > { %4159 = vst.msk [vmem:[#allocation3 + $0x60] sm:$0xf] %vm1436_vm6, %v4136_v36  ;;  %5049 = vrot.lane.b32.xlu1 %v5032_v50, %s12971_s26  ;;  %5051 = vrot.lane.b32.xlu0 %v5033_v37, %s12971_s26  ;;  %v5246_v50 = vld [vmem:[#allocation2 + $0x2c] sm:$0x1]  ;;  %v4640_v36 = vld [vmem:[#allocation2 + $0x24] sm:$0x1] }
 0x301   : > { %v5285_v35 = vrot.slane %v5246_v50, 5  ;;  %v9379_v6 = vrot.slane %v4639_v17, 9  ;;  %v4681_v54 = vrot.slane %v4640_v36, 5  ;;  %v4784_v0 = vld [vmem:[#allocation2 + $0x2c] sm:$0x1]  ;;  %v4854_v36 = vor.u32 %v4853_v47, %v4850_v38 }
 0x302   : > { %v4138_v43 = vpop.permute.xlu1 %4137  ;;  %v4140_v32 = vpop.permute.xlu0 %4139  ;;  %v4789_v3 = vld [vmem:[#allocation2 + $0x40] sm:$0xf] }
 0x303   : > { %4160 = vst.msk [vmem:[#allocation3 + $0x64] sm:$0xf] %vm1436_vm6, %v4138_v43  ;;  %4161 = vst.msk [vmem:[#allocation3 + $0x68] sm:$0xf] %vm1436_vm6, %v4140_v32  ;;  %v4642_v43 = vld [vmem:[#allocation2 + $0x2c] sm:$0x1]  ;;  %v4682_v62 = vsel %vm9956_vm7, %v9379_v6, %v4681_v54 }
 0x304   : > { %5053 = vrot.lane.b32.xlu1 %v5034_v9, %s12971_s26  ;;  %5207 = vrot.lane.b32.xlu0 %v5108_v46, %s12969_s27  ;;  %v4643_v32 = vld [vmem:[#allocation2 + $0x30] sm:$0xe]  ;;  %v5286_v46 = vsel %vm9956_vm7, %v9394_v55, %v5285_v35  ;;  %v4864_v55 = vrot.slane %v4862_v14, 4  ;;  %v4890_v6 = vshrl.u32 %v4789_v3, 16  ;;  %v4893_v54 = vshll.u32 %v4789_v3, 16 }
 0x305   : > { %v4855_v5 = vrot.slane %v4854_v36, 4  ;;  %v4944_v14 = vld [vmem:[#allocation2 + $0x2c] sm:$0x1]  ;;  %v4947_v3 = vld [vmem:[#allocation2 + $0x38] sm:$0xe] }
 0x306   : > { %v4142_v40 = vpop.permute.xlu1 %4141  ;;  %v4144_v18 = vpop.permute.xlu0 %4143  ;;  %v4892_v31 = vrot.slane %v4890_v6, 4  ;;  %v4985_v36 = vrot.slane %v4944_v14, 5 }
 0x307   : > { %4162 = vst.msk [vmem:[#allocation3 + $0x6c] sm:$0xf] %vm1436_vm6, %v4142_v40  ;;  %4163 = vst.msk [vmem:[#allocation3 + $0x70] sm:$0xf] %vm1436_vm6, %v4144_v18  ;;  %v4685_v40 = vrot.slane %v4642_v43, 5  ;;  %v9381_v18 = vrot.slane %v4643_v32, 9 }
 0x308   : > { %5209 = vrot.lane.b32.xlu1 %v5122_v51, %s12969_s27  ;;  %5211 = vrot.lane.b32.xlu0 %v5136_v33, %s12969_s27  ;;  %v4787_v51 = vld [vmem:[#allocation2 + $0x38] sm:$0xf]  ;;  %v9382_v33 = vrot.slane %v4645_v12, 9 }
 0x309   : > { %v4690_v56 = vsel %vm9956_vm7, %v9381_v18, %v4689_v58  ;;  %v4733_v12 = vld [vmem:[#allocation2 + $0x38] sm:$0xf] }
 0x30a   : > { %v4146_v53 = vpop.permute.xlu1 %4145  ;;  %v4148_v41 = vpop.permute.xlu0 %4147  ;;  %v4694_v8 = vsel %vm9956_vm7, %v9382_v33, %v4693_v27  ;;  %v4943_v33 = vld [vmem:[#allocation2 + $0x28] sm:$0xe]  ;;  %v4734_v27 = vld [vmem:[#allocation2 + $0x40] sm:$0xf] }
 0x30b   : > { %4164 = vst.msk [vmem:[#allocation3 + $0x74] sm:$0xf] %vm1436_vm6, %v4146_v53  ;;  %4165 = vst.msk [vmem:[#allocation3 + $0x78] sm:$0xf] %vm1436_vm6, %v4148_v41  ;;  %v4865_v53 = vshll.u32 %v4785_v10, 16  ;;  %v4686_v41 = vsel %vm9956_vm7, %v9380_v7, %v4685_v40 }
 0x30c   : > { %5213 = vrot.lane.b32.xlu1 %v5150_v15, %s12969_s27  ;;  %5303 = vrot.lane.b32.xlu0 %v5274_v61, %s9804_s28  ;;  %v4876_v15 = vshrl.u32 %v4787_v51, 16  ;;  %v4879_v61 = vshll.u32 %v4787_v51, 16 }
 0x30d   : > { %v4867_v35 = vrot.slane %v4865_v53, 5 }
 0x30e   : > { %v4150_v37 = vpop.permute.xlu1 %4149  ;;  %v4296_v63 = vpop.permute.xlu0 %4295 }
 0x30f   : > { %4166 = vst.msk [vmem:[#allocation3 + $0x7c] sm:$0xf] %vm1436_vm6, %v4150_v37  ;;  %v4857_v37 = vshll.u32 %v4784_v0, 16  ;;  %v4868_v7 = vor.u32 %v4867_v35, %v4864_v55  ;;  %v4946_v0 = vld [vmem:[#allocation2 + $0x34] sm:$0x1]  ;;  %v9389_v35 = vrot.slane %v4947_v3, 9 }
 0x310   : > { %4319 = vst.msk [vmem:[#allocation3 + $0x60] sm:$0xf] %vm1597_vm8, %v4296_v63  ;;  %5305 = vrot.lane.b32.xlu1 %v5278_v59, %s9804_s28  ;;  %5307 = vrot.lane.b32.xlu0 %v5282_v26, %s9804_s28  ;;  %v4786_v63 = vld [vmem:[#allocation2 + $0x34] sm:$0x1]  ;;  %v4878_v59 = vrot.slane %v4876_v15, 4  ;;  %v4881_v26 = vrot.slane %v4879_v61, 5 }
 0x311   : > { %v4859_v29 = vrot.slane %v4857_v37, 5  ;;  %v4948_v37 = vld [vmem:[#allocation2 + $0x3c] sm:$0x1]  ;;  %v4989_v55 = vrot.slane %v4946_v0, 5  ;;  %v5035_v3 = vld [vmem:[#allocation2 + $0x30] sm:$0xf] }
 0x312   : > { %v4298_v39 = vpop.permute.xlu1 %4297  ;;  %v4300_v9 = vpop.permute.xlu0 %4299  ;;  %v4882_v60 = vor.u32 %v4881_v26, %v4878_v59  ;;  %v4950_v59 = vld [vmem:[#allocation2 + $0x44] sm:$0x1] }
 0x313   : > { %4320 = vst.msk [vmem:[#allocation3 + $0x64] sm:$0xf] %vm1597_vm8, %v4298_v39  ;;  %4321 = vst.msk [vmem:[#allocation3 + $0x68] sm:$0xf] %vm1597_vm8, %v4300_v9  ;;  %v4871_v39 = vshll.u32 %v4786_v63, 16  ;;  %v4885_v9 = vshll.u32 %v4788_v52, 16 }
 0x314   : > { %5309 = vrot.lane.b32.xlu1 %v5286_v46, %s9804_s28  ;;  %4703 = vrot.lane.b32.xlu0 %v4682_v62, %s9798_s14  ;;  %v4790_v46 = vld [vmem:[#allocation2 + $0x44] sm:$0x1]  ;;  %v4895_v62 = vrot.slane %v4893_v54, 5  ;;  %v4883_v38 = vrot.slane %v4882_v60, 4  ;;  %v4949_v52 = vld [vmem:[#allocation2 + $0x40] sm:$0xe] }
 0x315   : > { %v4899_v40 = vshll.u32 %v4790_v46, 16  ;;  %v4873_v10 = vrot.slane %v4871_v39, 5  ;;  %v4887_v51 = vrot.slane %v4885_v9, 5  ;;  %v5089_v39 = vld [vmem:[#allocation2 + $0x38] sm:$0xf]  ;;  %v9390_v9 = vrot.slane %v4949_v52, 9 }
 0x316   : > { %v4302_v45 = vpop.permute.xlu1 %4301  ;;  %v4304_v4 = vpop.permute.xlu0 %4303  ;;  %v4896_v47 = vor.u32 %v4895_v62, %v4892_v31  ;;  %v5091_v46 = vld [vmem:[#allocation2 + $0x40] sm:$0xf]  ;;  %v5093_v31 = vld [vmem:[#allocation2 + $0x48] sm:$0xf] }
 0x317   : > { %4322 = vst.msk [vmem:[#allocation3 + $0x6c] sm:$0xf] %vm1597_vm8, %v4302_v45  ;;  %4323 = vst.msk [vmem:[#allocation3 + $0x70] sm:$0xf] %vm1597_vm8, %v4304_v4  ;;  %v4860_v45 = vsel %vm9944_vm4, %v4855_v5, %v4859_v29  ;;  %v4869_v4 = vrot.slane %v4868_v7, 4  ;;  %v4901_v53 = vrot.slane %v4899_v40, 5 }
 0x318   : > { %4705 = vrot.lane.b32.xlu1 %v4686_v41, %s9798_s14  ;;  %4707 = vrot.lane.b32.xlu0 %v4690_v56, %s9798_s14  ;;  %v9387_v41 = vrot.slane %v4943_v33, 9  ;;  %v4945_v56 = vld [vmem:[#allocation2 + $0x30] sm:$0xe]  ;;  %v5088_v5 = vld [vmem:[#allocation2 + $0x34] sm:$0x1]  ;;  %v5194_v14 = vshrl.u32 %v5093_v31, 16 }
 0x319   : > { %v9388_v63 = vrot.slane %v4945_v56, 9 }
 0x31a   : > { %v4306_v50 = vpop.permute.xlu1 %4305  ;;  %v4308_v17 = vpop.permute.xlu0 %4307  ;;  %v4986_v29 = vsel %vm9956_vm7, %v9387_v41, %v4985_v36  ;;  %v5092_v36 = vld [vmem:[#allocation2 + $0x44] sm:$0x1] }
 0x31b   : > { %4324 = vst.msk [vmem:[#allocation3 + $0x74] sm:$0xf] %vm1597_vm8, %v4306_v50  ;;  %4325 = vst.msk [vmem:[#allocation3 + $0x78] sm:$0xf] %vm1597_vm8, %v4308_v17  ;;  %v4888_v50 = vsel %vm9944_vm4, %v4883_v38, %v4887_v51  ;;  %v4897_v17 = vrot.slane %v4896_v47, 4  ;;  %v5166_v51 = vshrl.u32 %v5089_v39, 16 }
 0x31c   : > { %4709 = vrot.lane.b32.xlu1 %v4694_v8, %s9798_s14  ;;  %4751 = vrot.lane.b32.xlu0 %v4731_v34, %s9799_s21  ;;  %v5087_v8 = vld [vmem:[#allocation2 + $0x30] sm:$0xf]  ;;  %v4874_v34 = vsel %vm9944_vm4, %v4869_v4, %v4873_v10  ;;  %v5183_v4 = vshll.u32 %v5091_v46, 16  ;;  %v5161_v38 = vshll.u32 %v5088_v5, 16  ;;  %v5090_v47 = vld [vmem:[#allocation2 + $0x3c] sm:$0x1] }
 0x31d   : > { %v5152_v26 = vshrl.u32 %v5087_v8, 16  ;;  %v5155_v7 = vshll.u32 %v5087_v8, 16 }
 0x31e   : > { %v4310_v43 = vpop.permute.xlu1 %4309  ;;  %v4392_v32 = vpop.permute.xlu0 %4391 }
 0x31f   : > { %4326 = vst.msk [vmem:[#allocation3 + $0x7c] sm:$0xf] %vm1597_vm8, %v4310_v43  ;;  %v4993_v43 = vrot.slane %v4948_v37, 5  ;;  %v5154_v60 = vrot.slane %v5152_v26, 4  ;;  %v5157_v33 = vrot.slane %v5155_v7, 5  ;;  %v5175_v37 = vshll.u32 %v5090_v47, 16 }
 0x320   : > { %4415 = vst.msk [vmem:[#allocation3 + $0x60] sm:$0xf] %vm1694_vm10, %v4392_v32  ;;  %4753 = vrot.lane.b32.xlu1 %v4732_v22, %s9799_s21  ;;  %4755 = vrot.lane.b32.xlu0 %v4733_v12, %s9799_s21  ;;  %v4902_v32 = vsel %vm9944_vm4, %v4897_v17, %v4901_v53  ;;  %v4997_v12 = vrot.slane %v4950_v59, 5  ;;  %v5197_v53 = vshll.u32 %v5093_v31, 16  ;;  %v5185_v17 = vrot.slane %v5183_v4, 5 }
 0x321   : > { %v5158_v8 = vor.u32 %v5157_v33, %v5154_v60  ;;  %v5163_v26 = vrot.slane %v5161_v38, 5  ;;  %v5189_v7 = vshll.u32 %v5092_v36, 16  ;;  %v5177_v60 = vrot.slane %v5175_v37, 5  ;;  %v5383_v4 = vld [vmem:[#allocation2] sm:$0xf] }
 0x322   : > { %v4394_v18 = vpop.permute.xlu1 %4393  ;;  %v4396_v58 = vpop.permute.xlu0 %4395  ;;  %v4998_v0 = vsel %vm9956_vm7, %v9390_v9, %v4997_v12 }
 0x323   : > { %4416 = vst.msk [vmem:[#allocation3 + $0x64] sm:$0xf] %vm1694_vm10, %v4394_v18  ;;  %4417 = vst.msk [vmem:[#allocation3 + $0x68] sm:$0xf] %vm1694_vm10, %v4396_v58  ;;  %v4990_v18 = vsel %vm9956_vm7, %v9388_v63, %v4989_v55  ;;  %v4994_v58 = vsel %vm9956_vm7, %v9389_v35, %v4993_v43  ;;  %v5196_v63 = vrot.slane %v5194_v14, 4  ;;  %v5199_v55 = vrot.slane %v5197_v53, 5 }
 0x324   : > { %4757 = vrot.lane.b32.xlu1 %v4734_v27, %s9799_s21  ;;  %4911 = vrot.lane.b32.xlu0 %v4860_v45, %s12975_s22  ;;  %v5169_v27 = vshll.u32 %v5089_v39, 16  ;;  %v5180_v45 = vshrl.u32 %v5091_v46, 16  ;;  %v5159_v43 = vrot.slane %v5158_v8, 4  ;;  %v5038_v39 = vld [vmem:[#allocation2 + $0x48] sm:$0xf]  ;;  %v5403_v8 = vshll.u32 %v5383_v4, 16 }
 0x325   : > { %v5200_v9 = vor.u32 %v5199_v55, %v5196_v63 }
 0x326   : > { %v4398_v15 = vpop.permute.xlu1 %4397  ;;  %v4400_v61 = vpop.permute.xlu0 %4399  ;;  %v5164_v31 = vsel %vm9944_vm4, %v5159_v43, %v5163_v26  ;;  %v5335_v26 = vld [vmem:[#allocation2] sm:$0xf] }
 0x327   : > { %4418 = vst.msk [vmem:[#allocation3 + $0x6c] sm:$0xf] %vm1694_vm10, %v4398_v15  ;;  %4419 = vst.msk [vmem:[#allocation3 + $0x70] sm:$0xf] %vm1694_vm10, %v4400_v61  ;;  %v5168_v61 = vrot.slane %v5166_v51, 4  ;;  %v5201_v51 = vrot.slane %v5200_v9, 4 }
 0x328   : > { %4913 = vrot.lane.b32.xlu1 %v4874_v34, %s12975_s22  ;;  %4915 = vrot.lane.b32.xlu0 %v4888_v50, %s12975_s22  ;;  %v5171_v34 = vrot.slane %v5169_v27, 5  ;;  %v5182_v50 = vrot.slane %v5180_v45, 4 }
 0x32a   : > { %v4402_v6 = vpop.permute.xlu1 %4401  ;;  %v4404_v54 = vpop.permute.xlu0 %4403  ;;  %v9741_v22 = vld [vmem:[#allocation3 + $0x60] sm:$0xff]  }
 0x32b   : > { %4420 = vst.msk [vmem:[#allocation3 + $0x74] sm:$0xf] %vm1694_vm10, %v4402_v6  ;;  %4421 = vst.msk [vmem:[#allocation3 + $0x78] sm:$0xf] %vm1694_vm10, %v4404_v54  ;;  %9608 = vmatprep.mubr.bf16.mxu0 %v9741_v22  ;;  %v5094_v6 = vld [vmem:[#allocation2 + $0x4c] sm:$0x1] }
 0x32c   : > { %4917 = vrot.lane.b32.xlu1 %v4902_v32, %s12975_s22  ;;  %5007 = vrot.lane.b32.xlu0 %v4986_v29, %s12973_s23  ;;  %v5036_v54 = vld [vmem:[#allocation2 + $0x38] sm:$0xf]  ;;  %v5037_v22 = vld [vmem:[#allocation2 + $0x40] sm:$0xf]  ;;  %v5172_v32 = vor.u32 %v5171_v34, %v5168_v61  ;;  %v5186_v29 = vor.u32 %v5185_v17, %v5182_v50  ;;  %v5203_v46 = vshll.u32 %v5094_v6, 16  ;;  %s13033_s22 = smov 76  }
 0x32d   : > { %v5252_v61 = vld [vmem:[#allocation2 + $0x44] sm:$0x1]  ;;  %v5385_v34 = vld [vmem:[#allocation2 + $0x8] sm:$0xf] }
 0x32e   : > { %v4406_v62 = vpop.permute.xlu1 %4405  ;;  %v4440_v40 = vpop.permute.xlu0 %4439  ;;  %v9742_v10 = vld [vmem:[#allocation3 + $0x68] sm:$0xff]   ;;  %v5205_v33 = vrot.slane %v5203_v46, 5 }
 0x32f   : > { %4422 = vst.msk [vmem:[#allocation3 + $0x7c] sm:$0xf] %vm1694_vm10, %v4406_v62  ;;  %9609 = vmatmul.mubr.bf16.gmra.mxu0 %v9742_v10  ;;  %v5173_v62 = vrot.slane %v5172_v32, 4  ;;  %v5248_v10 = vld [vmem:[#allocation2 + $0x34] sm:$0x1] }
 0x330   : > { %4463 = vst.msk [vmem:[#allocation3 + $0x80] sm:$0xf] %vm815_vm9, %v4440_v40  ;;  %5009 = vrot.lane.b32.xlu1 %v4990_v18, %s12973_s23  ;;  %5011 = vrot.lane.b32.xlu0 %v4994_v58, %s12973_s23  ;;  %v5187_v40 = vrot.slane %v5186_v29, 4  ;;  %v5191_v18 = vrot.slane %v5189_v7, 5  ;;  %v5247_v58 = vld [vmem:[#allocation2 + $0x30] sm:$0xe] }
 0x331   : > { %v5178_v38 = vsel %vm9944_vm4, %v5173_v62, %v5177_v60  ;;  %v9395_v14 = vrot.slane %v5247_v58, 9  ;;  %v5289_v53 = vrot.slane %v5248_v10, 5  ;;  %v5253_v29 = vld [vmem:[#allocation2 + $0x48] sm:$0xe]  ;;  %v5254_v7 = vld [vmem:[#allocation2 + $0x4c] sm:$0x1] }
 0x332   : > { %v4442_v41 = vpop.permute.xlu1 %4441  ;;  %v4444_v56 = vpop.permute.xlu0 %4443  ;;  %v9743_v15 = vld [vmem:[#allocation3 + $0x70] sm:$0xff]   ;;  %v5192_v47 = vsel %vm9944_vm4, %v5187_v40, %v5191_v18  ;;  %v9398_v60 = vrot.slane %v5253_v29, 9  ;;  %v5336_v10 = vld [vmem:[#allocation2 + $0x8] sm:$0xf] }
 0x333   : > { %4464 = vst.msk [vmem:[#allocation3 + $0x84] sm:$0xf] %vm815_vm9, %v4442_v41  ;;  %4465 = vst.msk [vmem:[#allocation3 + $0x88] sm:$0xf] %vm815_vm9, %v4444_v56  ;;  %9612 = vmatprep.mubr.bf16.mxu0 %v9743_v15  ;;  %v5249_v41 = vld [vmem:[#allocation2 + $0x38] sm:$0xe]  ;;  %v5206_v15 = vsel %vm9944_vm4, %v5201_v51, %v5205_v33  ;;  %v5290_v36 = vsel %vm9956_vm7, %v9395_v14, %v5289_v53 }
 0x334   : > { %5013 = vrot.lane.b32.xlu1 %v4998_v0, %s12973_s23  ;;  %5055 = vrot.lane.b32.xlu0 %v5035_v3, %s12971_s26  ;;  %v5250_v56 = vld [vmem:[#allocation2 + $0x3c] sm:$0x1]  ;;  %v5251_v0 = vld [vmem:[#allocation2 + $0x40] sm:$0xe]  ;;  %v5400_v3 = vshrl.u32 %v5383_v4, 16  ;;  %v9396_v37 = vrot.slane %v5249_v41, 9 }
 0x335   : > { %v5293_v63 = vrot.slane %v5250_v56, 5  ;;  %v9397_v55 = vrot.slane %v5251_v0, 9  ;;  %v5386_v33 = vld [vmem:[#allocation2 + $0xc] sm:$0x1]  ;;  %v5388_v4 = vld [vmem:[#allocation2 + $0x14] sm:$0x1] }
 0x336   : > { %v4446_v35 = vpop.permute.xlu1 %4445  ;;  %v4448_v52 = vpop.permute.xlu0 %4447  ;;  %v9744_v59 = vld [vmem:[#allocation3 + $0x78] sm:$0xff]   ;;  %v5402_v6 = vrot.slane %v5400_v3, 4  ;;  %v5423_v3 = vshll.u32 %v5386_v33, 16  ;;  %s13032_s23 = smov 64  }
 0x337   : > { %4466 = vst.msk [vmem:[#allocation3 + $0x8c] sm:$0xf] %vm815_vm9, %v4446_v35  ;;  %4467 = vst.msk [vmem:[#allocation3 + $0x90] sm:$0xf] %vm815_vm9, %v4448_v52  ;;  %9613 = vmatmul.mubr.bf16.gmra.mxu0 %v9744_v59  ;;  %v5297_v35 = vrot.slane %v5252_v61, 5  ;;  %v5414_v52 = vshrl.u32 %v5385_v34, 16  ;;  %v5294_v9 = vsel %vm9956_vm7, %v9396_v37, %v5293_v63 }
 0x338   : > { %5057 = vrot.lane.b32.xlu1 %v5036_v54, %s12971_s26  ;;  %5059 = vrot.lane.b32.xlu0 %v5037_v22, %s12971_s26  ;;  %v5387_v59 = vld [vmem:[#allocation2 + $0x10] sm:$0xf]  ;;  %v5405_v54 = vrot.slane %v5403_v8, 5  ;;  %v5417_v22 = vshll.u32 %v5385_v34, 16  ;;  %v5437_v8 = vshll.u32 %v5388_v4, 16 }
 0x339   : > { %v5428_v46 = vshrl.u32 %v5387_v59, 16  ;;  %v5298_v51 = vsel %vm9956_vm7, %v9397_v55, %v5297_v35  ;;  %v5337_v34 = vld [vmem:[#allocation2 + $0x10] sm:$0xf]  ;;  %v5390_v63 = vld [vmem:[#allocation2 + $0x1c] sm:$0x1] }
 0x33a   : > { %v4450_v12 = vpop.permute.xlu1 %4449  ;;  %v4452_v5 = vpop.permute.xlu0 %4451  ;;  %v5406_v62 = vor.u32 %v5405_v54, %v5402_v6  ;;  %v5543_v6 = vld [vmem:[#allocation2] sm:$0xe]  ;;  %v5544_v54 = vld [vmem:[#allocation2 + $0x4] sm:$0x1]  ;;  %v5545_v33 = vld [vmem:[#allocation2 + $0x8] sm:$0xe] }
 0x33b   : > { %4468 = vst.msk [vmem:[#allocation3 + $0x94] sm:$0xf] %vm815_vm9, %v4450_v12  ;;  %4469 = vst.msk [vmem:[#allocation3 + $0x98] sm:$0xf] %vm815_vm9, %v4452_v5  ;;  %v5431_v12 = vshll.u32 %v5387_v59, 16  ;;  %v5425_v59 = vrot.slane %v5423_v3, 5 }
 0x33c   : > { %5061 = vrot.lane.b32.xlu1 %v5038_v39, %s12971_s26  ;;  %5215 = vrot.lane.b32.xlu0 %v5164_v31, %s12969_s27  ;;  %v5384_v39 = vld [vmem:[#allocation2 + $0x4] sm:$0x1]  ;;  %v5389_v5 = vld [vmem:[#allocation2 + $0x18] sm:$0xf]  ;;  %v5301_v31 = vrot.slane %v5254_v7, 5  ;;  %v5407_v56 = vrot.slane %v5406_v62, 4 }
 0x33d   : > { %v5409_v40 = vshll.u32 %v5384_v39, 16  ;;  %v5442_v14 = vshrl.u32 %v5389_v5, 16  ;;  %v5445_v53 = vshll.u32 %v5389_v5, 16  ;;  %v5451_v7 = vshll.u32 %v5390_v63, 16  ;;  %v5549_v4 = vld [vmem:[#allocation2 + $0x18] sm:$0xe] }
 0x33e   : > { %v4454_v27 = vpop.permute.xlu1 %4453  ;;  %v4600_v45 = vpop.permute.xlu0 %4599  ;;  %v5302_v41 = vsel %vm9956_vm7, %v9398_v60, %v5301_v31  ;;  %v9399_v39 = vrot.slane %v5543_v6, 9  ;;  %v9400_v3 = vrot.slane %v5545_v33, 9  ;;  %s13031_s26 = smov 52  }
 0x33f   : > { %4470 = vst.msk [vmem:[#allocation3 + $0x9c] sm:$0xf] %vm815_vm9, %v4454_v27  ;;  %v5416_v27 = vrot.slane %v5414_v52, 4  ;;  %v5411_v0 = vrot.slane %v5409_v40, 5  ;;  %v5447_v37 = vrot.slane %v5445_v53, 5  ;;  %v5453_v62 = vrot.slane %v5451_v7, 5 }
 0x340   : > { %4623 = vst.msk [vmem:[#allocation3 + $0x80] sm:$0xf] %vm979_vm0, %v4600_v45  ;;  %5217 = vrot.lane.b32.xlu1 %v5178_v38, %s12969_s27  ;;  %5219 = vrot.lane.b32.xlu0 %v5192_v47, %s12969_s27  ;;  %v5419_v45 = vrot.slane %v5417_v22, 5  ;;  %v5430_v38 = vrot.slane %v5428_v46, 4  ;;  %v5433_v47 = vrot.slane %v5431_v12, 5 }
 0x341   : > { %v5412_v55 = vsel %vm9944_vm4, %v5407_v56, %v5411_v0  ;;  %v5338_v22 = vld [vmem:[#allocation2 + $0x18] sm:$0xf]  ;;  %v5687_v40 = vld [vmem:[#allocation2 + $0x8] sm:$0xf] }
 0x342   : > { %v4602_v50 = vpop.permute.xlu1 %4601  ;;  %v4604_v17 = vpop.permute.xlu0 %4603 }
 0x343   : > { %4624 = vst.msk [vmem:[#allocation3 + $0x84] sm:$0xf] %vm979_vm0, %v4602_v50  ;;  %4625 = vst.msk [vmem:[#allocation3 + $0x88] sm:$0xf] %vm979_vm0, %v4604_v17  ;;  %v5420_v50 = vor.u32 %v5419_v45, %v5416_v27  ;;  %v5434_v17 = vor.u32 %v5433_v47, %v5430_v38  ;;  %v5550_v38 = vld [vmem:[#allocation2 + $0x1c] sm:$0x1] }
 0x344   : > { %5221 = vrot.lane.b32.xlu1 %v5206_v15, %s12969_s27  ;;  %5311 = vrot.lane.b32.xlu0 %v5290_v36, %s9804_s28  ;;  %v5444_v36 = vrot.slane %v5442_v14, 4  ;;  %v5704_v47 = vshrl.u32 %v5687_v40, 16  ;;  %v5707_v14 = vshll.u32 %v5687_v40, 16  ;;  %s13030_s27 = smov 40  }
 0x346   : > { %v4606_v43 = vpop.permute.xlu1 %4605  ;;  %v4608_v32 = vpop.permute.xlu0 %4607  ;;  %v5448_v29 = vor.u32 %v5447_v37, %v5444_v36  ;;  %v5706_v36 = vrot.slane %v5704_v47, 4  ;;  %v5709_v37 = vrot.slane %v5707_v14, 5  ;;  %v5694_v14 = vld [vmem:[#allocation2 + $0x24] sm:$0x1] }
 0x347   : > { %4626 = vst.msk [vmem:[#allocation3 + $0x8c] sm:$0xf] %vm979_vm0, %v4606_v43  ;;  %4627 = vst.msk [vmem:[#allocation3 + $0x90] sm:$0xf] %vm979_vm0, %v4608_v32  ;;  %v5421_v43 = vrot.slane %v5420_v50, 4  ;;  %v5435_v32 = vrot.slane %v5434_v17, 4 }
 0x348   : > { %5313 = vrot.lane.b32.xlu1 %v5294_v9, %s9804_s28  ;;  %5351 = vrot.lane.b32.xlu0 %v5335_v26, %s9816_s11  ;;  %v5439_v26 = vrot.slane %v5437_v8, 5  ;;  %v5577_v9 = vrot.slane %v5544_v54, 5  ;;  %v5449_v31 = vrot.slane %v5448_v29, 4  ;;  %v9402_v8 = vrot.slane %v5549_v4, 9  ;;  %v5693_v54 = vld [vmem:[#allocation2 + $0x20] sm:$0xf] }
 0x349   : > { %v5426_v5 = vsel %vm9944_vm4, %v5421_v43, %v5425_v59  ;;  %v5688_v59 = vld [vmem:[#allocation2 + $0xc] sm:$0x1]  ;;  %v5639_v43 = vld [vmem:[#allocation2 + $0x8] sm:$0xf]  ;;  %v5710_v7 = vor.u32 %v5709_v37, %v5706_v36  ;;  %v5749_v40 = vshll.u32 %v5693_v54, 16 }
 0x34a   : > { %v4610_v18 = vpop.permute.xlu1 %4609  ;;  %v4612_v58 = vpop.permute.xlu0 %4611  ;;  %v5440_v60 = vsel %vm9944_vm4, %v5435_v32, %v5439_v26  ;;  %v5454_v53 = vsel %vm9944_vm4, %v5449_v31, %v5453_v62  ;;  %v5746_v62 = vshrl.u32 %v5693_v54, 16  ;;  %v5848_v37 = vld [vmem:[#allocation2 + $0xc] sm:$0x1] }
 0x34b   : > { %4628 = vst.msk [vmem:[#allocation3 + $0x94] sm:$0xf] %vm979_vm0, %v4610_v18  ;;  %4629 = vst.msk [vmem:[#allocation3 + $0x98] sm:$0xf] %vm979_vm0, %v4612_v58  ;;  %v5546_v18 = vld [vmem:[#allocation2 + $0xc] sm:$0x1] }
 0x34c   : > { %5353 = vrot.lane.b32.xlu1 %v5336_v10, %s9816_s11  ;;  %5315 = vrot.lane.b32.xlu0 %v5298_v51, %s9804_s28  ;;  %v5547_v58 = vld [vmem:[#allocation2 + $0x10] sm:$0xe]  ;;  %v5548_v10 = vld [vmem:[#allocation2 + $0x14] sm:$0x1]  ;;  %v5578_v51 = vsel %vm9956_vm7, %v9399_v39, %v5577_v9  ;;  %v5713_v39 = vshll.u32 %v5688_v59, 16 }
 0x34d   : > { %v9401_v56 = vrot.slane %v5547_v58, 9  ;;  %v5585_v0 = vrot.slane %v5548_v10, 5  ;;  %v5690_v9 = vld [vmem:[#allocation2 + $0x14] sm:$0x1]  ;;  %v5849_v59 = vld [vmem:[#allocation2 + $0x10] sm:$0xe] }
 0x34e   : > { %v4614_v15 = vpop.permute.xlu1 %4613  ;;  %v4696_v61 = vpop.permute.xlu0 %4695  ;;  %v5715_v33 = vrot.slane %v5713_v39, 5 }
 0x34f   : > { %4630 = vst.msk [vmem:[#allocation3 + $0x9c] sm:$0xf] %vm979_vm0, %v4614_v15  ;;  %v5689_v15 = vld [vmem:[#allocation2 + $0x10] sm:$0xf] }
 0x350   : > { %4719 = vst.msk [vmem:[#allocation3 + $0x80] sm:$0xf] %vm1079_vm1, %v4696_v61  ;;  %5317 = vrot.lane.b32.xlu1 %v5302_v41, %s9804_s28  ;;  %5355 = vrot.lane.b32.xlu0 %v5337_v34, %s9816_s11  ;;  %v5581_v41 = vrot.slane %v5546_v18, 5  ;;  %s13027_s28 = smov 4   ;;  %v5691_v61 = vld [vmem:[#allocation2 + $0x18] sm:$0xf] }
 0x351   : > { %v5589_v34 = vrot.slane %v5550_v38, 5  ;;  %v5718_v63 = vshrl.u32 %v5689_v15, 16  ;;  %v5732_v26 = vshrl.u32 %v5691_v61, 16  ;;  %v5735_v6 = vshll.u32 %v5691_v61, 16  ;;  %v5640_v18 = vld [vmem:[#allocation2 + $0x10] sm:$0xf] }
 0x352   : > { %v4698_v35 = vpop.permute.xlu1 %4697  ;;  %v4700_v52 = vpop.permute.xlu0 %4699  ;;  %v5711_v38 = vrot.slane %v5710_v7, 4  ;;  %v5852_v7 = vld [vmem:[#allocation2 + $0x1c] sm:$0x1] }
 0x353   : > { %4720 = vst.msk [vmem:[#allocation3 + $0x84] sm:$0xf] %vm1079_vm1, %v4698_v35  ;;  %4721 = vst.msk [vmem:[#allocation3 + $0x88] sm:$0xf] %vm1079_vm1, %v4700_v52  ;;  %v5582_v35 = vsel %vm9956_vm7, %v9400_v3, %v5581_v41  ;;  %v5586_v52 = vsel %vm9956_vm7, %v9401_v56, %v5585_v0  ;;  %v5737_v31 = vrot.slane %v5735_v6, 5  ;;  %v5751_v41 = vrot.slane %v5749_v40, 5 }
 0x354   : > { %5357 = vrot.lane.b32.xlu1 %v5338_v22, %s9816_s11  ;;  %5511 = vrot.lane.b32.xlu0 %v5412_v55, %s9806_s15  ;;  %v5721_v55 = vshll.u32 %v5689_v15, 16  ;;  %v5590_v22 = vsel %vm9956_vm7, %v9402_v8, %v5589_v34  ;;  %v5755_v3 = vshll.u32 %v5694_v14, 16  ;;  %v5642_v8 = vld [vmem:[#allocation2 + $0x20] sm:$0xf]  ;;  %v5716_v34 = vsel %vm9944_vm4, %v5711_v38, %v5715_v33  ;;  %v5854_v38 = vld [vmem:[#allocation2 + $0x24] sm:$0x1] }
 0x356   : > { %v4702_v46 = vpop.permute.xlu1 %4701  ;;  %v4744_v12 = vpop.permute.xlu0 %4743 }
 0x357   : > { %4722 = vst.msk [vmem:[#allocation3 + $0x8c] sm:$0xf] %vm1079_vm1, %v4702_v46  ;;  %v5720_v46 = vrot.slane %v5718_v63, 4 }
 0x358   : > { %4767 = vst.msk [vmem:[#allocation3 + $0x80] sm:$0xf] %vm1128_vm2, %v4744_v12  ;;  %5513 = vrot.lane.b32.xlu1 %v5426_v5, %s9806_s15  ;;  %5515 = vrot.lane.b32.xlu0 %v5440_v60, %s9806_s15  ;;  %v5723_v12 = vrot.slane %v5721_v55, 5  ;;  %v5692_v5 = vld [vmem:[#allocation2 + $0x1c] sm:$0x1]  ;;  %v5734_v60 = vrot.slane %v5732_v26, 4 }
 0x359   : > { %v5741_v4 = vshll.u32 %v5692_v5, 16 }
 0x35a   : > { %v4746_v27 = vpop.permute.xlu1 %4745  ;;  %v4748_v45 = vpop.permute.xlu0 %4747  ;;  %v5738_v47 = vor.u32 %v5737_v31, %v5734_v60 }
 0x35b   : > { %4768 = vst.msk [vmem:[#allocation3 + $0x84] sm:$0xf] %vm1128_vm2, %v4746_v27  ;;  %4769 = vst.msk [vmem:[#allocation3 + $0x88] sm:$0xf] %vm1128_vm2, %v4748_v45  ;;  %v5724_v27 = vor.u32 %v5723_v12, %v5720_v46  ;;  %v5727_v45 = vshll.u32 %v5690_v9, 16  ;;  %v5743_v61 = vrot.slane %v5741_v4, 5 }
 0x35c   : > { %5517 = vrot.lane.b32.xlu1 %v5454_v53, %s9806_s15  ;;  %5607 = vrot.lane.b32.xlu0 %v5578_v51, %s13027_s28  ;;  %v5641_v51 = vld [vmem:[#allocation2 + $0x18] sm:$0xf]  ;;  %v5748_v53 = vrot.slane %v5746_v62, 4  ;;  %v9408_v46 = vrot.slane %v5849_v59, 9  ;;  %v5853_v4 = vld [vmem:[#allocation2 + $0x20] sm:$0xe] }
 0x35d   : > { %v5729_v15 = vrot.slane %v5727_v45, 5 }
 0x35e   : > { %v4750_v50 = vpop.permute.xlu1 %4749  ;;  %v4904_v17 = vpop.permute.xlu0 %4903  ;;  %v5752_v36 = vor.u32 %v5751_v41, %v5748_v53 }
 0x35f   : > { %4770 = vst.msk [vmem:[#allocation3 + $0x8c] sm:$0xf] %vm1128_vm2, %v4750_v50  ;;  %v5725_v50 = vrot.slane %v5724_v27, 4  ;;  %v5889_v27 = vrot.slane %v5852_v7, 5  ;;  %v5943_v7 = vld [vmem:[#allocation2 + $0x10] sm:$0xf] }
 0x360   : > { %4927 = vst.msk [vmem:[#allocation3 + $0x80] sm:$0xf] %vm1289_vm3, %v4904_v17  ;;  %5609 = vrot.lane.b32.xlu1 %v5582_v35, %s13027_s28  ;;  %5611 = vrot.lane.b32.xlu0 %v5586_v52, %s13027_s28  ;;  %v5739_v17 = vrot.slane %v5738_v47, 4  ;;  %v5757_v35 = vrot.slane %v5755_v3, 5  ;;  %v5847_v52 = vld [vmem:[#allocation2 + $0x8] sm:$0xe] }
 0x361   : > { %v5730_v26 = vsel %vm9944_vm4, %v5725_v50, %v5729_v15  ;;  %v5753_v54 = vrot.slane %v5752_v36, 4  ;;  %v9407_v9 = vrot.slane %v5847_v52, 9  ;;  %v5893_v36 = vrot.slane %v5854_v38, 5  ;;  %v5945_v38 = vld [vmem:[#allocation2 + $0x20] sm:$0xf] }
 0x362   : > { %v4906_v32 = vpop.permute.xlu1 %4905  ;;  %v4908_v29 = vpop.permute.xlu0 %4907  ;;  %v5744_v6 = vsel %vm9944_vm4, %v5739_v17, %v5743_v61  ;;  %v9410_v17 = vrot.slane %v5853_v4, 9 }
 0x363   : > { %4928 = vst.msk [vmem:[#allocation3 + $0x84] sm:$0xf] %vm1289_vm3, %v4906_v32  ;;  %4929 = vst.msk [vmem:[#allocation3 + $0x88] sm:$0xf] %vm1289_vm3, %v4908_v29  ;;  %v5991_v32 = vld [vmem:[#allocation2 + $0x10] sm:$0xf] }
 0x364   : > { %5613 = vrot.lane.b32.xlu1 %v5590_v22, %s13027_s28  ;;  %5655 = vrot.lane.b32.xlu0 %v5639_v43, %s13028_s17  ;;  %v5881_v22 = vrot.slane %v5848_v37, 5  ;;  %v5850_v43 = vld [vmem:[#allocation2 + $0x14] sm:$0x1]  ;;  %v5851_v29 = vld [vmem:[#allocation2 + $0x18] sm:$0xe]  ;;  %v6008_v62 = vshrl.u32 %v5991_v32, 16 }
 0x365   : > { %v5885_v31 = vrot.slane %v5850_v43, 5  ;;  %v6011_v40 = vshll.u32 %v5991_v32, 16  ;;  %v9409_v33 = vrot.slane %v5851_v29, 9  ;;  %v5894_v29 = vsel %vm9956_vm7, %v9410_v17, %v5893_v36  ;;  %v5391_v17 = vld [vmem:[#allocation2 + $0x20] sm:$0xf] }
 0x366   : > { %v4910_v58 = vpop.permute.xlu1 %4909  ;;  %v5000_v10 = vpop.permute.xlu0 %4999  ;;  %v6010_v15 = vrot.slane %v6008_v62, 4  ;;  %v5946_v36 = vld [vmem:[#allocation2 + $0x28] sm:$0xf] }
 0x367   : > { %4930 = vst.msk [vmem:[#allocation3 + $0x8c] sm:$0xf] %vm1289_vm3, %v4910_v58  ;;  %v6013_v61 = vrot.slane %v6011_v40, 5  ;;  %v5890_v50 = vsel %vm9956_vm7, %v9409_v33, %v5889_v27 }
 0x368   : > { %5023 = vst.msk [vmem:[#allocation3 + $0x80] sm:$0xf] %vm1386_vm5, %v5000_v10  ;;  %5657 = vrot.lane.b32.xlu1 %v5640_v18, %s13028_s17  ;;  %5659 = vrot.lane.b32.xlu0 %v5641_v51, %s13028_s17  ;;  %v5993_v18 = vld [vmem:[#allocation2 + $0x18] sm:$0xf]  ;;  %v5758_v10 = vsel %vm9944_vm4, %v5753_v54, %v5757_v35  ;;  %v5882_v51 = vsel %vm9956_vm7, %v9407_v9, %v5881_v22  ;;  %v5994_v54 = vld [vmem:[#allocation2 + $0x1c] sm:$0x1] }
 0x369   : > { %v6022_v14 = vshrl.u32 %v5993_v18, 16  ;;  %v6025_v3 = vshll.u32 %v5993_v18, 16 }
 0x36a   : > { %v5002_v56 = vpop.permute.xlu1 %5001  ;;  %v5004_v0 = vpop.permute.xlu0 %5003 }
 0x36b   : > { %5024 = vst.msk [vmem:[#allocation3 + $0x84] sm:$0xf] %vm1386_vm5, %v5002_v56  ;;  %5025 = vst.msk [vmem:[#allocation3 + $0x88] sm:$0xf] %vm1386_vm5, %v5004_v0  ;;  %v5992_v0 = vld [vmem:[#allocation2 + $0x14] sm:$0x1] }
 0x36c   : > { %5661 = vrot.lane.b32.xlu1 %v5642_v8, %s13028_s17  ;;  %5815 = vrot.lane.b32.xlu0 %v5716_v34, %s13029_s18  ;;  %v5886_v34 = vsel %vm9956_vm7, %v9408_v46, %v5885_v31  ;;  %v6017_v35 = vshll.u32 %v5992_v0, 16  ;;  %v6024_v22 = vrot.slane %v6022_v14, 4  ;;  %v6027_v43 = vrot.slane %v6025_v3, 5 }
 0x36d   : > { %v6031_v31 = vshll.u32 %v5994_v54, 16  ;;  %v5459_v54 = vshll.u32 %v5391_v17, 16 }
 0x36e   : > { %v5006_v63 = vpop.permute.xlu1 %5005  ;;  %v5048_v55 = vpop.permute.xlu0 %5047  ;;  %v6019_v33 = vrot.slane %v6017_v35, 5  ;;  %v6028_v27 = vor.u32 %v6027_v43, %v6024_v22 }
 0x36f   : > { %5026 = vst.msk [vmem:[#allocation3 + $0x8c] sm:$0xf] %vm1386_vm5, %v5006_v63  ;;  %v11708_v39 = vpop.f32.mrf.mxu0  ;;  %v5995_v63 = vld [vmem:[#allocation2 + $0x20] sm:$0xf] }
 0x370   : > { %5071 = vst.msk [vmem:[#allocation3 + $0x80] sm:$0xf] %vm1436_vm6, %v5048_v55  ;;  %5817 = vrot.lane.b32.xlu1 %v5730_v26, %s13029_s18  ;;  %5819 = vrot.lane.b32.xlu0 %v5744_v6, %s13029_s18  ;;  %v8682_v12 = vpack.c.bf16 %v11708_v39, %v11708_v39  ;;  %v6014_v6 = vor.u32 %v6013_v61, %v6010_v15  ;;  %v6036_v9 = vshrl.u32 %v5995_v63, 16  ;;  %v6039_v46 = vshll.u32 %v5995_v63, 16 }
 0x371   : > { %v11714_v58 = vpop.f32.mrf.mxu0 }
 0x372   : > { %v5050_v5 = vpop.permute.xlu1 %5049  ;;  %v5052_v60 = vpop.permute.xlu0 %5051  ;;  %8747 = vst.msk [vmem:[%s10988_s30 + $0x48] sm:$0xf] %vm8728_vm11, %v8682_v12  ;;  %v8680_v45 = vpack.c.bf16 %v11714_v58, %v11714_v58  ;;  %v6038_v14 = vrot.slane %v6036_v9, 4 }
 0x373   : > { %5072 = vst.msk [vmem:[#allocation3 + $0x84] sm:$0xf] %vm1436_vm6, %v5050_v5  ;;  %5073 = vst.msk [vmem:[#allocation3 + $0x88] sm:$0xf] %vm1436_vm6, %v5052_v60  ;;  %v11726_v47 = vpop.f32.mrf.mxu0  ;;  %v5997_v5 = vld [vmem:[#allocation2 + $0x28] sm:$0xf] }
 0x374   : > { %5821 = vrot.lane.b32.xlu1 %v5758_v10, %s13029_s18  ;;  %5911 = vrot.lane.b32.xlu0 %v5882_v51, %s13030_s27  ;;  %8745 = vst.msk [vmem:[%s10988_s30 + $0x40] sm:$0xf] %vm8728_vm11, %v8680_v45  ;;  %v8683_v53 = vpack.c.bf16 %v11726_v47, %v11726_v47  ;;  %v5944_v10 = vld [vmem:[#allocation2 + $0x18] sm:$0xf]  ;;  %v6015_v51 = vrot.slane %v6014_v6, 4  ;;  %v5456_v6 = vshrl.u32 %v5391_v17, 16 }
 0x375   : > { %v11734_v8 = vpop.f32.mrf.mxu0  ;;  %v5996_v45 = vld [vmem:[#allocation2 + $0x24] sm:$0x1] }
 0x376   : > { %v5054_v41 = vpop.permute.xlu1 %5053  ;;  %v5208_v56 = vpop.permute.xlu0 %5207  ;;  %8748 = vst.msk [vmem:[%s10988_s30 + $0x4c] sm:$0xf] %vm8728_vm11, %v8683_v53  ;;  %v8681_v37 = vpack.c.bf16 %v11734_v8, %v11734_v8  ;;  %v6041_v53 = vrot.slane %v6039_v46, 5  ;;  %v6045_v15 = vshll.u32 %v5996_v45, 16  ;;  %v5339_v46 = vld [vmem:[#allocation2 + $0x20] sm:$0xf] }
 0x377   : > { %5074 = vst.msk [vmem:[#allocation3 + $0x8c] sm:$0xf] %vm1436_vm6, %v5054_v41  ;;  %v11746_v55 = vpop.f32.mrf.mxu0  ;;  %v6050_v41 = vshrl.u32 %v5997_v5, 16 }
 0x378   : > { %5231 = vst.msk [vmem:[#allocation3 + $0x80] sm:$0xf] %vm1597_vm8, %v5208_v56  ;;  %5913 = vrot.lane.b32.xlu1 %v5886_v34, %s13030_s27  ;;  %5915 = vrot.lane.b32.xlu0 %v5890_v50, %s13030_s27  ;;  %v8686_v52 = vpack.c.bf16 %v11746_v55, %v11746_v55  ;;  %v6053_v56 = vshll.u32 %v5997_v5, 16  ;;  %v6029_v34 = vrot.slane %v6028_v27, 4  ;;  %v6033_v50 = vrot.slane %v6031_v31, 5 }
 0x379   : > { %8746 = vst.msk [vmem:[%s10988_s30 + $0x44] sm:$0xf] %vm8728_vm11, %v8681_v37  ;;  %v11754_v32 = vpop.f32.mrf.mxu0  ;;  %v6020_v37 = vsel %vm9944_vm4, %v6015_v51, %v6019_v33  ;;  %v6042_v63 = vor.u32 %v6041_v53, %v6038_v14  ;;  %v6052_v35 = vrot.slane %v6050_v41, 4  ;;  %v6154_v51 = vld [vmem:[#allocation2 + $0x1c] sm:$0x1]  ;;  %v5458_v33 = vrot.slane %v5456_v6, 4 }
 0x37a   : > { %v5210_v59 = vpop.permute.xlu1 %5209  ;;  %v5212_v26 = vpop.permute.xlu0 %5211  ;;  %8751 = vst.msk [vmem:[%s10988_s30 + $0x58] sm:$0xf] %vm8728_vm11, %v8686_v52  ;;  %v8684_v12 = vpack.c.bf16 %v11754_v32, %v11754_v32  ;;  %v6055_v52 = vrot.slane %v6053_v56, 5  ;;  %v6034_v9 = vsel %vm9944_vm4, %v6029_v34, %v6033_v50  ;;  %v5461_v27 = vrot.slane %v5459_v54, 5  ;;  %v5395_v34 = vld [vmem:[#allocation2 + $0x30] sm:$0xf] }
 0x37b   : > { %5232 = vst.msk [vmem:[#allocation3 + $0x84] sm:$0xf] %vm1597_vm8, %v5210_v59  ;;  %5233 = vst.msk [vmem:[#allocation3 + $0x88] sm:$0xf] %vm1597_vm8, %v5212_v26  ;;  %v11764_v60 = vpop.f32.mrf.mxu0  ;;  %v5998_v59 = vld [vmem:[#allocation2 + $0x2c] sm:$0x1] }
 0x37c   : > { %5917 = vrot.lane.b32.xlu1 %v5894_v29, %s13030_s27  ;;  %5959 = vrot.lane.b32.xlu0 %v5943_v7, %s13031_s26  ;;  %8749 = vst.msk [vmem:[%s10988_s30 + $0x50] sm:$0xf] %vm8728_vm11, %v8684_v12  ;;  %v8687_v62 = vpack.c.bf16 %v11764_v60, %v11764_v60  ;;  %v6047_v26 = vrot.slane %v6045_v15, 5  ;;  %v6151_v29 = vld [vmem:[#allocation2 + $0x10] sm:$0xe]  ;;  %v6043_v12 = vrot.slane %v6042_v63, 4  ;;  %v6056_v5 = vor.u32 %v6055_v52, %v6052_v35 }
 0x37d   : > { %v11772_v4 = vpop.f32.mrf.mxu0  ;;  %v5393_v7 = vld [vmem:[#allocation2 + $0x28] sm:$0xf]  ;;  %v6059_v31 = vshll.u32 %v5998_v59, 16  ;;  %v6189_v17 = vrot.slane %v6154_v51, 5  ;;  %v5462_v35 = vor.u32 %v5461_v27, %v5458_v33  ;;  %v6156_v51 = vld [vmem:[#allocation2 + $0x24] sm:$0x1] }
 0x37e   : > { %v5214_v40 = vpop.permute.xlu1 %5213  ;;  %v5304_v18 = vpop.permute.xlu0 %5303  ;;  %8752 = vst.msk [vmem:[%s10988_s30 + $0x5c] sm:$0xf] %vm8728_vm11, %v8687_v62  ;;  %v8685_v0 = vpack.c.bf16 %v11772_v4, %v11772_v4  ;;  %v6152_v62 = vld [vmem:[#allocation2 + $0x14] sm:$0x1]  ;;  %v5470_v45 = vshrl.u32 %v5393_v7, 16  ;;  %v5473_v41 = vshll.u32 %v5393_v7, 16  ;;  %v6048_v56 = vsel %vm9944_vm4, %v6043_v12, %v6047_v26 }
 0x37f   : > { %5234 = vst.msk [vmem:[#allocation3 + $0x8c] sm:$0xf] %vm1597_vm8, %v5214_v40  ;;  %v6153_v40 = vld [vmem:[#allocation2 + $0x18] sm:$0xe]  ;;  %v6061_v15 = vrot.slane %v6059_v31, 5 }
 0x380   : > { %5327 = vst.msk [vmem:[#allocation3 + $0x80] sm:$0xf] %vm1694_vm10, %v5304_v18  ;;  %5961 = vrot.lane.b32.xlu1 %v5944_v10, %s13031_s26  ;;  %5963 = vrot.lane.b32.xlu0 %v5945_v38, %s13031_s26  ;;  %v5340_v18 = vld [vmem:[#allocation2 + $0x28] sm:$0xf]  ;;  %v9415_v10 = vrot.slane %v6151_v29, 9  ;;  %v9416_v50 = vrot.slane %v6153_v40, 9 }
 0x381   : > { %8750 = vst.msk [vmem:[%s10988_s30 + $0x54] sm:$0xf] %vm8728_vm11, %v8685_v0  ;;  %v6057_v0 = vrot.slane %v6056_v5, 4  ;;  %v5472_v59 = vrot.slane %v5470_v45, 4  ;;  %v5475_v6 = vrot.slane %v5473_v41, 5  ;;  %v5487_v29 = vshll.u32 %v5395_v34, 16 }
 0x382   : > { %v5306_v61 = vpop.permute.xlu1 %5305  ;;  %v5308_v3 = vpop.permute.xlu0 %5307  ;;  %v5397_v7 = vld [vmem:[#allocation2 + $0x38] sm:$0xf]  ;;  %v6155_v12 = vld [vmem:[#allocation2 + $0x20] sm:$0xe]  ;;  %v5396_v33 = vld [vmem:[#allocation2 + $0x34] sm:$0x1] }
 0x383   : > { %5328 = vst.msk [vmem:[#allocation3 + $0x84] sm:$0xf] %vm1694_vm10, %v5306_v61  ;;  %5329 = vst.msk [vmem:[#allocation3 + $0x88] sm:$0xf] %vm1694_vm10, %v5308_v3  ;;  %v6185_v61 = vrot.slane %v6152_v62, 5  ;;  %v6062_v26 = vsel %vm9944_vm4, %v6057_v0, %v6061_v15  ;;  %v5463_v62 = vrot.slane %v5462_v35, 4 }
 0x384   : > { %5965 = vrot.lane.b32.xlu1 %v5946_v36, %s13031_s26  ;;  %6119 = vrot.lane.b32.xlu0 %v6020_v37, %s13032_s23  ;;  %v5392_v3 = vld [vmem:[#allocation2 + $0x24] sm:$0x1]  ;;  %v5489_v45 = vrot.slane %v5487_v29, 5  ;;  %v9417_v41 = vrot.slane %v6155_v12, 9  ;;  %v5551_v12 = vld [vmem:[#allocation2 + $0x20] sm:$0xe] }
 0x385   : > { %v5465_v52 = vshll.u32 %v5392_v3, 16  ;;  %v6186_v54 = vsel %vm9956_vm7, %v9415_v10, %v6185_v61  ;;  %v6193_v3 = vrot.slane %v6156_v51, 5 }
 0x386   : > { %v5310_v22 = vpop.permute.xlu1 %5309  ;;  %v4704_v43 = vpop.permute.xlu0 %4703 }
 0x387   : > { %5330 = vst.msk [vmem:[#allocation3 + $0x8c] sm:$0xf] %vm1694_vm10, %v5310_v22  ;;  %v5394_v22 = vld [vmem:[#allocation2 + $0x2c] sm:$0x1]  ;;  %v5467_v40 = vrot.slane %v5465_v52, 5 }
 0x388   : > { %4723 = vst.msk [vmem:[#allocation3 + $0x90] sm:$0xf] %vm1079_vm1, %v4704_v43  ;;  %6121 = vrot.lane.b32.xlu1 %v6034_v9, %s13032_s23  ;;  %5359 = vrot.lane.b32.xlu0 %v5339_v46, %s9816_s11  ;;  %v5484_v43 = vshrl.u32 %v5395_v34, 16  ;;  %v6190_v9 = vsel %vm9956_vm7, %v9416_v50, %v6189_v17  ;;  %v5341_v46 = vld [vmem:[#allocation2 + $0x30] sm:$0xf]  ;;  %v5479_v10 = vshll.u32 %v5394_v22, 16 }
 0x389   : > { %v5468_v15 = vsel %vm9944_vm4, %v5463_v62, %v5467_v40  ;;  %v6157_v34 = vld [vmem:[#allocation2 + $0x28] sm:$0xe]  ;;  %v5493_v50 = vshll.u32 %v5396_v33, 16  ;;  %v5398_v52 = vld [vmem:[#allocation2 + $0x3c] sm:$0x1]  ;;  %v9403_v40 = vrot.slane %v5551_v12, 9 }
 0x38a   : > { %v4706_v38 = vpop.permute.xlu1 %4705  ;;  %v4708_v14 = vpop.permute.xlu0 %4707  ;;  %v9745_v53 = vld [vmem:[#allocation3 + $0x80] sm:$0xff]   ;;  %v5486_v27 = vrot.slane %v5484_v43, 4  ;;  %v5481_v61 = vrot.slane %v5479_v10, 5 }
 0x38b   : > { %4724 = vst.msk [vmem:[#allocation3 + $0x94] sm:$0xf] %vm1079_vm1, %v4706_v38  ;;  %4725 = vst.msk [vmem:[#allocation3 + $0x98] sm:$0xf] %vm1079_vm1, %v4708_v14  ;;  %9616 = vmatprep.mubr.bf16.mxu1 %v9745_v53  ;;  %v5498_v38 = vshrl.u32 %v5397_v7, 16  ;;  %v5501_v14 = vshll.u32 %v5397_v7, 16 }
 0x38c   : > { %5361 = vrot.lane.b32.xlu1 %v5340_v18, %s9816_s11  ;;  %6123 = vrot.lane.b32.xlu0 %v6048_v56, %s13032_s23  ;;  %v5476_v18 = vor.u32 %v5475_v6, %v5472_v59  ;;  %v5342_v53 = vld [vmem:[#allocation2 + $0x38] sm:$0xf]  ;;  %v5495_v43 = vrot.slane %v5493_v50, 5 }
 0x38d   : > { %v5503_v35 = vrot.slane %v5501_v14, 5  ;;  %v5554_v14 = vld [vmem:[#allocation2 + $0x2c] sm:$0x1] }
 0x38e   : > { %v4710_v36 = vpop.permute.xlu1 %4709  ;;  %v4752_v37 = vpop.permute.xlu0 %4751  ;;  %v9746_v63 = vld [vmem:[#allocation3 + $0x88] sm:$0xff]   ;;  %v5477_v17 = vrot.slane %v5476_v18, 4 }
 0x38f   : > { %4726 = vst.msk [vmem:[#allocation3 + $0x9c] sm:$0xf] %vm1079_vm1, %v4710_v36  ;;  %9617 = vmatmul.mubr.bf16.vlgmr.msra.gmra.mxu1 %v9746_v63  ;;  %v6158_v36 = vld [vmem:[#allocation2 + $0x2c] sm:$0x1]  ;;  %v5500_v63 = vrot.slane %v5498_v38, 4 }
 0x390   : > { %4771 = vst.msk [vmem:[#allocation3 + $0x90] sm:$0xf] %vm1128_vm2, %v4752_v37  ;;  %6125 = vrot.lane.b32.xlu1 %v6062_v26, %s13032_s23  ;;  %6215 = vrot.lane.b32.xlu0 %v6186_v54, %s13033_s22  ;;  %v5490_v37 = vor.u32 %v5489_v45, %v5486_v27  ;;  %v6194_v26 = vsel %vm9956_vm7, %v9417_v41, %v6193_v3  ;;  %v9418_v54 = vrot.slane %v6157_v34, 9  ;;  %v6197_v22 = vrot.slane %v6158_v36, 5  ;;  %v5553_v45 = vld [vmem:[#allocation2 + $0x28] sm:$0xe] }
 0x391   : > { %v5482_v29 = vsel %vm9944_vm4, %v5477_v17, %v5481_v61  ;;  %v5695_v38 = vld [vmem:[#allocation2 + $0x28] sm:$0xf]  ;;  %v5556_v41 = vld [vmem:[#allocation2 + $0x34] sm:$0x1]  ;;  %v9404_v3 = vrot.slane %v5553_v45, 9 }
 0x392   : > { %v4754_v5 = vpop.permute.xlu1 %4753  ;;  %v4756_v31 = vpop.permute.xlu0 %4755  ;;  %v5491_v7 = vrot.slane %v5490_v37, 4  ;;  %v6198_v10 = vsel %vm9956_vm7, %v9418_v54, %v6197_v22  ;;  %v5558_v34 = vld [vmem:[#allocation2 + $0x3c] sm:$0x1]  ;;  %v5760_v50 = vshrl.u32 %v5695_v38, 16  ;;  %v5763_v17 = vshll.u32 %v5695_v38, 16 }
 0x393   : > { %4772 = vst.msk [vmem:[#allocation3 + $0x94] sm:$0xf] %vm1128_vm2, %v4754_v5  ;;  %4773 = vst.msk [vmem:[#allocation3 + $0x98] sm:$0xf] %vm1128_vm2, %v4756_v31  ;;  %v5552_v5 = vld [vmem:[#allocation2 + $0x24] sm:$0x1] }
 0x394   : > { %6217 = vrot.lane.b32.xlu1 %v6190_v9, %s13033_s22  ;;  %5363 = vrot.lane.b32.xlu0 %v5341_v46, %s9816_s11  ;;  %v5504_v9 = vor.u32 %v5503_v35, %v5500_v63  ;;  %v5507_v46 = vshll.u32 %v5398_v52, 16  ;;  %v5593_v18 = vrot.slane %v5552_v5, 5  ;;  %v5496_v51 = vsel %vm9944_vm4, %v5491_v7, %v5495_v43  ;;  %v5697_v52 = vld [vmem:[#allocation2 + $0x30] sm:$0xf]  ;;  %v5696_v43 = vld [vmem:[#allocation2 + $0x2c] sm:$0x1] }
 0x395   : > { %v5597_v37 = vrot.slane %v5554_v14, 5  ;;  %v5601_v35 = vrot.slane %v5556_v41, 5  ;;  %v5765_v7 = vrot.slane %v5763_v17, 5  ;;  %v5698_v38 = vld [vmem:[#allocation2 + $0x34] sm:$0x1] }
 0x396   : > { %v4758_v56 = vpop.permute.xlu1 %4757  ;;  %v4912_v0 = vpop.permute.xlu0 %4911  ;;  %v5505_v33 = vrot.slane %v5504_v9, 4  ;;  %v5509_v27 = vrot.slane %v5507_v46, 5  ;;  %v5594_v61 = vsel %vm9956_vm7, %v9403_v40, %v5593_v18  ;;  %v5774_v9 = vshrl.u32 %v5697_v52, 16  ;;  %v5701_v40 = vld [vmem:[#allocation2 + $0x40] sm:$0xf] }
 0x397   : > { %4774 = vst.msk [vmem:[#allocation3 + $0x9c] sm:$0xf] %vm1128_vm2, %v4758_v56  ;;  %v5557_v56 = vld [vmem:[#allocation2 + $0x38] sm:$0xe]  ;;  %v5777_v46 = vshll.u32 %v5697_v52, 16  ;;  %v5598_v12 = vsel %vm9956_vm7, %v9404_v3, %v5597_v37  ;;  %v5769_v18 = vshll.u32 %v5696_v43, 16 }
 0x398   : > { %4931 = vst.msk [vmem:[#allocation3 + $0x90] sm:$0xf] %vm1289_vm3, %v4912_v0  ;;  %5365 = vrot.lane.b32.xlu1 %v5342_v53, %s9816_s11  ;;  %5519 = vrot.lane.b32.xlu0 %v5468_v15, %s9806_s15  ;;  %v5555_v53 = vld [vmem:[#allocation2 + $0x30] sm:$0xe]  ;;  %v5510_v36 = vsel %vm9944_vm4, %v5505_v33, %v5509_v27  ;;  %v5643_v27 = vld [vmem:[#allocation2 + $0x28] sm:$0xf] }
 0x399   : > { %v9405_v63 = vrot.slane %v5555_v53, 9  ;;  %v5776_v14 = vrot.slane %v5774_v9, 4  ;;  %v5779_v53 = vrot.slane %v5777_v46, 5  ;;  %v5700_v41 = vld [vmem:[#allocation2 + $0x3c] sm:$0x1]  ;;  %v5771_v17 = vrot.slane %v5769_v18, 5 }
 0x39a   : > { %v4914_v59 = vpop.permute.xlu1 %4913  ;;  %v4916_v6 = vpop.permute.xlu0 %4915  ;;  %v5783_v37 = vshll.u32 %v5698_v38, 16  ;;  %v5856_v18 = vld [vmem:[#allocation2 + $0x2c] sm:$0x1]  ;;  %v5858_v38 = vld [vmem:[#allocation2 + $0x34] sm:$0x1] }
 0x39b   : > { %4932 = vst.msk [vmem:[#allocation3 + $0x94] sm:$0xf] %vm1289_vm3, %v4914_v59  ;;  %4933 = vst.msk [vmem:[#allocation3 + $0x98] sm:$0xf] %vm1289_vm3, %v4916_v6  ;;  %v5699_v59 = vld [vmem:[#allocation2 + $0x38] sm:$0xf]  ;;  %v5602_v5 = vsel %vm9956_vm7, %v9405_v63, %v5601_v35 }
 0x39c   : > { %5521 = vrot.lane.b32.xlu1 %v5482_v29, %s9806_s15  ;;  %6219 = vrot.lane.b32.xlu0 %v6194_v26, %s13033_s22  ;;  %v9406_v6 = vrot.slane %v5557_v56, 9  ;;  %v5605_v26 = vrot.slane %v5558_v34, 5  ;;  %v5762_v29 = vrot.slane %v5760_v50, 4  ;;  %v5644_v50 = vld [vmem:[#allocation2 + $0x30] sm:$0xf]  ;;  %v5797_v63 = vshll.u32 %v5700_v41, 16 }
 0x39d   : > { %v5645_v35 = vld [vmem:[#allocation2 + $0x38] sm:$0xf]  ;;  %v5785_v9 = vrot.slane %v5783_v37, 5 }
 0x39e   : > { %v4918_v31 = vpop.permute.xlu1 %4917  ;;  %v5008_v62 = vpop.permute.xlu0 %5007  ;;  %v5606_v33 = vsel %vm9956_vm7, %v9406_v6, %v5605_v26  ;;  %v5766_v45 = vor.u32 %v5765_v7, %v5762_v29  ;;  %v5646_v29 = vld [vmem:[#allocation2 + $0x40] sm:$0xf]  ;;  %v5799_v46 = vrot.slane %v5797_v63, 5 }
 0x39f   : > { %4934 = vst.msk [vmem:[#allocation3 + $0x9c] sm:$0xf] %vm1289_vm3, %v4918_v31  ;;  %v5788_v31 = vshrl.u32 %v5699_v59, 16  ;;  %v5861_v63 = vld [vmem:[#allocation2 + $0x40] sm:$0xe] }
 0x3a0   : > { %5027 = vst.msk [vmem:[#allocation3 + $0x90] sm:$0xf] %vm1386_vm5, %v5008_v62  ;;  %6221 = vrot.lane.b32.xlu1 %v6198_v10, %s13033_s22  ;;  %5523 = vrot.lane.b32.xlu0 %v5496_v51, %s9806_s15  ;;  %v5791_v62 = vshll.u32 %v5699_v59, 16  ;;  %v5767_v52 = vrot.slane %v5766_v45, 4  ;;  %v5857_v45 = vld [vmem:[#allocation2 + $0x30] sm:$0xe] }
 0x3a1   : > { %v5790_v56 = vrot.slane %v5788_v31, 4 }
 0x3a2   : > { %v5010_v0 = vpop.permute.xlu1 %5009  ;;  %v5012_v15 = vpop.permute.xlu0 %5011 }
 0x3a3   : > { %5028 = vst.msk [vmem:[#allocation3 + $0x94] sm:$0xf] %vm1386_vm5, %v5010_v0  ;;  %5029 = vst.msk [vmem:[#allocation3 + $0x98] sm:$0xf] %vm1386_vm5, %v5012_v15  ;;  %v5793_v0 = vrot.slane %v5791_v62, 5  ;;  %v5802_v15 = vshrl.u32 %v5701_v40, 16 }
 0x3a4   : > { %5525 = vrot.lane.b32.xlu1 %v5510_v36, %s9806_s15  ;;  %5615 = vrot.lane.b32.xlu0 %v5594_v61, %s13027_s28  ;;  %v5805_v61 = vshll.u32 %v5701_v40, 16  ;;  %v5780_v36 = vor.u32 %v5779_v53, %v5776_v14  ;;  %v5855_v40 = vld [vmem:[#allocation2 + $0x28] sm:$0xe] }
 0x3a5   : > { %v5794_v59 = vor.u32 %v5793_v0, %v5790_v56  ;;  %v5804_v6 = vrot.slane %v5802_v15, 4  ;;  %v5859_v0 = vld [vmem:[#allocation2 + $0x38] sm:$0xe]  ;;  %v5860_v15 = vld [vmem:[#allocation2 + $0x3c] sm:$0x1] }
 0x3a6   : > { %v5014_v54 = vpop.permute.xlu1 %5013  ;;  %v5056_v22 = vpop.permute.xlu0 %5055  ;;  %v5807_v26 = vrot.slane %v5805_v61, 5  ;;  %v5781_v7 = vrot.slane %v5780_v36, 4  ;;  %v5999_v61 = vld [vmem:[#allocation2 + $0x30] sm:$0xf]  ;;  %v9413_v36 = vrot.slane %v5859_v0, 9  ;;  %v5905_v37 = vrot.slane %v5860_v15, 5 }
 0x3a7   : > { %5030 = vst.msk [vmem:[#allocation3 + $0x9c] sm:$0xf] %vm1386_vm5, %v5014_v54  ;;  %v5702_v54 = vld [vmem:[#allocation2 + $0x44] sm:$0x1] }
 0x3a8   : > { %5075 = vst.msk [vmem:[#allocation3 + $0x90] sm:$0xf] %vm1436_vm6, %v5056_v22  ;;  %5617 = vrot.lane.b32.xlu1 %v5598_v12, %s13027_s28  ;;  %5619 = vrot.lane.b32.xlu0 %v5602_v5, %s13027_s28  ;;  %v5772_v12 = vsel %vm9944_vm4, %v5767_v52, %v5771_v17  ;;  %v5795_v5 = vrot.slane %v5794_v59, 4  ;;  %v5808_v31 = vor.u32 %v5807_v26, %v5804_v6  ;;  %v5811_v62 = vshll.u32 %v5702_v54, 16  ;;  %v6001_v54 = vld [vmem:[#allocation2 + $0x38] sm:$0xf] }
 0x3a9   : > { %v5786_v14 = vsel %vm9944_vm4, %v5781_v7, %v5785_v9  ;;  %v6064_v6 = vshrl.u32 %v5999_v61, 16  ;;  %v6067_v26 = vshll.u32 %v5999_v61, 16 }
 0x3aa   : > { %v5058_v10 = vpop.permute.xlu1 %5057  ;;  %v5060_v51 = vpop.permute.xlu0 %5059  ;;  %v5800_v53 = vsel %vm9944_vm4, %v5795_v5, %v5799_v46  ;;  %v5809_v41 = vrot.slane %v5808_v31, 4  ;;  %v5813_v56 = vrot.slane %v5811_v62, 5  ;;  %v6078_v5 = vshrl.u32 %v6001_v54, 16  ;;  %v6005_v62 = vld [vmem:[#allocation2 + $0x48] sm:$0xf] }
 0x3ab   : > { %5076 = vst.msk [vmem:[#allocation3 + $0x94] sm:$0xf] %vm1436_vm6, %v5058_v10  ;;  %5077 = vst.msk [vmem:[#allocation3 + $0x98] sm:$0xf] %vm1436_vm6, %v5060_v51  ;;  %v6081_v31 = vshll.u32 %v6001_v54, 16 }
 0x3ac   : > { %5621 = vrot.lane.b32.xlu1 %v5606_v33, %s13027_s28  ;;  %5663 = vrot.lane.b32.xlu0 %v5643_v27, %s13028_s17  ;;  %v9411_v33 = vrot.slane %v5855_v40, 9  ;;  %v5897_v27 = vrot.slane %v5856_v18, 5  ;;  %v5814_v52 = vsel %vm9944_vm4, %v5809_v41, %v5813_v56  ;;  %v6000_v40 = vld [vmem:[#allocation2 + $0x34] sm:$0x1]  ;;  %v6066_v18 = vrot.slane %v6064_v6, 4 }
 0x3ad   : > { %v6073_v0 = vshll.u32 %v6000_v40, 16  ;;  %v6080_v15 = vrot.slane %v6078_v5, 4  ;;  %v5948_v54 = vld [vmem:[#allocation2 + $0x38] sm:$0xf] }
 0x3ae   : > { %v5062_v3 = vpop.permute.xlu1 %5061  ;;  %v5216_v34 = vpop.permute.xlu0 %5215  ;;  %v5898_v59 = vsel %vm9956_vm7, %v9411_v33, %v5897_v27  ;;  %v5947_v27 = vld [vmem:[#allocation2 + $0x30] sm:$0xf] }
 0x3af   : > { %5078 = vst.msk [vmem:[#allocation3 + $0x9c] sm:$0xf] %vm1436_vm6, %v5062_v3  ;;  %v9412_v3 = vrot.slane %v5857_v45, 9  ;;  %v6106_v45 = vshrl.u32 %v6005_v62, 16 }
 0x3b0   : > { %5235 = vst.msk [vmem:[#allocation3 + $0x90] sm:$0xf] %vm1597_vm8, %v5216_v34  ;;  %5665 = vrot.lane.b32.xlu1 %v5644_v50, %s13028_s17  ;;  %5667 = vrot.lane.b32.xlu0 %v5645_v35, %s13028_s17  ;;  %v5901_v34 = vrot.slane %v5858_v38, 5  ;;  %v5862_v35 = vld [vmem:[#allocation2 + $0x44] sm:$0x1]  ;;  %v6109_v38 = vshll.u32 %v6005_v62, 16 }
 0x3b2   : > { %v5218_v22 = vpop.permute.xlu1 %5217  ;;  %v5220_v43 = vpop.permute.xlu0 %5219  ;;  %v5902_v46 = vsel %vm9956_vm7, %v9412_v3, %v5901_v34  ;;  %v6002_v3 = vld [vmem:[#allocation2 + $0x3c] sm:$0x1]  ;;  %v6083_v34 = vrot.slane %v6081_v31, 5 }
 0x3b3   : > { %5236 = vst.msk [vmem:[#allocation3 + $0x94] sm:$0xf] %vm1597_vm8, %v5218_v22  ;;  %5237 = vst.msk [vmem:[#allocation3 + $0x98] sm:$0xf] %vm1597_vm8, %v5220_v43  ;;  %v6003_v22 = vld [vmem:[#allocation2 + $0x40] sm:$0xf] }
 0x3b4   : > { %5669 = vrot.lane.b32.xlu1 %v5646_v29, %s13028_s17  ;;  %5823 = vrot.lane.b32.xlu0 %v5772_v12, %s13029_s18  ;;  %v9414_v43 = vrot.slane %v5861_v63, 9  ;;  %v5909_v29 = vrot.slane %v5862_v35, 5  ;;  %v5906_v12 = vsel %vm9956_vm7, %v9413_v36, %v5905_v37  ;;  %v6095_v33 = vshll.u32 %v6003_v22, 16  ;;  %v6004_v36 = vld [vmem:[#allocation2 + $0x44] sm:$0x1] }
 0x3b5   : > { %v6108_v37 = vrot.slane %v6106_v45, 4  ;;  %v6111_v63 = vrot.slane %v6109_v38, 5  ;;  %v6087_v6 = vshll.u32 %v6002_v3, 16  ;;  %v6159_v45 = vld [vmem:[#allocation2 + $0x30] sm:$0xe] }
 0x3b6   : > { %v5222_v10 = vpop.permute.xlu1 %5221  ;;  %v5312_v51 = vpop.permute.xlu0 %5311  ;;  %v5910_v41 = vsel %vm9956_vm7, %v9414_v43, %v5909_v29  ;;  %v6084_v29 = vor.u32 %v6083_v34, %v6080_v15  ;;  %v6160_v38 = vld [vmem:[#allocation2 + $0x34] sm:$0x1]  ;;  %v9419_v3 = vrot.slane %v6159_v45, 9 }
 0x3b7   : > { %5238 = vst.msk [vmem:[#allocation3 + $0x9c] sm:$0xf] %vm1597_vm8, %v5222_v10  ;;  %v6069_v10 = vrot.slane %v6067_v26, 5  ;;  %v6006_v26 = vld [vmem:[#allocation2 + $0x4c] sm:$0x1]  ;;  %v6201_v34 = vrot.slane %v6160_v38, 5 }
 0x3b8   : > { %5331 = vst.msk [vmem:[#allocation3 + $0x90] sm:$0xf] %vm1694_vm10, %v5312_v51  ;;  %5825 = vrot.lane.b32.xlu1 %v5786_v14, %s13029_s18  ;;  %5827 = vrot.lane.b32.xlu0 %v5800_v53, %s13029_s18  ;;  %v6092_v51 = vshrl.u32 %v6003_v22, 16  ;;  %v5949_v22 = vld [vmem:[#allocation2 + $0x40] sm:$0xf]  ;;  %v6115_v5 = vshll.u32 %v6006_v26, 16 }
 0x3b9   : > { %v6070_v61 = vor.u32 %v6069_v10, %v6066_v18  ;;  %v6089_v18 = vrot.slane %v6087_v6, 5 }
 0x3ba   : > { %v5314_v50 = vpop.permute.xlu1 %5313  ;;  %v5352_v17 = vpop.permute.xlu0 %5351 }
 0x3bb   : > { %5332 = vst.msk [vmem:[#allocation3 + $0x94] sm:$0xf] %vm1694_vm10, %v5314_v50  ;;  %v6094_v50 = vrot.slane %v6092_v51, 4  ;;  %v6071_v43 = vrot.slane %v6070_v61, 4  ;;  %v6085_v51 = vrot.slane %v6084_v29, 4 }
 0x3bc   : > { %5375 = vst.msk [vmem:[#allocation3 + $0xa0] sm:$0xf] %vm815_vm9, %v5352_v17  ;;  %5829 = vrot.lane.b32.xlu1 %v5814_v52, %s13029_s18  ;;  %5919 = vrot.lane.b32.xlu0 %v5898_v59, %s13030_s27  ;;  %v6097_v17 = vrot.slane %v6095_v33, 5  ;;  %v6075_v59 = vrot.slane %v6073_v0, 5  ;;  %v6295_v0 = vld [vmem:[#allocation2] sm:$0xf] }
 0x3bd   : > { %v6090_v15 = vsel %vm9944_vm4, %v6085_v51, %v6089_v18  ;;  %v6297_v29 = vld [vmem:[#allocation2 + $0x8] sm:$0xf]  ;;  %v6296_v51 = vld [vmem:[#allocation2 + $0x4] sm:$0x1] }
 0x3be   : > { %v5354_v7 = vpop.permute.xlu1 %5353  ;;  %v5316_v9 = vpop.permute.xlu0 %5315  ;;  %v6076_v10 = vsel %vm9944_vm4, %v6071_v43, %v6075_v59  ;;  %v6165_v18 = vld [vmem:[#allocation2 + $0x48] sm:$0xe] }
 0x3bf   : > { %5376 = vst.msk [vmem:[#allocation3 + $0xa4] sm:$0xf] %vm815_vm9, %v5354_v7  ;;  %v6098_v7 = vor.u32 %v6097_v17, %v6094_v50  ;;  %v6161_v50 = vld [vmem:[#allocation2 + $0x38] sm:$0xe]  ;;  %v6162_v17 = vld [vmem:[#allocation2 + $0x3c] sm:$0x1] }
 0x3c0   : > { %5333 = vst.msk [vmem:[#allocation3 + $0x98] sm:$0xf] %vm1694_vm10, %v5316_v9  ;;  %5921 = vrot.lane.b32.xlu1 %v5902_v46, %s13030_s27  ;;  %5923 = vrot.lane.b32.xlu0 %v5906_v12, %s13030_s27  ;;  %v6101_v9 = vshll.u32 %v6004_v36, 16  ;;  %v5950_v46 = vld [vmem:[#allocation2 + $0x48] sm:$0xf]  ;;  %v6112_v12 = vor.u32 %v6111_v63, %v6108_v37  ;;  %v6312_v63 = vshrl.u32 %v6295_v0, 16 }
 0x3c1   : > { %v6099_v33 = vrot.slane %v6098_v7, 4  ;;  %v6163_v37 = vld [vmem:[#allocation2 + $0x40] sm:$0xe]  ;;  %v9420_v6 = vrot.slane %v6161_v50, 9  ;;  %v6205_v26 = vrot.slane %v6162_v17, 5 }
 0x3c2   : > { %v5318_v14 = vpop.permute.xlu1 %5317  ;;  %v5356_v53 = vpop.permute.xlu0 %5355  ;;  %v9747_v56 = vld [vmem:[#allocation3 + $0x90] sm:$0xff]   ;;  %v9421_v43 = vrot.slane %v6163_v37, 9  ;;  %v6299_v7 = vld [vmem:[#allocation2 + $0x10] sm:$0xf]  ;;  %v6248_v17 = vld [vmem:[#allocation2 + $0x8] sm:$0xf] }
 0x3c3   : > { %5334 = vst.msk [vmem:[#allocation3 + $0x9c] sm:$0xf] %vm1694_vm10, %v5318_v14  ;;  %9620 = vmatprep.mubr.bf16.mxu1 %v9747_v56  ;;  %v6113_v14 = vrot.slane %v6112_v12, 4  ;;  %v6314_v12 = vrot.slane %v6312_v63, 4  ;;  %v6340_v45 = vshrl.u32 %v6299_v7, 16  ;;  %v6343_v38 = vshll.u32 %v6299_v7, 16 }
 0x3c4   : > { %5377 = vst.msk [vmem:[#allocation3 + $0xa8] sm:$0xf] %vm815_vm9, %v5356_v53  ;;  %5925 = vrot.lane.b32.xlu1 %v5910_v41, %s13030_s27  ;;  %5967 = vrot.lane.b32.xlu0 %v5947_v27, %s13031_s26  ;;  %v6103_v27 = vrot.slane %v6101_v9, 5  ;;  %v6117_v53 = vrot.slane %v6115_v5, 5  ;;  %v6247_v9 = vld [vmem:[#allocation2] sm:$0xf] }
 0x3c5   : > { %v6342_v63 = vrot.slane %v6340_v45, 4 }
 0x3c6   : > { %v5358_v35 = vpop.permute.xlu1 %5357  ;;  %v5512_v52 = vpop.permute.xlu0 %5511  ;;  %v6104_v61 = vsel %vm9944_vm4, %v6099_v33, %v6103_v27  ;;  %v6118_v36 = vsel %vm9944_vm4, %v6113_v14, %v6117_v53  ;;  %v6326_v33 = vshrl.u32 %v6297_v29, 16  ;;  %v6329_v27 = vshll.u32 %v6297_v29, 16  ;;  %v6301_v14 = vld [vmem:[#allocation2 + $0x18] sm:$0xf]  ;;  %v6302_v29 = vld [vmem:[#allocation2 + $0x1c] sm:$0x1] }
 0x3c7   : > { %5378 = vst.msk [vmem:[#allocation3 + $0xac] sm:$0xf] %vm815_vm9, %v5358_v35  ;;  %v6315_v35 = vshll.u32 %v6295_v0, 16  ;;  %v9422_v53 = vrot.slane %v6165_v18, 9  ;;  %v6321_v0 = vshll.u32 %v6296_v51, 16  ;;  %v6357_v50 = vshll.u32 %v6301_v14, 16 }
 0x3c8   : > { %5535 = vst.msk [vmem:[#allocation3 + $0xa0] sm:$0xf] %vm979_vm0, %v5512_v52  ;;  %5969 = vrot.lane.b32.xlu1 %v5948_v54, %s13031_s26  ;;  %5971 = vrot.lane.b32.xlu0 %v5949_v22, %s13031_s26  ;;  %v6164_v54 = vld [vmem:[#allocation2 + $0x44] sm:$0x1]  ;;  %v6202_v22 = vsel %vm9956_vm7, %v9419_v3, %v6201_v34  ;;  %v6354_v34 = vshrl.u32 %v6301_v14, 16  ;;  %v6331_v37 = vrot.slane %v6329_v27, 5 }
 0x3c9   : > { %v6317_v5 = vrot.slane %v6315_v35, 5  ;;  %v6345_v35 = vrot.slane %v6343_v38, 5  ;;  %v6585_v14 = vld [vmem:[#allocation2 + $0x10] sm:$0xf] }
 0x3ca   : > { %v5514_v31 = vpop.permute.xlu1 %5513  ;;  %v5516_v62 = vpop.permute.xlu0 %5515  ;;  %v9748_v40 = vld [vmem:[#allocation3 + $0x98] sm:$0xff]   ;;  %v6356_v7 = vrot.slane %v6354_v34, 4  ;;  %v6614_v34 = vshrl.u32 %v6585_v14, 16 }
 0x3cb   : > { %5536 = vst.msk [vmem:[#allocation3 + $0xa4] sm:$0xf] %vm979_vm0, %v5514_v31  ;;  %5537 = vst.msk [vmem:[#allocation3 + $0xa8] sm:$0xf] %vm979_vm0, %v5516_v62  ;;  %9621 = vmatmul.mubr.bf16.gmra.mxu1 %v9748_v40  ;;  %v6206_v40 = vsel %vm9956_vm7, %v9420_v6, %v6205_v26 }
 0x3cc   : > { %5973 = vrot.lane.b32.xlu1 %v5950_v46, %s13031_s26  ;;  %6127 = vrot.lane.b32.xlu0 %v6076_v10, %s13032_s23  ;;  %v6209_v46 = vrot.slane %v6164_v54, 5  ;;  %v6166_v10 = vld [vmem:[#allocation2 + $0x4c] sm:$0x1]  ;;  %v6323_v54 = vrot.slane %v6321_v0, 5 }
 0x3ce   : > { %v5518_v41 = vpop.permute.xlu1 %5517  ;;  %v5608_v56 = vpop.permute.xlu0 %5607  ;;  %v6210_v3 = vsel %vm9956_vm7, %v9421_v43, %v6209_v46  ;;  %v6249_v46 = vld [vmem:[#allocation2 + $0x10] sm:$0xf] }
 0x3cf   : > { %5538 = vst.msk [vmem:[#allocation3 + $0xac] sm:$0xf] %vm979_vm0, %v5518_v41  ;;  %v6213_v41 = vrot.slane %v6166_v10, 5  ;;  %v6363_v10 = vshll.u32 %v6302_v29, 16 }
 0x3d0   : > { %5631 = vst.msk [vmem:[#allocation3 + $0xa0] sm:$0xf] %vm1079_vm1, %v5608_v56  ;;  %6129 = vrot.lane.b32.xlu1 %v6090_v15, %s13032_s23  ;;  %6131 = vrot.lane.b32.xlu0 %v6104_v61, %s13032_s23  ;;  %v6318_v56 = vor.u32 %v6317_v5, %v6314_v12 }
 0x3d1   : > { %v6214_v6 = vsel %vm9956_vm7, %v9422_v53, %v6213_v41  ;;  %v6250_v53 = vld [vmem:[#allocation2 + $0x18] sm:$0xf] }
 0x3d2   : > { %v5610_v52 = vpop.permute.xlu1 %5609  ;;  %v5612_v59 = vpop.permute.xlu0 %5611  ;;  %v6319_v26 = vrot.slane %v6318_v56, 4 }
 0x3d3   : > { %5632 = vst.msk [vmem:[#allocation3 + $0xa4] sm:$0xf] %vm1079_vm1, %v5610_v52  ;;  %5633 = vst.msk [vmem:[#allocation3 + $0xa8] sm:$0xf] %vm1079_vm1, %v5612_v59  ;;  %v6298_v52 = vld [vmem:[#allocation2 + $0xc] sm:$0x1] }
 0x3d4   : > { %6133 = vrot.lane.b32.xlu1 %v6118_v36, %s13032_s23  ;;  %6223 = vrot.lane.b32.xlu0 %v6202_v22, %s13033_s22  ;;  %s9817_s23 = smov 104   ;;  %v6328_v36 = vrot.slane %v6326_v33, 4  ;;  %v6300_v59 = vld [vmem:[#allocation2 + $0x14] sm:$0x1]  ;;  %v6335_v5 = vshll.u32 %v6298_v52, 16  ;;  %v6324_v18 = vsel %vm9944_vm4, %v6319_v26, %v6323_v54  ;;  %v6617_v52 = vshll.u32 %v6585_v14, 16 }
 0x3d5   : > { %v6537_v14 = vld [vmem:[#allocation2 + $0x18] sm:$0xf] }
 0x3d6   : > { %v5614_v31 = vpop.permute.xlu1 %5613  ;;  %v5656_v62 = vpop.permute.xlu0 %5655  ;;  %v6332_v12 = vor.u32 %v6331_v37, %v6328_v36  ;;  %v6337_v56 = vrot.slane %v6335_v5, 5  ;;  %v6584_v37 = vld [vmem:[#allocation2 + $0xc] sm:$0x1]  ;;  %v6586_v5 = vld [vmem:[#allocation2 + $0x14] sm:$0x1] }
 0x3d7   : > { %5634 = vst.msk [vmem:[#allocation3 + $0xac] sm:$0xf] %vm1079_vm1, %v5614_v31  ;;  %v6346_v31 = vor.u32 %v6345_v35, %v6342_v63 }
 0x3d8   : > { %5679 = vst.msk [vmem:[#allocation3 + $0xa0] sm:$0xf] %vm1128_vm2, %v5656_v62  ;;  %6225 = vrot.lane.b32.xlu1 %v6206_v40, %s13033_s22  ;;  %6263 = vrot.lane.b32.xlu0 %v6247_v9, %s9817_s23  ;;  %v6359_v9 = vrot.slane %v6357_v50, 5  ;;  %v6349_v62 = vshll.u32 %v6300_v59, 16  ;;  %v6583_v40 = vld [vmem:[#allocation2 + $0x8] sm:$0xf] }
 0x3d9   : > { %v6600_v45 = vshrl.u32 %v6583_v40, 16  ;;  %v6603_v38 = vshll.u32 %v6583_v40, 16  ;;  %v6333_v41 = vrot.slane %v6332_v12, 4  ;;  %v6347_v0 = vrot.slane %v6346_v31, 4  ;;  %v6588_v40 = vld [vmem:[#allocation2 + $0x1c] sm:$0x1] }
 0x3da   : > { %v5658_v15 = vpop.permute.xlu1 %5657  ;;  %v5660_v61 = vpop.permute.xlu0 %5659  ;;  %v6360_v27 = vor.u32 %v6359_v9, %v6356_v7  ;;  %v6616_v31 = vrot.slane %v6614_v34, 4 }
 0x3db   : > { %5680 = vst.msk [vmem:[#allocation3 + $0xa4] sm:$0xf] %vm1128_vm2, %v5658_v15  ;;  %5681 = vst.msk [vmem:[#allocation3 + $0xa8] sm:$0xf] %vm1128_vm2, %v5660_v61  ;;  %v6351_v15 = vrot.slane %v6349_v62, 5  ;;  %v6602_v63 = vrot.slane %v6600_v45, 4  ;;  %v6338_v59 = vsel %vm9944_vm4, %v6333_v41, %v6337_v56 }
 0x3dc   : > { %6265 = vrot.lane.b32.xlu1 %v6248_v17, %s9817_s23  ;;  %6227 = vrot.lane.b32.xlu0 %v6210_v3, %s13033_s22  ;;  %v6587_v61 = vld [vmem:[#allocation2 + $0x18] sm:$0xf]  ;;  %v6365_v3 = vrot.slane %v6363_v10, 5  ;;  %v6361_v36 = vrot.slane %v6360_v27, 4  ;;  %v6605_v35 = vrot.slane %v6603_v38, 5  ;;  %v6619_v62 = vrot.slane %v6617_v52, 5 }
 0x3dd   : > { %v6628_v26 = vshrl.u32 %v6587_v61, 16  ;;  %v6631_v54 = vshll.u32 %v6587_v61, 16  ;;  %v6536_v27 = vld [vmem:[#allocation2 + $0x10] sm:$0xf]  ;;  %v6623_v56 = vshll.u32 %v6586_v5, 16 }
 0x3de   : > { %v5662_v22 = vpop.permute.xlu1 %5661  ;;  %v5816_v43 = vpop.permute.xlu0 %5815  ;;  %v6366_v9 = vsel %vm9944_vm4, %v6361_v36, %v6365_v3  ;;  %v6606_v12 = vor.u32 %v6605_v35, %v6602_v63  ;;  %v6620_v41 = vor.u32 %v6619_v62, %v6616_v31  ;;  %v6590_v3 = vld [vmem:[#allocation2 + $0x24] sm:$0x1] }
 0x3df   : > { %5682 = vst.msk [vmem:[#allocation3 + $0xac] sm:$0xf] %vm1128_vm2, %v5662_v22  ;;  %v6589_v22 = vld [vmem:[#allocation2 + $0x20] sm:$0xf]  ;;  %v6633_v10 = vrot.slane %v6631_v54, 5  ;;  %v6625_v52 = vrot.slane %v6623_v56, 5 }
 0x3e0   : > { %5839 = vst.msk [vmem:[#allocation3 + $0xa0] sm:$0xf] %vm1289_vm3, %v5816_v43  ;;  %6229 = vrot.lane.b32.xlu1 %v6214_v6, %s13033_s22  ;;  %6267 = vrot.lane.b32.xlu0 %v6249_v46, %s9817_s23  ;;  %v6352_v6 = vsel %vm9944_vm4, %v6347_v0, %v6351_v15  ;;  %v6609_v43 = vshll.u32 %v6584_v37, 16  ;;  %v6535_v46 = vld [vmem:[#allocation2 + $0x8] sm:$0xf]  ;;  %v6637_v0 = vshll.u32 %v6588_v40, 16 }
 0x3e1   : > { %v6607_v15 = vrot.slane %v6606_v12, 4  ;;  %v6621_v35 = vrot.slane %v6620_v41, 4  ;;  %v6743_v12 = vld [vmem:[#allocation2 + $0x8] sm:$0xe]  ;;  %v6887_v56 = vld [vmem:[#allocation2 + $0x10] sm:$0xf] }
 0x3e2   : > { %v5818_v51 = vpop.permute.xlu1 %5817  ;;  %v5820_v33 = vpop.permute.xlu0 %5819 }
 0x3e3   : > { %5840 = vst.msk [vmem:[#allocation3 + $0xa4] sm:$0xf] %vm1289_vm3, %v5818_v51  ;;  %5841 = vst.msk [vmem:[#allocation3 + $0xa8] sm:$0xf] %vm1289_vm3, %v5820_v33  ;;  %v6642_v51 = vshrl.u32 %v6589_v22, 16  ;;  %v6645_v33 = vshll.u32 %v6589_v22, 16 }
 0x3e4   : > { %6269 = vrot.lane.b32.xlu1 %v6250_v53, %s9817_s23  ;;  %6423 = vrot.lane.b32.xlu0 %v6324_v18, %s9814_s29  ;;  %v6630_v18 = vrot.slane %v6628_v26, 4  ;;  %v6611_v53 = vrot.slane %v6609_v43, 5  ;;  %v6538_v26 = vld [vmem:[#allocation2 + $0x20] sm:$0xf]  ;;  %v6639_v43 = vrot.slane %v6637_v0, 5 }
 0x3e5   : > { %v6644_v34 = vrot.slane %v6642_v51, 4 }
 0x3e6   : > { %v5822_v50 = vpop.permute.xlu1 %5821  ;;  %v5912_v17 = vpop.permute.xlu0 %5911  ;;  %v6634_v61 = vor.u32 %v6633_v10, %v6630_v18  ;;  %v6612_v54 = vsel %vm9944_vm4, %v6607_v15, %v6611_v53  ;;  %v6745_v18 = vld [vmem:[#allocation2 + $0x10] sm:$0xe]  ;;  %v6746_v10 = vld [vmem:[#allocation2 + $0x14] sm:$0x1]  ;;  %v6748_v53 = vld [vmem:[#allocation2 + $0x1c] sm:$0x1] }
 0x3e7   : > { %5842 = vst.msk [vmem:[#allocation3 + $0xac] sm:$0xf] %vm1289_vm3, %v5822_v50  ;;  %v6647_v50 = vrot.slane %v6645_v33, 5  ;;  %v6626_v33 = vsel %vm9944_vm4, %v6621_v35, %v6625_v52  ;;  %v9431_v15 = vrot.slane %v6743_v12, 9  ;;  %v6749_v35 = vld [vmem:[#allocation2 + $0x20] sm:$0xe] }
 0x3e8   : > { %5935 = vst.msk [vmem:[#allocation3 + $0xa0] sm:$0xf] %vm1386_vm5, %v5912_v17  ;;  %6425 = vrot.lane.b32.xlu1 %v6338_v59, %s9814_s29  ;;  %6427 = vrot.lane.b32.xlu0 %v6352_v6, %s9814_s29  ;;  %v6651_v59 = vshll.u32 %v6590_v3, 16  ;;  %v6635_v22 = vrot.slane %v6634_v61, 4  ;;  %v9432_v61 = vrot.slane %v6745_v18, 9  ;;  %v9434_v12 = vrot.slane %v6749_v35, 9 }
 0x3ea   : > { %v5914_v29 = vpop.permute.xlu1 %5913  ;;  %v5916_v7 = vpop.permute.xlu0 %5915  ;;  %v6653_v40 = vrot.slane %v6651_v59, 5 }
 0x3eb   : > { %5936 = vst.msk [vmem:[#allocation3 + $0xa4] sm:$0xf] %vm1386_vm5, %v5914_v29  ;;  %5937 = vst.msk [vmem:[#allocation3 + $0xa8] sm:$0xf] %vm1386_vm5, %v5916_v7  ;;  %v6648_v29 = vor.u32 %v6647_v50, %v6644_v34 }
 0x3ec   : > { %6429 = vrot.lane.b32.xlu1 %v6366_v9, %s9814_s29  ;;  %6551 = vrot.lane.b32.xlu0 %v6535_v46, %s9789_s8  ;;  %v6744_v9 = vld [vmem:[#allocation2 + $0xc] sm:$0x1] }
 0x3ee   : > { %v5918_v45 = vpop.permute.xlu1 %5917  ;;  %v5960_v38 = vpop.permute.xlu0 %5959 }
 0x3ef   : > { %5938 = vst.msk [vmem:[#allocation3 + $0xac] sm:$0xf] %vm1386_vm5, %v5918_v45  ;;  %v11966_v17 = vpop.f32.mrf.mxu0  ;;  %v6649_v45 = vrot.slane %v6648_v29, 4  ;;  %v6889_v29 = vld [vmem:[#allocation2 + $0x18] sm:$0xf] }
 0x3f0   : > { %5983 = vst.msk [vmem:[#allocation3 + $0xa0] sm:$0xf] %vm1436_vm6, %v5960_v38  ;;  %6553 = vrot.lane.b32.xlu1 %v6536_v27, %s9789_s8  ;;  %6555 = vrot.lane.b32.xlu0 %v6537_v14, %s9789_s8  ;;  %v8690_v36 = vpack.c.bf16 %v11966_v17, %v11966_v17  ;;  %v6640_v27 = vsel %vm9944_vm4, %v6635_v22, %v6639_v43  ;;  %v6777_v38 = vrot.slane %v6744_v9, 5  ;;  %v6747_v14 = vld [vmem:[#allocation2 + $0x18] sm:$0xe]  ;;  %v6904_v22 = vshrl.u32 %v6887_v56, 16 }
 0x3f1   : > { %v11972_v6 = vpop.f32.mrf.mxu0  ;;  %v6654_v59 = vsel %vm9944_vm4, %v6649_v45, %v6653_v40  ;;  %v6907_v43 = vshll.u32 %v6887_v56, 16  ;;  %v6888_v45 = vld [vmem:[#allocation2 + $0x14] sm:$0x1]  ;;  %v6891_v56 = vld [vmem:[#allocation2 + $0x20] sm:$0xf] }
 0x3f2   : > { %v5962_v37 = vpop.permute.xlu1 %5961  ;;  %v5964_v63 = vpop.permute.xlu0 %5963  ;;  %13034 = vst [vmem:[#allocation8_spill] sm:$0xff] %v11972_v6  ;;  %8755 = vst.msk [vmem:[%s10988_s30 + $0x68] sm:$0xf] %vm8728_vm11, %v8690_v36  ;;  %v8688_v7 = vpack.c.bf16 %v11972_v6, %v11972_v6  ;;  %v6781_v36 = vrot.slane %v6746_v10, 5  ;;  %v6918_v10 = vshrl.u32 %v6889_v29, 16 }
 0x3f3   : > { %5984 = vst.msk [vmem:[#allocation3 + $0xa4] sm:$0xf] %vm1436_vm6, %v5962_v37  ;;  %5985 = vst.msk [vmem:[#allocation3 + $0xa8] sm:$0xf] %vm1436_vm6, %v5964_v63  ;;  %v11982_v46 = vpop.f32.mrf.mxu0  ;;  %v9433_v37 = vrot.slane %v6747_v14, 9  ;;  %v6785_v63 = vrot.slane %v6748_v53, 5 }
 0x3f4   : > { %6557 = vrot.lane.b32.xlu1 %v6538_v26, %s9789_s8  ;;  %6711 = vrot.lane.b32.xlu0 %v6612_v54, %s9791_s10  ;;  %8753 = vst.msk [vmem:[%s10988_s30 + $0x60] sm:$0xf] %vm8728_vm11, %v8688_v7  ;;  %v8691_v5 = vpack.c.bf16 %v11982_v46, %v11982_v46  ;;  %v6778_v26 = vsel %vm9956_vm7, %v9431_v15, %v6777_v38  ;;  %v6750_v54 = vld [vmem:[#allocation2 + $0x24] sm:$0x1]  ;;  %v6906_v38 = vrot.slane %v6904_v22, 4  ;;  %v6909_v14 = vrot.slane %v6907_v43, 5 }
 0x3f5   : > { %v11990_v51 = vpop.f32.mrf.mxu0  ;;  %v6782_v40 = vsel %vm9956_vm7, %v9432_v61, %v6781_v36  ;;  %v6789_v18 = vrot.slane %v6750_v54, 5  ;;  %v6921_v53 = vshll.u32 %v6889_v29, 16  ;;  %v6890_v36 = vld [vmem:[#allocation2 + $0x1c] sm:$0x1]  ;;  %v6893_v54 = vld [vmem:[#allocation2 + $0x28] sm:$0xf] }
 0x3f6   : > { %v5966_v31 = vpop.permute.xlu1 %5965  ;;  %v6120_v62 = vpop.permute.xlu0 %6119  ;;  %13035 = vst [vmem:[#allocation9_spill] sm:$0xff] %v11990_v51  ;;  %8756 = vst.msk [vmem:[%s10988_s30 + $0x6c] sm:$0xf] %vm8728_vm11, %v8691_v5  ;;  %v8689_v41 = vpack.c.bf16 %v11990_v51, %v11990_v51  ;;  %v6840_v22 = vld [vmem:[#allocation2 + $0x18] sm:$0xf] }
 0x3f7   : > { %5986 = vst.msk [vmem:[#allocation3 + $0xac] sm:$0xf] %vm1436_vm6, %v5966_v31  ;;  %v12002_v0 = vpop.f32.mrf.mxu0  ;;  %v6923_v35 = vrot.slane %v6921_v53, 5 }
 0x3f8   : > { %6143 = vst.msk [vmem:[#allocation3 + $0xa0] sm:$0xf] %vm1597_vm8, %v6120_v62  ;;  %6713 = vrot.lane.b32.xlu1 %v6626_v33, %s9791_s10  ;;  %6715 = vrot.lane.b32.xlu0 %v6640_v27, %s9791_s10  ;;  %13036 = vst [vmem:[#allocation11_spill] sm:$0xff] %v12002_v0  ;;  %v8694_v3 = vpack.c.bf16 %v12002_v0, %v12002_v0  ;;  %v6786_v27 = vsel %vm9956_vm7, %v9433_v37, %v6785_v63  ;;  %v6920_v37 = vrot.slane %v6918_v10, 4 }
 0x3f9   : > { %8754 = vst.msk [vmem:[%s10988_s30 + $0x64] sm:$0xf] %vm8728_vm11, %v8689_v41  ;;  %v12010_v52 = vpop.f32.mrf.mxu0  ;;  %v6910_v63 = vor.u32 %v6909_v14, %v6906_v38 }
 0x3fa   : > { %v6122_v34 = vpop.permute.xlu1 %6121  ;;  %v5360_v50 = vpop.permute.xlu0 %5359  ;;  %8759 = vst.msk [vmem:[%s10988_s30 + $0x78] sm:$0xf] %vm8728_vm11, %v8694_v3  ;;  %v8692_v7 = vpack.c.bf16 %v12010_v52, %v12010_v52  ;;  %v6790_v3 = vsel %vm9956_vm7, %v9434_v12, %v6789_v18  ;;  %v6927_v12 = vshll.u32 %v6890_v36, 16  ;;  %v6924_v10 = vor.u32 %v6923_v35, %v6920_v37  ;;  %v6303_v37 = vld [vmem:[#allocation2 + $0x20] sm:$0xf] }
 0x3fb   : > { %6144 = vst.msk [vmem:[#allocation3 + $0xa4] sm:$0xf] %vm1597_vm8, %v6122_v34  ;;  %v12022_v9 = vpop.f32.mrf.mxu0  ;;  %v6839_v34 = vld [vmem:[#allocation2 + $0x10] sm:$0xf]  ;;  %v6911_v18 = vrot.slane %v6910_v63, 4 }
 0x3fc   : > { %5379 = vst.msk [vmem:[#allocation3 + $0xb0] sm:$0xf] %vm815_vm9, %v5360_v50  ;;  %6717 = vrot.lane.b32.xlu1 %v6654_v59, %s9791_s10  ;;  %6807 = vrot.lane.b32.xlu0 %v6778_v26, %s9793_s12  ;;  %13037 = vst [vmem:[#allocation6_spill] sm:$0xff] %v12022_v9  ;;  %v8695_v5 = vpack.c.bf16 %v12022_v9, %v12022_v9  ;;  %v6913_v50 = vshll.u32 %v6888_v45, 16  ;;  %v6932_v59 = vshrl.u32 %v6891_v56, 16  ;;  %v6935_v26 = vshll.u32 %v6891_v56, 16 }
 0x3fd   : > { %8757 = vst.msk [vmem:[%s10988_s30 + $0x70] sm:$0xf] %vm8728_vm11, %v8692_v7  ;;  %v12032_v33 = vpop.f32.mrf.mxu0  ;;  %v6251_v63 = vld [vmem:[#allocation2 + $0x20] sm:$0xf] }
 0x3fe   : > { %v5362_v31 = vpop.permute.xlu1 %5361  ;;  %v6124_v62 = vpop.permute.xlu0 %6123  ;;  %8760 = vst.msk [vmem:[%s10988_s30 + $0x7c] sm:$0xf] %vm8728_vm11, %v8695_v5  ;;  %v8693_v41 = vpack.c.bf16 %v12032_v33, %v12032_v33  ;;  %v6915_v7 = vrot.slane %v6913_v50, 5  ;;  %v6892_v5 = vld [vmem:[#allocation2 + $0x24] sm:$0x1]  ;;  %v6937_v45 = vrot.slane %v6935_v26, 5 }
 0x3ff   : > { %5380 = vst.msk [vmem:[#allocation3 + $0xb4] sm:$0xf] %vm815_vm9, %v5362_v31  ;;  %v6946_v31 = vshrl.u32 %v6893_v54, 16  ;;  %v6941_v38 = vshll.u32 %v6892_v5, 16  ;;  %v6929_v50 = vrot.slane %v6927_v12, 5 }
 0x400   : > { %6145 = vst.msk [vmem:[#allocation3 + $0xa8] sm:$0xf] %vm1597_vm8, %v6124_v62  ;;  %6809 = vrot.lane.b32.xlu1 %v6782_v40, %s9793_s12  ;;  %6811 = vrot.lane.b32.xlu0 %v6786_v27, %s9793_s12  ;;  %v6949_v62 = vshll.u32 %v6893_v54, 16  ;;  %v6841_v40 = vld [vmem:[#allocation2 + $0x20] sm:$0xf]  ;;  %v6934_v27 = vrot.slane %v6932_v59, 4 }
 0x401   : > { %8758 = vst.msk [vmem:[%s10988_s30 + $0x74] sm:$0xf] %vm8728_vm11, %v8693_v41  ;;  %v6894_v41 = vld [vmem:[#allocation2 + $0x2c] sm:$0x1]  ;;  %v6948_v56 = vrot.slane %v6946_v31, 4  ;;  %v6368_v31 = vshrl.u32 %v6303_v37, 16 }
 0x402   : > { %v6126_v15 = vpop.permute.xlu1 %6125  ;;  %v6216_v61 = vpop.permute.xlu0 %6215  ;;  %v6938_v36 = vor.u32 %v6937_v45, %v6934_v27  ;;  %v6955_v35 = vshll.u32 %v6894_v41, 16  ;;  %v7047_v59 = vld [vmem:[#allocation2 + $0x10] sm:$0xe]  ;;  %v7048_v5 = vld [vmem:[#allocation2 + $0x14] sm:$0x1] }
 0x403   : > { %6146 = vst.msk [vmem:[#allocation3 + $0xac] sm:$0xf] %vm1597_vm8, %v6126_v15  ;;  %v6951_v15 = vrot.slane %v6949_v62, 5  ;;  %v6371_v62 = vshll.u32 %v6303_v37, 16  ;;  %v7049_v27 = vld [vmem:[#allocation2 + $0x18] sm:$0xe] }
 0x404   : > { %6239 = vst.msk [vmem:[#allocation3 + $0xa0] sm:$0xf] %vm1694_vm10, %v6216_v61  ;;  %6813 = vrot.lane.b32.xlu1 %v6790_v3, %s9793_s12  ;;  %6855 = vrot.lane.b32.xlu0 %v6839_v34, %s9796_s19  ;;  %v6842_v61 = vld [vmem:[#allocation2 + $0x28] sm:$0xf]  ;;  %v6916_v3 = vsel %vm9944_vm4, %v6911_v18, %v6915_v7  ;;  %v6925_v34 = vrot.slane %v6924_v10, 4  ;;  %v6939_v12 = vrot.slane %v6938_v36, 4 }
 0x405   : > { %v6252_v18 = vld [vmem:[#allocation2 + $0x28] sm:$0xf]  ;;  %v6957_v10 = vrot.slane %v6955_v35, 5  ;;  %v7081_v41 = vrot.slane %v7048_v5, 5  ;;  %v6307_v37 = vld [vmem:[#allocation2 + $0x30] sm:$0xf] }
 0x406   : > { %v6218_v43 = vpop.permute.xlu1 %6217  ;;  %v5364_v29 = vpop.permute.xlu0 %5363  ;;  %v6930_v7 = vsel %vm9944_vm4, %v6925_v34, %v6929_v50  ;;  %v6370_v34 = vrot.slane %v6368_v31, 4  ;;  %v6373_v50 = vrot.slane %v6371_v62, 5  ;;  %v6396_v31 = vshrl.u32 %v6307_v37, 16 }
 0x407   : > { %6240 = vst.msk [vmem:[#allocation3 + $0xa4] sm:$0xf] %vm1694_vm10, %v6218_v43  ;;  %v6943_v43 = vrot.slane %v6941_v38, 5  ;;  %v6399_v62 = vshll.u32 %v6307_v37, 16  ;;  %v6308_v37 = vld [vmem:[#allocation2 + $0x34] sm:$0x1] }
 0x408   : > { %5381 = vst.msk [vmem:[#allocation3 + $0xb8] sm:$0xf] %vm815_vm9, %v5364_v29  ;;  %6857 = vrot.lane.b32.xlu1 %v6840_v22, %s9796_s19  ;;  %6859 = vrot.lane.b32.xlu0 %v6841_v40, %s9796_s19  ;;  %v6952_v29 = vor.u32 %v6951_v15, %v6948_v56  ;;  %v6305_v40 = vld [vmem:[#allocation2 + $0x28] sm:$0xf]  ;;  %v6304_v56 = vld [vmem:[#allocation2 + $0x24] sm:$0x1] }
 0x409   : > { %v6382_v15 = vshrl.u32 %v6305_v40, 16  ;;  %v6385_v36 = vshll.u32 %v6305_v40, 16  ;;  %v6377_v35 = vshll.u32 %v6304_v56, 16  ;;  %v6309_v40 = vld [vmem:[#allocation2 + $0x38] sm:$0xf] }
 0x40a   : > { %v5366_v14 = vpop.permute.xlu1 %5365  ;;  %v5520_v53 = vpop.permute.xlu0 %5519  ;;  %v6410_v56 = vshrl.u32 %v6309_v40, 16 }
 0x40b   : > { %5382 = vst.msk [vmem:[#allocation3 + $0xbc] sm:$0xf] %vm815_vm9, %v5366_v14  ;;  %v6953_v14 = vrot.slane %v6952_v29, 4  ;;  %v6306_v29 = vld [vmem:[#allocation2 + $0x2c] sm:$0x1]  ;;  %v6384_v5 = vrot.slane %v6382_v15, 4 }
 0x40c   : > { %5539 = vst.msk [vmem:[#allocation3 + $0xb0] sm:$0xf] %vm979_vm0, %v5520_v53  ;;  %6861 = vrot.lane.b32.xlu1 %v6842_v61, %s9796_s19  ;;  %7015 = vrot.lane.b32.xlu0 %v6916_v3, %s9794_s13  ;;  %v9439_v53 = vrot.slane %v7047_v59, 9  ;;  %v6944_v61 = vsel %vm9944_vm4, %v6939_v12, %v6943_v43  ;;  %v7050_v3 = vld [vmem:[#allocation2 + $0x1c] sm:$0x1]  ;;  %v6387_v12 = vrot.slane %v6385_v36, 5 }
 0x40d   : > { %v7085_v43 = vrot.slane %v7050_v3, 5  ;;  %v6413_v15 = vshll.u32 %v6309_v40, 16  ;;  %v6401_v36 = vrot.slane %v6399_v62, 5  ;;  %v6412_v40 = vrot.slane %v6410_v56, 4 }
 0x40e   : > { %v5522_v26 = vpop.permute.xlu1 %5521  ;;  %v6220_v54 = vpop.permute.xlu0 %6219  ;;  %v9749_v22 = vld [vmem:[#allocation3 + $0xa0] sm:$0xff]   ;;  %v6388_v3 = vor.u32 %v6387_v12, %v6384_v5 }
 0x40f   : > { %5540 = vst.msk [vmem:[#allocation3 + $0xb4] sm:$0xf] %vm979_vm0, %v5522_v26  ;;  %9624 = vmatprep.mubr.bf16.mxu1 %v9749_v22  ;;  %v7082_v22 = vsel %vm9956_vm7, %v9439_v53, %v7081_v41  ;;  %v6391_v41 = vshll.u32 %v6306_v29, 16  ;;  %v6310_v29 = vld [vmem:[#allocation2 + $0x3c] sm:$0x1] }
 0x410   : > { %6241 = vst.msk [vmem:[#allocation3 + $0xa8] sm:$0xf] %vm1694_vm10, %v6220_v54  ;;  %7017 = vrot.lane.b32.xlu1 %v6930_v7, %s9794_s13  ;;  %6271 = vrot.lane.b32.xlu0 %v6251_v63, %s9817_s23  ;;  %v9440_v63 = vrot.slane %v7049_v27, 9  ;;  %v6958_v54 = vsel %vm9944_vm4, %v6953_v14, %v6957_v10  ;;  %v6374_v7 = vor.u32 %v6373_v50, %v6370_v34  ;;  %v6379_v10 = vrot.slane %v6377_v35, 5  ;;  %v7051_v27 = vld [vmem:[#allocation2 + $0x20] sm:$0xe] }
 0x411   : > { %v7052_v34 = vld [vmem:[#allocation2 + $0x24] sm:$0x1]  ;;  %v6398_v50 = vrot.slane %v6396_v31, 4  ;;  %v9441_v35 = vrot.slane %v7051_v27, 9  ;;  %v6389_v12 = vrot.slane %v6388_v3, 4 }
 0x412   : > { %v6222_v45 = vpop.permute.xlu1 %6221  ;;  %v5524_v38 = vpop.permute.xlu0 %5523  ;;  %v7086_v14 = vsel %vm9956_vm7, %v9440_v63, %v7085_v43  ;;  %v6254_v63 = vld [vmem:[#allocation2 + $0x38] sm:$0xf]  ;;  %v7089_v43 = vrot.slane %v7052_v34, 5  ;;  %v7054_v31 = vld [vmem:[#allocation2 + $0x2c] sm:$0x1] }
 0x413   : > { %6242 = vst.msk [vmem:[#allocation3 + $0xac] sm:$0xf] %vm1694_vm10, %v6222_v45  ;;  %v6402_v62 = vor.u32 %v6401_v36, %v6398_v50  ;;  %v6591_v27 = vld [vmem:[#allocation2 + $0x28] sm:$0xf]  ;;  %v6595_v36 = vld [vmem:[#allocation2 + $0x38] sm:$0xf] }
 0x414   : > { %5541 = vst.msk [vmem:[#allocation3 + $0xb8] sm:$0xf] %vm979_vm0, %v5524_v38  ;;  %6273 = vrot.lane.b32.xlu1 %v6252_v18, %s9817_s23  ;;  %7019 = vrot.lane.b32.xlu0 %v6944_v61, %s9794_s13  ;;  %v6253_v18 = vld [vmem:[#allocation2 + $0x30] sm:$0xf]  ;;  %v6375_v61 = vrot.slane %v6374_v7, 4  ;;  %v6415_v7 = vrot.slane %v6413_v15, 5 }
 0x415   : > { %v6656_v15 = vshrl.u32 %v6591_v27, 16  ;;  %v6659_v34 = vshll.u32 %v6591_v27, 16  ;;  %v6403_v3 = vrot.slane %v6402_v62, 4  ;;  %v6597_v62 = vld [vmem:[#allocation2 + $0x40] sm:$0xf] }
 0x416   : > { %v5526_v59 = vpop.permute.xlu1 %5525  ;;  %v5616_v26 = vpop.permute.xlu0 %5615  ;;  %v6380_v5 = vsel %vm9944_vm4, %v6375_v61, %v6379_v10  ;;  %v6416_v56 = vor.u32 %v6415_v7, %v6412_v40  ;;  %v7090_v61 = vsel %vm9956_vm7, %v9441_v35, %v7089_v43  ;;  %v6592_v40 = vld [vmem:[#allocation2 + $0x2c] sm:$0x1]  ;;  %v6684_v43 = vshrl.u32 %v6595_v36, 16 }
 0x417   : > { %5542 = vst.msk [vmem:[#allocation3 + $0xbc] sm:$0xf] %vm979_vm0, %v5526_v59  ;;  %v7053_v59 = vld [vmem:[#allocation2 + $0x28] sm:$0xe]  ;;  %v6658_v7 = vrot.slane %v6656_v15, 4 }
 0x418   : > { %5635 = vst.msk [vmem:[#allocation3 + $0xb0] sm:$0xf] %vm1079_vm1, %v5616_v26  ;;  %7021 = vrot.lane.b32.xlu1 %v6958_v54, %s9794_s13  ;;  %7111 = vrot.lane.b32.xlu0 %v7082_v22, %s9790_s9  ;;  %v6393_v22 = vrot.slane %v6391_v41, 5  ;;  %v7093_v41 = vrot.slane %v7054_v31, 5  ;;  %v6594_v15 = vld [vmem:[#allocation2 + $0x34] sm:$0x1] }
 0x41a   : > { %v5618_v45 = vpop.permute.xlu1 %5617  ;;  %v5620_v38 = vpop.permute.xlu0 %5619  ;;  %v9750_v53 = vld [vmem:[#allocation3 + $0xa8] sm:$0xff]   ;;  %v6394_v10 = vsel %vm9944_vm4, %v6389_v12, %v6393_v22  ;;  %v6687_v12 = vshll.u32 %v6595_v36, 16 }
 0x41b   : > { %5636 = vst.msk [vmem:[#allocation3 + $0xb4] sm:$0xf] %vm1079_vm1, %v5618_v45  ;;  %5637 = vst.msk [vmem:[#allocation3 + $0xb8] sm:$0xf] %vm1079_vm1, %v5620_v38  ;;  %9625 = vmatmul.mubr.bf16.gmra.mxu1 %v9750_v53  ;;  %v9442_v45 = vrot.slane %v7053_v59, 9  ;;  %v6419_v38 = vshll.u32 %v6310_v29, 16 }
 0x41c   : > { %7113 = vrot.lane.b32.xlu1 %v7086_v14, %s9790_s9  ;;  %6275 = vrot.lane.b32.xlu0 %v6253_v18, %s9817_s23  ;;  %v6405_v18 = vshll.u32 %v6308_v37, 16  ;;  %v6417_v29 = vrot.slane %v6416_v56, 4 }
 0x41d   : > { %v6421_v37 = vrot.slane %v6419_v38, 5  ;;  %v7094_v35 = vsel %vm9956_vm7, %v9442_v45, %v7093_v41 }
 0x41e   : > { %v5622_v26 = vpop.permute.xlu1 %5621  ;;  %v5664_v54 = vpop.permute.xlu0 %5663  ;;  %v6407_v50 = vrot.slane %v6405_v18, 5  ;;  %v6665_v18 = vshll.u32 %v6592_v40, 16 }
 0x41f   : > { %5638 = vst.msk [vmem:[#allocation3 + $0xbc] sm:$0xf] %vm1079_vm1, %v5622_v26  ;;  %v6593_v26 = vld [vmem:[#allocation2 + $0x30] sm:$0xf] }
 0x420   : > { %5683 = vst.msk [vmem:[#allocation3 + $0xb0] sm:$0xf] %vm1128_vm2, %v5664_v54  ;;  %6277 = vrot.lane.b32.xlu1 %v6254_v63, %s9817_s23  ;;  %6431 = vrot.lane.b32.xlu0 %v6380_v5, %s9814_s29  ;;  %v6670_v63 = vshrl.u32 %v6593_v26, 16  ;;  %v6661_v5 = vrot.slane %v6659_v34, 5  ;;  %v6673_v31 = vshll.u32 %v6593_v26, 16  ;;  %v6408_v22 = vsel %vm9944_vm4, %v6403_v3, %v6407_v50 }
 0x421   : > { %v6596_v34 = vld [vmem:[#allocation2 + $0x3c] sm:$0x1]  ;;  %v6686_v26 = vrot.slane %v6684_v43, 4  ;;  %v6701_v3 = vshll.u32 %v6597_v62, 16  ;;  %v6540_v50 = vld [vmem:[#allocation2 + $0x30] sm:$0xf] }
 0x422   : > { %v5666_v14 = vpop.permute.xlu1 %5665  ;;  %v5668_v53 = vpop.permute.xlu0 %5667  ;;  %v6662_v56 = vor.u32 %v6661_v5, %v6658_v7  ;;  %v6672_v45 = vrot.slane %v6670_v63, 4  ;;  %v6675_v41 = vrot.slane %v6673_v31, 5  ;;  %v6693_v40 = vshll.u32 %v6596_v34, 16  ;;  %v6598_v31 = vld [vmem:[#allocation2 + $0x44] sm:$0x1] }
 0x423   : > { %5684 = vst.msk [vmem:[#allocation3 + $0xb4] sm:$0xf] %vm1128_vm2, %v5666_v14  ;;  %5685 = vst.msk [vmem:[#allocation3 + $0xb8] sm:$0xf] %vm1128_vm2, %v5668_v53  ;;  %v6422_v14 = vsel %vm9944_vm4, %v6417_v29, %v6421_v37  ;;  %v6539_v53 = vld [vmem:[#allocation2 + $0x28] sm:$0xf] }
 0x424   : > { %6433 = vrot.lane.b32.xlu1 %v6394_v10, %s9814_s29  ;;  %7115 = vrot.lane.b32.xlu0 %v7090_v61, %s9790_s9  ;;  %v6689_v10 = vrot.slane %v6687_v12, 5  ;;  %v6698_v61 = vshrl.u32 %v6597_v62, 16  ;;  %v6676_v63 = vor.u32 %v6675_v41, %v6672_v45  ;;  %v6679_v29 = vshll.u32 %v6594_v15, 16  ;;  %v6751_v45 = vld [vmem:[#allocation2 + $0x28] sm:$0xe] }
 0x425   : > { %v6663_v7 = vrot.slane %v6662_v56, 4  ;;  %v6752_v41 = vld [vmem:[#allocation2 + $0x2c] sm:$0x1] }
 0x426   : > { %v5670_v59 = vpop.permute.xlu1 %5669  ;;  %v5824_v54 = vpop.permute.xlu0 %5823  ;;  %v6690_v5 = vor.u32 %v6689_v10, %v6686_v26  ;;  %v6681_v62 = vrot.slane %v6679_v29, 5  ;;  %v6756_v29 = vld [vmem:[#allocation2 + $0x3c] sm:$0x1] }
 0x427   : > { %5686 = vst.msk [vmem:[#allocation3 + $0xbc] sm:$0xf] %vm1128_vm2, %v5670_v59  ;;  %v6541_v59 = vld [vmem:[#allocation2 + $0x38] sm:$0xf] }
 0x428   : > { %5843 = vst.msk [vmem:[#allocation3 + $0xb0] sm:$0xf] %vm1289_vm3, %v5824_v54  ;;  %7117 = vrot.lane.b32.xlu1 %v7094_v35, %s9790_s9  ;;  %6435 = vrot.lane.b32.xlu0 %v6408_v22, %s9814_s29  ;;  %v6667_v54 = vrot.slane %v6665_v18, 5  ;;  %v6700_v35 = vrot.slane %v6698_v61, 4  ;;  %v6703_v22 = vrot.slane %v6701_v3, 5  ;;  %v6695_v18 = vrot.slane %v6693_v40, 5 }
 0x429   : > { %v6691_v56 = vrot.slane %v6690_v5, 4  ;;  %v9435_v61 = vrot.slane %v6751_v45, 9  ;;  %v6753_v3 = vld [vmem:[#allocation2 + $0x30] sm:$0xe] }
 0x42a   : > { %v5826_v27 = vpop.permute.xlu1 %5825  ;;  %v5828_v38 = vpop.permute.xlu0 %5827  ;;  %v6704_v15 = vor.u32 %v6703_v22, %v6700_v35  ;;  %v6895_v40 = vld [vmem:[#allocation2 + $0x30] sm:$0xf] }
 0x42b   : > { %5844 = vst.msk [vmem:[#allocation3 + $0xb4] sm:$0xf] %vm1289_vm3, %v5826_v27  ;;  %5845 = vst.msk [vmem:[#allocation3 + $0xb8] sm:$0xf] %vm1289_vm3, %v5828_v38  ;;  %v6707_v27 = vshll.u32 %v6598_v31, 16 }
 0x42c   : > { %6437 = vrot.lane.b32.xlu1 %v6422_v14, %s9814_s29  ;;  %6559 = vrot.lane.b32.xlu0 %v6539_v53, %s9789_s8  ;;  %v6542_v38 = vld [vmem:[#allocation2 + $0x40] sm:$0xf]  ;;  %v6668_v14 = vsel %vm9944_vm4, %v6663_v7, %v6667_v54  ;;  %v6677_v53 = vrot.slane %v6676_v63, 4  ;;  %v6793_v54 = vrot.slane %v6752_v41, 5  ;;  %v6755_v63 = vld [vmem:[#allocation2 + $0x38] sm:$0xe] }
 0x42d   : > { %v6709_v10 = vrot.slane %v6707_v27, 5  ;;  %v9436_v7 = vrot.slane %v6753_v3, 9  ;;  %v9437_v22 = vrot.slane %v6755_v63, 9  ;;  %v6758_v27 = vld [vmem:[#allocation2 + $0x44] sm:$0x1] }
 0x42e   : > { %v5830_v36 = vpop.permute.xlu1 %5829  ;;  %v5920_v37 = vpop.permute.xlu0 %5919  ;;  %v6901_v41 = vld [vmem:[#allocation2 + $0x48] sm:$0xf] }
 0x42f   : > { %5846 = vst.msk [vmem:[#allocation3 + $0xbc] sm:$0xf] %vm1289_vm3, %v5830_v36  ;;  %v6682_v36 = vsel %vm9944_vm4, %v6677_v53, %v6681_v62  ;;  %v6897_v53 = vld [vmem:[#allocation2 + $0x38] sm:$0xf] }
 0x430   : > { %5939 = vst.msk [vmem:[#allocation3 + $0xb0] sm:$0xf] %vm1386_vm5, %v5920_v37  ;;  %6561 = vrot.lane.b32.xlu1 %v6540_v50, %s9789_s8  ;;  %6563 = vrot.lane.b32.xlu0 %v6541_v59, %s9789_s8  ;;  %v6754_v50 = vld [vmem:[#allocation2 + $0x34] sm:$0x1]  ;;  %v6696_v37 = vsel %vm9944_vm4, %v6691_v56, %v6695_v18  ;;  %v6705_v59 = vrot.slane %v6704_v15, 4  ;;  %v6794_v18 = vsel %vm9956_vm7, %v9435_v61, %v6793_v54  ;;  %v6805_v61 = vrot.slane %v6758_v27, 5 }
 0x431   : > { %v6797_v5 = vrot.slane %v6754_v50, 5  ;;  %v6899_v56 = vld [vmem:[#allocation2 + $0x40] sm:$0xf]  ;;  %v6974_v3 = vshrl.u32 %v6897_v53, 16  ;;  %v6977_v50 = vshll.u32 %v6897_v53, 16 }
 0x432   : > { %v5922_v43 = vpop.permute.xlu1 %5921  ;;  %v5924_v12 = vpop.permute.xlu0 %5923  ;;  %v6710_v62 = vsel %vm9944_vm4, %v6705_v59, %v6709_v10  ;;  %v6988_v54 = vshrl.u32 %v6899_v56, 16  ;;  %v6991_v63 = vshll.u32 %v6899_v56, 16 }
 0x433   : > { %5940 = vst.msk [vmem:[#allocation3 + $0xb4] sm:$0xf] %vm1386_vm5, %v5922_v43  ;;  %5941 = vst.msk [vmem:[#allocation3 + $0xb8] sm:$0xf] %vm1386_vm5, %v5924_v12  ;;  %v6801_v43 = vrot.slane %v6756_v29, 5  ;;  %v6798_v15 = vsel %vm9956_vm7, %v9436_v7, %v6797_v5  ;;  %v7002_v29 = vshrl.u32 %v6901_v41, 16 }
 0x434   : > { %6565 = vrot.lane.b32.xlu1 %v6542_v38, %s9789_s8  ;;  %6719 = vrot.lane.b32.xlu0 %v6668_v14, %s9791_s10  ;;  %v6757_v12 = vld [vmem:[#allocation2 + $0x40] sm:$0xe]  ;;  %v6960_v38 = vshrl.u32 %v6895_v40, 16  ;;  %v6963_v14 = vshll.u32 %v6895_v40, 16  ;;  %v7005_v40 = vshll.u32 %v6901_v41, 16  ;;  %v6990_v27 = vrot.slane %v6988_v54, 4 }
 0x435   : > { %v9438_v45 = vrot.slane %v6757_v12, 9  ;;  %v6802_v10 = vsel %vm9956_vm7, %v9437_v22, %v6801_v43  ;;  %v6976_v43 = vrot.slane %v6974_v3, 4  ;;  %v7004_v53 = vrot.slane %v7002_v29, 4  ;;  %v7055_v29 = vld [vmem:[#allocation2 + $0x30] sm:$0xe]  ;;  %s9818_s8 = smov 100  }
 0x436   : > { %v5926_v34 = vpop.permute.xlu1 %5925  ;;  %v5968_v26 = vpop.permute.xlu0 %5967  ;;  %v6965_v59 = vrot.slane %v6963_v14, 5  ;;  %v6900_v14 = vld [vmem:[#allocation2 + $0x44] sm:$0x1]  ;;  %v7007_v56 = vrot.slane %v7005_v40, 5 }
 0x437   : > { %5942 = vst.msk [vmem:[#allocation3 + $0xbc] sm:$0xf] %vm1386_vm5, %v5926_v34 }
 0x438   : > { %5987 = vst.msk [vmem:[#allocation3 + $0xb0] sm:$0xf] %vm1436_vm6, %v5968_v26  ;;  %6721 = vrot.lane.b32.xlu1 %v6682_v36, %s9791_s10  ;;  %6723 = vrot.lane.b32.xlu0 %v6696_v37, %s9791_s10  ;;  %v6896_v36 = vld [vmem:[#allocation2 + $0x34] sm:$0x1]  ;;  %v6962_v37 = vrot.slane %v6960_v38, 4  ;;  %v6993_v38 = vrot.slane %v6991_v63, 5 }
 0x439   : > { %v6969_v22 = vshll.u32 %v6896_v36, 16  ;;  %v6846_v63 = vld [vmem:[#allocation2 + $0x48] sm:$0xf] }
 0x43a   : > { %v5970_v31 = vpop.permute.xlu1 %5969  ;;  %v5972_v35 = vpop.permute.xlu0 %5971  ;;  %v6966_v12 = vor.u32 %v6965_v59, %v6962_v37  ;;  %v6994_v36 = vor.u32 %v6993_v38, %v6990_v27  ;;  %v6997_v37 = vshll.u32 %v6900_v14, 16  ;;  %v7008_v59 = vor.u32 %v7007_v56, %v7004_v53  ;;  %v12166_v53 = vld [vmem:[#allocation2 + $0x3c] sm:$0x1]  ;;  %v12206_v56 = vld [vmem:[#allocation2 + $0x18] sm:$0xe] }
 0x43b   : > { %5988 = vst.msk [vmem:[#allocation3 + $0xb4] sm:$0xf] %vm1436_vm6, %v5970_v31  ;;  %5989 = vst.msk [vmem:[#allocation3 + $0xb8] sm:$0xf] %vm1436_vm6, %v5972_v35  ;;  %v6806_v31 = vsel %vm9956_vm7, %v9438_v45, %v6805_v61  ;;  %v6843_v35 = vld [vmem:[#allocation2 + $0x30] sm:$0xf] }
 0x43c   : > { %6725 = vrot.lane.b32.xlu1 %v6710_v62, %s9791_s10  ;;  %6815 = vrot.lane.b32.xlu0 %v6794_v18, %s9793_s12  ;;  %v6898_v62 = vld [vmem:[#allocation2 + $0x3c] sm:$0x1]  ;;  %v6979_v18 = vrot.slane %v6977_v50, 5  ;;  %v6845_v61 = vld [vmem:[#allocation2 + $0x40] sm:$0xf]  ;;  %v6967_v3 = vrot.slane %v6966_v12, 4 }
 0x43d   : > { %v6995_v12 = vrot.slane %v6994_v36, 4  ;;  %v9443_v38 = vrot.slane %v7055_v29, 9  ;;  %v12179_v36 = vld [vmem:[#allocation2 + $0x8] sm:$0xe]  ;;  %s13044_s10 = smov 44  }
 0x43e   : > { %v5974_v34 = vpop.permute.xlu1 %5973  ;;  %v6128_v26 = vpop.permute.xlu0 %6127  ;;  %v6980_v50 = vor.u32 %v6979_v18, %v6976_v43  ;;  %v7009_v18 = vrot.slane %v7008_v59, 4  ;;  %v6458_v59 = vld [vmem:[#allocation2 + $0xc] sm:$0x1] }
 0x43f   : > { %5990 = vst.msk [vmem:[#allocation3 + $0xbc] sm:$0xf] %vm1436_vm6, %v5974_v34  ;;  %v6971_v34 = vrot.slane %v6969_v22, 5 }
 0x440   : > { %6147 = vst.msk [vmem:[#allocation3 + $0xb0] sm:$0xf] %vm1597_vm8, %v6128_v26  ;;  %6817 = vrot.lane.b32.xlu1 %v6798_v15, %s9793_s12  ;;  %6819 = vrot.lane.b32.xlu0 %v6802_v10, %s9793_s12  ;;  %v6902_v15 = vld [vmem:[#allocation2 + $0x4c] sm:$0x1]  ;;  %v6983_v26 = vshll.u32 %v6898_v62, 16  ;;  %v6981_v43 = vrot.slane %v6980_v50, 4 }
 0x441   : > { %v6844_v10 = vld [vmem:[#allocation2 + $0x38] sm:$0xf]  ;;  %v7011_v54 = vshll.u32 %v6902_v15, 16  ;;  %v6972_v22 = vsel %vm9944_vm4, %v6967_v3, %v6971_v34  ;;  %v6999_v62 = vrot.slane %v6997_v37, 5  ;;  %v6455_v15 = vld [vmem:[#allocation2] sm:$0xe] }
 0x442   : > { %v6130_v7 = vpop.permute.xlu1 %6129  ;;  %v6132_v5 = vpop.permute.xlu0 %6131  ;;  %v7191_v34 = vld [vmem:[#allocation2] sm:$0xf]  ;;  %v12177_v50 = vld [vmem:[#allocation2 + $0x44] sm:$0x1] }
 0x443   : > { %6148 = vst.msk [vmem:[#allocation3 + $0xb4] sm:$0xf] %vm1597_vm8, %v6130_v7  ;;  %6149 = vst.msk [vmem:[#allocation3 + $0xb8] sm:$0xf] %vm1597_vm8, %v6132_v5  ;;  %v6985_v5 = vrot.slane %v6983_v26, 5  ;;  %v7013_v27 = vrot.slane %v7011_v54, 5 }
 0x444   : > { %6821 = vrot.lane.b32.xlu1 %v6806_v31, %s9793_s12  ;;  %6863 = vrot.lane.b32.xlu0 %v6843_v35, %s9796_s19  ;;  %v7056_v31 = vld [vmem:[#allocation2 + $0x34] sm:$0x1]  ;;  %v12158_v35 = vld [vmem:[#allocation2 + $0x38] sm:$0xe]  ;;  %v6456_v26 = vld [vmem:[#allocation2 + $0x4] sm:$0x1] }
 0x445   : > { %v7097_v14 = vrot.slane %v7056_v31, 5  ;;  %v12175_v3 = vld [vmem:[#allocation2 + $0x40] sm:$0xe]  ;;  %v7014_v37 = vsel %vm9944_vm4, %v7009_v18, %v7013_v27  ;;  %v12185_v54 = vld [vmem:[#allocation2 + $0x10] sm:$0xe]  ;;  %v7211_v31 = vshll.u32 %v7191_v34, 16 }
 0x446   : > { %v6134_v45 = vpop.permute.xlu1 %6133  ;;  %v6224_v41 = vpop.permute.xlu0 %6223  ;;  %s13048_s12 = smov 56  }
 0x447   : > { %6150 = vst.msk [vmem:[#allocation3 + $0xbc] sm:$0xf] %vm1597_vm8, %v6134_v45  ;;  %v7098_v18 = vsel %vm9956_vm7, %v9443_v38, %v7097_v14  ;;  %v7143_v14 = vld [vmem:[#allocation2] sm:$0xf] }
 0x448   : > { %6243 = vst.msk [vmem:[#allocation3 + $0xb0] sm:$0xf] %vm1694_vm10, %v6224_v41  ;;  %6865 = vrot.lane.b32.xlu1 %v6844_v10, %s9796_s19  ;;  %6867 = vrot.lane.b32.xlu0 %v6845_v61, %s9796_s19  ;;  %v6986_v10 = vsel %vm9944_vm4, %v6981_v43, %v6985_v5  ;;  %v7000_v61 = vsel %vm9944_vm4, %v6995_v12, %v6999_v62  ;;  %v7208_v5 = vshrl.u32 %v7191_v34, 16  ;;  %v9424_v34 = vrot.slane %v12179_v36, 9 }
 0x44a   : > { %v6226_v40 = vpop.permute.xlu1 %6225  ;;  %v6264_v7 = vpop.permute.xlu0 %6263 }
 0x44b   : > { %6244 = vst.msk [vmem:[#allocation3 + $0xb4] sm:$0xf] %vm1694_vm10, %v6226_v40  ;;  %v9423_v40 = vrot.slane %v6455_v15, 9 }
 0x44c   : > { %6287 = vst.msk [vmem:[#allocation3 + $0xc0] sm:$0xf] %vm815_vm9, %v6264_v7  ;;  %6869 = vrot.lane.b32.xlu1 %v6846_v63, %s9796_s19  ;;  %7023 = vrot.lane.b32.xlu0 %v6972_v22, %s9794_s13  ;;  %v12187_v63 = vld [vmem:[#allocation2 + $0x14] sm:$0x1]  ;;  %v6489_v7 = vrot.slane %v6456_v26, 5  ;;  %v7105_v26 = vrot.slane %v12177_v50, 5 }
 0x44d   : > { %v12191_v22 = vld [vmem:[#allocation2 + $0x8] sm:$0xf]  ;;  %v7195_v50 = vld [vmem:[#allocation2 + $0x10] sm:$0xf] }
 0x44e   : > { %v6266_v45 = vpop.permute.xlu1 %6265  ;;  %v6228_v41 = vpop.permute.xlu0 %6227 }
 0x44f   : > { %6288 = vst.msk [vmem:[#allocation3 + $0xc4] sm:$0xf] %vm815_vm9, %v6266_v45  ;;  %v12189_v29 = vpop.f32.mrf.mxu1  ;;  %v7101_v45 = vrot.slane %v12166_v53, 5  ;;  %v6497_v53 = vrot.slane %v12187_v63, 5 }
 0x450   : > { %6245 = vst.msk [vmem:[#allocation3 + $0xb8] sm:$0xf] %vm1694_vm10, %v6228_v41  ;;  %7025 = vrot.lane.b32.xlu1 %v6986_v10, %s9794_s13  ;;  %7027 = vrot.lane.b32.xlu0 %v7000_v61, %s9794_s13  ;;  %13038 = vst [vmem:[#allocation7_spill] sm:$0xff] %v12189_v29  ;;  %v8698_v43 = vpack.c.bf16 %v12189_v29, %v12189_v29  ;;  %v9445_v41 = vrot.slane %v12175_v3, 9  ;;  %v6493_v10 = vrot.slane %v6458_v59, 5  ;;  %v9425_v61 = vrot.slane %v12185_v54, 9 }
 0x451   : > { %v12201_v15 = vpop.f32.mrf.mxu1  ;;  %v7222_v3 = vshrl.u32 %v12191_v22, 16  ;;  %v6490_v59 = vsel %vm9956_vm7, %v9423_v40, %v6489_v7  ;;  %v7061_v54 = vld [vmem:[#allocation2 + $0x48] sm:$0xe]  ;;  %v7062_v29 = vld [vmem:[#allocation2 + $0x4c] sm:$0x1]  ;;  %v13042_v7 = vrot.slane %v12158_v35, 9 }
 0x452   : > { %v6230_v12 = vpop.permute.xlu1 %6229  ;;  %v6268_v62 = vpop.permute.xlu0 %6267  ;;  %v9751_v27 = vld [vmem:[#allocation3 + $0xb0] sm:$0xff]   ;;  %13039 = vst [vmem:[#allocation10_spill] sm:$0xff] %v12201_v15  ;;  %8763 = vst.msk [vmem:[%s10988_s30 + $0x88] sm:$0xf] %vm8728_vm11, %v8698_v43  ;;  %v8696_v38 = vpack.c.bf16 %v12201_v15, %v12201_v15  ;;  %v7210_v43 = vrot.slane %v7208_v5, 4  ;;  %v7106_v35 = vsel %vm9956_vm7, %v9445_v41, %v7105_v26  ;;  %v6498_v41 = vsel %vm9956_vm7, %v9425_v61, %v6497_v53 }
 0x453   : > { %6246 = vst.msk [vmem:[#allocation3 + $0xbc] sm:$0xf] %vm1694_vm10, %v6230_v12  ;;  %v12216_v36 = vpop.f32.mrf.mxu1  ;;  %9628 = vmatprep.mubr.bf16.mxu1 %v9751_v27  ;;  %v7213_v12 = vrot.slane %v7211_v31, 5  ;;  %v7192_v15 = vld [vmem:[#allocation2 + $0x4] sm:$0x1]  ;;  %v7102_v5 = vsel %vm9956_vm7, %v13042_v7, %v7101_v45  ;;  %v7239_v27 = vshll.u32 %v7195_v50, 16  ;;  %v6494_v45 = vsel %vm9956_vm7, %v9424_v34, %v6493_v10 }
 0x454   : > { %6289 = vst.msk [vmem:[#allocation3 + $0xc8] sm:$0xf] %vm815_vm9, %v6268_v62  ;;  %7029 = vrot.lane.b32.xlu1 %v7014_v37, %s9794_s13  ;;  %7119 = vrot.lane.b32.xlu0 %v7098_v18, %s9790_s9  ;;  %13040 = vst [vmem:[#allocation12_spill] sm:$0xff] %v12216_v36  ;;  %v7225_v37 = vshll.u32 %v12191_v22, 16  ;;  %v8699_v63 = vpack.c.bf16 %v12216_v36, %v12216_v36  ;;  %v6462_v31 = vld [vmem:[#allocation2 + $0x1c] sm:$0x1] }
 0x455   : > { %8761 = vst.msk [vmem:[%s10988_s30 + $0x80] sm:$0xf] %vm8728_vm11, %v8696_v38  ;;  %v12227_v40 = vpop.f32.mrf.mxu1  ;;  %v7236_v22 = vshrl.u32 %v7195_v50, 16  ;;  %v9426_v50 = vrot.slane %v12206_v56, 9  ;;  %v7109_v7 = vrot.slane %v7062_v29, 5  ;;  %v7214_v36 = vor.u32 %v7213_v12, %v7210_v43  ;;  %s13049_s13 = smov 68  }
 0x456   : > { %v6270_v62 = vpop.permute.xlu1 %6269  ;;  %v6424_v18 = vpop.permute.xlu0 %6423  ;;  %13041 = vst [vmem:[#allocation13_spill] sm:$0xff] %v12227_v40  ;;  %8764 = vst.msk [vmem:[%s10988_s30 + $0x8c] sm:$0xf] %vm8728_vm11, %v8699_v63  ;;  %v8697_v38 = vpack.c.bf16 %v12227_v40, %v12227_v40  ;;  %v7197_v63 = vld [vmem:[#allocation2 + $0x18] sm:$0xf]  ;;  %v7217_v40 = vshll.u32 %v7192_v15, 16 }
 0x457   : > { %6290 = vst.msk [vmem:[#allocation3 + $0xcc] sm:$0xf] %vm815_vm9, %v6270_v62  ;;  %v7144_v62 = vld [vmem:[#allocation2 + $0x8] sm:$0xf]  ;;  %v6501_v26 = vrot.slane %v6462_v31, 5  ;;  %v7227_v34 = vrot.slane %v7225_v37, 5 }
 0x458   : > { %6447 = vst.msk [vmem:[#allocation3 + $0xc0] sm:$0xf] %vm979_vm0, %v6424_v18  ;;  %7121 = vrot.lane.b32.xlu1 %v7102_v5, %s9790_s9  ;;  %7159 = vrot.lane.b32.xlu0 %v7143_v14, %s9818_s8  ;;  %v9446_v18 = vrot.slane %v7061_v54, 9  ;;  %v7194_v5 = vld [vmem:[#allocation2 + $0xc] sm:$0x1]  ;;  %v7238_v29 = vrot.slane %v7236_v22, 4 }
 0x459   : > { %6527 = vst.msk [vmem:[#allocation3 + $0xc0] sm:$0xf] %vm1079_vm1, %v6490_v59  ;;  %v7224_v59 = vrot.slane %v7222_v3, 4  ;;  %v7196_v56 = vld [vmem:[#allocation2 + $0x14] sm:$0x1]  ;;  %v7241_v10 = vrot.slane %v7239_v27, 5  ;;  %v6502_v12 = vsel %vm9956_vm7, %v9426_v50, %v6501_v26 }
 0x45a   : > { %8762 = vst.msk [vmem:[%s10988_s30 + $0x84] sm:$0xf] %vm8728_vm11, %v8697_v38  ;;  %v6426_v14 = vpop.permute.xlu1 %6425  ;;  %v6428_v9 = vpop.permute.xlu0 %6427  ;;  %v9752_v0 = vld [vmem:[#allocation3 + $0xb8] sm:$0xff]   ;;  %v7250_v15 = vshrl.u32 %v7197_v63, 16  ;;  %v7253_v54 = vshll.u32 %v7197_v63, 16  ;;  %v7110_v61 = vsel %vm9956_vm7, %v9446_v18, %v7109_v7  ;;  %v7215_v53 = vrot.slane %v7214_v36, 4 }
 0x45b   : > { %6448 = vst.msk [vmem:[#allocation3 + $0xc4] sm:$0xf] %vm979_vm0, %v6426_v14  ;;  %6449 = vst.msk [vmem:[#allocation3 + $0xc8] sm:$0xf] %vm979_vm0, %v6428_v9  ;;  %9629 = vmatmul.mubr.bf16.gmra.mxu1 %v9752_v0  ;;  %v7219_v3 = vrot.slane %v7217_v40, 5  ;;  %v7231_v37 = vshll.u32 %v7194_v5, 16  ;;  %v7228_v27 = vor.u32 %v7227_v34, %v7224_v59  ;;  %v7242_v38 = vor.u32 %v7241_v10, %v7238_v29 }
 0x45c   : > { %7161 = vrot.lane.b32.xlu1 %v7144_v62, %s9818_s8  ;;  %7123 = vrot.lane.b32.xlu0 %v7106_v35, %s9790_s9  ;;  %6528 = vst.msk [vmem:[#allocation3 + $0xc4] sm:$0xf] %vm1079_vm1, %v6494_v45  ;;  %6529 = vst.msk [vmem:[#allocation3 + $0xc8] sm:$0xf] %vm1079_vm1, %v6498_v41  ;;  %v7245_v31 = vshll.u32 %v7196_v56, 16  ;;  %v7252_v0 = vrot.slane %v7250_v15, 4 }
 0x45d   : > { %v7145_v22 = vld [vmem:[#allocation2 + $0x10] sm:$0xf]  ;;  %v7255_v35 = vrot.slane %v7253_v54, 5  ;;  %v7198_v36 = vld [vmem:[#allocation2 + $0x1c] sm:$0x1]  ;;  %v7220_v40 = vsel %vm9944_vm4, %v7215_v53, %v7219_v3  ;;  %v7233_v63 = vrot.slane %v7231_v37, 5 }
 0x45e   : > { %v6430_v9 = vpop.permute.xlu1 %6429  ;;  %v6552_v43 = vpop.permute.xlu0 %6551  ;;  %v7247_v62 = vrot.slane %v7245_v31, 5  ;;  %v7351_v18 = vld [vmem:[#allocation2] sm:$0xe]  ;;  %v7352_v7 = vld [vmem:[#allocation2 + $0x4] sm:$0x1]  ;;  %v7229_v14 = vrot.slane %v7228_v27, 4 }
 0x45f   : > { %6450 = vst.msk [vmem:[#allocation3 + $0xcc] sm:$0xf] %vm979_vm0, %v6430_v9  ;;  %v7146_v5 = vld [vmem:[#allocation2 + $0x18] sm:$0xf]  ;;  %v7243_v41 = vrot.slane %v7242_v38, 4  ;;  %v7256_v26 = vor.u32 %v7255_v35, %v7252_v0  ;;  %v7259_v59 = vshll.u32 %v7198_v36, 16 }
 0x460   : > { %6575 = vst.msk [vmem:[#allocation3 + $0xc0] sm:$0xf] %vm1128_vm2, %v6552_v43  ;;  %7125 = vrot.lane.b32.xlu1 %v7110_v61, %s9790_s9  ;;  %7163 = vrot.lane.b32.xlu0 %v7145_v22, %s9818_s8  ;;  %v9447_v34 = vrot.slane %v7351_v18, 9  ;;  %v7385_v56 = vrot.slane %v7352_v7, 5  ;;  %v7234_v15 = vsel %vm9944_vm4, %v7229_v14, %v7233_v63  ;;  %v7495_v3 = vld [vmem:[#allocation2 + $0x8] sm:$0xf] }
 0x461   : > { %6530 = vst.msk [vmem:[#allocation3 + $0xcc] sm:$0xf] %vm1079_vm1, %v6502_v12  ;;  %v7248_v54 = vsel %vm9944_vm4, %v7243_v41, %v7247_v62  ;;  %v7257_v61 = vrot.slane %v7256_v26, 4  ;;  %v7261_v53 = vrot.slane %v7259_v59, 5  ;;  %v7354_v9 = vld [vmem:[#allocation2 + $0xc] sm:$0x1] }
 0x462   : > { %v6554_v45 = vpop.permute.xlu1 %6553  ;;  %v6556_v50 = vpop.permute.xlu0 %6555  ;;  %v7355_v43 = vld [vmem:[#allocation2 + $0x10] sm:$0xe]  ;;  %v7356_v12 = vld [vmem:[#allocation2 + $0x14] sm:$0x1]  ;;  %v7386_v37 = vsel %vm9956_vm7, %v9447_v34, %v7385_v56  ;;  %v7353_v31 = vld [vmem:[#allocation2 + $0x8] sm:$0xe] }
 0x463   : > { %6576 = vst.msk [vmem:[#allocation3 + $0xc4] sm:$0xf] %vm1128_vm2, %v6554_v45  ;;  %6577 = vst.msk [vmem:[#allocation3 + $0xc8] sm:$0xf] %vm1128_vm2, %v6556_v50  ;;  %v7357_v38 = vld [vmem:[#allocation2 + $0x18] sm:$0xe] }
 0x464   : > { %7165 = vrot.lane.b32.xlu1 %v7146_v5, %s9818_s8  ;;  %7319 = vrot.lane.b32.xlu0 %v7220_v40, %s9815_s16  ;;  %v7358_v0 = vld [vmem:[#allocation2 + $0x1c] sm:$0x1]  ;;  %v7512_v35 = vshrl.u32 %v7495_v3, 16  ;;  %v7515_v36 = vshll.u32 %v7495_v3, 16  ;;  %v7262_v40 = vsel %vm9944_vm4, %v7257_v61, %v7261_v53  ;;  %v7389_v45 = vrot.slane %v7354_v9, 5  ;;  %s13043_s9 = smov 32  }
 0x465   : > { %v9449_v50 = vrot.slane %v7355_v43, 9  ;;  %v7393_v63 = vrot.slane %v7356_v12, 5  ;;  %v7497_v62 = vld [vmem:[#allocation2 + $0x10] sm:$0xf]  ;;  %v7499_v18 = vld [vmem:[#allocation2 + $0x18] sm:$0xf] }
 0x466   : > { %v6558_v29 = vpop.permute.xlu1 %6557  ;;  %v6712_v10 = vpop.permute.xlu0 %6711  ;;  %v9448_v7 = vrot.slane %v7353_v31, 9  ;;  %v9450_v5 = vrot.slane %v7357_v38, 9  ;;  %v7397_v14 = vrot.slane %v7358_v0, 5  ;;  %v7514_v59 = vrot.slane %v7512_v35, 4  ;;  %v7501_v3 = vld [vmem:[#allocation2 + $0x20] sm:$0xf] }
 0x467   : > { %6578 = vst.msk [vmem:[#allocation3 + $0xcc] sm:$0xf] %vm1128_vm2, %v6558_v29  ;;  %v7517_v34 = vrot.slane %v7515_v36, 5  ;;  %v7526_v56 = vshrl.u32 %v7497_v62, 16  ;;  %v7529_v29 = vshll.u32 %v7497_v62, 16  ;;  %v7540_v61 = vshrl.u32 %v7499_v18, 16 }
 0x468   : > { %6735 = vst.msk [vmem:[#allocation3 + $0xc0] sm:$0xf] %vm1289_vm3, %v6712_v10  ;;  %7321 = vrot.lane.b32.xlu1 %v7234_v15, %s9815_s16  ;;  %7323 = vrot.lane.b32.xlu0 %v7248_v54, %s9815_s16  ;;  %v7390_v10 = vsel %vm9956_vm7, %v9448_v7, %v7389_v45  ;;  %v7394_v15 = vsel %vm9956_vm7, %v9449_v50, %v7393_v63  ;;  %v7496_v54 = vld [vmem:[#allocation2 + $0xc] sm:$0x1]  ;;  %v7543_v53 = vshll.u32 %v7499_v18, 16  ;;  %v7554_v45 = vshrl.u32 %v7501_v3, 16 }
 0x469   : > { %v7398_v9 = vsel %vm9956_vm7, %v9450_v5, %v7397_v14  ;;  %v7447_v43 = vld [vmem:[#allocation2 + $0x8] sm:$0xf]  ;;  %v7518_v31 = vor.u32 %v7517_v34, %v7514_v59  ;;  %v7528_v38 = vrot.slane %v7526_v56, 4  ;;  %v7531_v0 = vrot.slane %v7529_v29, 5  ;;  %v7500_v35 = vld [vmem:[#allocation2 + $0x1c] sm:$0x1] }
 0x46a   : > { %v6714_v22 = vpop.permute.xlu1 %6713  ;;  %v6716_v27 = vpop.permute.xlu0 %6715  ;;  %v7542_v36 = vrot.slane %v7540_v61, 4  ;;  %v7557_v50 = vshll.u32 %v7501_v3, 16  ;;  %v7448_v18 = vld [vmem:[#allocation2 + $0x10] sm:$0xf]  ;;  %v7556_v56 = vrot.slane %v7554_v45, 4 }
 0x46b   : > { %6736 = vst.msk [vmem:[#allocation3 + $0xc4] sm:$0xf] %vm1289_vm3, %v6714_v22  ;;  %6737 = vst.msk [vmem:[#allocation3 + $0xc8] sm:$0xf] %vm1289_vm3, %v6716_v27  ;;  %v7521_v22 = vshll.u32 %v7496_v54, 16  ;;  %v7532_v5 = vor.u32 %v7531_v0, %v7528_v38  ;;  %v7519_v59 = vrot.slane %v7518_v31, 4 }
 0x46c   : > { %7325 = vrot.lane.b32.xlu1 %v7262_v40, %s9815_s16  ;;  %7415 = vrot.lane.b32.xlu0 %v7386_v37, %s9797_s20  ;;  %v7498_v27 = vld [vmem:[#allocation2 + $0x14] sm:$0x1]  ;;  %v7545_v40 = vrot.slane %v7543_v53, 5  ;;  %v7559_v29 = vrot.slane %v7557_v50, 5 }
 0x46d   : > { %v7523_v7 = vrot.slane %v7521_v22, 5  ;;  %v7535_v14 = vshll.u32 %v7498_v27, 16  ;;  %v7533_v61 = vrot.slane %v7532_v5, 4  ;;  %v7656_v22 = vld [vmem:[#allocation2 + $0xc] sm:$0x1] }
 0x46e   : > { %v6718_v41 = vpop.permute.xlu1 %6717  ;;  %v6808_v26 = vpop.permute.xlu0 %6807  ;;  %v7546_v34 = vor.u32 %v7545_v40, %v7542_v36  ;;  %v7657_v36 = vld [vmem:[#allocation2 + $0x10] sm:$0xe]  ;;  %v7660_v5 = vld [vmem:[#allocation2 + $0x1c] sm:$0x1] }
 0x46f   : > { %6738 = vst.msk [vmem:[#allocation3 + $0xcc] sm:$0xf] %vm1289_vm3, %v6718_v41  ;;  %v7549_v41 = vshll.u32 %v7500_v35, 16  ;;  %v7537_v53 = vrot.slane %v7535_v14, 5  ;;  %v7655_v35 = vld [vmem:[#allocation2 + $0x8] sm:$0xe] }
 0x470   : > { %6831 = vst.msk [vmem:[#allocation3 + $0xc0] sm:$0xf] %vm1386_vm5, %v6808_v26  ;;  %7417 = vrot.lane.b32.xlu1 %v7390_v10, %s9797_s20  ;;  %7419 = vrot.lane.b32.xlu0 %v7394_v15, %s9797_s20  ;;  %v7449_v26 = vld [vmem:[#allocation2 + $0x18] sm:$0xf]  ;;  %v7502_v10 = vld [vmem:[#allocation2 + $0x24] sm:$0x1] }
 0x471   : > { %v7551_v3 = vrot.slane %v7549_v41, 5  ;;  %v7563_v31 = vshll.u32 %v7502_v10, 16  ;;  %v7538_v0 = vsel %vm9944_vm4, %v7533_v61, %v7537_v53  ;;  %v7799_v40 = vld [vmem:[#allocation2 + $0x10] sm:$0xf]  ;;  %v9455_v14 = vrot.slane %v7655_v35, 9 }
 0x472   : > { %v6810_v12 = vpop.permute.xlu1 %6809  ;;  %v6812_v37 = vpop.permute.xlu0 %6811  ;;  %v7816_v41 = vshrl.u32 %v7799_v40, 16  ;;  %v7697_v61 = vrot.slane %v7660_v5, 5  ;;  %v7801_v53 = vld [vmem:[#allocation2 + $0x18] sm:$0xf] }
 0x473   : > { %6832 = vst.msk [vmem:[#allocation3 + $0xc4] sm:$0xf] %vm1386_vm5, %v6810_v12  ;;  %6833 = vst.msk [vmem:[#allocation3 + $0xc8] sm:$0xf] %vm1386_vm5, %v6812_v37  ;;  %v7547_v12 = vrot.slane %v7546_v34, 4  ;;  %v7560_v37 = vor.u32 %v7559_v29, %v7556_v56  ;;  %v9456_v56 = vrot.slane %v7657_v36, 9 }
 0x474   : > { %7421 = vrot.lane.b32.xlu1 %v7398_v9, %s9797_s20  ;;  %7463 = vrot.lane.b32.xlu0 %v7447_v43, %s9798_s14  ;;  %v7450_v9 = vld [vmem:[#allocation2 + $0x20] sm:$0xf]  ;;  %v7524_v43 = vsel %vm9944_vm4, %v7519_v59, %v7523_v7  ;;  %v7659_v7 = vld [vmem:[#allocation2 + $0x18] sm:$0xe] }
 0x475   : > { %v7552_v45 = vsel %vm9944_vm4, %v7547_v12, %v7551_v3  ;;  %v7561_v50 = vrot.slane %v7560_v37, 4  ;;  %v7661_v3 = vld [vmem:[#allocation2 + $0x20] sm:$0xe]  ;;  %v7818_v12 = vrot.slane %v7816_v41, 4 }
 0x476   : > { %v6814_v63 = vpop.permute.xlu1 %6813  ;;  %v6856_v62 = vpop.permute.xlu0 %6855 }
 0x477   : > { %6834 = vst.msk [vmem:[#allocation3 + $0xcc] sm:$0xf] %vm1386_vm5, %v6814_v63  ;;  %v7565_v63 = vrot.slane %v7563_v31, 5 }
 0x478   : > { %6879 = vst.msk [vmem:[#allocation3 + $0xc0] sm:$0xf] %vm1436_vm6, %v6856_v62  ;;  %7465 = vrot.lane.b32.xlu1 %v7448_v18, %s9798_s14  ;;  %7467 = vrot.lane.b32.xlu0 %v7449_v26, %s9798_s14  ;;  %v7689_v62 = vrot.slane %v7656_v22, 5  ;;  %v7658_v18 = vld [vmem:[#allocation2 + $0x14] sm:$0x1]  ;;  %v7819_v26 = vshll.u32 %v7799_v40, 16 }
 0x479   : > { %v7693_v29 = vrot.slane %v7658_v18, 5  ;;  %v7566_v10 = vsel %vm9944_vm4, %v7561_v50, %v7565_v63  ;;  %v9458_v40 = vrot.slane %v7661_v3, 9 }
 0x47a   : > { %v6858_v15 = vpop.permute.xlu1 %6857  ;;  %v6860_v54 = vpop.permute.xlu0 %6859  ;;  %v7821_v37 = vrot.slane %v7819_v26, 5 }
 0x47b   : > { %6880 = vst.msk [vmem:[#allocation3 + $0xc4] sm:$0xf] %vm1436_vm6, %v6858_v15  ;;  %6881 = vst.msk [vmem:[#allocation3 + $0xc8] sm:$0xf] %vm1436_vm6, %v6860_v54  ;;  %v7690_v15 = vsel %vm9956_vm7, %v9455_v14, %v7689_v62  ;;  %v9457_v54 = vrot.slane %v7659_v7, 9  ;;  %v7694_v35 = vsel %vm9956_vm7, %v9456_v56, %v7693_v29 }
 0x47c   : > { %7469 = vrot.lane.b32.xlu1 %v7450_v9, %s9798_s14  ;;  %7623 = vrot.lane.b32.xlu0 %v7524_v43, %s9799_s21  ;;  %v7662_v9 = vld [vmem:[#allocation2 + $0x24] sm:$0x1]  ;;  %v7800_v43 = vld [vmem:[#allocation2 + $0x14] sm:$0x1]  ;;  %v7822_v63 = vor.u32 %v7821_v37, %v7818_v12  ;;  %v7802_v14 = vld [vmem:[#allocation2 + $0x1c] sm:$0x1] }
 0x47d   : > { %v7698_v36 = vsel %vm9956_vm7, %v9457_v54, %v7697_v61  ;;  %v7825_v50 = vshll.u32 %v7800_v43, 16  ;;  %v6463_v56 = vld [vmem:[#allocation2 + $0x20] sm:$0xe]  ;;  %v6464_v29 = vld [vmem:[#allocation2 + $0x24] sm:$0x1] }
 0x47e   : > { %v6862_v27 = vpop.permute.xlu1 %6861  ;;  %v7016_v38 = vpop.permute.xlu0 %7015  ;;  %v7823_v61 = vrot.slane %v7822_v63, 4  ;;  %v6465_v63 = vld [vmem:[#allocation2 + $0x28] sm:$0xe] }
 0x47f   : > { %6882 = vst.msk [vmem:[#allocation3 + $0xcc] sm:$0xf] %vm1436_vm6, %v6862_v27  ;;  %v7830_v27 = vshrl.u32 %v7801_v53, 16 }
 0x480   : > { %7039 = vst.msk [vmem:[#allocation3 + $0xc0] sm:$0xf] %vm1597_vm8, %v7016_v38  ;;  %7625 = vrot.lane.b32.xlu1 %v7538_v0, %s9799_s21  ;;  %7627 = vrot.lane.b32.xlu0 %v7552_v45, %s9799_s21  ;;  %v7833_v38 = vshll.u32 %v7801_v53, 16  ;;  %v7803_v0 = vld [vmem:[#allocation2 + $0x20] sm:$0xf]  ;;  %v7701_v45 = vrot.slane %v7662_v9, 5 }
 0x481   : > { %v7844_v62 = vshrl.u32 %v7803_v0, 16  ;;  %v7847_v18 = vshll.u32 %v7803_v0, 16  ;;  %v7832_v41 = vrot.slane %v7830_v27, 4  ;;  %v7839_v53 = vshll.u32 %v7802_v14, 16 }
 0x482   : > { %v7018_v59 = vpop.permute.xlu1 %7017  ;;  %v6272_v34 = vpop.permute.xlu0 %6271  ;;  %v7835_v26 = vrot.slane %v7833_v38, 5  ;;  %v9427_v27 = vrot.slane %v6463_v56, 9  ;;  %v6505_v38 = vrot.slane %v6464_v29, 5 }
 0x483   : > { %7040 = vst.msk [vmem:[#allocation3 + $0xc4] sm:$0xf] %vm1597_vm8, %v7018_v59  ;;  %v7702_v59 = vsel %vm9956_vm7, %v9458_v40, %v7701_v45  ;;  %v7846_v3 = vrot.slane %v7844_v62, 4  ;;  %v7849_v9 = vrot.slane %v7847_v18, 5  ;;  %v6466_v62 = vld [vmem:[#allocation2 + $0x2c] sm:$0x1] }
 0x484   : > { %6291 = vst.msk [vmem:[#allocation3 + $0xd0] sm:$0xf] %vm815_vm9, %v6272_v34  ;;  %7629 = vrot.lane.b32.xlu1 %v7566_v10, %s9799_s21  ;;  %7719 = vrot.lane.b32.xlu0 %v7690_v15, %s13043_s9  ;;  %v7751_v34 = vld [vmem:[#allocation2 + $0x10] sm:$0xf]  ;;  %v7827_v10 = vrot.slane %v7825_v50, 5 }
 0x485   : > { %v7805_v15 = vld [vmem:[#allocation2 + $0x28] sm:$0xf]  ;;  %v7850_v14 = vor.u32 %v7849_v9, %v7846_v3 }
 0x486   : > { %v6274_v31 = vpop.permute.xlu1 %6273  ;;  %v7020_v22 = vpop.permute.xlu0 %7019  ;;  %v7858_v40 = vshrl.u32 %v7805_v15, 16  ;;  %v7861_v45 = vshll.u32 %v7805_v15, 16  ;;  %v7828_v56 = vsel %vm9944_vm4, %v7823_v61, %v7827_v10  ;;  %v6506_v15 = vsel %vm9956_vm7, %v9427_v27, %v6505_v38  ;;  %v7959_v61 = vld [vmem:[#allocation2 + $0x10] sm:$0xe]  ;;  %v6468_v27 = vld [vmem:[#allocation2 + $0x34] sm:$0x1] }
 0x487   : > { %6292 = vst.msk [vmem:[#allocation3 + $0xd4] sm:$0xf] %vm815_vm9, %v6274_v31  ;;  %v7836_v31 = vor.u32 %v7835_v26, %v7832_v41  ;;  %v7851_v38 = vrot.slane %v7850_v14, 4 }
 0x488   : > { %7041 = vst.msk [vmem:[#allocation3 + $0xc8] sm:$0xf] %vm1597_vm8, %v7020_v22  ;;  %7721 = vrot.lane.b32.xlu1 %v7694_v35, %s13043_s9  ;;  %7723 = vrot.lane.b32.xlu0 %v7698_v36, %s13043_s9  ;;  %v7804_v22 = vld [vmem:[#allocation2 + $0x24] sm:$0x1]  ;;  %v7752_v35 = vld [vmem:[#allocation2 + $0x18] sm:$0xf] }
 0x489   : > { %v7753_v36 = vld [vmem:[#allocation2 + $0x20] sm:$0xf]  ;;  %v7853_v41 = vshll.u32 %v7804_v22, 16  ;;  %v7837_v29 = vrot.slane %v7836_v31, 4  ;;  %v7860_v3 = vrot.slane %v7858_v40, 4  ;;  %v7863_v9 = vrot.slane %v7861_v45, 5 }
 0x48a   : > { %v7022_v7 = vpop.permute.xlu1 %7021  ;;  %v7112_v5 = vpop.permute.xlu0 %7111  ;;  %v7199_v22 = vld [vmem:[#allocation2 + $0x20] sm:$0xf]  ;;  %v6467_v31 = vld [vmem:[#allocation2 + $0x30] sm:$0xe]  ;;  %v7960_v40 = vld [vmem:[#allocation2 + $0x14] sm:$0x1] }
 0x48b   : > { %7042 = vst.msk [vmem:[#allocation3 + $0xcc] sm:$0xf] %vm1597_vm8, %v7022_v7  ;;  %v12340_v54 = vpop.f32.mrf.mxu1  ;;  %v7754_v7 = vld [vmem:[#allocation2 + $0x28] sm:$0xf] }
 0x48c   : > { %7135 = vst.msk [vmem:[#allocation3 + $0xc0] sm:$0xf] %vm1694_vm10, %v7112_v5  ;;  %7725 = vrot.lane.b32.xlu1 %v7702_v59, %s13043_s9  ;;  %7767 = vrot.lane.b32.xlu0 %v7751_v34, %s13044_s10  ;;  %13045 = vst [vmem:[#allocation14_spill] sm:$0xff] %v12340_v54  ;;  %v8702_v43 = vpack.c.bf16 %v12340_v54, %v12340_v54  ;;  %v7841_v5 = vrot.slane %v7839_v53, 5 }
 0x48d   : > { %v12346_v0 = vpop.f32.mrf.mxu1 }
 0x48e   : > { %v7114_v12 = vpop.permute.xlu1 %7113  ;;  %v6276_v37 = vpop.permute.xlu0 %6275  ;;  %8767 = vst.msk [vmem:[%s10988_s30 + $0x98] sm:$0xf] %vm8728_vm11, %v8702_v43  ;;  %v8700_v50 = vpack.c.bf16 %v12346_v0, %v12346_v0  ;;  %v7806_v43 = vld [vmem:[#allocation2 + $0x2c] sm:$0x1] }
 0x48f   : > { %7136 = vst.msk [vmem:[#allocation3 + $0xc4] sm:$0xf] %vm1694_vm10, %v7114_v12  ;;  %v12354_v18 = vpop.f32.mrf.mxu1  ;;  %v9428_v12 = vrot.slane %v6465_v63, 9  ;;  %v7842_v63 = vsel %vm9944_vm4, %v7837_v29, %v7841_v5  ;;  %v6469_v5 = vld [vmem:[#allocation2 + $0x38] sm:$0xe] }
 0x490   : > { %6293 = vst.msk [vmem:[#allocation3 + $0xd8] sm:$0xf] %vm815_vm9, %v6276_v37  ;;  %7769 = vrot.lane.b32.xlu1 %v7752_v35, %s13044_s10  ;;  %7771 = vrot.lane.b32.xlu0 %v7753_v36, %s13044_s10  ;;  %13046 = vst [vmem:[#allocation15_spill] sm:$0xff] %v12354_v18  ;;  %v8703_v26 = vpack.c.bf16 %v12354_v18, %v12354_v18  ;;  %v6509_v37 = vrot.slane %v6466_v62, 5  ;;  %v7855_v35 = vrot.slane %v7853_v41, 5  ;;  %v7867_v36 = vshll.u32 %v7806_v43, 16 }
 0x491   : > { %8765 = vst.msk [vmem:[%s10988_s30 + $0x90] sm:$0xf] %vm8728_vm11, %v8700_v50  ;;  %v12366_v53 = vpop.f32.mrf.mxu1  ;;  %v9429_v41 = vrot.slane %v6467_v31, 9  ;;  %v6470_v29 = vld [vmem:[#allocation2 + $0x3c] sm:$0x1] }
 0x492   : > { %v6278_v59 = vpop.permute.xlu1 %6277  ;;  %v6432_v34 = vpop.permute.xlu0 %6431  ;;  %13047 = vst [vmem:[#allocation16_spill] sm:$0xff] %v12366_v53  ;;  %8768 = vst.msk [vmem:[%s10988_s30 + $0x9c] sm:$0xf] %vm8728_vm11, %v8703_v26  ;;  %v8701_v10 = vpack.c.bf16 %v12366_v53, %v12366_v53  ;;  %v7267_v26 = vshll.u32 %v7199_v22, 16  ;;  %v6510_v14 = vsel %vm9956_vm7, %v9428_v12, %v6509_v37  ;;  %v7148_v43 = vld [vmem:[#allocation2 + $0x28] sm:$0xf] }
 0x493   : > { %6294 = vst.msk [vmem:[#allocation3 + $0xdc] sm:$0xf] %vm815_vm9, %v6278_v59  ;;  %v7147_v59 = vld [vmem:[#allocation2 + $0x20] sm:$0xf]  ;;  %v7961_v12 = vld [vmem:[#allocation2 + $0x18] sm:$0xe] }
 0x494   : > { %6451 = vst.msk [vmem:[#allocation3 + $0xd0] sm:$0xf] %vm979_vm0, %v6432_v34  ;;  %7773 = vrot.lane.b32.xlu1 %v7754_v7, %s13044_s10  ;;  %7927 = vrot.lane.b32.xlu0 %v7828_v56, %s13048_s12  ;;  %v7264_v7 = vshrl.u32 %v7199_v22, 16  ;;  %v7864_v34 = vor.u32 %v7863_v9, %v7860_v3  ;;  %v6513_v56 = vrot.slane %v6468_v27, 5  ;;  %v7856_v22 = vsel %vm9944_vm4, %v7851_v38, %v7855_v35  ;;  %v7962_v27 = vld [vmem:[#allocation2 + $0x1c] sm:$0x1] }
 0x495   : > { %6531 = vst.msk [vmem:[#allocation3 + $0xd0] sm:$0xf] %vm1079_vm1, %v6506_v15  ;;  %v7201_v15 = vld [vmem:[#allocation2 + $0x28] sm:$0xf]  ;;  %v7869_v3 = vrot.slane %v7867_v36, 5  ;;  %v9463_v9 = vrot.slane %v7959_v61, 9 }
 0x496   : > { %8766 = vst.msk [vmem:[%s10988_s30 + $0x94] sm:$0xf] %vm8728_vm11, %v8701_v10  ;;  %v6434_v45 = vpop.permute.xlu1 %6433  ;;  %v7116_v50 = vpop.permute.xlu0 %7115  ;;  %v9753_v62 = vld [vmem:[#allocation3 + $0xc0] sm:$0xff]   ;;  %v7993_v10 = vrot.slane %v7960_v40, 5  ;;  %v9430_v38 = vrot.slane %v6469_v5, 9  ;;  %v6517_v35 = vrot.slane %v6470_v29, 5 }
 0x497   : > { %6452 = vst.msk [vmem:[#allocation3 + $0xd4] sm:$0xf] %vm979_vm0, %v6434_v45  ;;  %9632 = vmatprep.mubr.bf16.mxu1 %v9753_v62  ;;  %v7266_v45 = vrot.slane %v7264_v7, 4  ;;  %v7865_v62 = vrot.slane %v7864_v34, 4  ;;  %v7200_v61 = vld [vmem:[#allocation2 + $0x24] sm:$0x1] }
 0x498   : > { %7137 = vst.msk [vmem:[#allocation3 + $0xc8] sm:$0xf] %vm1694_vm10, %v7116_v50  ;;  %7929 = vrot.lane.b32.xlu1 %v7842_v63, %s13048_s12  ;;  %7167 = vrot.lane.b32.xlu0 %v7147_v59, %s9818_s8  ;;  %v7269_v50 = vrot.slane %v7267_v26, 5  ;;  %v7278_v63 = vshrl.u32 %v7201_v15, 16  ;;  %v7281_v59 = vshll.u32 %v7201_v15, 16  ;;  %v7994_v40 = vsel %vm9956_vm7, %v9463_v9, %v7993_v10 }
 0x499   : > { %6532 = vst.msk [vmem:[#allocation3 + $0xd4] sm:$0xf] %vm1079_vm1, %v6510_v14  ;;  %v6514_v14 = vsel %vm9956_vm7, %v9429_v41, %v6513_v56  ;;  %v7203_v36 = vld [vmem:[#allocation2 + $0x30] sm:$0xf]  ;;  %v9464_v7 = vrot.slane %v7961_v12, 9  ;;  %v7997_v26 = vrot.slane %v7962_v27, 5  ;;  %v7870_v5 = vsel %vm9944_vm4, %v7865_v62, %v7869_v3 }
 0x49a   : > { %v7118_v37 = vpop.permute.xlu1 %7117  ;;  %v6436_v31 = vpop.permute.xlu0 %6435  ;;  %v7280_v41 = vrot.slane %v7278_v63, 4  ;;  %v7283_v56 = vrot.slane %v7281_v59, 5  ;;  %v6518_v29 = vsel %vm9956_vm7, %v9430_v38, %v6517_v35  ;;  %v7295_v9 = vshll.u32 %v7203_v36, 16  ;;  %v7205_v10 = vld [vmem:[#allocation2 + $0x38] sm:$0xf] }
 0x49b   : > { %7138 = vst.msk [vmem:[#allocation3 + $0xcc] sm:$0xf] %vm1694_vm10, %v7118_v37  ;;  %v7270_v37 = vor.u32 %v7269_v50, %v7266_v45  ;;  %v7998_v12 = vsel %vm9956_vm7, %v9464_v7, %v7997_v26  ;;  %v7149_v27 = vld [vmem:[#allocation2 + $0x30] sm:$0xf]  ;;  %v7963_v45 = vld [vmem:[#allocation2 + $0x20] sm:$0xe] }
 0x49c   : > { %6453 = vst.msk [vmem:[#allocation3 + $0xd8] sm:$0xf] %vm979_vm0, %v6436_v31  ;;  %7169 = vrot.lane.b32.xlu1 %v7148_v43, %s9818_s8  ;;  %7931 = vrot.lane.b32.xlu0 %v7856_v22, %s13048_s12  ;;  %v7273_v31 = vshll.u32 %v7200_v61, 16  ;;  %v7202_v43 = vld [vmem:[#allocation2 + $0x2c] sm:$0x1]  ;;  %v7292_v22 = vshrl.u32 %v7203_v36, 16  ;;  %v7284_v38 = vor.u32 %v7283_v56, %v7280_v41 }
 0x49d   : > { %6533 = vst.msk [vmem:[#allocation3 + $0xd8] sm:$0xf] %vm1079_vm1, %v6514_v14  ;;  %v7964_v50 = vld [vmem:[#allocation2 + $0x24] sm:$0x1]  ;;  %v7271_v62 = vrot.slane %v7270_v37, 4  ;;  %v7287_v35 = vshll.u32 %v7202_v43, 16 }
 0x49e   : > { %v6438_v15 = vpop.permute.xlu1 %6437  ;;  %v6560_v34 = vpop.permute.xlu0 %6559  ;;  %v7275_v14 = vrot.slane %v7273_v31, 5  ;;  %v7204_v61 = vld [vmem:[#allocation2 + $0x34] sm:$0x1]  ;;  %v7294_v36 = vrot.slane %v7292_v22, 4  ;;  %v7150_v7 = vld [vmem:[#allocation2 + $0x38] sm:$0xf] }
 0x49f   : > { %6454 = vst.msk [vmem:[#allocation3 + $0xdc] sm:$0xf] %vm979_vm0, %v6438_v15  ;;  %v7306_v15 = vshrl.u32 %v7205_v10, 16  ;;  %v9465_v26 = vrot.slane %v7963_v45, 9  ;;  %v7289_v56 = vrot.slane %v7287_v35, 5  ;;  %v7301_v43 = vshll.u32 %v7204_v61, 16 }
 0x4a0   : > { %6579 = vst.msk [vmem:[#allocation3 + $0xd0] sm:$0xf] %vm1128_vm2, %v6560_v34  ;;  %7933 = vrot.lane.b32.xlu1 %v7870_v5, %s13048_s12  ;;  %8023 = vrot.lane.b32.xlu0 %v7994_v40, %s13049_s13  ;;  %v7297_v40 = vrot.slane %v7295_v9, 5  ;;  %v7309_v34 = vshll.u32 %v7205_v10, 16  ;;  %v7276_v41 = vsel %vm9944_vm4, %v7271_v62, %v7275_v14  ;;  %v8001_v5 = vrot.slane %v7964_v50, 5 }
 0x4a1   : > { %6534 = vst.msk [vmem:[#allocation3 + $0xdc] sm:$0xf] %vm1079_vm1, %v6518_v29  ;;  %v7965_v29 = vld [vmem:[#allocation2 + $0x28] sm:$0xe]  ;;  %v7285_v22 = vrot.slane %v7284_v38, 4  ;;  %v7303_v14 = vrot.slane %v7301_v43, 5 }
 0x4a2   : > { %v6562_v3 = vpop.permute.xlu1 %6561  ;;  %v6564_v63 = vpop.permute.xlu0 %6563  ;;  %v9754_v59 = vld [vmem:[#allocation3 + $0xc8] sm:$0xff]   ;;  %v7966_v9 = vld [vmem:[#allocation2 + $0x2c] sm:$0x1]  ;;  %v7298_v10 = vor.u32 %v7297_v40, %v7294_v36  ;;  %v8002_v50 = vsel %vm9956_vm7, %v9465_v26, %v8001_v5  ;;  %v7359_v40 = vld [vmem:[#allocation2 + $0x20] sm:$0xe] }
 0x4a3   : > { %6580 = vst.msk [vmem:[#allocation3 + $0xd4] sm:$0xf] %vm1128_vm2, %v6562_v3  ;;  %6581 = vst.msk [vmem:[#allocation3 + $0xd8] sm:$0xf] %vm1128_vm2, %v6564_v63  ;;  %9633 = vmatmul.mubr.bf16.gmra.mxu1 %v9754_v59  ;;  %v7206_v45 = vld [vmem:[#allocation2 + $0x3c] sm:$0x1]  ;;  %v7290_v38 = vsel %vm9944_vm4, %v7285_v22, %v7289_v56 }
 0x4a4   : > { %8025 = vrot.lane.b32.xlu1 %v7998_v12, %s13049_s13  ;;  %7171 = vrot.lane.b32.xlu0 %v7149_v27, %s9818_s8  ;;  %v7308_v12 = vrot.slane %v7306_v15, 4  ;;  %v7311_v27 = vrot.slane %v7309_v34, 5  ;;  %v9466_v59 = vrot.slane %v7965_v29, 9  ;;  %v8005_v62 = vrot.slane %v7966_v9, 5  ;;  %v7360_v15 = vld [vmem:[#allocation2 + $0x24] sm:$0x1] }
 0x4a5   : > { %v7299_v35 = vrot.slane %v7298_v10, 4  ;;  %v7315_v36 = vshll.u32 %v7206_v45, 16  ;;  %v7401_v43 = vrot.slane %v7360_v15, 5  ;;  %v7503_v22 = vld [vmem:[#allocation2 + $0x28] sm:$0xf] }
 0x4a6   : > { %v6566_v37 = vpop.permute.xlu1 %6565  ;;  %v6720_v31 = vpop.permute.xlu0 %6719  ;;  %v7312_v61 = vor.u32 %v7311_v27, %v7308_v12  ;;  %v8006_v26 = vsel %vm9956_vm7, %v9466_v59, %v8005_v62  ;;  %v7363_v9 = vld [vmem:[#allocation2 + $0x30] sm:$0xe]  ;;  %v7364_v10 = vld [vmem:[#allocation2 + $0x34] sm:$0x1]  ;;  %v7568_v59 = vshrl.u32 %v7503_v22, 16  ;;  %v7571_v62 = vshll.u32 %v7503_v22, 16 }
 0x4a7   : > { %6582 = vst.msk [vmem:[#allocation3 + $0xdc] sm:$0xf] %vm1128_vm2, %v6566_v37  ;;  %v9451_v37 = vrot.slane %v7359_v40, 9  ;;  %v7304_v56 = vsel %vm9944_vm4, %v7299_v35, %v7303_v14  ;;  %v7317_v29 = vrot.slane %v7315_v36, 5  ;;  %v9453_v35 = vrot.slane %v7363_v9, 9 }
 0x4a8   : > { %6739 = vst.msk [vmem:[#allocation3 + $0xd0] sm:$0xf] %vm1289_vm3, %v6720_v31  ;;  %7173 = vrot.lane.b32.xlu1 %v7150_v7, %s9818_s8  ;;  %7327 = vrot.lane.b32.xlu0 %v7276_v41, %s9815_s16  ;;  %v7361_v31 = vld [vmem:[#allocation2 + $0x28] sm:$0xe]  ;;  %v7362_v41 = vld [vmem:[#allocation2 + $0x2c] sm:$0x1] }
 0x4a9   : > { %v7313_v5 = vrot.slane %v7312_v61, 4  ;;  %v9452_v12 = vrot.slane %v7361_v31, 9  ;;  %v7405_v27 = vrot.slane %v7362_v41, 5  ;;  %v7409_v61 = vrot.slane %v7364_v10, 5  ;;  %v7505_v36 = vld [vmem:[#allocation2 + $0x30] sm:$0xf] }
 0x4aa   : > { %v6722_v3 = vpop.permute.xlu1 %6721  ;;  %v6724_v63 = vpop.permute.xlu0 %6723  ;;  %v7507_v40 = vld [vmem:[#allocation2 + $0x38] sm:$0xf]  ;;  %v7570_v31 = vrot.slane %v7568_v59, 4  ;;  %v7573_v41 = vrot.slane %v7571_v62, 5  ;;  %v7585_v22 = vshll.u32 %v7505_v36, 16 }
 0x4ab   : > { %6740 = vst.msk [vmem:[#allocation3 + $0xd4] sm:$0xf] %vm1289_vm3, %v6722_v3  ;;  %6741 = vst.msk [vmem:[#allocation3 + $0xd8] sm:$0xf] %vm1289_vm3, %v6724_v63  ;;  %v7365_v63 = vld [vmem:[#allocation2 + $0x38] sm:$0xe]  ;;  %v7318_v14 = vsel %vm9944_vm4, %v7313_v5, %v7317_v29  ;;  %v7410_v5 = vsel %vm9956_vm7, %v9453_v35, %v7409_v61 }
 0x4ac   : > { %7329 = vrot.lane.b32.xlu1 %v7290_v38, %s9815_s16  ;;  %8027 = vrot.lane.b32.xlu0 %v8002_v50, %s13049_s13  ;;  %v7366_v50 = vld [vmem:[#allocation2 + $0x3c] sm:$0x1]  ;;  %v7402_v38 = vsel %vm9956_vm7, %v9451_v37, %v7401_v43  ;;  %v9454_v15 = vrot.slane %v7365_v63, 9  ;;  %v7406_v37 = vsel %vm9956_vm7, %v9452_v12, %v7405_v27  ;;  %v7504_v29 = vld [vmem:[#allocation2 + $0x2c] sm:$0x1]  ;;  %v7596_v43 = vshrl.u32 %v7507_v40, 16 }
 0x4ad   : > { %v7599_v9 = vshll.u32 %v7507_v40, 16  ;;  %v7509_v10 = vld [vmem:[#allocation2 + $0x40] sm:$0xf]  ;;  %v7574_v59 = vor.u32 %v7573_v41, %v7570_v31  ;;  %v7577_v62 = vshll.u32 %v7504_v29, 16  ;;  %v7506_v12 = vld [vmem:[#allocation2 + $0x34] sm:$0x1] }
 0x4ae   : > { %v6726_v34 = vpop.permute.xlu1 %6725  ;;  %v6816_v7 = vpop.permute.xlu0 %6815  ;;  %v7598_v35 = vrot.slane %v7596_v43, 4  ;;  %v7613_v40 = vshll.u32 %v7509_v10, 16  ;;  %v7510_v29 = vld [vmem:[#allocation2 + $0x44] sm:$0x1] }
 0x4af   : > { %6742 = vst.msk [vmem:[#allocation3 + $0xdc] sm:$0xf] %vm1289_vm3, %v6726_v34  ;;  %v7413_v34 = vrot.slane %v7366_v50, 5  ;;  %v7601_v61 = vrot.slane %v7599_v9, 5  ;;  %v7579_v31 = vrot.slane %v7577_v62, 5 }
 0x4b0   : > { %6835 = vst.msk [vmem:[#allocation3 + $0xd0] sm:$0xf] %vm1386_vm5, %v6816_v7  ;;  %8029 = vrot.lane.b32.xlu1 %v8006_v26, %s13049_s13  ;;  %7331 = vrot.lane.b32.xlu0 %v7304_v56, %s9815_s16  ;;  %v7582_v56 = vshrl.u32 %v7505_v36, 16  ;;  %v7610_v36 = vshrl.u32 %v7509_v10, 16  ;;  %v7615_v9 = vrot.slane %v7613_v40, 5 }
 0x4b1   : > { %v7454_v62 = vld [vmem:[#allocation2 + $0x40] sm:$0xf] }
 0x4b2   : > { %v6818_v45 = vpop.permute.xlu1 %6817  ;;  %v6820_v3 = vpop.permute.xlu0 %6819  ;;  %v7584_v27 = vrot.slane %v7582_v56, 4  ;;  %v7591_v56 = vshll.u32 %v7506_v12, 16  ;;  %v7612_v43 = vrot.slane %v7610_v36, 4 }
 0x4b3   : > { %6836 = vst.msk [vmem:[#allocation3 + $0xd4] sm:$0xf] %vm1386_vm5, %v6818_v45  ;;  %6837 = vst.msk [vmem:[#allocation3 + $0xd8] sm:$0xf] %vm1386_vm5, %v6820_v3  ;;  %v7414_v45 = vsel %vm9956_vm7, %v9454_v15, %v7413_v34  ;;  %v7451_v3 = vld [vmem:[#allocation2 + $0x28] sm:$0xf] }
 0x4b4   : > { %7333 = vrot.lane.b32.xlu1 %v7318_v14, %s9815_s16  ;;  %7423 = vrot.lane.b32.xlu0 %v7402_v38, %s9797_s20  ;;  %v7587_v14 = vrot.slane %v7585_v22, 5  ;;  %v7508_v38 = vld [vmem:[#allocation2 + $0x3c] sm:$0x1]  ;;  %v7452_v15 = vld [vmem:[#allocation2 + $0x30] sm:$0xf] }
 0x4b5   : > { %v7605_v22 = vshll.u32 %v7508_v38, 16  ;;  %v7663_v38 = vld [vmem:[#allocation2 + $0x28] sm:$0xe] }
 0x4b6   : > { %v6822_v7 = vpop.permute.xlu1 %6821  ;;  %v6864_v26 = vpop.permute.xlu0 %6863  ;;  %v7588_v41 = vor.u32 %v7587_v14, %v7584_v27  ;;  %v7616_v14 = vor.u32 %v7615_v9, %v7612_v43 }
 0x4b7   : > { %6838 = vst.msk [vmem:[#allocation3 + $0xdc] sm:$0xf] %vm1386_vm5, %v6822_v7 }
 0x4b8   : > { %6883 = vst.msk [vmem:[#allocation3 + $0xd0] sm:$0xf] %vm1436_vm6, %v6864_v26  ;;  %7425 = vrot.lane.b32.xlu1 %v7406_v37, %s9797_s20  ;;  %7427 = vrot.lane.b32.xlu0 %v7410_v5, %s9797_s20  ;;  %v7453_v26 = vld [vmem:[#allocation2 + $0x38] sm:$0xf]  ;;  %v7575_v37 = vrot.slane %v7574_v59, 4  ;;  %v7602_v5 = vor.u32 %v7601_v61, %v7598_v35  ;;  %v7589_v12 = vrot.slane %v7588_v41, 4 }
 0x4b9   : > { %v7664_v35 = vld [vmem:[#allocation2 + $0x2c] sm:$0x1]  ;;  %v7617_v41 = vrot.slane %v7616_v14, 4  ;;  %v7809_v14 = vld [vmem:[#allocation2 + $0x38] sm:$0xf] }
 0x4ba   : > { %v6866_v63 = vpop.permute.xlu1 %6865  ;;  %v6868_v50 = vpop.permute.xlu0 %6867  ;;  %v7580_v59 = vsel %vm9944_vm4, %v7575_v37, %v7579_v31  ;;  %v7603_v27 = vrot.slane %v7602_v5, 4  ;;  %v7668_v37 = vld [vmem:[#allocation2 + $0x3c] sm:$0x1]  ;;  %v7807_v5 = vld [vmem:[#allocation2 + $0x30] sm:$0xf] }
 0x4bb   : > { %6884 = vst.msk [vmem:[#allocation3 + $0xd4] sm:$0xf] %vm1436_vm6, %v6866_v63  ;;  %6885 = vst.msk [vmem:[#allocation3 + $0xd8] sm:$0xf] %vm1436_vm6, %v6868_v50  ;;  %v7607_v63 = vrot.slane %v7605_v22, 5  ;;  %v7619_v50 = vshll.u32 %v7510_v29, 16 }
 0x4bc   : > { %7429 = vrot.lane.b32.xlu1 %v7414_v45, %s9797_s20  ;;  %7471 = vrot.lane.b32.xlu0 %v7451_v3, %s9798_s14  ;;  %v7593_v3 = vrot.slane %v7591_v56, 5  ;;  %v7705_v56 = vrot.slane %v7664_v35, 5  ;;  %v7667_v22 = vld [vmem:[#allocation2 + $0x38] sm:$0xe] }
 0x4bd   : > { %v7621_v40 = vrot.slane %v7619_v50, 5  ;;  %v7608_v31 = vsel %vm9944_vm4, %v7603_v27, %v7607_v63  ;;  %v7713_v50 = vrot.slane %v7668_v37, 5  ;;  %v7875_v27 = vshll.u32 %v7807_v5, 16 }
 0x4be   : > { %v6870_v34 = vpop.permute.xlu1 %6869  ;;  %v7024_v7 = vpop.permute.xlu0 %7023 }
 0x4bf   : > { %6886 = vst.msk [vmem:[#allocation3 + $0xdc] sm:$0xf] %vm1436_vm6, %v6870_v34  ;;  %v7665_v34 = vld [vmem:[#allocation2 + $0x30] sm:$0xe]  ;;  %v7622_v63 = vsel %vm9944_vm4, %v7617_v41, %v7621_v40  ;;  %v7808_v41 = vld [vmem:[#allocation2 + $0x34] sm:$0x1] }
 0x4c0   : > { %7043 = vst.msk [vmem:[#allocation3 + $0xd0] sm:$0xf] %vm1597_vm8, %v7024_v7  ;;  %7473 = vrot.lane.b32.xlu1 %v7452_v15, %s9798_s14  ;;  %7475 = vrot.lane.b32.xlu0 %v7453_v26, %s9798_s14  ;;  %v9459_v15 = vrot.slane %v7663_v38, 9  ;;  %v7666_v7 = vld [vmem:[#allocation2 + $0x34] sm:$0x1]  ;;  %v7594_v26 = vsel %vm9944_vm4, %v7589_v12, %v7593_v3  ;;  %v9460_v29 = vrot.slane %v7665_v34, 9 }
 0x4c1   : > { %v7709_v43 = vrot.slane %v7666_v7, 5  ;;  %v7670_v3 = vld [vmem:[#allocation2 + $0x44] sm:$0x1]  ;;  %v7872_v12 = vshrl.u32 %v7807_v5, 16  ;;  %v7811_v38 = vld [vmem:[#allocation2 + $0x40] sm:$0xf] }
 0x4c2   : > { %v7026_v10 = vpop.permute.xlu1 %7025  ;;  %v7028_v45 = vpop.permute.xlu0 %7027  ;;  %v7900_v37 = vshrl.u32 %v7811_v38, 16  ;;  %v7903_v5 = vshll.u32 %v7811_v38, 16 }
 0x4c3   : > { %7044 = vst.msk [vmem:[#allocation3 + $0xd4] sm:$0xf] %vm1597_vm8, %v7026_v10  ;;  %7045 = vst.msk [vmem:[#allocation3 + $0xd8] sm:$0xf] %vm1597_vm8, %v7028_v45  ;;  %v9461_v45 = vrot.slane %v7667_v22, 9  ;;  %v7710_v7 = vsel %vm9956_vm7, %v9460_v29, %v7709_v43  ;;  %v7877_v22 = vrot.slane %v7875_v27, 5 }
 0x4c4   : > { %7477 = vrot.lane.b32.xlu1 %v7454_v62, %s9798_s14  ;;  %7631 = vrot.lane.b32.xlu0 %v7580_v59, %s9799_s21  ;;  %v7669_v62 = vld [vmem:[#allocation2 + $0x40] sm:$0xe]  ;;  %v7706_v59 = vsel %vm9956_vm7, %v9459_v15, %v7705_v56  ;;  %v7889_v15 = vshll.u32 %v7809_v14, 16  ;;  %v7874_v56 = vrot.slane %v7872_v12, 4  ;;  %v7755_v29 = vld [vmem:[#allocation2 + $0x30] sm:$0xf] }
 0x4c5   : > { %v9462_v35 = vrot.slane %v7669_v62, 9  ;;  %v7714_v40 = vsel %vm9956_vm7, %v9461_v45, %v7713_v50  ;;  %v7810_v12 = vld [vmem:[#allocation2 + $0x3c] sm:$0x1]  ;;  %v7905_v38 = vrot.slane %v7903_v5, 5 }
 0x4c6   : > { %v7030_v61 = vpop.permute.xlu1 %7029  ;;  %v7120_v36 = vpop.permute.xlu0 %7119  ;;  %v7891_v27 = vrot.slane %v7889_v15, 5  ;;  %v7756_v15 = vld [vmem:[#allocation2 + $0x38] sm:$0xf] }
 0x4c7   : > { %7046 = vst.msk [vmem:[#allocation3 + $0xdc] sm:$0xf] %vm1597_vm8, %v7030_v61  ;;  %v7717_v61 = vrot.slane %v7670_v3, 5  ;;  %v7881_v3 = vshll.u32 %v7808_v41, 16  ;;  %v7757_v41 = vld [vmem:[#allocation2 + $0x40] sm:$0xf] }
 0x4c8   : > { %7139 = vst.msk [vmem:[#allocation3 + $0xd0] sm:$0xf] %vm1694_vm10, %v7120_v36  ;;  %7633 = vrot.lane.b32.xlu1 %v7594_v26, %s9799_s21  ;;  %7635 = vrot.lane.b32.xlu0 %v7608_v31, %s9799_s21  ;;  %v7886_v26 = vshrl.u32 %v7809_v14, 16  ;;  %v7813_v31 = vld [vmem:[#allocation2 + $0x48] sm:$0xf]  ;;  %v7902_v14 = vrot.slane %v7900_v37, 4 }
 0x4c9   : > { %v7914_v43 = vshrl.u32 %v7813_v31, 16  ;;  %v7718_v50 = vsel %vm9956_vm7, %v9462_v35, %v7717_v61 }
 0x4ca   : > { %v7122_v9 = vpop.permute.xlu1 %7121  ;;  %v7160_v10 = vpop.permute.xlu0 %7159  ;;  %v7906_v37 = vor.u32 %v7905_v38, %v7902_v14  ;;  %v7968_v14 = vld [vmem:[#allocation2 + $0x34] sm:$0x1] }
 0x4cb   : > { %7140 = vst.msk [vmem:[#allocation3 + $0xd4] sm:$0xf] %vm1694_vm10, %v7122_v9  ;;  %v7917_v9 = vshll.u32 %v7813_v31, 16  ;;  %v7814_v31 = vld [vmem:[#allocation2 + $0x4c] sm:$0x1] }
 0x4cc   : > { %7183 = vst.msk [vmem:[#allocation3 + $0xe0] sm:$0xf] %vm815_vm9, %v7160_v10  ;;  %7637 = vrot.lane.b32.xlu1 %v7622_v63, %s9799_s21  ;;  %7727 = vrot.lane.b32.xlu0 %v7706_v59, %s13043_s9  ;;  %v7888_v63 = vrot.slane %v7886_v26, 4  ;;  %v7878_v59 = vor.u32 %v7877_v22, %v7874_v56  ;;  %v7895_v26 = vshll.u32 %v7810_v12, 16 }
 0x4cd   : > { %v7919_v35 = vrot.slane %v7917_v9, 5  ;;  %v7923_v9 = vshll.u32 %v7814_v31, 16 }
 0x4ce   : > { %v7162_v36 = vpop.permute.xlu1 %7161  ;;  %v7124_v34 = vpop.permute.xlu0 %7123  ;;  %v7879_v56 = vrot.slane %v7878_v59, 4  ;;  %v7892_v22 = vor.u32 %v7891_v27, %v7888_v63  ;;  %v7907_v59 = vrot.slane %v7906_v37, 4  ;;  %v7967_v27 = vld [vmem:[#allocation2 + $0x30] sm:$0xe]  ;;  %v7970_v37 = vld [vmem:[#allocation2 + $0x3c] sm:$0x1] }
 0x4cf   : > { %7184 = vst.msk [vmem:[#allocation3 + $0xe4] sm:$0xf] %vm815_vm9, %v7162_v36  ;;  %v7812_v36 = vld [vmem:[#allocation2 + $0x44] sm:$0x1] }
 0x4d0   : > { %7141 = vst.msk [vmem:[#allocation3 + $0xd8] sm:$0xf] %vm1694_vm10, %v7124_v34  ;;  %7729 = vrot.lane.b32.xlu1 %v7710_v7, %s13043_s9  ;;  %7731 = vrot.lane.b32.xlu0 %v7714_v40, %s13043_s9  ;;  %v7916_v34 = vrot.slane %v7914_v43, 4  ;;  %v7883_v40 = vrot.slane %v7881_v3, 5  ;;  %v7909_v5 = vshll.u32 %v7812_v36, 16  ;;  %v7893_v63 = vrot.slane %v7892_v22, 4 }
 0x4d2   : > { %v7126_v10 = vpop.permute.xlu1 %7125  ;;  %v7164_v45 = vpop.permute.xlu0 %7163  ;;  %v9755_v62 = vld [vmem:[#allocation3 + $0xd0] sm:$0xff]   ;;  %v7920_v43 = vor.u32 %v7919_v35, %v7916_v34  ;;  %v7884_v3 = vsel %vm9944_vm4, %v7879_v56, %v7883_v40  ;;  %v7911_v12 = vrot.slane %v7909_v5, 5  ;;  %v7925_v34 = vrot.slane %v7923_v9, 5  ;;  %v7969_v56 = vld [vmem:[#allocation2 + $0x38] sm:$0xe] }
 0x4d3   : > { %7142 = vst.msk [vmem:[#allocation3 + $0xdc] sm:$0xf] %vm1694_vm10, %v7126_v10  ;;  %9636 = vmatprep.mubr.bf16.mxu1 %v9755_v62  ;;  %v7897_v62 = vrot.slane %v7895_v26, 5  ;;  %v7971_v5 = vld [vmem:[#allocation2 + $0x40] sm:$0xe] }
 0x4d4   : > { %7185 = vst.msk [vmem:[#allocation3 + $0xe8] sm:$0xf] %vm815_vm9, %v7164_v45  ;;  %7733 = vrot.lane.b32.xlu1 %v7718_v50, %s13043_s9  ;;  %7775 = vrot.lane.b32.xlu0 %v7755_v29, %s13044_s10  ;;  %v7758_v29 = vld [vmem:[#allocation2 + $0x48] sm:$0xf]  ;;  %v7921_v36 = vrot.slane %v7920_v43, 4  ;;  %v7912_v31 = vsel %vm9944_vm4, %v7907_v59, %v7911_v12  ;;  %v8013_v12 = vrot.slane %v7970_v37, 5 }
 0x4d5   : > { %v7898_v26 = vsel %vm9944_vm4, %v7893_v63, %v7897_v62  ;;  %v9468_v62 = vrot.slane %v7969_v56, 9  ;;  %v7974_v63 = vld [vmem:[#allocation2 + $0x4c] sm:$0x1] }
 0x4d6   : > { %v7166_v61 = vpop.permute.xlu1 %7165  ;;  %v7320_v7 = vpop.permute.xlu0 %7319  ;;  %v7926_v9 = vsel %vm9944_vm4, %v7921_v36, %v7925_v34  ;;  %vm9098_vm4 = vcmask 57344  }
 0x4d7   : > { %7186 = vst.msk [vmem:[#allocation3 + $0xec] sm:$0xf] %vm815_vm9, %v7166_v61 }
 0x4d8   : > { %7343 = vst.msk [vmem:[#allocation3 + $0xe0] sm:$0xf] %vm979_vm0, %v7320_v7  ;;  %7777 = vrot.lane.b32.xlu1 %v7756_v15, %s13044_s10  ;;  %7779 = vrot.lane.b32.xlu0 %v7757_v41, %s13044_s10  ;;  %v9467_v15 = vrot.slane %v7967_v27, 9  ;;  %v8009_v41 = vrot.slane %v7968_v14, 5  ;;  %v9469_v27 = vrot.slane %v7971_v5, 9 }
 0x4da   : > { %v7322_v10 = vpop.permute.xlu1 %7321  ;;  %v7324_v45 = vpop.permute.xlu0 %7323  ;;  %v9756_v50 = vld [vmem:[#allocation3 + $0xd8] sm:$0xff]   ;;  %v8010_v13 = vsel %vm9956_vm7, %v9467_v15, %v8009_v41 }
 0x4db   : > { %7344 = vst.msk [vmem:[#allocation3 + $0xe4] sm:$0xf] %vm979_vm0, %v7322_v10  ;;  %7345 = vst.msk [vmem:[#allocation3 + $0xe8] sm:$0xf] %vm979_vm0, %v7324_v45  ;;  %v12506_v38 = vpop.f32.mrf.mxu1  ;;  %9637 = vmatmul.mubr.bf16.gmra.mxu1 %v9756_v50 }
 0x4dc   : > { %7781 = vrot.lane.b32.xlu1 %v7758_v29, %s13044_s10  ;;  %7935 = vrot.lane.b32.xlu0 %v7884_v3, %s13048_s12  ;;  %v8706_v35 = vpack.c.bf16 %v12506_v38, %v12506_v38  ;;  %v7972_v29 = vld [vmem:[#allocation2 + $0x44] sm:$0x1]  ;;  %v7973_v3 = vld [vmem:[#allocation2 + $0x48] sm:$0xe] }
 0x4dd   : > { %v12512_v40 = vpop.f32.mrf.mxu1  ;;  %v8017_v14 = vrot.slane %v7972_v29, 5  ;;  %v9470_v34 = vrot.slane %v7973_v3, 9 }
 0x4de   : > { %v7326_v61 = vpop.permute.xlu1 %7325  ;;  %v7416_v7 = vpop.permute.xlu0 %7415  ;;  %13050 = vst [vmem:[#allocation17_spill] sm:$0xff] %v12512_v40  ;;  %8771 = vst.msk [vmem:[%s10988_s30 + $0xa8] sm:$0xf] %vm8728_vm11, %v8706_v35  ;;  %v8704_v22 = vpack.c.bf16 %v12512_v40, %v12512_v40  ;;  %v8021_v35 = vrot.slane %v7974_v63, 5 }
 0x4df   : > { %7346 = vst.msk [vmem:[#allocation3 + $0xec] sm:$0xf] %vm979_vm0, %v7326_v61  ;;  %v12524_v43 = vpop.f32.mrf.mxu1 }
 0x4e0   : > { %7439 = vst.msk [vmem:[#allocation3 + $0xe0] sm:$0xf] %vm1079_vm1, %v7416_v7  ;;  %7937 = vrot.lane.b32.xlu1 %v7898_v26, %s13048_s12  ;;  %7939 = vrot.lane.b32.xlu0 %v7912_v31, %s13048_s12  ;;  %v8707_v10 = vpack.c.bf16 %v12524_v43, %v12524_v43  ;;  %v8014_v26 = vsel %vm9956_vm7, %v9468_v62, %v8013_v12 }
 0x4e1   : > { %8769 = vst.msk [vmem:[%s10988_s30 + $0xa0] sm:$0xf] %vm8728_vm11, %v8704_v22  ;;  %v12534_v59 = vpop.f32.mrf.mxu1  ;;  %v8018_v31 = vsel %vm9956_vm7, %v9469_v27, %v8017_v14  ;;  %v8022_v15 = vsel %vm9956_vm7, %v9470_v34, %v8021_v35 }
 0x4e2   : > { %v7418_v45 = vpop.permute.xlu1 %7417  ;;  %v7420_v50 = vpop.permute.xlu0 %7419  ;;  %13051 = vst [vmem:[#allocation18_spill] sm:$0xff] %v12534_v59  ;;  %8772 = vst.msk [vmem:[%s10988_s30 + $0xac] sm:$0xf] %vm8728_vm11, %v8707_v10  ;;  %v8705_v36 = vpack.c.bf16 %v12534_v59, %v12534_v59 }
 0x4e3   : > { %7440 = vst.msk [vmem:[#allocation3 + $0xe4] sm:$0xf] %vm1079_vm1, %v7418_v45  ;;  %7441 = vst.msk [vmem:[#allocation3 + $0xe8] sm:$0xf] %vm1079_vm1, %v7420_v50 }
 0x4e4   : > { %7941 = vrot.lane.b32.xlu1 %v7926_v9, %s13048_s12  ;;  %8031 = vrot.lane.b32.xlu0 %v8010_v13, %s13049_s13  ;;  %8770 = vst.msk [vmem:[%s10988_s30 + $0xa4] sm:$0xf] %vm8728_vm11, %v8705_v36 }
 0x4e6   : > { %v7422_v61 = vpop.permute.xlu1 %7421  ;;  %v7464_v7 = vpop.permute.xlu0 %7463 }
 0x4e7   : > { %7442 = vst.msk [vmem:[#allocation3 + $0xec] sm:$0xf] %vm1079_vm1, %v7422_v61 }
 0x4e8   : > { %7487 = vst.msk [vmem:[#allocation3 + $0xe0] sm:$0xf] %vm1128_vm2, %v7464_v7  ;;  %8033 = vrot.lane.b32.xlu1 %v8014_v26, %s13049_s13  ;;  %8035 = vrot.lane.b32.xlu0 %v8018_v31, %s13049_s13 }
 0x4ea   : > { %v7466_v41 = vpop.permute.xlu1 %7465  ;;  %v7468_v56 = vpop.permute.xlu0 %7467 }
 0x4eb   : > { %7488 = vst.msk [vmem:[#allocation3 + $0xe4] sm:$0xf] %vm1128_vm2, %v7466_v41  ;;  %7489 = vst.msk [vmem:[#allocation3 + $0xe8] sm:$0xf] %vm1128_vm2, %v7468_v56 }
 0x4ec   : > { %8037 = vrot.lane.b32.xlu1 %v8022_v15, %s13049_s13 }
 0x4ee   : > { %v7470_v22 = vpop.permute.xlu1 %7469  ;;  %v7624_v37 = vpop.permute.xlu0 %7623 }
 0x4ef   : > { %7490 = vst.msk [vmem:[#allocation3 + $0xec] sm:$0xf] %vm1128_vm2, %v7470_v22 }
 0x4f0   : > { %7647 = vst.msk [vmem:[#allocation3 + $0xe0] sm:$0xf] %vm1289_vm3, %v7624_v37 }
 0x4f2   : > { %v7626_v5 = vpop.permute.xlu1 %7625  ;;  %v7628_v29 = vpop.permute.xlu0 %7627 }
 0x4f3   : > { %7648 = vst.msk [vmem:[#allocation3 + $0xe4] sm:$0xf] %vm1289_vm3, %v7626_v5  ;;  %7649 = vst.msk [vmem:[#allocation3 + $0xe8] sm:$0xf] %vm1289_vm3, %v7628_v29 }
 0x4f6   : > { %v7630_v21 = vpop.permute.xlu1 %7629  ;;  %v7720_v9 = vpop.permute.xlu0 %7719 }
 0x4f7   : > { %7650 = vst.msk [vmem:[#allocation3 + $0xec] sm:$0xf] %vm1289_vm3, %v7630_v21 }
 0x4f8   : > { %7743 = vst.msk [vmem:[#allocation3 + $0xe0] sm:$0xf] %vm1386_vm5, %v7720_v9 }
 0x4fa   : > { %v7722_v10 = vpop.permute.xlu1 %7721  ;;  %v7724_v45 = vpop.permute.xlu0 %7723 }
 0x4fb   : > { %7744 = vst.msk [vmem:[#allocation3 + $0xe4] sm:$0xf] %vm1386_vm5, %v7722_v10  ;;  %7745 = vst.msk [vmem:[#allocation3 + $0xe8] sm:$0xf] %vm1386_vm5, %v7724_v45 }
 0x4fe   : > { %v7726_v50 = vpop.permute.xlu1 %7725  ;;  %v7768_v62 = vpop.permute.xlu0 %7767 }
 0x4ff   : > { %7746 = vst.msk [vmem:[#allocation3 + $0xec] sm:$0xf] %vm1386_vm5, %v7726_v50 }
 0x500   : > { %7791 = vst.msk [vmem:[#allocation3 + $0xe0] sm:$0xf] %vm1436_vm6, %v7768_v62 }
 0x502   : > { %v7770_v3 = vpop.permute.xlu1 %7769  ;;  %v7772_v63 = vpop.permute.xlu0 %7771 }
 0x503   : > { %7792 = vst.msk [vmem:[#allocation3 + $0xe4] sm:$0xf] %vm1436_vm6, %v7770_v3  ;;  %7793 = vst.msk [vmem:[#allocation3 + $0xe8] sm:$0xf] %vm1436_vm6, %v7772_v63 }
 0x506   : > { %v7774_v13 = vpop.permute.xlu1 %7773  ;;  %v7928_v12 = vpop.permute.xlu0 %7927 }
 0x507   : > { %7794 = vst.msk [vmem:[#allocation3 + $0xec] sm:$0xf] %vm1436_vm6, %v7774_v13 }
 0x508   : > { %7951 = vst.msk [vmem:[#allocation3 + $0xe0] sm:$0xf] %vm1597_vm8, %v7928_v12 }
 0x50a   : > { %v7930_v27 = vpop.permute.xlu1 %7929  ;;  %v7168_v14 = vpop.permute.xlu0 %7167 }
 0x50b   : > { %7952 = vst.msk [vmem:[#allocation3 + $0xe4] sm:$0xf] %vm1597_vm8, %v7930_v27 }
 0x50c   : > { %7187 = vst.msk [vmem:[#allocation3 + $0xf0] sm:$0xf] %vm815_vm9, %v7168_v14 }
 0x50e   : > { %v7170_v36 = vpop.permute.xlu1 %7169  ;;  %v7932_v34 = vpop.permute.xlu0 %7931 }
 0x50f   : > { %7188 = vst.msk [vmem:[#allocation3 + $0xf4] sm:$0xf] %vm815_vm9, %v7170_v36 }
 0x510   : > { %7953 = vst.msk [vmem:[#allocation3 + $0xe8] sm:$0xf] %vm1597_vm8, %v7932_v34 }
 0x512   : > { %v7934_v35 = vpop.permute.xlu1 %7933  ;;  %v8024_v61 = vpop.permute.xlu0 %8023 }
 0x513   : > { %7954 = vst.msk [vmem:[#allocation3 + $0xec] sm:$0xf] %vm1597_vm8, %v7934_v35 }
 0x514   : > { %8047 = vst.msk [vmem:[#allocation3 + $0xe0] sm:$0xf] %vm1694_vm10, %v8024_v61 }
 0x516   : > { %v8026_v7 = vpop.permute.xlu1 %8025  ;;  %v7172_v26 = vpop.permute.xlu0 %7171 }
 0x517   : > { %8048 = vst.msk [vmem:[#allocation3 + $0xe4] sm:$0xf] %vm1694_vm10, %v8026_v7 }
 0x518   : > { %7189 = vst.msk [vmem:[#allocation3 + $0xf8] sm:$0xf] %vm815_vm9, %v7172_v26 }
 0x51a   : > { %v7174_v31 = vpop.permute.xlu1 %7173  ;;  %v7328_v15 = vpop.permute.xlu0 %7327 }
 0x51b   : > { %7190 = vst.msk [vmem:[#allocation3 + $0xfc] sm:$0xf] %vm815_vm9, %v7174_v31  ;;  %v12583_v41 = vpop.f32.mrf.mxu1 }
 0x51c   : > { %7347 = vst.msk [vmem:[#allocation3 + $0xf0] sm:$0xf] %vm979_vm0, %v7328_v15  ;;  %v8710_v56 = vpack.c.bf16 %v12583_v41, %v12583_v41 }
 0x51d   : > { %v12589_v29 = vpop.f32.mrf.mxu1 }
 0x51e   : > { %v7330_v22 = vpop.permute.xlu1 %7329  ;;  %v8028_v37 = vpop.permute.xlu0 %8027  ;;  %v9757_v5 = vld [vmem:[#allocation3 + $0xe0] sm:$0xff]   ;;  %8775 = vst.msk [vmem:[%s10988_s30 + $0xb8] sm:$0xf] %vm8728_vm11, %v8710_v56  ;;  %v8708_v21 = vpack.c.bf16 %v12589_v29, %v12589_v29 }
 0x51f   : > { %7348 = vst.msk [vmem:[#allocation3 + $0xf4] sm:$0xf] %vm979_vm0, %v7330_v22  ;;  %9640 = vmatprep.mubr.bf16.mxu1 %v9757_v5  ;;  %v12595_v9 = vpop.f32.mrf.mxu1 }
 0x520   : > { %8049 = vst.msk [vmem:[#allocation3 + $0xe8] sm:$0xf] %vm1694_vm10, %v8028_v37  ;;  %v8711_v10 = vpack.c.bf16 %v12595_v9, %v12595_v9 }
 0x521   : > { %8773 = vst.msk [vmem:[%s10988_s30 + $0xb0] sm:$0xf] %vm8728_vm11, %v8708_v21  ;;  %v12603_v62 = vpop.f32.mrf.mxu1 }
 0x522   : > { %v8030_v45 = vpop.permute.xlu1 %8029  ;;  %v7332_v50 = vpop.permute.xlu0 %7331  ;;  %8776 = vst.msk [vmem:[%s10988_s30 + $0xbc] sm:$0xf] %vm8728_vm11, %v8711_v10  ;;  %v8709_v3 = vpack.c.bf16 %v12603_v62, %v12603_v62 }
 0x523   : > { %8050 = vst.msk [vmem:[#allocation3 + $0xec] sm:$0xf] %vm1694_vm10, %v8030_v45 }
 0x524   : > { %7349 = vst.msk [vmem:[#allocation3 + $0xf8] sm:$0xf] %vm979_vm0, %v7332_v50 }
 0x525   : > { %8774 = vst.msk [vmem:[%s10988_s30 + $0xb4] sm:$0xf] %vm8728_vm11, %v8709_v3 }
 0x526   : > { %v7334_v63 = vpop.permute.xlu1 %7333  ;;  %v7424_v13 = vpop.permute.xlu0 %7423 }
 0x527   : > { %7350 = vst.msk [vmem:[#allocation3 + $0xfc] sm:$0xf] %vm979_vm0, %v7334_v63 }
 0x528   : > { %7443 = vst.msk [vmem:[#allocation3 + $0xf0] sm:$0xf] %vm1079_vm1, %v7424_v13 }
 0x52a   : > { %v7426_v12 = vpop.permute.xlu1 %7425  ;;  %v7428_v27 = vpop.permute.xlu0 %7427  ;;  %v9758_v14 = vld [vmem:[#allocation3 + $0xe8] sm:$0xff]  }
 0x52b   : > { %7444 = vst.msk [vmem:[#allocation3 + $0xf4] sm:$0xf] %vm1079_vm1, %v7426_v12  ;;  %7445 = vst.msk [vmem:[#allocation3 + $0xf8] sm:$0xf] %vm1079_vm1, %v7428_v27  ;;  %9641 = vmatmul.mubr.bf16.gmra.mxu1 %v9758_v14 }
 0x52e   : > { %v7430_v36 = vpop.permute.xlu1 %7429  ;;  %v7472_v34 = vpop.permute.xlu0 %7471 }
 0x52f   : > { %7446 = vst.msk [vmem:[#allocation3 + $0xfc] sm:$0xf] %vm1079_vm1, %v7430_v36 }
 0x530   : > { %7491 = vst.msk [vmem:[#allocation3 + $0xf0] sm:$0xf] %vm1128_vm2, %v7472_v34 }
 0x532   : > { %v7474_v35 = vpop.permute.xlu1 %7473  ;;  %v7476_v61 = vpop.permute.xlu0 %7475 }
 0x533   : > { %7492 = vst.msk [vmem:[#allocation3 + $0xf4] sm:$0xf] %vm1128_vm2, %v7474_v35  ;;  %7493 = vst.msk [vmem:[#allocation3 + $0xf8] sm:$0xf] %vm1128_vm2, %v7476_v61 }
 0x536   : > { %v7478_v7 = vpop.permute.xlu1 %7477  ;;  %v7632_v26 = vpop.permute.xlu0 %7631 }
 0x537   : > { %7494 = vst.msk [vmem:[#allocation3 + $0xfc] sm:$0xf] %vm1128_vm2, %v7478_v7 }
 0x538   : > { %7651 = vst.msk [vmem:[#allocation3 + $0xf0] sm:$0xf] %vm1289_vm3, %v7632_v26 }
 0x53a   : > { %v7634_v31 = vpop.permute.xlu1 %7633  ;;  %v7636_v15 = vpop.permute.xlu0 %7635 }
 0x53b   : > { %7652 = vst.msk [vmem:[#allocation3 + $0xf4] sm:$0xf] %vm1289_vm3, %v7634_v31  ;;  %7653 = vst.msk [vmem:[#allocation3 + $0xf8] sm:$0xf] %vm1289_vm3, %v7636_v15 }
 0x53e   : > { %v7638_v56 = vpop.permute.xlu1 %7637  ;;  %v7728_v22 = vpop.permute.xlu0 %7727 }
 0x53f   : > { %7654 = vst.msk [vmem:[#allocation3 + $0xfc] sm:$0xf] %vm1289_vm3, %v7638_v56 }
 0x540   : > { %7747 = vst.msk [vmem:[#allocation3 + $0xf0] sm:$0xf] %vm1386_vm5, %v7728_v22 }
 0x542   : > { %v7730_v37 = vpop.permute.xlu1 %7729  ;;  %v7732_v5 = vpop.permute.xlu0 %7731 }
 0x543   : > { %7748 = vst.msk [vmem:[#allocation3 + $0xf4] sm:$0xf] %vm1386_vm5, %v7730_v37  ;;  %7749 = vst.msk [vmem:[#allocation3 + $0xf8] sm:$0xf] %vm1386_vm5, %v7732_v5 }
 0x546   : > { %v7734_v21 = vpop.permute.xlu1 %7733  ;;  %v7776_v10 = vpop.permute.xlu0 %7775 }
 0x547   : > { %7750 = vst.msk [vmem:[#allocation3 + $0xfc] sm:$0xf] %vm1386_vm5, %v7734_v21 }
 0x548   : > { %7795 = vst.msk [vmem:[#allocation3 + $0xf0] sm:$0xf] %vm1436_vm6, %v7776_v10  ;;  %v8793_v10 = vadd.f32 %v11018_v23, %v10998_v28 }
 0x54a   : > { %v7778_v45 = vpop.permute.xlu1 %7777  ;;  %v7780_v50 = vpop.permute.xlu0 %7779 }
 0x54b   : > { %7796 = vst.msk [vmem:[#allocation3 + $0xf4] sm:$0xf] %vm1436_vm6, %v7778_v45  ;;  %7797 = vst.msk [vmem:[#allocation3 + $0xf8] sm:$0xf] %vm1436_vm6, %v7780_v50  ;;  %v8794_v45 = vadd.f32 %v10990_v2, %v8793_v10 }
 0x54d   : > { %v8795_v50 = vadd.f32 %v11008_v57, %v8794_v45 }
 0x54e   : > { %v7782_v3 = vpop.permute.xlu1 %7781  ;;  %v7936_v63 = vpop.permute.xlu0 %7935 }
 0x54f   : > { %7798 = vst.msk [vmem:[#allocation3 + $0xfc] sm:$0xf] %vm1436_vm6, %v7782_v3  ;;  %v8796_v3 = vadd.f32 %v8795_v50, %v11044_v42 }
 0x550   : > { %7955 = vst.msk [vmem:[#allocation3 + $0xf0] sm:$0xf] %vm1597_vm8, %v7936_v63 }
 0x551   : > { %v8797_v63 = vadd.f32 %v8796_v3, %v11062_v25 }
 0x552   : > { %v7938_v13 = vpop.permute.xlu1 %7937  ;;  %v7940_v12 = vpop.permute.xlu0 %7939 }
 0x553   : > { %7956 = vst.msk [vmem:[#allocation3 + $0xf4] sm:$0xf] %vm1597_vm8, %v7938_v13  ;;  %7957 = vst.msk [vmem:[#allocation3 + $0xf8] sm:$0xf] %vm1597_vm8, %v7940_v12  ;;  %v8798_v13 = vadd.f32 %v11038_v30, %v8797_v63 }
 0x555   : > { %v8799_v12 = vadd.f32 %v11054_v19, %v8798_v13 }
 0x556   : > { %v7942_v27 = vpop.permute.xlu1 %7941  ;;  %v8032_v14 = vpop.permute.xlu0 %8031 }
 0x557   : > { %7958 = vst.msk [vmem:[#allocation3 + $0xfc] sm:$0xf] %vm1597_vm8, %v7942_v27  ;;  %v8800_v27 = vadd.f32 %v8799_v12, %v11428_v1 }
 0x558   : > { %8051 = vst.msk [vmem:[#allocation3 + $0xf0] sm:$0xf] %vm1694_vm10, %v8032_v14 }
 0x559   : > { %v8801_v14 = vadd.f32 %v8800_v27, %v11444_v44 }
 0x55a   : > { %v8034_v36 = vpop.permute.xlu1 %8033  ;;  %v8036_v34 = vpop.permute.xlu0 %8035 }
 0x55b   : > { %8052 = vst.msk [vmem:[#allocation3 + $0xf4] sm:$0xf] %vm1694_vm10, %v8034_v36  ;;  %8053 = vst.msk [vmem:[#allocation3 + $0xf8] sm:$0xf] %vm1694_vm10, %v8036_v34  ;;  %v8802_v36 = vadd.f32 %v11420_v49, %v8801_v14 }
 0x55d   : > { %v8803_v34 = vadd.f32 %v11436_v11, %v8802_v36 }
 0x55e   : > { %v8038_v35 = vpop.permute.xlu1 %8037 }
 0x55f   : > { %8054 = vst.msk [vmem:[#allocation3 + $0xfc] sm:$0xf] %vm1694_vm10, %v8038_v35  ;;  %v8804_v35 = vadd.f32 %v8803_v34, %v11460_v20  ;;  %v9819_v34 = vmov 0.0  }
 0x560   : > { %474 = vst [vmem:[#allocation4] sm:$0x1] %v9819_v34  ;;  %475 = vst [vmem:[#allocation5] sm:$0x1] %v9819_v34  ;;  %v13058_v34 = vld [vmem:[#allocation10_spill] sm:$0xff] }
 0x562   : > { %v9759_v61 = vld [vmem:[#allocation3 + $0xf0] sm:$0xff]  }
 0x563   : > { %9644 = vmatprep.mubr.bf16.mxu1 %v9759_v61  ;;  %v12640_v7 = vpop.f32.mrf.mxu1  ;;  %v8805_v61 = vadd.f32 %v8804_v35, %v11478_v48 }
 0x564   : > { %13052 = vst [vmem:[#allocation19_spill] sm:$0xff] %v12640_v7  ;;  %v8714_v26 = vpack.c.bf16 %v12640_v7, %v12640_v7 }
 0x565   : > { %v12644_v15 = vpop.f32.mrf.mxu1 }
 0x566   : > { %v9760_v31 = vld [vmem:[#allocation3 + $0xf8] sm:$0xff]   ;;  %8779 = vst.msk [vmem:[%s10988_s30 + $0xc8] sm:$0xf] %vm8728_vm11, %v8714_v26  ;;  %v8712_v56 = vpack.c.bf16 %v12644_v15, %v12644_v15  ;;  %v8806_v26 = vadd.f32 %v11452_v24, %v8805_v61 }
 0x567   : > { %9645 = vmatmul.mubr.bf16.gmra.mxu1 %v9760_v31  ;;  %v12650_v22 = vpop.f32.mrf.mxu1 }
 0x568   : > { %8777 = vst.msk [vmem:[%s10988_s30 + $0xc0] sm:$0xf] %vm8728_vm11, %v8712_v56  ;;  %v8715_v37 = vpack.c.bf16 %v12650_v22, %v12650_v22 }
 0x569   : > { %v12656_v5 = vpop.f32.mrf.mxu1 }
 0x56a   : > { %8780 = vst.msk [vmem:[%s10988_s30 + $0xcc] sm:$0xf] %vm8728_vm11, %v8715_v37  ;;  %v8713_v21 = vpack.c.bf16 %v12656_v5, %v12656_v5  ;;  %v8807_v37 = vadd.f32 %v11470_v16, %v8806_v26 }
 0x56c   : > { %8778 = vst.msk [vmem:[%s10988_s30 + $0xc4] sm:$0xf] %vm8728_vm11, %v8713_v21  ;;  %v8808_v45 = vadd.f32 %v8807_v37, %v11714_v58 }
 0x56e   : > { %v8809_v63 = vadd.f32 %v8808_v45, %v11734_v8 }
 0x570   : > { %v8810_v27 = vadd.f32 %v11708_v39, %v8809_v63 }
 0x572   : > { %v8811_v14 = vadd.f32 %v11726_v47, %v8810_v27 }
 0x574   : > { %v8812_v36 = vadd.f32 %v8811_v14, %v11754_v32  ;;  %v13057_v14 = vld [vmem:[#allocation6_spill] sm:$0xff] }
 0x576   : > { %v8813_v35 = vadd.f32 %v8812_v36, %v11772_v4 }
 0x578   : > { %v8814_v61 = vadd.f32 %v11746_v55, %v8813_v35 }
 0x57a   : > { %v8815_v26 = vadd.f32 %v11764_v60, %v8814_v61  ;;  %v13059_v61 = vld [vmem:[#allocation13_spill] sm:$0xff] }
 0x59b   : > { %v12679_v31 = vpop.f32.mrf.mxu1 }
 0x59c   : > { %13053 = vst [vmem:[#allocation20_spill] sm:$0xff] %v12679_v31  ;;  %v8718_v56 = vpack.c.bf16 %v12679_v31, %v12679_v31 }
 0x59d   : > { %v12684_v21 = vpop.f32.mrf.mxu1 }
 0x59e   : > { %8783 = vst.msk [vmem:[%s10988_s30 + $0xd8] sm:$0xf] %vm8728_vm11, %v8718_v56  ;;  %v8716_v10 = vpack.c.bf16 %v12684_v21, %v12684_v21  ;;  %v8816_v56 = vadd.f32 %v8815_v26, %v11972_v6  ;;  %v13060_v6 = vld [vmem:[#allocation7_spill] sm:$0xff] }
 0x59f   : > { %v12691_v50 = vpop.f32.mrf.mxu1 }
 0x5a0   : > { %13054 = vst [vmem:[#allocation21_spill] sm:$0xff] %v12691_v50  ;;  %8781 = vst.msk [vmem:[%s10988_s30 + $0xd0] sm:$0xf] %vm8728_vm11, %v8716_v10  ;;  %v8719_v3 = vpack.c.bf16 %v12691_v50, %v12691_v50  ;;  %v8817_v37 = vadd.f32 %v8816_v56, %v11990_v51  ;;  %v13061_v51 = vld [vmem:[#allocation12_spill] sm:$0xff] }
 0x5a1   : > { %v12698_v13 = vpop.f32.mrf.mxu1 }
 0x5a2   : > { %13055 = vst [vmem:[#allocation22_spill] sm:$0xff] %v12698_v13  ;;  %8784 = vst.msk [vmem:[%s10988_s30 + $0xdc] sm:$0xf] %vm8728_vm11, %v8719_v3  ;;  %v8717_v12 = vpack.c.bf16 %v12698_v13, %v12698_v13  ;;  %v8818_v10 = vadd.f32 %v11966_v17, %v8817_v37 }
 0x5a4   : > { %8782 = vst.msk [vmem:[%s10988_s30 + $0xd4] sm:$0xf] %vm8728_vm11, %v8717_v12  ;;  %v8819_v45 = vadd.f32 %v11982_v46, %v8818_v10  ;;  %v13056_v12 = vld [vmem:[#allocation11_spill] sm:$0xff] }
 0x5a6   : > { %v8820_v3 = vadd.f32 %v8819_v45, %v12010_v52 }
 0x5a8   : > { %v8821_v63 = vadd.f32 %v8820_v3, %v12032_v33 }
 0x5aa   : > { %v8822_v27 = vadd.f32 %v13056_v12, %v8821_v63 }
 0x5ac   : > { %v8823_v36 = vadd.f32 %v13057_v14, %v8822_v27 }
 0x5ae   : > { %v8824_v35 = vadd.f32 %v8823_v36, %v13058_v34 }
 0x5b0   : > { %v8825_v26 = vadd.f32 %v8824_v35, %v13059_v61 }
 0x5b2   : > { %v8826_v56 = vadd.f32 %v13060_v6, %v8825_v26 }
 0x5b4   : > { %v8827_v37 = vadd.f32 %v13061_v51, %v8826_v56 }
 0x5b6   : > { %v8828_v10 = vadd.f32 %v8827_v37, %v12346_v0 }
 0x5b8   : > { %v8829_v45 = vadd.f32 %v8828_v10, %v12366_v53 }
 0x5ba   : > { %v8830_v3 = vadd.f32 %v12340_v54, %v8829_v45 }
 0x5bc   : > { %v8831_v35 = vadd.f32 %v12354_v18, %v8830_v3 }
 0x5be   : > { %v8832_v37 = vadd.f32 %v8831_v35, %v12512_v40 }
 0x5c0   : > { %v8833_v54 = vadd.f32 %v8832_v37, %v12534_v59 }
 0x5eb   : > { %v12727_v63 = vpop.f32.mrf.mxu1 }
 0x5ec   : > { %13062 = vst [vmem:[#allocation11_spill] sm:$0xff] %v12727_v63  ;;  %v8722_v27 = vpack.c.bf16 %v12727_v63, %v12727_v63 }
 0x5ed   : > { %v12731_v36 = vpop.f32.mrf.mxu1 }
 0x5ee   : > { %13063 = vst [vmem:[#allocation6_spill] sm:$0xff] %v12731_v36  ;;  %8787 = vst.msk [vmem:[%s10988_s30 + $0xe8] sm:$0xf] %vm8728_vm11, %v8722_v27  ;;  %v8720_v26 = vpack.c.bf16 %v12731_v36, %v12731_v36  ;;  %v8834_v27 = vadd.f32 %v12506_v38, %v8833_v54 }
 0x5ef   : > { %v12738_v56 = vpop.f32.mrf.mxu1 }
 0x5f0   : > { %13064 = vst [vmem:[#allocation10_spill] sm:$0xff] %v12738_v56  ;;  %8785 = vst.msk [vmem:[%s10988_s30 + $0xe0] sm:$0xf] %vm8728_vm11, %v8720_v26  ;;  %v8723_v10 = vpack.c.bf16 %v12738_v56, %v12738_v56  ;;  %v8835_v35 = vadd.f32 %v12524_v43, %v8834_v27 }
 0x5f1   : > { %v12745_v45 = vpop.f32.mrf.mxu1 }
 0x5f2   : > { %13065 = vst [vmem:[#allocation13_spill] sm:$0xff] %v12745_v45  ;;  %8788 = vst.msk [vmem:[%s10988_s30 + $0xec] sm:$0xf] %vm8728_vm11, %v8723_v10  ;;  %v8721_v3 = vpack.c.bf16 %v12745_v45, %v12745_v45  ;;  %v8836_v26 = vadd.f32 %v8835_v35, %v12589_v29 }
 0x5f4   : > { %8786 = vst.msk [vmem:[%s10988_s30 + $0xe4] sm:$0xf] %vm8728_vm11, %v8721_v3  ;;  %v8837_v40 = vadd.f32 %v8836_v26, %v12603_v62 }
 0x5f6   : > { %v8838_v18 = vadd.f32 %v12583_v41, %v8837_v40 }
 0x5f8   : > { %v8839_v37 = vadd.f32 %v12595_v9, %v8838_v18 }
 0x5fa   : > { %v8840_v10 = vadd.f32 %v8839_v37, %v12644_v15 }
 0x5fc   : > { %v8841_v59 = vadd.f32 %v8840_v10, %v12656_v5 }
 0x5fe   : > { %v8842_v53 = vadd.f32 %v12640_v7, %v8841_v59 }
 0x600   : > { %v8843_v54 = vadd.f32 %v12650_v22, %v8842_v53 }
 0x602   : > { %v8844_v3 = vadd.f32 %v8843_v54, %v12684_v21 }
 0x604   : > { %v8845_v27 = vadd.f32 %v8844_v3, %v12698_v13 }
 0x606   : > { %v8846_v35 = vadd.f32 %v12679_v31, %v8845_v27 }
 0x608   : > { %v8847_v40 = vadd.f32 %v12691_v50, %v8846_v35 }
 0x60a   : > { %v8848_v18 = vadd.f32 %v8847_v40, %v12731_v36 }
 0x60c   : > { %v8849_v26 = vadd.f32 %v8848_v18, %v12745_v45 }
 0x60e   : > { %v8850_v37 = vadd.f32 %v12727_v63, %v8849_v26 }
 0x610   : > { %v8851_v54 = vadd.f32 %v12738_v56, %v8850_v37 }
 0x627   : > { %v9646_v59 = vpop.f32.mrf.mxu1 }
 0x628   : > { %v8726_v10 = vpack.c.bf16 %v9646_v59, %v9646_v59 }
 0x629   : > { %v8649_v7 = vpop.f32.mrf.mxu1 }
 0x62a   : > { %8791 = vst.msk [vmem:[%s10988_s30 + $0xf8] sm:$0xf] %vm8728_vm11, %v8726_v10  ;;  %v8724_v53 = vpack.c.bf16 %v8649_v7, %v8649_v7  ;;  %v8852_v27 = vadd.f32 %v8851_v54, %v8649_v7 }
 0x62b   : > { %v9647_v3 = vpop.f32.mrf.mxu1 }
 0x62c   : > { %8789 = vst.msk [vmem:[%s10988_s30 + $0xf0] sm:$0xf] %vm8728_vm11, %v8724_v53  ;;  %v8727_v35 = vpack.c.bf16 %v9647_v3, %v9647_v3 }
 0x62d   : > { %v8652_v50 = vpop.f32.mrf.mxu1 }
 0x62e   : > { %8792 = vst.msk [vmem:[%s10988_s30 + $0xfc] sm:$0xf] %vm8728_vm11, %v8727_v35  ;;  %v8725_v40 = vpack.c.bf16 %v8652_v50, %v8652_v50  ;;  %v8853_v18 = vadd.f32 %v8852_v27, %v8652_v50 }
 0x630   : > { %8790 = vst.msk [vmem:[%s10988_s30 + $0xf4] sm:$0xf] %vm8728_vm11, %v8725_v40  ;;  %v8854_v26 = vadd.f32 %v9646_v59, %v8853_v18  ;;  %s9268_s30 = sshll.u32 %s13086_s24, 1 }
 0x631   : > { %s446_s22 = scalar_lea.vmem %s12954_s7, %s9268_s30 }
 0x632   : > { %v8855_v63 = vadd.f32 %v9647_v3, %v8854_v26 }
 0x634   : > { %v8856_v45 = vrot.slane %v8855_v63, 4 }
 0x636   : > { %v8857_v36 = vadd.f32 %v8856_v45, %v8855_v63 }
 0x638   : > { %v8858_v10 = vrot.slane %v8857_v36, 2 }
 0x63a   : > { %v8859_v31 = vadd.f32 %v8858_v10, %v8857_v36 }
 0x63c   : > { %v8860_v13 = vrot.slane %v8859_v31, 1 }
 0x63e   : > { %v8861_v37 = vadd.f32 %v8860_v13, %v8859_v31 }
 0x640   : > { %v12780_v56 = vmul.f32 0.001953125, %v8861_v37 }
 0x642   : > { %v12783_v53 = vsub.f32 %v8649_v7, %v12780_v56  ;;  %v12786_v54 = vsub.f32 %v8652_v50, %v12780_v56  ;;  %v12789_v27 = vsub.f32 %v9646_v59, %v12780_v56  ;;  %v12792_v35 = vsub.f32 %v9647_v3, %v12780_v56 }
 0x643   : > { %v8863_v63 = vsub.f32 %v10998_v28, %v12780_v56  ;;  %v8864_v31 = vsub.f32 %v11018_v23, %v12780_v56  ;;  %v8865_v13 = vsub.f32 %v10990_v2, %v12780_v56  ;;  %v8866_v50 = vsub.f32 %v11008_v57, %v12780_v56 }
 0x644   : > { %v8867_v45 = vsub.f32 %v11044_v42, %v12780_v56  ;;  %v8868_v40 = vsub.f32 %v11062_v25, %v12780_v56  ;;  %v8869_v23 = vsub.f32 %v11038_v30, %v12780_v56  ;;  %v8870_v10 = vsub.f32 %v11054_v19, %v12780_v56 }
 0x645   : > { %v8927_v7 = vmul.f32 %v8863_v63, %v8863_v63  ;;  %v8928_v36 = vmul.f32 %v8864_v31, %v8864_v31  ;;  %v8929_v59 = vmul.f32 %v8865_v13, %v8865_v13  ;;  %v8930_v28 = vmul.f32 %v8866_v50, %v8866_v50  ;;  %v9063_v13 = vld [vmem:[#allocation4] sm:$0x1] }
 0x646   : > { %v8931_v26 = vmul.f32 %v8867_v45, %v8867_v45  ;;  %v8932_v37 = vmul.f32 %v8868_v40, %v8868_v40  ;;  %v8871_v42 = vsub.f32 %v11428_v1, %v12780_v56  ;;  %v8933_v63 = vmul.f32 %v8869_v23, %v8869_v23 }
 0x647   : > { %v8991_v3 = vadd.f32 %v8928_v36, %v8927_v7  ;;  %v12813_v25 = vsub.f32 %v12780_v56, %v9063_v13  ;;  %v8872_v7 = vsub.f32 %v11444_v44, %v12780_v56  ;;  %v8934_v30 = vmul.f32 %v8870_v10, %v8870_v10 }
 0x648   : > { %v8873_v19 = vsub.f32 %v11420_v49, %v12780_v56  ;;  %v8935_v45 = vmul.f32 %v8871_v42, %v8871_v42  ;;  %v8874_v1 = vsub.f32 %v11436_v11, %v12780_v56  ;;  %v8876_v23 = vsub.f32 %v11478_v48, %v12780_v56 }
 0x649   : > { %v8992_v18 = vadd.f32 %v8991_v3, %v8929_v59  ;;  %v9071_v50 = vadd.f32 %v12813_v25, %v9063_v13  ;;  %v8936_v3 = vmul.f32 %v8872_v7, %v8872_v7  ;;  %v8877_v49 = vsub.f32 %v11452_v24, %v12780_v56 }
 0x64a   : > { %v8878_v11 = vsub.f32 %v11470_v16, %v12780_v56  ;;  %v8880_v48 = vsub.f32 %v11734_v8, %v12780_v56  ;;  %v8881_v24 = vsub.f32 %v11708_v39, %v12780_v56  ;;  %v8882_v16 = vsub.f32 %v11726_v47, %v12780_v56 }
 0x64b   : > { %v8993_v2 = vadd.f32 %v8992_v18, %v8930_v28  ;;  %9072 = vst [vmem:[#allocation4] sm:$0x1] %v9071_v50  ;;  %v8875_v28 = vsub.f32 %v11460_v20, %v12780_v56  ;;  %v8937_v18 = vmul.f32 %v8873_v19, %v8873_v19  ;;  %v8879_v20 = vsub.f32 %v11714_v58, %v12780_v56 }
 0x64c   : > { %v8942_v13 = vmul.f32 %v8878_v11, %v8878_v11  ;;  %v8944_v50 = vmul.f32 %v8880_v48, %v8880_v48  ;;  %v8883_v58 = vsub.f32 %v11754_v32, %v12780_v56  ;;  %v8884_v8 = vsub.f32 %v11772_v4, %v12780_v56 }
 0x64d   : > { %v8994_v57 = vadd.f32 %v8993_v2, %v8931_v26  ;;  %v8938_v26 = vmul.f32 %v8874_v1, %v8874_v1  ;;  %v8939_v10 = vmul.f32 %v8875_v28, %v8875_v28  ;;  %v8946_v1 = vmul.f32 %v8882_v16, %v8882_v16 }
 0x64e   : > { %v8885_v39 = vsub.f32 %v11746_v55, %v12780_v56  ;;  %v8886_v47 = vsub.f32 %v11764_v60, %v12780_v56  ;;  %v8889_v55 = vsub.f32 %v11966_v17, %v12780_v56  ;;  %v8890_v60 = vsub.f32 %v11982_v46, %v12780_v56 }
 0x64f   : > { %v8995_v31 = vadd.f32 %v8994_v57, %v8932_v37  ;;  %v8940_v57 = vmul.f32 %v8876_v23, %v8876_v23  ;;  %v13066_v23 = vld [vmem:[#allocation8_spill] sm:$0xff]  ;;  %v8893_v17 = vsub.f32 %v13056_v12, %v12780_v56  ;;  %v8894_v46 = vsub.f32 %v13057_v14, %v12780_v56 }
 0x650   : > { %v8887_v32 = vsub.f32 %v13066_v23, %v12780_v56  ;;  %v8897_v12 = vsub.f32 %v13060_v6, %v12780_v56  ;;  %v8898_v14 = vsub.f32 %v13061_v51, %v12780_v56  ;;  %v13069_v23 = vld [vmem:[#allocation14_spill] sm:$0xff] }
 0x651   : > { %v8996_v36 = vadd.f32 %v8995_v31, %v8933_v63  ;;  %v8941_v63 = vmul.f32 %v8877_v49, %v8877_v49  ;;  %v13067_v49 = vld [vmem:[#allocation9_spill] sm:$0xff]  ;;  %v8901_v6 = vsub.f32 %v13069_v23, %v12780_v56 }
 0x652   : > { %v8888_v4 = vsub.f32 %v13067_v49, %v12780_v56  ;;  %v8951_v11 = vmul.f32 %v8887_v32, %v8887_v32 }
 0x653   : > { %v8997_v59 = vadd.f32 %v8996_v36, %v8934_v30  ;;  %v8943_v30 = vmul.f32 %v8879_v20, %v8879_v20 }
 0x655   : > { %v8998_v40 = vadd.f32 %v8997_v59, %v8935_v45  ;;  %v8945_v45 = vmul.f32 %v8881_v24, %v8881_v24 }
 0x657   : > { %v8999_v44 = vadd.f32 %v8998_v40, %v8936_v3  ;;  %v8947_v40 = vmul.f32 %v8883_v58, %v8883_v58 }
 0x659   : > { %v9000_v2 = vadd.f32 %v8999_v44, %v8937_v18  ;;  %v8948_v18 = vmul.f32 %v8884_v8, %v8884_v8 }
 0x65b   : > { %v9001_v37 = vadd.f32 %v9000_v2, %v8938_v26  ;;  %v8949_v26 = vmul.f32 %v8885_v39, %v8885_v39 }
 0x65d   : > { %v9002_v42 = vadd.f32 %v9001_v37, %v8939_v10  ;;  %v8950_v10 = vmul.f32 %v8886_v47, %v8886_v47  ;;  %v13068_v47 = vld [vmem:[#allocation16_spill] sm:$0xff] }
 0x65f   : > { %v9003_v31 = vadd.f32 %v9002_v42, %v8940_v57  ;;  %v8952_v42 = vmul.f32 %v8888_v4, %v8888_v4 }
 0x661   : > { %v9004_v7 = vadd.f32 %v9003_v31, %v8941_v63  ;;  %v8891_v63 = vsub.f32 %v12010_v52, %v12780_v56  ;;  %v8953_v31 = vmul.f32 %v8889_v55, %v8889_v55  ;;  %v8895_v52 = vsub.f32 %v13058_v34, %v12780_v56 }
 0x662   : > { %v8899_v34 = vsub.f32 %v12346_v0, %v12780_v56 }
 0x663   : > { %v9005_v36 = vadd.f32 %v9004_v7, %v8942_v13  ;;  %v8892_v13 = vsub.f32 %v12032_v33, %v12780_v56  ;;  %v8954_v7 = vmul.f32 %v8890_v60, %v8890_v60  ;;  %v8896_v33 = vsub.f32 %v13059_v61, %v12780_v56 }
 0x664   : > { %v8959_v8 = vmul.f32 %v8895_v52, %v8895_v52  ;;  %v8900_v61 = vsub.f32 %v13068_v47, %v12780_v56  ;;  %v8963_v32 = vmul.f32 %v8899_v34, %v8899_v34 }
 0x665   : > { %v9006_v19 = vadd.f32 %v9005_v36, %v8943_v30  ;;  %v8955_v30 = vmul.f32 %v8891_v63, %v8891_v63  ;;  %v8956_v16 = vmul.f32 %v8892_v13, %v8892_v13 }
 0x666   : > { %v8964_v49 = vmul.f32 %v8900_v61, %v8900_v61 }
 0x667   : > { %v9007_v59 = vadd.f32 %v9006_v19, %v8944_v50  ;;  %v8957_v19 = vmul.f32 %v8893_v17, %v8893_v17 }
 0x669   : > { %v9008_v3 = vadd.f32 %v9007_v59, %v8945_v45  ;;  %v8958_v45 = vmul.f32 %v8894_v46, %v8894_v46 }
 0x66b   : > { %v9009_v28 = vadd.f32 %v9008_v3, %v8946_v1  ;;  %v8960_v3 = vmul.f32 %v8896_v33, %v8896_v33 }
 0x66d   : > { %v9010_v44 = vadd.f32 %v9009_v28, %v8947_v40  ;;  %v8961_v40 = vmul.f32 %v8897_v12, %v8897_v12 }
 0x66f   : > { %v9011_v2 = vadd.f32 %v9010_v44, %v8948_v18  ;;  %v8962_v18 = vmul.f32 %v8898_v14, %v8898_v14 }
 0x671   : > { %v9012_v37 = vadd.f32 %v9011_v2, %v8949_v26  ;;  %v13070_v2 = vld [vmem:[#allocation15_spill] sm:$0xff] }
 0x672   : > { %v8902_v51 = vsub.f32 %v13070_v2, %v12780_v56 }
 0x673   : > { %v9013_v57 = vadd.f32 %v9012_v37, %v8950_v10  ;;  %v13071_v10 = vld [vmem:[#allocation17_spill] sm:$0xff]  ;;  %v8965_v37 = vmul.f32 %v8901_v6, %v8901_v6 }
 0x674   : > { %v8903_v0 = vsub.f32 %v13071_v10, %v12780_v56  ;;  %v8966_v60 = vmul.f32 %v8902_v51, %v8902_v51  ;;  %v13077_v51 = vld [vmem:[#allocation6_spill] sm:$0xff]  ;;  %v13078_v10 = vld [vmem:[#allocation13_spill] sm:$0xff] }
 0x675   : > { %v9014_v20 = vadd.f32 %v9013_v57, %v8951_v11  ;;  %v13072_v11 = vld [vmem:[#allocation18_spill] sm:$0xff] }
 0x676   : > { %v8904_v57 = vsub.f32 %v13072_v11, %v12780_v56  ;;  %v8967_v63 = vmul.f32 %v8903_v0, %v8903_v0  ;;  %v8920_v0 = vsub.f32 %v13078_v10, %v12780_v56  ;;  %v13079_v11 = vld [vmem:[#allocation11_spill] sm:$0xff] }
 0x677   : > { %v9015_v48 = vadd.f32 %v9014_v20, %v8952_v42  ;;  %v8905_v20 = vsub.f32 %v12506_v38, %v12780_v56  ;;  %v8909_v38 = vsub.f32 %v12583_v41, %v12780_v56 }
 0x678   : > { %v8968_v13 = vmul.f32 %v8904_v57, %v8904_v57  ;;  %v8921_v57 = vsub.f32 %v13079_v11, %v12780_v56 }
 0x679   : > { %v9016_v24 = vadd.f32 %v9015_v48, %v8953_v31  ;;  %v8906_v48 = vsub.f32 %v12524_v43, %v12780_v56  ;;  %v8969_v17 = vmul.f32 %v8905_v20, %v8905_v20  ;;  %v8910_v43 = vsub.f32 %v12595_v9, %v12780_v56  ;;  %v13080_v20 = vld [vmem:[#allocation10_spill] sm:$0xff] }
 0x67a   : > { %v8973_v33 = vmul.f32 %v8909_v38, %v8909_v38  ;;  %v8914_v9 = vsub.f32 %v12650_v22, %v12780_v56  ;;  %v8989_v38 = vmul.f32 %v12789_v27, %v12789_v27 }
 0x67b   : > { %v9017_v36 = vadd.f32 %v9016_v24, %v8954_v7  ;;  %v8907_v24 = vsub.f32 %v12589_v29, %v12780_v56  ;;  %v8970_v46 = vmul.f32 %v8906_v48, %v8906_v48  ;;  %v8911_v29 = vsub.f32 %v12644_v15, %v12780_v56 }
 0x67c   : > { %v8915_v15 = vsub.f32 %v12684_v21, %v12780_v56  ;;  %v8978_v47 = vmul.f32 %v8914_v9, %v8914_v9  ;;  %v8919_v21 = vsub.f32 %v13077_v51, %v12780_v56  ;;  %v9094_v9 = vld [vmem:[%s12952_s5] sm:$0x1] }
 0x67d   : > { %v9018_v50 = vadd.f32 %v9017_v36, %v8955_v30  ;;  %v8908_v36 = vsub.f32 %v12603_v62, %v12780_v56  ;;  %v8912_v62 = vsub.f32 %v12656_v5, %v12780_v56 }
 0x67e   : > { %v8979_v23 = vmul.f32 %v8915_v15, %v8915_v15 }
 0x67f   : > { %v9019_v58 = vadd.f32 %v9018_v50, %v8956_v16  ;;  %v8971_v50 = vmul.f32 %v8907_v24, %v8907_v24 }
 0x681   : > { %v9020_v59 = vadd.f32 %v9019_v58, %v8957_v19  ;;  %v8972_v19 = vmul.f32 %v8908_v36, %v8908_v36 }
 0x683   : > { %v9021_v1 = vadd.f32 %v9020_v59, %v8958_v45  ;;  %v8974_v59 = vmul.f32 %v8910_v43, %v8910_v43 }
 0x685   : > { %v9022_v39 = vadd.f32 %v9021_v1, %v8959_v8  ;;  %v13073_v8 = vld [vmem:[#allocation19_spill] sm:$0xff]  ;;  %v8975_v1 = vmul.f32 %v8911_v29, %v8911_v29 }
 0x686   : > { %v8913_v41 = vsub.f32 %v13073_v8, %v12780_v56 }
 0x687   : > { %v9023_v28 = vadd.f32 %v9022_v39, %v8960_v3  ;;  %v8976_v3 = vmul.f32 %v8912_v62, %v8912_v62 }
 0x688   : > { %v8977_v34 = vmul.f32 %v8913_v41, %v8913_v41 }
 0x689   : > { %v9024_v44 = vadd.f32 %v9023_v28, %v8961_v40  ;;  %v13074_v28 = vld [vmem:[#allocation22_spill] sm:$0xff] }
 0x68a   : > { %v8916_v5 = vsub.f32 %v13074_v28, %v12780_v56 }
 0x68b   : > { %v9025_v26 = vadd.f32 %v9024_v44, %v8962_v18  ;;  %v13075_v18 = vld [vmem:[#allocation20_spill] sm:$0xff] }
 0x68c   : > { %v8917_v44 = vsub.f32 %v13075_v18, %v12780_v56 }
 0x68d   : > { %v9026_v4 = vadd.f32 %v9025_v26, %v8963_v32  ;;  %v13076_v32 = vld [vmem:[#allocation21_spill] sm:$0xff]  ;;  %v8980_v26 = vmul.f32 %v8916_v5, %v8916_v5 }
 0x68e   : > { %v8918_v22 = vsub.f32 %v13076_v32, %v12780_v56 }
 0x68f   : > { %v9027_v55 = vadd.f32 %v9026_v4, %v8964_v49  ;;  %v8981_v49 = vmul.f32 %v8917_v44, %v8917_v44 }
 0x691   : > { %v9028_v42 = vadd.f32 %v9027_v55, %v8965_v37  ;;  %v8982_v37 = vmul.f32 %v8918_v22, %v8918_v22 }
 0x693   : > { %v9029_v31 = vadd.f32 %v9028_v42, %v8966_v60  ;;  %v8983_v60 = vmul.f32 %v8919_v21, %v8919_v21 }
 0x695   : > { %v9030_v7 = vadd.f32 %v9029_v31, %v8967_v63  ;;  %v8922_v63 = vsub.f32 %v13080_v20, %v12780_v56  ;;  %v8984_v31 = vmul.f32 %v8920_v0, %v8920_v0  ;;  %v8990_v56 = vmul.f32 %v12792_v35, %v12792_v35 }
 0x697   : > { %v9031_v30 = vadd.f32 %v9030_v7, %v8968_v13  ;;  %v8985_v13 = vmul.f32 %v8921_v57, %v8921_v57  ;;  %v8986_v24 = vmul.f32 %v8922_v63, %v8922_v63 }
 0x699   : > { %v9032_v16 = vadd.f32 %v9031_v30, %v8969_v17  ;;  %v8987_v30 = vmul.f32 %v12783_v53, %v12783_v53 }
 0x69b   : > { %v9033_v52 = vadd.f32 %v9032_v16, %v8970_v46  ;;  %v8988_v46 = vmul.f32 %v12786_v54, %v12786_v54  ;;  %v9073_v54 = vld [vmem:[#allocation5] sm:$0x1] }
 0x69d   : > { %v9034_v58 = vadd.f32 %v9033_v52, %v8971_v50 }
 0x69f   : > { %v9035_v45 = vadd.f32 %v9034_v58, %v8972_v19 }
 0x6a1   : > { %v9036_v12 = vadd.f32 %v9035_v45, %v8973_v33  ;;  %v9075_v45 = vmul.f32 %v12813_v25, %v12813_v25 }
 0x6a3   : > { %v9037_v14 = vadd.f32 %v9036_v12, %v8974_v59  ;;  %v9082_v12 = vmul.f32 0.0, %v9075_v45 }
 0x6a5   : > { %v9038_v39 = vadd.f32 %v9037_v14, %v8975_v1  ;;  %v9092_v1 = vld [vmem:[%s12951_s4] sm:$0x1] }
 0x6a7   : > { %v9039_v40 = vadd.f32 %v9038_v39, %v8976_v3  ;;  %v9095_v3 = vld [vmem:[#allocation4] sm:$0x1] }
 0x6a9   : > { %v9040_v61 = vadd.f32 %v9039_v40, %v8977_v34 }
 0x6ab   : > { %v9041_v6 = vadd.f32 %v9040_v61, %v8978_v47 }
 0x6ad   : > { %v9042_v2 = vadd.f32 %v9041_v6, %v8979_v23 }
 0x6af   : > { %v9043_v4 = vadd.f32 %v9042_v2, %v8980_v26 }
 0x6b1   : > { %v9044_v55 = vadd.f32 %v9043_v4, %v8981_v49 }
 0x6b3   : > { %v9045_v42 = vadd.f32 %v9044_v55, %v8982_v37 }
 0x6b5   : > { %v9046_v48 = vadd.f32 %v9045_v42, %v8983_v60 }
 0x6b7   : > { %v9047_v7 = vadd.f32 %v9046_v48, %v8984_v31 }
 0x6b9   : > { %v9048_v17 = vadd.f32 %v9047_v7, %v8985_v13 }
 0x6bb   : > { %v9049_v36 = vadd.f32 %v9048_v17, %v8986_v24 }
 0x6bd   : > { %v9050_v16 = vadd.f32 %v9049_v36, %v8987_v30 }
 0x6bf   : > { %v9051_v50 = vadd.f32 %v9050_v16, %v8988_v46 }
 0x6c1   : > { %v9052_v52 = vadd.f32 %v9051_v50, %v8989_v38 }
 0x6c3   : > { %v9053_v43 = vadd.f32 %v9052_v52, %v8990_v56 }
 0x6c5   : > { %v9054_v19 = vrot.slane %v9053_v43, 4 }
 0x6c7   : > { %v9055_v58 = vadd.f32 %v9054_v19, %v9053_v43 }
 0x6c9   : > { %v9056_v29 = vrot.slane %v9055_v58, 2 }
 0x6cb   : > { %v9057_v33 = vadd.f32 %v9056_v29, %v9055_v58 }
 0x6cd   : > { %v9058_v53 = vrot.slane %v9057_v33, 1 }
 0x6cf   : > { %v9059_v62 = vadd.f32 %v9058_v53, %v9057_v33 }
 0x6d1   : > { %v9074_v59 = vadd.f32 %v9073_v54, %v9059_v62 }
 0x6d3   : > { %v9083_v27 = vadd.f32 %v9082_v12, %v9074_v59 }
 0x6d5   : > { %9084 = vst [vmem:[#allocation5] sm:$0x1] %v9083_v27 }
 0x6dc   : > { %v9088_v8 = vld [vmem:[#allocation5] sm:$0x1] }
 0x6dd   : > { %v9089_v41 = vmul.f32 0.001953125, %v9088_v8 }
 0x6df   : > { %v9090_v35 = vadd.f32 1e-05, %v9089_v41 }
 0x6e1   : > { %9761 = vrsqrt.f32 %v9090_v35 }
 0x6ee   : > { %v9762_v14 = vpop.eup %9761 }
 0x6ef   : > { %v9093_v25 = vmul.f32 %v9762_v14, %v9092_v1 }
 0x6f1   : > { %v9096_v39 = vmul.f32 %v9095_v3, %v9093_v25  ;;  %9099 = vst.msk [vmem:[%s446_s22] sm:$0x1] %vm9098_vm4, %v9093_v25 }
 0x6f3   : > { %v9097_v15 = vsub.f32 %v9094_v9, %v9096_v39 }
 0x6f5   : > { %9100 = vst.msk [vmem:[%s446_s22 + $0x1] sm:$0x1] %vm9098_vm4, %v9097_v15 }
 0x6f6 PF: > { %s18_s2 = sadd.s32 1, %s9785_s2   ;;  %s13081_s24 = smov %s9781_s1 }
 0x6f7   : > { %p15_p5 = scmp.ge.s32.totalorder %s18_s2, 4   ;;  %s13082_s1 = smov %s13084_s25 }
 0x6f9   :  { %17 = sbr.rel (!%p15_p5) target bundleno = 2 (0x2), region = 111 }

</bundles_post_ra>
